<compile_context>
chip_gen: v5e
topology: v5e:2x2
jax: 0.10.0
libtpu: 0.0.40
codegen_flags: <defaults>
</compile_context>

<pallas_src>
import jax
import jax.numpy as jnp
from jax import lax
from jax.experimental import pallas as pl
from jax.experimental.pallas import tpu as pltpu


def _round_up(n, m):
    return ((n + m - 1) // m) * m


def _gru_chunk_kernel(x_ref, h0_ref, wih_ref, whh_ref, bgi_ref, bhn_ref,
                      out_ref, h_scratch, gi_scratch):
    """One (batch block, time chunk) of the GRU recurrence.

    x_ref      : (Bb, Tc, Hp) f32   input slab (batch-first; x is never transposed)
    h0_ref     : (Bb, Hp)           initial hidden for this batch block
    wih_ref    : (Hp, 3Hp)          W_ih^T, gate-blocked & lane-padded
    whh_ref    : (Hp, 3Hp)          W_hh^T, gate-blocked & lane-padded
    bgi_ref    : (1, 3Hp) f32       b_ih with the r/z parts of b_hh folded in
    bhn_ref    : (1, Hp)  f32       b_hn (must stay inside the r* multiply)
    out_ref    : (Bb, Tc, Hp) f32   per-step hidden states, batch-first
    h_scratch  : (Bb, Hp) f32       hidden carried across time chunks
    gi_scratch : (Bb, Tc, 3Hp) f32  chunk-wide input projection
    """
    c = pl.program_id(1)                      # time-chunk index (sequential)

    @pl.when(c == 0)
    def _():
        h_scratch[...] = h0_ref[...].astype(jnp.float32)

    Bb, t_chunk, Hp = x_ref.shape

    # --- Fused input projection for the whole chunk (off the serial path) ---
    # One large MXU matmul; gi lives only in VMEM (no HBM round trip).
    wih = wih_ref[...]
    x2 = x_ref[...].reshape(Bb * t_chunk, Hp).astype(wih.dtype)
    gi = jnp.dot(x2, wih, preferred_element_type=jnp.float32) + bgi_ref[...]
    gi_scratch[...] = gi.reshape(Bb, t_chunk, 3 * Hp)

    # TODO(synk): for H <= ~256 the W_hh^T weights could be held resident in
    # the MXU across the serial steps (pltpu.matmul_push_rhs / matmul_acc_lhs /
    # matmul_pop); kept as a plain per-step jnp.dot for portability.
    def step(t, h_prev):
        g = gi_scratch[:, t, :]                                   # (Bb, 3Hp)
        # Only the h-dependent projection sits on the serial critical path.
        # W_hh^T is streamed from VMEM per step (no giant live value across
        # the unrolled loop -> avoids vreg spills at large H).
        gh = jnp.dot(h_prev.astype(whh_ref.dtype), whh_ref[...],
                     preferred_element_type=jnp.float32)          # (Bb, 3Hp)
        # PyTorch gate order r, z, n; slices are lane-tile aligned (Hp % 128 == 0).
        r = jax.nn.sigmoid(g[:, 0:Hp] + gh[:, 0:Hp])
        z = jax.nn.sigmoid(g[:, Hp:2 * Hp] + gh[:, Hp:2 * Hp])
        n = jnp.tanh(g[:, 2 * Hp:] + r * (gh[:, 2 * Hp:] + bhn_ref[...]))
        h_new = (1.0 - z) * n + z * h_prev
        out_ref[:, t, :] = h_new.astype(out_ref.dtype)
        return h_new

    unroll = min(t_chunk, 8 if Hp <= 512 else 2)
    h_scratch[...] = lax.fori_loop(0, t_chunk, step, h_scratch[...],
                                   unroll=unroll)


def _pack_gate_weight_T(w, H, Hp, dtype):
    """(3H, H) PyTorch gate-stacked weight -> (Hp, 3*Hp) transposed, lane-padded."""
    out = jnp.zeros((Hp, 3 * Hp), dtype)
    for g in range(3):
        out = out.at[:H, g * Hp:g * Hp + H].set(
            jnp.transpose(w[g * H:(g + 1) * H, :]).astype(dtype))
    return out


def _pack_gate_bias(gate_vals, H, Hp):
    """[b_r, b_z, b_n] each (H,) -> (1, 3*Hp) lane-padded row."""
    out = jnp.zeros((1, 3 * Hp), jnp.float32)
    for g, v in enumerate(gate_vals):
        out = out.at[0, g * Hp:g * Hp + H].set(v.astype(jnp.float32))
    return out


def encoder_rnn_forward(x_btH, params, initial_hidden=None, *,
                        t_chunk_target=64, matmul_dtype=jnp.float32,
                        vmem_budget_bytes=40 * 1024 * 1024):
    """x_btH: (B, T, H) float. Returns (output (B,T,H) f32, hidden (1,B,H) f32)."""
    B, T, H = x_btH.shape
    w_ih, w_hh = params["w_ih"], params["w_hh"]
    b_ih, b_hh = params["b_ih"], params["b_hh"]

    Hp = _round_up(H, 128)            # lane-align gates / output stores
    B_pad = _round_up(B, 8)           # sublane-align batch
    # Batch-block axis: lets v7x's 2 TensorCores split the batch ("parallel");
    # on v5e/v6e it is just an outer loop.  Only split when blocks stay >= 8.
    b_block = B_pad // 2 if (B_pad >= 16 and B_pad % 16 == 0) else B_pad
    n_b = B_pad // b_block

    w_bytes = jnp.dtype(matmul_dtype).itemsize

    def vmem_estimate(tc):
        x_blk = b_block * tc * Hp * 4
        out_blk = b_block * tc * Hp * 4
        gi_scr = b_block * tc * 3 * Hp * 4
        h_scr = b_block * Hp * 4
        h0_blk = b_block * Hp * 4
        w_blk = 2 * Hp * 3 * Hp * w_bytes
        bias_blk = 4 * Hp * 4
        # pipelined operands are double-buffered by default
        return 2 * (x_blk + out_blk + h0_blk + w_blk + bias_blk) + gi_scr + h_scr

    # Time chunking: pad T up instead of collapsing to tiny chunks (keeps the
    # big-slab write path even for prime T); shrink until the working set fits
    # the per-generation VMEM budget (v7x: 64 MiB physical; v5e: 16 MiB scoped
    # default, raised below via vmem_limit_bytes).
    t_chunk = min(_round_up(t_chunk_target, 8), _round_up(T, 8))
    while t_chunk > 8 and vmem_estimate(t_chunk) > vmem_budget_bytes:
        t_chunk = max(8, _round_up(t_chunk // 2, 8))
    T_pad = _round_up(T, t_chunk)
    n_c = T_pad // t_chunk
    vmem_limit = int(min(64 * 1024 * 1024,
                         max(vmem_estimate(t_chunk) * 3 // 2 + (4 << 20),
                             16 * 1024 * 1024)))

    # --- operand prep: gate-blocked, lane-padded --------------------------
    wih_t = _pack_gate_weight_T(w_ih, H, Hp, matmul_dtype)         # (Hp, 3Hp)
    whh_t = _pack_gate_weight_T(w_hh, H, Hp, matmul_dtype)         # (Hp, 3Hp)
    # Fold r/z parts of b_hh into the input-projection bias; b_hn must stay
    # inside the r* multiply (PyTorch semantics), so it is passed separately.
    bgi = _pack_gate_bias([b_ih[0:H] + b_hh[0:H],
                           b_ih[H:2 * H] + b_hh[H:2 * H],
                           b_ih[2 * H:3 * H]], H, Hp)              # (1, 3Hp)
    bhn = jnp.zeros((1, Hp), jnp.float32).at[0, :H].set(
        b_hh[2 * H:3 * H].astype(jnp.float32))                     # (1, Hp)

    x_p = jnp.zeros((B_pad, T_pad, Hp), jnp.float32)
    x_p = x_p.at[:B, :T, :H].set(x_btH.astype(jnp.float32))

    if initial_hidden is None:
        h0_p = jnp.zeros((B_pad, Hp), jnp.float32)
    else:
        h0 = initial_hidden.reshape(B, H).astype(jnp.float32)
        h0_p = jnp.zeros((B_pad, Hp), jnp.float32).at[:B, :H].set(h0)

    # TODO(synk): the constant-index operands (W_ih^T, W_hh^T, biases, h0)
    # could be single-buffered via pipeline_mode=pl.Buffered(1) to reclaim
    # VMEM at large H; omitted here for maximal lowering portability.
    out_full = pl.pallas_call(
        _gru_chunk_kernel,
        out_shape=jax.ShapeDtypeStruct((B_pad, T_pad, Hp), jnp.float32),
        grid_spec=pltpu.PrefetchScalarGridSpec(
            num_scalar_prefetch=0,
            grid=(n_b, n_c),                      # time (carried h) innermost
            in_specs=[
                pl.BlockSpec((b_block, t_chunk, Hp), lambda b, c: (b, c, 0)),  # x
                pl.BlockSpec((b_block, Hp), lambda b, c: (b, 0)),              # h0
                pl.BlockSpec((Hp, 3 * Hp), lambda b, c: (0, 0)),               # W_ih^T
                pl.BlockSpec((Hp, 3 * Hp), lambda b, c: (0, 0)),               # W_hh^T
                pl.BlockSpec((1, 3 * Hp), lambda b, c: (0, 0)),                # bias(gi)
                pl.BlockSpec((1, Hp), lambda b, c: (0, 0)),                    # b_hn
            ],
            out_specs=pl.BlockSpec((b_block, t_chunk, Hp),
                                   lambda b, c: (b, c, 0)),
            scratch_shapes=[
                pltpu.VMEM((b_block, Hp), jnp.float32),               # carried h
                pltpu.VMEM((b_block, t_chunk, 3 * Hp), jnp.float32),  # chunk gi
            ],
        ),
        compiler_params=pltpu.CompilerParams(
            dimension_semantics=("parallel", "arbitrary"),
            vmem_limit_bytes=vmem_limit),
    )(x_p, h0_p, wih_t, whh_t, bgi, bhn)

    output = out_full[:B, :T, :H]                   # batch-first; no HBM transpose
    hidden = out_full[:B, T - 1, :H][None]          # h_T == last real output step
    return output.astype(jnp.float32), hidden.astype(jnp.float32)


def _gru_reference(x_btH, params, h0=None):
    """Pure-JAX f32 reference (PyTorch GRU semantics) for validation."""
    B, T, H = x_btH.shape
    w_ih, w_hh = params["w_ih"], params["w_hh"]
    b_ih, b_hh = params["b_ih"], params["b_hh"]
    h = jnp.zeros((B, H), jnp.float32) if h0 is None else h0.reshape(B, H)

    def step(h, x_t):
        gi = x_t @ w_ih.T + b_ih
        gh = h @ w_hh.T + b_hh
        i_r, i_z, i_n = jnp.split(gi, 3, axis=-1)
        h_r, h_z, h_n = jnp.split(gh, 3, axis=-1)
        r = jax.nn.sigmoid(i_r + h_r)
        z = jax.nn.sigmoid(i_z + h_z)
        n = jnp.tanh(i_n + r * h_n)
        h_new = (1.0 - z) * n + z * h
        return h_new, h_new

    h_last, outs = jax.lax.scan(step, h, jnp.transpose(x_btH, (1, 0, 2)))
    return jnp.transpose(outs, (1, 0, 2)), h_last[None]


def init_params(key, hidden_size):
    """nn.GRU-shaped params, uniform(-1/sqrt(H), 1/sqrt(H))."""
    H = hidden_size
    k = 1.0 / jnp.sqrt(jnp.float32(H))
    ks = jax.random.split(key, 4)
    return {
        "w_ih": jax.random.uniform(ks[0], (3 * H, H), jnp.float32, -k, k),
        "w_hh": jax.random.uniform(ks[1], (3 * H, H), jnp.float32, -k, k),
        "b_ih": jax.random.uniform(ks[2], (3 * H,), jnp.float32, -k, k),
        "b_hh": jax.random.uniform(ks[3], (3 * H,), jnp.float32, -k, k),
    }


if __name__ == "__main__":
    B, T, H = 2, 8, 32  # batch=2, seq=8, hidden=32 (GRU input_size == hidden)
    key = jax.random.PRNGKey(0)
    kx, kp, kh = jax.random.split(key, 3)

    x = jax.random.normal(kx, (B, T, H), jnp.float32)
    params = init_params(kp, H)

    # Default f32 path (no bf16 dots anywhere -> runs on any backend).
    out, hid = encoder_rnn_forward(x, params, initial_hidden=None)
    out, hid = jax.block_until_ready((out, hid))
    ref_out, ref_hid = _gru_reference(x, params)
    assert out.shape == (B, T, H) and hid.shape == (1, B, H)
    assert jnp.allclose(out, ref_out, atol=1e-3, rtol=1e-3)
    assert jnp.allclose(hid, ref_hid, atol=1e-3, rtol=1e-3)

    # With a provided initial hidden state (PyTorch (1, B, H) layout).
    h0 = jax.random.normal(kh, (1, B, H), jnp.float32)
    out2, hid2 = encoder_rnn_forward(x, params, initial_hidden=h0)
    out2, hid2 = jax.block_until_ready((out2, hid2))
    ref_out2, ref_hid2 = _gru_reference(x, params, h0)
    assert jnp.allclose(out2, ref_out2, atol=1e-3, rtol=1e-3)
    assert jnp.allclose(hid2, ref_hid2, atol=1e-3, rtol=1e-3)

    print("KERNEL_OK")
</pallas_src>

<mosaic_0001>
module attributes {stable_mosaic.version = 11 : i64} {
  func.func @_gru_chunk_kernel(%arg0: i32, %arg1: i32, %arg2: memref<8x8x128xf32, #tpu.memory_space<vmem>>, %arg3: memref<8x128xf32, #tpu.memory_space<vmem>>, %arg4: memref<128x384xf32, #tpu.memory_space<vmem>>, %arg5: memref<128x384xf32, #tpu.memory_space<vmem>>, %arg6: memref<1x384xf32, #tpu.memory_space<vmem>>, %arg7: memref<1x128xf32, #tpu.memory_space<vmem>>, %arg8: memref<8x8x128xf32, #tpu.memory_space<vmem>>, %arg9: memref<8x128xf32, #tpu.memory_space<vmem>>, %arg10: memref<8x8x384xf32, #tpu.memory_space<vmem>>) attributes {dimension_semantics = [#tpu.dimension_semantics<parallel>, #tpu.dimension_semantics<arbitrary>], iteration_bounds = array<i64: 1, 1>, scalar_prefetch = 0 : i64, scratch_operands = 2 : i64, tpu.core_type = #tpu.core_type<tc>, window_params = [{transform_indices = @transform_0, window_bounds = array<i64: 8, 8, 128>}, {transform_indices = @transform_1, window_bounds = array<i64: 8, 128>}, {pipeline_mode = #tpu.pipeline_mode<synchronous>, transform_indices = @transform_2, window_bounds = array<i64: 128, 384>}, {pipeline_mode = #tpu.pipeline_mode<synchronous>, transform_indices = @transform_3, window_bounds = array<i64: 128, 384>}, {pipeline_mode = #tpu.pipeline_mode<synchronous>, transform_indices = @transform_4, window_bounds = array<i64: 1, 384>}, {pipeline_mode = #tpu.pipeline_mode<synchronous>, transform_indices = @transform_5, window_bounds = array<i64: 1, 128>}, {transform_indices = @transform_6, window_bounds = array<i64: 8, 8, 128>}]} {
    %c0_i32 = arith.constant 0 : i32
    %0 = arith.cmpi eq, %arg1, %c0_i32 : i32
    %1 = arith.extui %0 : i1 to i32
    %c0_i32_0 = arith.constant 0 : i32
    %2 = arith.cmpi ne, %1, %c0_i32_0 : i32
    scf.if %2 {
      %c0_111 = arith.constant 0 : index
      %c0_112 = arith.constant 0 : index
      %318 = vector.load %arg3[%c0_111, %c0_112] : memref<8x128xf32, #tpu.memory_space<vmem>>, vector<8x128xf32>
      %c0_113 = arith.constant 0 : index
      %c0_114 = arith.constant 0 : index
      %319 = vector.load %arg9[%c0_113, %c0_114] : memref<8x128xf32, #tpu.memory_space<vmem>>, vector<8x128xf32>
      tpu.vector_store %arg9[%c0_113, %c0_114], %318 {strides = array<i32>} : memref<8x128xf32, #tpu.memory_space<vmem>>, vector<8x128xf32>,
    } else {
    }
    %c0 = arith.constant 0 : index
    %c0_1 = arith.constant 0 : index
    %3 = vector.load %arg4[%c0, %c0_1] : memref<128x384xf32, #tpu.memory_space<vmem>>, vector<128x384xf32>
    %c0_2 = arith.constant 0 : index
    %c0_3 = arith.constant 0 : index
    %c0_4 = arith.constant 0 : index
    %4 = vector.load %arg2[%c0_2, %c0_3, %c0_4] : memref<8x8x128xf32, #tpu.memory_space<vmem>>, vector<8x8x128xf32>
    %5 = vector.shape_cast %4 : vector<8x8x128xf32> to vector<64x128xf32>
    %cst = arith.constant dense<0.000000e+00> : vector<64x384xf32>
    %6 = tpu.matmul %5, %3, %cst {dimension_numbers = #tpu.dot_dimension_numbers<[1], [0], [0], [1], [0, 0, 1, 1], [], []>} : vector<64x128xf32>, vector<128x384xf32>, vector<64x384xf32> -> vector<64x384xf32>
    %c0_5 = arith.constant 0 : index
    %c0_6 = arith.constant 0 : index
    %7 = vector.load %arg6[%c0_5, %c0_6] : memref<1x384xf32, #tpu.memory_space<vmem>>, vector<1x384xf32>
    %8 = vector.broadcast %7 : vector<1x384xf32> to vector<64x384xf32>
    %9 = arith.addf %6, %8 : vector<64x384xf32>
    %10 = vector.shape_cast %9 : vector<64x384xf32> to vector<8x8x384xf32>
    %c0_7 = arith.constant 0 : index
    %c0_8 = arith.constant 0 : index
    %c0_9 = arith.constant 0 : index
    %11 = vector.load %arg10[%c0_7, %c0_8, %c0_9] : memref<8x8x384xf32, #tpu.memory_space<vmem>>, vector<8x8x384xf32>
    tpu.vector_store %arg10[%c0_7, %c0_8, %c0_9], %10 {strides = array<i32>} : memref<8x8x384xf32, #tpu.memory_space<vmem>>, vector<8x8x384xf32>,
    %c0_10 = arith.constant 0 : index
    %c0_11 = arith.constant 0 : index
    %12 = vector.load %arg9[%c0_10, %c0_11] : memref<8x128xf32, #tpu.memory_space<vmem>>, vector<8x128xf32>
    %c0_i32_12 = arith.constant 0 : i32
    %c0_13 = arith.constant 0 : index
    %13 = arith.index_cast %c0_i32_12 : i32 to index
    %c0_14 = arith.constant 0 : index
    %14 = vector.load %arg10[%c0_13, %13, %c0_14] : memref<8x8x384xf32, #tpu.memory_space<vmem>>, vector<8x1x384xf32>
    %15 = vector.shape_cast %14 : vector<8x1x384xf32> to vector<8x384xf32>
    %c0_15 = arith.constant 0 : index
    %c0_16 = arith.constant 0 : index
    %16 = vector.load %arg5[%c0_15, %c0_16] : memref<128x384xf32, #tpu.memory_space<vmem>>, vector<128x384xf32>
    %cst_17 = arith.constant dense<0.000000e+00> : vector<8x384xf32>
    %17 = tpu.matmul %12, %16, %cst_17 {dimension_numbers = #tpu.dot_dimension_numbers<[1], [0], [0], [1], [0, 0, 1, 1], [], []>} : vector<8x128xf32>, vector<128x384xf32>, vector<8x384xf32> -> vector<8x384xf32>
    %18 = vector.extract_strided_slice %15 {offsets = [0, 0], sizes = [8, 128], strides = [1, 1]} : vector<8x384xf32> to vector<8x128xf32>
    %19 = vector.extract_strided_slice %17 {offsets = [0, 0], sizes = [8, 128], strides = [1, 1]} : vector<8x384xf32> to vector<8x128xf32>
    %20 = arith.addf %18, %19 : vector<8x128xf32>
    %21 = arith.negf %20 : vector<8x128xf32>
    %22 = math.exp %21 : vector<8x128xf32>
    %cst_18 = arith.constant 1.000000e+00 : f32
    %23 = vector.broadcast %cst_18 : f32 to vector<8x128xf32>
    %24 = arith.addf %23, %22 : vector<8x128xf32>
    %25 = arith.divf %23, %24 : vector<8x128xf32>
    %26 = vector.extract_strided_slice %15 {offsets = [0, 128], sizes = [8, 128], strides = [1, 1]} : vector<8x384xf32> to vector<8x128xf32>
    %27 = vector.extract_strided_slice %17 {offsets = [0, 128], sizes = [8, 128], strides = [1, 1]} : vector<8x384xf32> to vector<8x128xf32>
    %28 = arith.addf %26, %27 : vector<8x128xf32>
    %29 = arith.negf %28 : vector<8x128xf32>
    %30 = math.exp %29 : vector<8x128xf32>
    %cst_19 = arith.constant 1.000000e+00 : f32
    %31 = vector.broadcast %cst_19 : f32 to vector<8x128xf32>
    %32 = arith.addf %31, %30 : vector<8x128xf32>
    %33 = arith.divf %31, %32 : vector<8x128xf32>
    %34 = vector.extract_strided_slice %15 {offsets = [0, 256], sizes = [8, 128], strides = [1, 1]} : vector<8x384xf32> to vector<8x128xf32>
    %35 = vector.extract_strided_slice %17 {offsets = [0, 256], sizes = [8, 128], strides = [1, 1]} : vector<8x384xf32> to vector<8x128xf32>
    %c0_20 = arith.constant 0 : index
    %c0_21 = arith.constant 0 : index
    %36 = vector.load %arg7[%c0_20, %c0_21] : memref<1x128xf32, #tpu.memory_space<vmem>>, vector<1x128xf32>
    %37 = vector.broadcast %36 : vector<1x128xf32> to vector<8x128xf32>
    %38 = arith.addf %35, %37 : vector<8x128xf32>
    %39 = arith.mulf %25, %38 : vector<8x128xf32>
    %40 = arith.addf %34, %39 : vector<8x128xf32>
    %41 = math.tanh %40 : vector<8x128xf32>
    %cst_22 = arith.constant 1.000000e+00 : f32
    %42 = vector.broadcast %cst_22 : f32 to vector<8x128xf32>
    %43 = arith.subf %42, %33 : vector<8x128xf32>
    %44 = arith.mulf %43, %41 : vector<8x128xf32>
    %45 = arith.mulf %33, %12 : vector<8x128xf32>
    %46 = arith.addf %44, %45 : vector<8x128xf32>
    %c0_23 = arith.constant 0 : index
    %47 = arith.index_cast %c0_i32_12 : i32 to index
    %c0_24 = arith.constant 0 : index
    %48 = vector.load %arg8[%c0_23, %47, %c0_24] : memref<8x8x128xf32, #tpu.memory_space<vmem>>, vector<8x1x128xf32>
    %49 = vector.shape_cast %48 : vector<8x1x128xf32> to vector<8x128xf32>
    %50 = vector.shape_cast %46 : vector<8x128xf32> to vector<8x1x128xf32>
    tpu.vector_store %arg8[%c0_23, %47, %c0_24], %50 {strides = array<i32>} : memref<8x8x128xf32, #tpu.memory_space<vmem>>, vector<8x1x128xf32>,
    %c1_i32 = arith.constant 1 : i32
    %c0_25 = arith.constant 0 : index
    %51 = arith.index_cast %c1_i32 : i32 to index
    %c0_26 = arith.constant 0 : index
    %52 = vector.load %arg10[%c0_25, %51, %c0_26] : memref<8x8x384xf32, #tpu.memory_space<vmem>>, vector<8x1x384xf32>
    %53 = vector.shape_cast %52 : vector<8x1x384xf32> to vector<8x384xf32>
    %c0_27 = arith.constant 0 : index
    %c0_28 = arith.constant 0 : index
    %54 = vector.load %arg5[%c0_27, %c0_28] : memref<128x384xf32, #tpu.memory_space<vmem>>, vector<128x384xf32>
    %cst_29 = arith.constant dense<0.000000e+00> : vector<8x384xf32>
    %55 = tpu.matmul %46, %54, %cst_29 {dimension_numbers = #tpu.dot_dimension_numbers<[1], [0], [0], [1], [0, 0, 1, 1], [], []>} : vector<8x128xf32>, vector<128x384xf32>, vector<8x384xf32> -> vector<8x384xf32>
    %56 = vector.extract_strided_slice %53 {offsets = [0, 0], sizes = [8, 128], strides = [1, 1]} : vector<8x384xf32> to vector<8x128xf32>
    %57 = vector.extract_strided_slice %55 {offsets = [0, 0], sizes = [8, 128], strides = [1, 1]} : vector<8x384xf32> to vector<8x128xf32>
    %58 = arith.addf %56, %57 : vector<8x128xf32>
    %59 = arith.negf %58 : vector<8x128xf32>
    %60 = math.exp %59 : vector<8x128xf32>
    %cst_30 = arith.constant 1.000000e+00 : f32
    %61 = vector.broadcast %cst_30 : f32 to vector<8x128xf32>
    %62 = arith.addf %61, %60 : vector<8x128xf32>
    %63 = arith.divf %61, %62 : vector<8x128xf32>
    %64 = vector.extract_strided_slice %53 {offsets = [0, 128], sizes = [8, 128], strides = [1, 1]} : vector<8x384xf32> to vector<8x128xf32>
    %65 = vector.extract_strided_slice %55 {offsets = [0, 128], sizes = [8, 128], strides = [1, 1]} : vector<8x384xf32> to vector<8x128xf32>
    %66 = arith.addf %64, %65 : vector<8x128xf32>
    %67 = arith.negf %66 : vector<8x128xf32>
    %68 = math.exp %67 : vector<8x128xf32>
    %cst_31 = arith.constant 1.000000e+00 : f32
    %69 = vector.broadcast %cst_31 : f32 to vector<8x128xf32>
    %70 = arith.addf %69, %68 : vector<8x128xf32>
    %71 = arith.divf %69, %70 : vector<8x128xf32>
    %72 = vector.extract_strided_slice %53 {offsets = [0, 256], sizes = [8, 128], strides = [1, 1]} : vector<8x384xf32> to vector<8x128xf32>
    %73 = vector.extract_strided_slice %55 {offsets = [0, 256], sizes = [8, 128], strides = [1, 1]} : vector<8x384xf32> to vector<8x128xf32>
    %c0_32 = arith.constant 0 : index
    %c0_33 = arith.constant 0 : index
    %74 = vector.load %arg7[%c0_32, %c0_33] : memref<1x128xf32, #tpu.memory_space<vmem>>, vector<1x128xf32>
    %75 = vector.broadcast %74 : vector<1x128xf32> to vector<8x128xf32>
    %76 = arith.addf %73, %75 : vector<8x128xf32>
    %77 = arith.mulf %63, %76 : vector<8x128xf32>
    %78 = arith.addf %72, %77 : vector<8x128xf32>
    %79 = math.tanh %78 : vector<8x128xf32>
    %cst_34 = arith.constant 1.000000e+00 : f32
    %80 = vector.broadcast %cst_34 : f32 to vector<8x128xf32>
    %81 = arith.subf %80, %71 : vector<8x128xf32>
    %82 = arith.mulf %81, %79 : vector<8x128xf32>
    %83 = arith.mulf %71, %46 : vector<8x128xf32>
    %84 = arith.addf %82, %83 : vector<8x128xf32>
    %c0_35 = arith.constant 0 : index
    %85 = arith.index_cast %c1_i32 : i32 to index
    %c0_36 = arith.constant 0 : index
    %86 = vector.load %arg8[%c0_35, %85, %c0_36] : memref<8x8x128xf32, #tpu.memory_space<vmem>>, vector<8x1x128xf32>
    %87 = vector.shape_cast %86 : vector<8x1x128xf32> to vector<8x128xf32>
    %88 = vector.shape_cast %84 : vector<8x128xf32> to vector<8x1x128xf32>
    tpu.vector_store %arg8[%c0_35, %85, %c0_36], %88 {strides = array<i32>} : memref<8x8x128xf32, #tpu.memory_space<vmem>>, vector<8x1x128xf32>,
    %c2_i32 = arith.constant 2 : i32
    %c0_37 = arith.constant 0 : index
    %89 = arith.index_cast %c2_i32 : i32 to index
    %c0_38 = arith.constant 0 : index
    %90 = vector.load %arg10[%c0_37, %89, %c0_38] : memref<8x8x384xf32, #tpu.memory_space<vmem>>, vector<8x1x384xf32>
    %91 = vector.shape_cast %90 : vector<8x1x384xf32> to vector<8x384xf32>
    %c0_39 = arith.constant 0 : index
    %c0_40 = arith.constant 0 : index
    %92 = vector.load %arg5[%c0_39, %c0_40] : memref<128x384xf32, #tpu.memory_space<vmem>>, vector<128x384xf32>
    %cst_41 = arith.constant dense<0.000000e+00> : vector<8x384xf32>
    %93 = tpu.matmul %84, %92, %cst_41 {dimension_numbers = #tpu.dot_dimension_numbers<[1], [0], [0], [1], [0, 0, 1, 1], [], []>} : vector<8x128xf32>, vector<128x384xf32>, vector<8x384xf32> -> vector<8x384xf32>
    %94 = vector.extract_strided_slice %91 {offsets = [0, 0], sizes = [8, 128], strides = [1, 1]} : vector<8x384xf32> to vector<8x128xf32>
    %95 = vector.extract_strided_slice %93 {offsets = [0, 0], sizes = [8, 128], strides = [1, 1]} : vector<8x384xf32> to vector<8x128xf32>
    %96 = arith.addf %94, %95 : vector<8x128xf32>
    %97 = arith.negf %96 : vector<8x128xf32>
    %98 = math.exp %97 : vector<8x128xf32>
    %cst_42 = arith.constant 1.000000e+00 : f32
    %99 = vector.broadcast %cst_42 : f32 to vector<8x128xf32>
    %100 = arith.addf %99, %98 : vector<8x128xf32>
    %101 = arith.divf %99, %100 : vector<8x128xf32>
    %102 = vector.extract_strided_slice %91 {offsets = [0, 128], sizes = [8, 128], strides = [1, 1]} : vector<8x384xf32> to vector<8x128xf32>
    %103 = vector.extract_strided_slice %93 {offsets = [0, 128], sizes = [8, 128], strides = [1, 1]} : vector<8x384xf32> to vector<8x128xf32>
    %104 = arith.addf %102, %103 : vector<8x128xf32>
    %105 = arith.negf %104 : vector<8x128xf32>
    %106 = math.exp %105 : vector<8x128xf32>
    %cst_43 = arith.constant 1.000000e+00 : f32
    %107 = vector.broadcast %cst_43 : f32 to vector<8x128xf32>
    %108 = arith.addf %107, %106 : vector<8x128xf32>
    %109 = arith.divf %107, %108 : vector<8x128xf32>
    %110 = vector.extract_strided_slice %91 {offsets = [0, 256], sizes = [8, 128], strides = [1, 1]} : vector<8x384xf32> to vector<8x128xf32>
    %111 = vector.extract_strided_slice %93 {offsets = [0, 256], sizes = [8, 128], strides = [1, 1]} : vector<8x384xf32> to vector<8x128xf32>
    %c0_44 = arith.constant 0 : index
    %c0_45 = arith.constant 0 : index
    %112 = vector.load %arg7[%c0_44, %c0_45] : memref<1x128xf32, #tpu.memory_space<vmem>>, vector<1x128xf32>
    %113 = vector.broadcast %112 : vector<1x128xf32> to vector<8x128xf32>
    %114 = arith.addf %111, %113 : vector<8x128xf32>
    %115 = arith.mulf %101, %114 : vector<8x128xf32>
    %116 = arith.addf %110, %115 : vector<8x128xf32>
    %117 = math.tanh %116 : vector<8x128xf32>
    %cst_46 = arith.constant 1.000000e+00 : f32
    %118 = vector.broadcast %cst_46 : f32 to vector<8x128xf32>
    %119 = arith.subf %118, %109 : vector<8x128xf32>
    %120 = arith.mulf %119, %117 : vector<8x128xf32>
    %121 = arith.mulf %109, %84 : vector<8x128xf32>
    %122 = arith.addf %120, %121 : vector<8x128xf32>
    %c0_47 = arith.constant 0 : index
    %123 = arith.index_cast %c2_i32 : i32 to index
    %c0_48 = arith.constant 0 : index
    %124 = vector.load %arg8[%c0_47, %123, %c0_48] : memref<8x8x128xf32, #tpu.memory_space<vmem>>, vector<8x1x128xf32>
    %125 = vector.shape_cast %124 : vector<8x1x128xf32> to vector<8x128xf32>
    %126 = vector.shape_cast %122 : vector<8x128xf32> to vector<8x1x128xf32>
    tpu.vector_store %arg8[%c0_47, %123, %c0_48], %126 {strides = array<i32>} : memref<8x8x128xf32, #tpu.memory_space<vmem>>, vector<8x1x128xf32>,
    %c3_i32 = arith.constant 3 : i32
    %c0_49 = arith.constant 0 : index
    %127 = arith.index_cast %c3_i32 : i32 to index
    %c0_50 = arith.constant 0 : index
    %128 = vector.load %arg10[%c0_49, %127, %c0_50] : memref<8x8x384xf32, #tpu.memory_space<vmem>>, vector<8x1x384xf32>
    %129 = vector.shape_cast %128 : vector<8x1x384xf32> to vector<8x384xf32>
    %c0_51 = arith.constant 0 : index
    %c0_52 = arith.constant 0 : index
    %130 = vector.load %arg5[%c0_51, %c0_52] : memref<128x384xf32, #tpu.memory_space<vmem>>, vector<128x384xf32>
    %cst_53 = arith.constant dense<0.000000e+00> : vector<8x384xf32>
    %131 = tpu.matmul %122, %130, %cst_53 {dimension_numbers = #tpu.dot_dimension_numbers<[1], [0], [0], [1], [0, 0, 1, 1], [], []>} : vector<8x128xf32>, vector<128x384xf32>, vector<8x384xf32> -> vector<8x384xf32>
    %132 = vector.extract_strided_slice %129 {offsets = [0, 0], sizes = [8, 128], strides = [1, 1]} : vector<8x384xf32> to vector<8x128xf32>
    %133 = vector.extract_strided_slice %131 {offsets = [0, 0], sizes = [8, 128], strides = [1, 1]} : vector<8x384xf32> to vector<8x128xf32>
    %134 = arith.addf %132, %133 : vector<8x128xf32>
    %135 = arith.negf %134 : vector<8x128xf32>
    %136 = math.exp %135 : vector<8x128xf32>
    %cst_54 = arith.constant 1.000000e+00 : f32
    %137 = vector.broadcast %cst_54 : f32 to vector<8x128xf32>
    %138 = arith.addf %137, %136 : vector<8x128xf32>
    %139 = arith.divf %137, %138 : vector<8x128xf32>
    %140 = vector.extract_strided_slice %129 {offsets = [0, 128], sizes = [8, 128], strides = [1, 1]} : vector<8x384xf32> to vector<8x128xf32>
    %141 = vector.extract_strided_slice %131 {offsets = [0, 128], sizes = [8, 128], strides = [1, 1]} : vector<8x384xf32> to vector<8x128xf32>
    %142 = arith.addf %140, %141 : vector<8x128xf32>
    %143 = arith.negf %142 : vector<8x128xf32>
    %144 = math.exp %143 : vector<8x128xf32>
    %cst_55 = arith.constant 1.000000e+00 : f32
    %145 = vector.broadcast %cst_55 : f32 to vector<8x128xf32>
    %146 = arith.addf %145, %144 : vector<8x128xf32>
    %147 = arith.divf %145, %146 : vector<8x128xf32>
    %148 = vector.extract_strided_slice %129 {offsets = [0, 256], sizes = [8, 128], strides = [1, 1]} : vector<8x384xf32> to vector<8x128xf32>
    %149 = vector.extract_strided_slice %131 {offsets = [0, 256], sizes = [8, 128], strides = [1, 1]} : vector<8x384xf32> to vector<8x128xf32>
    %c0_56 = arith.constant 0 : index
    %c0_57 = arith.constant 0 : index
    %150 = vector.load %arg7[%c0_56, %c0_57] : memref<1x128xf32, #tpu.memory_space<vmem>>, vector<1x128xf32>
    %151 = vector.broadcast %150 : vector<1x128xf32> to vector<8x128xf32>
    %152 = arith.addf %149, %151 : vector<8x128xf32>
    %153 = arith.mulf %139, %152 : vector<8x128xf32>
    %154 = arith.addf %148, %153 : vector<8x128xf32>
    %155 = math.tanh %154 : vector<8x128xf32>
    %cst_58 = arith.constant 1.000000e+00 : f32
    %156 = vector.broadcast %cst_58 : f32 to vector<8x128xf32>
    %157 = arith.subf %156, %147 : vector<8x128xf32>
    %158 = arith.mulf %157, %155 : vector<8x128xf32>
    %159 = arith.mulf %147, %122 : vector<8x128xf32>
    %160 = arith.addf %158, %159 : vector<8x128xf32>
    %c0_59 = arith.constant 0 : index
    %161 = arith.index_cast %c3_i32 : i32 to index
    %c0_60 = arith.constant 0 : index
    %162 = vector.load %arg8[%c0_59, %161, %c0_60] : memref<8x8x128xf32, #tpu.memory_space<vmem>>, vector<8x1x128xf32>
    %163 = vector.shape_cast %162 : vector<8x1x128xf32> to vector<8x128xf32>
    %164 = vector.shape_cast %160 : vector<8x128xf32> to vector<8x1x128xf32>
    tpu.vector_store %arg8[%c0_59, %161, %c0_60], %164 {strides = array<i32>} : memref<8x8x128xf32, #tpu.memory_space<vmem>>, vector<8x1x128xf32>,
    %c4_i32 = arith.constant 4 : i32
    %c0_61 = arith.constant 0 : index
    %165 = arith.index_cast %c4_i32 : i32 to index
    %c0_62 = arith.constant 0 : index
    %166 = vector.load %arg10[%c0_61, %165, %c0_62] : memref<8x8x384xf32, #tpu.memory_space<vmem>>, vector<8x1x384xf32>
    %167 = vector.shape_cast %166 : vector<8x1x384xf32> to vector<8x384xf32>
    %c0_63 = arith.constant 0 : index
    %c0_64 = arith.constant 0 : index
    %168 = vector.load %arg5[%c0_63, %c0_64] : memref<128x384xf32, #tpu.memory_space<vmem>>, vector<128x384xf32>
    %cst_65 = arith.constant dense<0.000000e+00> : vector<8x384xf32>
    %169 = tpu.matmul %160, %168, %cst_65 {dimension_numbers = #tpu.dot_dimension_numbers<[1], [0], [0], [1], [0, 0, 1, 1], [], []>} : vector<8x128xf32>, vector<128x384xf32>, vector<8x384xf32> -> vector<8x384xf32>
    %170 = vector.extract_strided_slice %167 {offsets = [0, 0], sizes = [8, 128], strides = [1, 1]} : vector<8x384xf32> to vector<8x128xf32>
    %171 = vector.extract_strided_slice %169 {offsets = [0, 0], sizes = [8, 128], strides = [1, 1]} : vector<8x384xf32> to vector<8x128xf32>
    %172 = arith.addf %170, %171 : vector<8x128xf32>
    %173 = arith.negf %172 : vector<8x128xf32>
    %174 = math.exp %173 : vector<8x128xf32>
    %cst_66 = arith.constant 1.000000e+00 : f32
    %175 = vector.broadcast %cst_66 : f32 to vector<8x128xf32>
    %176 = arith.addf %175, %174 : vector<8x128xf32>
    %177 = arith.divf %175, %176 : vector<8x128xf32>
    %178 = vector.extract_strided_slice %167 {offsets = [0, 128], sizes = [8, 128], strides = [1, 1]} : vector<8x384xf32> to vector<8x128xf32>
    %179 = vector.extract_strided_slice %169 {offsets = [0, 128], sizes = [8, 128], strides = [1, 1]} : vector<8x384xf32> to vector<8x128xf32>
    %180 = arith.addf %178, %179 : vector<8x128xf32>
    %181 = arith.negf %180 : vector<8x128xf32>
    %182 = math.exp %181 : vector<8x128xf32>
    %cst_67 = arith.constant 1.000000e+00 : f32
    %183 = vector.broadcast %cst_67 : f32 to vector<8x128xf32>
    %184 = arith.addf %183, %182 : vector<8x128xf32>
    %185 = arith.divf %183, %184 : vector<8x128xf32>
    %186 = vector.extract_strided_slice %167 {offsets = [0, 256], sizes = [8, 128], strides = [1, 1]} : vector<8x384xf32> to vector<8x128xf32>
    %187 = vector.extract_strided_slice %169 {offsets = [0, 256], sizes = [8, 128], strides = [1, 1]} : vector<8x384xf32> to vector<8x128xf32>
    %c0_68 = arith.constant 0 : index
    %c0_69 = arith.constant 0 : index
    %188 = vector.load %arg7[%c0_68, %c0_69] : memref<1x128xf32, #tpu.memory_space<vmem>>, vector<1x128xf32>
    %189 = vector.broadcast %188 : vector<1x128xf32> to vector<8x128xf32>
    %190 = arith.addf %187, %189 : vector<8x128xf32>
    %191 = arith.mulf %177, %190 : vector<8x128xf32>
    %192 = arith.addf %186, %191 : vector<8x128xf32>
    %193 = math.tanh %192 : vector<8x128xf32>
    %cst_70 = arith.constant 1.000000e+00 : f32
    %194 = vector.broadcast %cst_70 : f32 to vector<8x128xf32>
    %195 = arith.subf %194, %185 : vector<8x128xf32>
    %196 = arith.mulf %195, %193 : vector<8x128xf32>
    %197 = arith.mulf %185, %160 : vector<8x128xf32>
    %198 = arith.addf %196, %197 : vector<8x128xf32>
    %c0_71 = arith.constant 0 : index
    %199 = arith.index_cast %c4_i32 : i32 to index
    %c0_72 = arith.constant 0 : index
    %200 = vector.load %arg8[%c0_71, %199, %c0_72] : memref<8x8x128xf32, #tpu.memory_space<vmem>>, vector<8x1x128xf32>
    %201 = vector.shape_cast %200 : vector<8x1x128xf32> to vector<8x128xf32>
    %202 = vector.shape_cast %198 : vector<8x128xf32> to vector<8x1x128xf32>
    tpu.vector_store %arg8[%c0_71, %199, %c0_72], %202 {strides = array<i32>} : memref<8x8x128xf32, #tpu.memory_space<vmem>>, vector<8x1x128xf32>,
    %c5_i32 = arith.constant 5 : i32
    %c0_73 = arith.constant 0 : index
    %203 = arith.index_cast %c5_i32 : i32 to index
    %c0_74 = arith.constant 0 : index
    %204 = vector.load %arg10[%c0_73, %203, %c0_74] : memref<8x8x384xf32, #tpu.memory_space<vmem>>, vector<8x1x384xf32>
    %205 = vector.shape_cast %204 : vector<8x1x384xf32> to vector<8x384xf32>
    %c0_75 = arith.constant 0 : index
    %c0_76 = arith.constant 0 : index
    %206 = vector.load %arg5[%c0_75, %c0_76] : memref<128x384xf32, #tpu.memory_space<vmem>>, vector<128x384xf32>
    %cst_77 = arith.constant dense<0.000000e+00> : vector<8x384xf32>
    %207 = tpu.matmul %198, %206, %cst_77 {dimension_numbers = #tpu.dot_dimension_numbers<[1], [0], [0], [1], [0, 0, 1, 1], [], []>} : vector<8x128xf32>, vector<128x384xf32>, vector<8x384xf32> -> vector<8x384xf32>
    %208 = vector.extract_strided_slice %205 {offsets = [0, 0], sizes = [8, 128], strides = [1, 1]} : vector<8x384xf32> to vector<8x128xf32>
    %209 = vector.extract_strided_slice %207 {offsets = [0, 0], sizes = [8, 128], strides = [1, 1]} : vector<8x384xf32> to vector<8x128xf32>
    %210 = arith.addf %208, %209 : vector<8x128xf32>
    %211 = arith.negf %210 : vector<8x128xf32>
    %212 = math.exp %211 : vector<8x128xf32>
    %cst_78 = arith.constant 1.000000e+00 : f32
    %213 = vector.broadcast %cst_78 : f32 to vector<8x128xf32>
    %214 = arith.addf %213, %212 : vector<8x128xf32>
    %215 = arith.divf %213, %214 : vector<8x128xf32>
    %216 = vector.extract_strided_slice %205 {offsets = [0, 128], sizes = [8, 128], strides = [1, 1]} : vector<8x384xf32> to vector<8x128xf32>
    %217 = vector.extract_strided_slice %207 {offsets = [0, 128], sizes = [8, 128], strides = [1, 1]} : vector<8x384xf32> to vector<8x128xf32>
    %218 = arith.addf %216, %217 : vector<8x128xf32>
    %219 = arith.negf %218 : vector<8x128xf32>
    %220 = math.exp %219 : vector<8x128xf32>
    %cst_79 = arith.constant 1.000000e+00 : f32
    %221 = vector.broadcast %cst_79 : f32 to vector<8x128xf32>
    %222 = arith.addf %221, %220 : vector<8x128xf32>
    %223 = arith.divf %221, %222 : vector<8x128xf32>
    %224 = vector.extract_strided_slice %205 {offsets = [0, 256], sizes = [8, 128], strides = [1, 1]} : vector<8x384xf32> to vector<8x128xf32>
    %225 = vector.extract_strided_slice %207 {offsets = [0, 256], sizes = [8, 128], strides = [1, 1]} : vector<8x384xf32> to vector<8x128xf32>
    %c0_80 = arith.constant 0 : index
    %c0_81 = arith.constant 0 : index
    %226 = vector.load %arg7[%c0_80, %c0_81] : memref<1x128xf32, #tpu.memory_space<vmem>>, vector<1x128xf32>
    %227 = vector.broadcast %226 : vector<1x128xf32> to vector<8x128xf32>
    %228 = arith.addf %225, %227 : vector<8x128xf32>
    %229 = arith.mulf %215, %228 : vector<8x128xf32>
    %230 = arith.addf %224, %229 : vector<8x128xf32>
    %231 = math.tanh %230 : vector<8x128xf32>
    %cst_82 = arith.constant 1.000000e+00 : f32
    %232 = vector.broadcast %cst_82 : f32 to vector<8x128xf32>
    %233 = arith.subf %232, %223 : vector<8x128xf32>
    %234 = arith.mulf %233, %231 : vector<8x128xf32>
    %235 = arith.mulf %223, %198 : vector<8x128xf32>
    %236 = arith.addf %234, %235 : vector<8x128xf32>
    %c0_83 = arith.constant 0 : index
    %237 = arith.index_cast %c5_i32 : i32 to index
    %c0_84 = arith.constant 0 : index
    %238 = vector.load %arg8[%c0_83, %237, %c0_84] : memref<8x8x128xf32, #tpu.memory_space<vmem>>, vector<8x1x128xf32>
    %239 = vector.shape_cast %238 : vector<8x1x128xf32> to vector<8x128xf32>
    %240 = vector.shape_cast %236 : vector<8x128xf32> to vector<8x1x128xf32>
    tpu.vector_store %arg8[%c0_83, %237, %c0_84], %240 {strides = array<i32>} : memref<8x8x128xf32, #tpu.memory_space<vmem>>, vector<8x1x128xf32>,
    %c6_i32 = arith.constant 6 : i32
    %c0_85 = arith.constant 0 : index
    %241 = arith.index_cast %c6_i32 : i32 to index
    %c0_86 = arith.constant 0 : index
    %242 = vector.load %arg10[%c0_85, %241, %c0_86] : memref<8x8x384xf32, #tpu.memory_space<vmem>>, vector<8x1x384xf32>
    %243 = vector.shape_cast %242 : vector<8x1x384xf32> to vector<8x384xf32>
    %c0_87 = arith.constant 0 : index
    %c0_88 = arith.constant 0 : index
    %244 = vector.load %arg5[%c0_87, %c0_88] : memref<128x384xf32, #tpu.memory_space<vmem>>, vector<128x384xf32>
    %cst_89 = arith.constant dense<0.000000e+00> : vector<8x384xf32>
    %245 = tpu.matmul %236, %244, %cst_89 {dimension_numbers = #tpu.dot_dimension_numbers<[1], [0], [0], [1], [0, 0, 1, 1], [], []>} : vector<8x128xf32>, vector<128x384xf32>, vector<8x384xf32> -> vector<8x384xf32>
    %246 = vector.extract_strided_slice %243 {offsets = [0, 0], sizes = [8, 128], strides = [1, 1]} : vector<8x384xf32> to vector<8x128xf32>
    %247 = vector.extract_strided_slice %245 {offsets = [0, 0], sizes = [8, 128], strides = [1, 1]} : vector<8x384xf32> to vector<8x128xf32>
    %248 = arith.addf %246, %247 : vector<8x128xf32>
    %249 = arith.negf %248 : vector<8x128xf32>
    %250 = math.exp %249 : vector<8x128xf32>
    %cst_90 = arith.constant 1.000000e+00 : f32
    %251 = vector.broadcast %cst_90 : f32 to vector<8x128xf32>
    %252 = arith.addf %251, %250 : vector<8x128xf32>
    %253 = arith.divf %251, %252 : vector<8x128xf32>
    %254 = vector.extract_strided_slice %243 {offsets = [0, 128], sizes = [8, 128], strides = [1, 1]} : vector<8x384xf32> to vector<8x128xf32>
    %255 = vector.extract_strided_slice %245 {offsets = [0, 128], sizes = [8, 128], strides = [1, 1]} : vector<8x384xf32> to vector<8x128xf32>
    %256 = arith.addf %254, %255 : vector<8x128xf32>
    %257 = arith.negf %256 : vector<8x128xf32>
    %258 = math.exp %257 : vector<8x128xf32>
    %cst_91 = arith.constant 1.000000e+00 : f32
    %259 = vector.broadcast %cst_91 : f32 to vector<8x128xf32>
    %260 = arith.addf %259, %258 : vector<8x128xf32>
    %261 = arith.divf %259, %260 : vector<8x128xf32>
    %262 = vector.extract_strided_slice %243 {offsets = [0, 256], sizes = [8, 128], strides = [1, 1]} : vector<8x384xf32> to vector<8x128xf32>
    %263 = vector.extract_strided_slice %245 {offsets = [0, 256], sizes = [8, 128], strides = [1, 1]} : vector<8x384xf32> to vector<8x128xf32>
    %c0_92 = arith.constant 0 : index
    %c0_93 = arith.constant 0 : index
    %264 = vector.load %arg7[%c0_92, %c0_93] : memref<1x128xf32, #tpu.memory_space<vmem>>, vector<1x128xf32>
    %265 = vector.broadcast %264 : vector<1x128xf32> to vector<8x128xf32>
    %266 = arith.addf %263, %265 : vector<8x128xf32>
    %267 = arith.mulf %253, %266 : vector<8x128xf32>
    %268 = arith.addf %262, %267 : vector<8x128xf32>
    %269 = math.tanh %268 : vector<8x128xf32>
    %cst_94 = arith.constant 1.000000e+00 : f32
    %270 = vector.broadcast %cst_94 : f32 to vector<8x128xf32>
    %271 = arith.subf %270, %261 : vector<8x128xf32>
    %272 = arith.mulf %271, %269 : vector<8x128xf32>
    %273 = arith.mulf %261, %236 : vector<8x128xf32>
    %274 = arith.addf %272, %273 : vector<8x128xf32>
    %c0_95 = arith.constant 0 : index
    %275 = arith.index_cast %c6_i32 : i32 to index
    %c0_96 = arith.constant 0 : index
    %276 = vector.load %arg8[%c0_95, %275, %c0_96] : memref<8x8x128xf32, #tpu.memory_space<vmem>>, vector<8x1x128xf32>
    %277 = vector.shape_cast %276 : vector<8x1x128xf32> to vector<8x128xf32>
    %278 = vector.shape_cast %274 : vector<8x128xf32> to vector<8x1x128xf32>
    tpu.vector_store %arg8[%c0_95, %275, %c0_96], %278 {strides = array<i32>} : memref<8x8x128xf32, #tpu.memory_space<vmem>>, vector<8x1x128xf32>,
    %c7_i32 = arith.constant 7 : i32
    %c0_97 = arith.constant 0 : index
    %279 = arith.index_cast %c7_i32 : i32 to index
    %c0_98 = arith.constant 0 : index
    %280 = vector.load %arg10[%c0_97, %279, %c0_98] : memref<8x8x384xf32, #tpu.memory_space<vmem>>, vector<8x1x384xf32>
    %281 = vector.shape_cast %280 : vector<8x1x384xf32> to vector<8x384xf32>
    %c0_99 = arith.constant 0 : index
    %c0_100 = arith.constant 0 : index
    %282 = vector.load %arg5[%c0_99, %c0_100] : memref<128x384xf32, #tpu.memory_space<vmem>>, vector<128x384xf32>
    %cst_101 = arith.constant dense<0.000000e+00> : vector<8x384xf32>
    %283 = tpu.matmul %274, %282, %cst_101 {dimension_numbers = #tpu.dot_dimension_numbers<[1], [0], [0], [1], [0, 0, 1, 1], [], []>} : vector<8x128xf32>, vector<128x384xf32>, vector<8x384xf32> -> vector<8x384xf32>
    %284 = vector.extract_strided_slice %281 {offsets = [0, 0], sizes = [8, 128], strides = [1, 1]} : vector<8x384xf32> to vector<8x128xf32>
    %285 = vector.extract_strided_slice %283 {offsets = [0, 0], sizes = [8, 128], strides = [1, 1]} : vector<8x384xf32> to vector<8x128xf32>
    %286 = arith.addf %284, %285 : vector<8x128xf32>
    %287 = arith.negf %286 : vector<8x128xf32>
    %288 = math.exp %287 : vector<8x128xf32>
    %cst_102 = arith.constant 1.000000e+00 : f32
    %289 = vector.broadcast %cst_102 : f32 to vector<8x128xf32>
    %290 = arith.addf %289, %288 : vector<8x128xf32>
    %291 = arith.divf %289, %290 : vector<8x128xf32>
    %292 = vector.extract_strided_slice %281 {offsets = [0, 128], sizes = [8, 128], strides = [1, 1]} : vector<8x384xf32> to vector<8x128xf32>
    %293 = vector.extract_strided_slice %283 {offsets = [0, 128], sizes = [8, 128], strides = [1, 1]} : vector<8x384xf32> to vector<8x128xf32>
    %294 = arith.addf %292, %293 : vector<8x128xf32>
    %295 = arith.negf %294 : vector<8x128xf32>
    %296 = math.exp %295 : vector<8x128xf32>
    %cst_103 = arith.constant 1.000000e+00 : f32
    %297 = vector.broadcast %cst_103 : f32 to vector<8x128xf32>
    %298 = arith.addf %297, %296 : vector<8x128xf32>
    %299 = arith.divf %297, %298 : vector<8x128xf32>
    %300 = vector.extract_strided_slice %281 {offsets = [0, 256], sizes = [8, 128], strides = [1, 1]} : vector<8x384xf32> to vector<8x128xf32>
    %301 = vector.extract_strided_slice %283 {offsets = [0, 256], sizes = [8, 128], strides = [1, 1]} : vector<8x384xf32> to vector<8x128xf32>
    %c0_104 = arith.constant 0 : index
    %c0_105 = arith.constant 0 : index
    %302 = vector.load %arg7[%c0_104, %c0_105] : memref<1x128xf32, #tpu.memory_space<vmem>>, vector<1x128xf32>
    %303 = vector.broadcast %302 : vector<1x128xf32> to vector<8x128xf32>
    %304 = arith.addf %301, %303 : vector<8x128xf32>
    %305 = arith.mulf %291, %304 : vector<8x128xf32>
    %306 = arith.addf %300, %305 : vector<8x128xf32>
    %307 = math.tanh %306 : vector<8x128xf32>
    %cst_106 = arith.constant 1.000000e+00 : f32
    %308 = vector.broadcast %cst_106 : f32 to vector<8x128xf32>
    %309 = arith.subf %308, %299 : vector<8x128xf32>
    %310 = arith.mulf %309, %307 : vector<8x128xf32>
    %311 = arith.mulf %299, %274 : vector<8x128xf32>
    %312 = arith.addf %310, %311 : vector<8x128xf32>
    %c0_107 = arith.constant 0 : index
    %313 = arith.index_cast %c7_i32 : i32 to index
    %c0_108 = arith.constant 0 : index
    %314 = vector.load %arg8[%c0_107, %313, %c0_108] : memref<8x8x128xf32, #tpu.memory_space<vmem>>, vector<8x1x128xf32>
    %315 = vector.shape_cast %314 : vector<8x1x128xf32> to vector<8x128xf32>
    %316 = vector.shape_cast %312 : vector<8x128xf32> to vector<8x1x128xf32>
    tpu.vector_store %arg8[%c0_107, %313, %c0_108], %316 {strides = array<i32>} : memref<8x8x128xf32, #tpu.memory_space<vmem>>, vector<8x1x128xf32>,
    %c8_i32 = arith.constant 8 : i32
    %c0_109 = arith.constant 0 : index
    %c0_110 = arith.constant 0 : index
    %317 = vector.load %arg9[%c0_109, %c0_110] : memref<8x128xf32, #tpu.memory_space<vmem>>, vector<8x128xf32>
    tpu.vector_store %arg9[%c0_109, %c0_110], %312 {strides = array<i32>} : memref<8x128xf32, #tpu.memory_space<vmem>>, vector<8x128xf32>,
    return
  }
  func.func @transform_0(%arg0: i32, %arg1: i32) -> (i32, i32, i32) {
    %c0_i32 = arith.constant 0 : i32
    %c0_i32_0 = arith.constant 0 : i32
    return %arg0, %arg1, %c0_i32 : i32, i32, i32
  }
  func.func @transform_1(%arg0: i32, %arg1: i32) -> (i32, i32) {
    %c0_i32 = arith.constant 0 : i32
    %c0_i32_0 = arith.constant 0 : i32
    return %arg0, %c0_i32 : i32, i32
  }
  func.func @transform_2(%arg0: i32, %arg1: i32) -> (i32, i32) {
    %c0_i32 = arith.constant 0 : i32
    %c0_i32_0 = arith.constant 0 : i32
    %c0_i32_1 = arith.constant 0 : i32
    return %c0_i32, %c0_i32_0 : i32, i32
  }
  func.func @transform_3(%arg0: i32, %arg1: i32) -> (i32, i32) {
    %c0_i32 = arith.constant 0 : i32
    %c0_i32_0 = arith.constant 0 : i32
    %c0_i32_1 = arith.constant 0 : i32
    return %c0_i32, %c0_i32_0 : i32, i32
  }
  func.func @transform_4(%arg0: i32, %arg1: i32) -> (i32, i32) {
    %c0_i32 = arith.constant 0 : i32
    %c0_i32_0 = arith.constant 0 : i32
    %c0_i32_1 = arith.constant 0 : i32
    return %c0_i32, %c0_i32_0 : i32, i32
  }
  func.func @transform_5(%arg0: i32, %arg1: i32) -> (i32, i32) {
    %c0_i32 = arith.constant 0 : i32
    %c0_i32_0 = arith.constant 0 : i32
    %c0_i32_1 = arith.constant 0 : i32
    return %c0_i32, %c0_i32_0 : i32, i32
  }
  func.func @transform_6(%arg0: i32, %arg1: i32) -> (i32, i32, i32) {
    %c0_i32 = arith.constant 0 : i32
    %c0_i32_0 = arith.constant 0 : i32
    return %arg0, %arg1, %c0_i32 : i32, i32, i32
  }
}

</mosaic_0001>

<bundles_post_ra>
// kernel: tpu_custom_call.1
= control target key start
LH: loop header
LB: loop body
LE: loop exit
PB: predicated region body
PF: predicated region fallthrough
CT: control target
= control target key end

     0   :  { %11 = vsyncpa [#allocation5], 0  ;;  %s11915_s0 = inlined_call_operand.hbm [shape: f32[8,8,128], index: 0, kind: input, shape index: {}]   ;;  %s11916_s1 = inlined_call_operand.hbm [shape: f32[8,128], index: 1, kind: input, shape index: {}]   ;;  %s11917_s2 = inlined_call_operand.hbm [shape: f32[128,384], index: 2, kind: input, shape index: {}]   ;;  %s11918_s3 = inlined_call_operand.hbm [shape: f32[128,384], index: 3, kind: input, shape index: {}]   ;;  %s11919_s4 = inlined_call_operand.vmem [shape: f32[1,384], index: 4, kind: input, shape index: {}]   ;;  %s11920_s5 = inlined_call_operand.vmem [shape: f32[1,128], index: 5, kind: input, shape index: {}]   ;;  %s11921_s6 = inlined_call_operand.hbm [shape: f32[8,8,128], index: 6, kind: output, shape index: {}]  }
   0x1   :  { %12 = vsyncpa [#allocation8], 0 }
   0x2   :  { %13 = vsyncpa [#allocation11], 0  ;;  %s33_s23 = sshll.u32 %s11916_s1, 4  ;;  %s34_s23 = int_to_ptr.hbm [resolvable:$true] %s33_s23 }
   0x3   :  { %14 = vsyncpa [#allocation6], 0  ;;  %s6280_s24 = smov [#allocation7]   ;;  %s19_s28 = sshll.u32 %s11915_s0, 4  ;;  %s20_s28 = int_to_ptr.hbm [resolvable:$true] %s19_s28 }
   0x4   :  { %s35_s25 = sshll.u32 %s6280_s24, 4  ;;  %s6281_s29 = smov [#allocation4]   ;;  %s36_s25 = int_to_ptr.vmem [resolvable:$true] %s35_s25 }
   0x5   :  { %38 = dma.hbm_to_vmem [thread:$0]  %s34_s23, 128, %s36_s25, [#allocation8]  }
   0x6   :  { %s21_s30 = sshll.u32 %s6281_s29, 4  ;;  %s6282_s7 = smov 128   ;;  %s22_s30 = int_to_ptr.vmem [resolvable:$true] %s21_s30 }
   0x7   :  { %s6283_s8 = smov 8   ;;  %s43_s10 = sshll.u32 %s11917_s2, 4  ;;  %s44_s10 = int_to_ptr.hbm [resolvable:$true] %s43_s10 }
   0x8   :  { %27 = dma.hbm_to_vmem [thread:$0]  %s20_s28, 1024, %s22_s30, [#allocation5], %s6282_s7, %s6282_s7, %s6283_s8  }
   0x9   :  { %s6284_s11 = smov [#allocation9]   ;;  %s56_s14 = sshll.u32 %s11918_s3, 4  ;;  %s57_s14 = int_to_ptr.hbm [resolvable:$true] %s56_s14 }
   0xa   :  { %s45_s12 = sshll.u32 %s6284_s11, 4  ;;  %s6285_s15 = smov 384   ;;  %s46_s12 = int_to_ptr.vmem [resolvable:$true] %s45_s12 }
   0xb   :  { %s6286_s16 = smov 24   ;;  %s6287_s17 = smov [#allocation10]  }
   0xc   :  { %51 = dma.hbm_to_vmem [thread:$0]  %s44_s10, 6144, %s46_s12, [#allocation8], %s6285_s15, %s6285_s15, %s6286_s16  }
   0xd   :  { %s58_s18 = sshll.u32 %s6287_s17, 4  ;;  %s59_s18 = int_to_ptr.vmem [resolvable:$true] %s58_s18 }
   0xe   :  { %64 = dma.hbm_to_vmem [thread:$0]  %s57_s14, 6144, %s59_s18, [#allocation11], %s6285_s15, %s6285_s15, %s6286_s16  }
   0xf   :  { %6272 = dma.done.wait [#allocation5], 1024  }
  0x10   :  { %6273 = vsyncadd [#allocation5], 4294966272 }
  0x11   :  { %6274 = dma.done.wait [#allocation8], 6272  }
  0x12   :  { %6275 = vsyncadd [#allocation8], 4294961024 }
  0x13   :  { %6276 = dma.done.wait [#allocation11], 6144  }
  0x14   :  { %6277 = vsyncadd [#allocation11], 4294961152  ;;  %v136_v0 = vld [vmem:[#allocation9 + $0x168] sm:$0xff]  ;;  %v138_v1 = vld [vmem:[#allocation9 + $0x178] sm:$0xff]  ;;  %s5308_s13 = sshll.u32 %s11921_s6, 4  ;;  %s5309_s13 = int_to_ptr.hbm [resolvable:$true] %s5308_s13 }
  0x15   :  { %v363_v2 = vld [vmem:[#allocation10 + $0x168] sm:$0xff]  ;;  %155 = vmatpush.msra.mxu0 %v136_v0  ;;  %237 = vmatpush.msra.mxu2 %v138_v1  ;;  %v133_v3 = vld [vmem:[#allocation9 + $0x150] sm:$0xff]  ;;  %v135_v4 = vld [vmem:[#allocation9 + $0x160] sm:$0xff] }
  0x16   :  { %v360_v5 = vld [vmem:[#allocation10 + $0x150] sm:$0xff]  ;;  %366 = vmatpush.msra.mxu3 %v363_v2  ;;  %v130_v6 = vld [vmem:[#allocation9 + $0x138] sm:$0xff]  ;;  %v132_v7 = vld [vmem:[#allocation9 + $0x148] sm:$0xff] }
  0x17   :  { %156 = vmatpush.msra.mxu0 %v133_v3  ;;  %238 = vmatpush.msra.mxu2 %v135_v4  ;;  %v357_v8 = vld [vmem:[#allocation10 + $0x138] sm:$0xff]  ;;  %v137_v9 = vld [vmem:[#allocation9 + $0x170] sm:$0xff]  ;;  %v127_v10 = vld [vmem:[#allocation9 + $0x120] sm:$0xff] }
  0x18   :  { %367 = vmatpush.msra.mxu3 %v360_v5  ;;  %196 = vmatpush.msra.mxu1 %v137_v9  ;;  %v129_v11 = vld [vmem:[#allocation9 + $0x130] sm:$0xff]  ;;  %v134_v12 = vld [vmem:[#allocation9 + $0x158] sm:$0xff]  ;;  %v354_v13 = vld [vmem:[#allocation10 + $0x120] sm:$0xff] }
  0x19   :  { %157 = vmatpush.msra.mxu0 %v130_v6  ;;  %239 = vmatpush.msra.mxu2 %v132_v7  ;;  %v124_v14 = vld [vmem:[#allocation9 + $0x108] sm:$0xff]  ;;  %v126_v15 = vld [vmem:[#allocation9 + $0x118] sm:$0xff]  ;;  %v131_v16 = vld [vmem:[#allocation9 + $0x140] sm:$0xff] }
  0x1a   :  { %368 = vmatpush.msra.mxu3 %v357_v8  ;;  %197 = vmatpush.msra.mxu1 %v134_v12  ;;  %v351_v17 = vld [vmem:[#allocation10 + $0x108] sm:$0xff]  ;;  %v121_v19 = vld [vmem:[#allocation9 + $0xf0] sm:$0xff]  ;;  %v123_v20 = vld [vmem:[#allocation9 + $0x100] sm:$0xff] }
  0x1b   :  { %158 = vmatpush.msra.mxu0 %v127_v10  ;;  %240 = vmatpush.msra.mxu2 %v129_v11  ;;  %v128_v18 = vld [vmem:[#allocation9 + $0x128] sm:$0xff]  ;;  %v348_v21 = vld [vmem:[#allocation10 + $0xf0] sm:$0xff]  ;;  %v118_v23 = vld [vmem:[#allocation9 + $0xd8] sm:$0xff] }
  0x1c   :  { %369 = vmatpush.msra.mxu3 %v354_v13  ;;  %198 = vmatpush.msra.mxu1 %v131_v16  ;;  %v125_v22 = vld [vmem:[#allocation9 + $0x110] sm:$0xff]  ;;  %v120_v24 = vld [vmem:[#allocation9 + $0xe8] sm:$0xff]  ;;  %v345_v25 = vld [vmem:[#allocation10 + $0xd8] sm:$0xff] }
  0x1d   :  { %159 = vmatpush.msra.mxu0 %v124_v14  ;;  %241 = vmatpush.msra.mxu2 %v126_v15  ;;  %v122_v26 = vld [vmem:[#allocation9 + $0xf8] sm:$0xff]  ;;  %v115_v27 = vld [vmem:[#allocation9 + $0xc0] sm:$0xff]  ;;  %v117_v28 = vld [vmem:[#allocation9 + $0xd0] sm:$0xff] }
  0x1e   :  { %370 = vmatpush.msra.mxu3 %v351_v17  ;;  %199 = vmatpush.msra.mxu1 %v128_v18  ;;  %v342_v29 = vld [vmem:[#allocation10 + $0xc0] sm:$0xff]  ;;  %v112_v31 = vld [vmem:[#allocation9 + $0xa8] sm:$0xff]  ;;  %v114_v32 = vld [vmem:[#allocation9 + $0xb8] sm:$0xff] }
  0x1f   :  { %160 = vmatpush.msra.mxu0 %v121_v19  ;;  %242 = vmatpush.msra.mxu2 %v123_v20  ;;  %v119_v30 = vld [vmem:[#allocation9 + $0xe0] sm:$0xff]  ;;  %v339_v33 = vld [vmem:[#allocation10 + $0xa8] sm:$0xff]  ;;  %v109_v35 = vld [vmem:[#allocation9 + $0x90] sm:$0xff] }
  0x20   :  { %371 = vmatpush.msra.mxu3 %v348_v21  ;;  %200 = vmatpush.msra.mxu1 %v125_v22  ;;  %v116_v34 = vld [vmem:[#allocation9 + $0xc8] sm:$0xff]  ;;  %v111_v36 = vld [vmem:[#allocation9 + $0xa0] sm:$0xff]  ;;  %v336_v37 = vld [vmem:[#allocation10 + $0x90] sm:$0xff] }
  0x21   :  { %161 = vmatpush.msra.mxu0 %v118_v23  ;;  %243 = vmatpush.msra.mxu2 %v120_v24  ;;  %v113_v38 = vld [vmem:[#allocation9 + $0xb0] sm:$0xff]  ;;  %v106_v39 = vld [vmem:[#allocation9 + $0x78] sm:$0xff]  ;;  %v108_v40 = vld [vmem:[#allocation9 + $0x88] sm:$0xff] }
  0x22   :  { %372 = vmatpush.msra.mxu3 %v345_v25  ;;  %201 = vmatpush.msra.mxu1 %v122_v26  ;;  %v333_v41 = vld [vmem:[#allocation10 + $0x78] sm:$0xff]  ;;  %v103_v43 = vld [vmem:[#allocation9 + $0x60] sm:$0xff]  ;;  %v105_v44 = vld [vmem:[#allocation9 + $0x70] sm:$0xff] }
  0x23   :  { %162 = vmatpush.msra.mxu0 %v115_v27  ;;  %244 = vmatpush.msra.mxu2 %v117_v28  ;;  %v110_v42 = vld [vmem:[#allocation9 + $0x98] sm:$0xff]  ;;  %v330_v45 = vld [vmem:[#allocation10 + $0x60] sm:$0xff]  ;;  %v100_v47 = vld [vmem:[#allocation9 + $0x48] sm:$0xff] }
  0x24   :  { %373 = vmatpush.msra.mxu3 %v342_v29  ;;  %202 = vmatpush.msra.mxu1 %v119_v30  ;;  %v107_v46 = vld [vmem:[#allocation9 + $0x80] sm:$0xff]  ;;  %v102_v48 = vld [vmem:[#allocation9 + $0x58] sm:$0xff]  ;;  %v327_v49 = vld [vmem:[#allocation10 + $0x48] sm:$0xff] }
  0x25   :  { %163 = vmatpush.msra.mxu0 %v112_v31  ;;  %245 = vmatpush.msra.mxu2 %v114_v32  ;;  %v104_v50 = vld [vmem:[#allocation9 + $0x68] sm:$0xff]  ;;  %v97_v51 = vld [vmem:[#allocation9 + $0x30] sm:$0xff]  ;;  %v99_v52 = vld [vmem:[#allocation9 + $0x40] sm:$0xff] }
  0x26   :  { %374 = vmatpush.msra.mxu3 %v339_v33  ;;  %203 = vmatpush.msra.mxu1 %v116_v34  ;;  %v324_v53 = vld [vmem:[#allocation10 + $0x30] sm:$0xff]  ;;  %v94_v54 = vld [vmem:[#allocation9 + $0x18] sm:$0xff]  ;;  %v96_v55 = vld [vmem:[#allocation9 + $0x28] sm:$0xff] }
  0x27   :  { %164 = vmatpush.msra.mxu0 %v109_v35  ;;  %246 = vmatpush.msra.mxu2 %v111_v36  ;;  %v101_v56 = vld [vmem:[#allocation9 + $0x50] sm:$0xff]  ;;  %v321_v57 = vld [vmem:[#allocation10 + $0x18] sm:$0xff]  ;;  %v91_v58 = vld [vmem:[#allocation9] sm:$0xff] }
  0x28   :  { %375 = vmatpush.msra.mxu3 %v336_v37  ;;  %204 = vmatpush.msra.mxu1 %v113_v38  ;;  %v93_v59 = vld [vmem:[#allocation9 + $0x10] sm:$0xff]  ;;  %v318_v60 = vld [vmem:[#allocation10] sm:$0xff]  ;;  %v139_v61 = vld [vmem:[#allocation4] sm:$0xff] }
  0x29   :  { %165 = vmatpush.msra.mxu0 %v106_v39  ;;  %247 = vmatpush.msra.mxu2 %v108_v40  ;;  %v98_v62 = vld [vmem:[#allocation9 + $0x38] sm:$0xff]  ;;  %v364_v63 = vld [vmem:[#allocation10 + $0x170] sm:$0xff]  ;;  %v95_v0 = vld [vmem:[#allocation9 + $0x20] sm:$0xff] }
  0x2a   :  { %376 = vmatpush.msra.mxu3 %v333_v41  ;;  %205 = vmatpush.msra.mxu1 %v110_v42  ;;  %v6339_v1 = vld [vmem:[#allocation7] sm:$0xff]  ;;  %v92_v3 = vld [vmem:[#allocation9 + $0x8] sm:$0xff]  ;;  %v358_v5 = vld [vmem:[#allocation10 + $0x140] sm:$0xff] }
  0x2b   :  { %166 = vmatpush.msra.mxu0 %v103_v43  ;;  %248 = vmatpush.msra.mxu2 %v105_v44  ;;  %v361_v2 = vld [vmem:[#allocation10 + $0x158] sm:$0xff]  ;;  %v362_v6 = vld [vmem:[#allocation10 + $0x160] sm:$0xff]  ;;  %v355_v7 = vld [vmem:[#allocation10 + $0x128] sm:$0xff] }
  0x2c   :  { %377 = vmatpush.msra.mxu3 %v330_v45  ;;  %206 = vmatpush.msra.mxu1 %v107_v46  ;;  %v365_v4 = vld [vmem:[#allocation10 + $0x178] sm:$0xff]  ;;  %v140_v8 = vld [vmem:[#allocation4 + $0x8] sm:$0xff]  ;;  %v352_v9 = vld [vmem:[#allocation10 + $0x110] sm:$0xff] }
  0x2d   :  { %167 = vmatpush.msra.mxu0 %v100_v47  ;;  %249 = vmatpush.msra.mxu2 %v102_v48  ;;  %v359_v10 = vld [vmem:[#allocation10 + $0x148] sm:$0xff]  ;;  %v349_v11 = vld [vmem:[#allocation10 + $0xf8] sm:$0xff]  ;;  %v356_v12 = vld [vmem:[#allocation10 + $0x130] sm:$0xff] }
  0x2e   :  { %378 = vmatpush.msra.mxu3 %v327_v49  ;;  %207 = vmatpush.msra.mxu1 %v104_v50  ;;  %v346_v13 = vld [vmem:[#allocation10 + $0xe0] sm:$0xff]  ;;  %v353_v14 = vld [vmem:[#allocation10 + $0x118] sm:$0xff]  ;;  %v343_v15 = vld [vmem:[#allocation10 + $0xc8] sm:$0xff] }
  0x2f   :  { %168 = vmatpush.msra.mxu0 %v97_v51  ;;  %250 = vmatpush.msra.mxu2 %v99_v52  ;;  %v141_v16 = vld [vmem:[#allocation4 + $0x10] sm:$0xff]  ;;  %v340_v17 = vld [vmem:[#allocation10 + $0xb0] sm:$0xff]  ;;  %v350_v18 = vld [vmem:[#allocation10 + $0x100] sm:$0xff] }
  0x30   :  { %379 = vmatpush.msra.mxu3 %v324_v53  ;;  %208 = vmatpush.msra.mxu1 %v101_v56  ;;  %v337_v19 = vld [vmem:[#allocation10 + $0x98] sm:$0xff]  ;;  %v347_v20 = vld [vmem:[#allocation10 + $0xe8] sm:$0xff]  ;;  %v334_v21 = vld [vmem:[#allocation10 + $0x80] sm:$0xff] }
  0x31   :  { %169 = vmatpush.msra.mxu0 %v94_v54  ;;  %251 = vmatpush.msra.mxu2 %v96_v55  ;;  %v344_v22 = vld [vmem:[#allocation10 + $0xd0] sm:$0xff]  ;;  %v331_v23 = vld [vmem:[#allocation10 + $0x68] sm:$0xff]  ;;  %v341_v26 = vld [vmem:[#allocation10 + $0xb8] sm:$0xff] }
  0x32   :  { %380 = vmatpush.msra.mxu3 %v321_v57  ;;  %209 = vmatpush.msra.mxu1 %v98_v62  ;;  %v142_v24 = vld [vmem:[#allocation4 + $0x18] sm:$0xff]  ;;  %v325_v27 = vld [vmem:[#allocation10 + $0x38] sm:$0xff]  ;;  %v338_v28 = vld [vmem:[#allocation10 + $0xa0] sm:$0xff] }
  0x33   :  { %170 = vmatpush.msra.mxu0 %v91_v58  ;;  %252 = vmatpush.msra.mxu2 %v93_v59  ;;  %v328_v25 = vld [vmem:[#allocation10 + $0x50] sm:$0xff]  ;;  %v322_v29 = vld [vmem:[#allocation10 + $0x20] sm:$0xff]  ;;  %v335_v30 = vld [vmem:[#allocation10 + $0x88] sm:$0xff] }
  0x34   :  { %381 = vmatpush.msra.mxu3 %v318_v60  ;;  %171 = vmatmul.f32.vlgmr.msra.gmra.mxu0 %v139_v61  ;;  %v319_v31 = vld [vmem:[#allocation10 + $0x8] sm:$0xff]  ;;  %v143_v32 = vld [vmem:[#allocation4 + $0x20] sm:$0xff]  ;;  %v332_v33 = vld [vmem:[#allocation10 + $0x70] sm:$0xff] }
  0x35   :  { %253 = vmatmul.f32.vlgmr.msra.gmra.mxu2 %v139_v61  ;;  %210 = vmatpush.msra.mxu1 %v95_v0  ;;  %v329_v34 = vld [vmem:[#allocation10 + $0x58] sm:$0xff]  ;;  %v326_v35 = vld [vmem:[#allocation10 + $0x40] sm:$0xff]  ;;  %v323_v36 = vld [vmem:[#allocation10 + $0x28] sm:$0xff] }
  0x36   :  { %386 = vmatpush.msrb.mxu3 %v364_v63  ;;  %406 = vmatpush.msrb.mxu0 %v365_v4  ;;  %v144_v37 = vld [vmem:[#allocation4 + $0x28] sm:$0xff]  ;;  %v320_v38 = vld [vmem:[#allocation10 + $0x10] sm:$0xff]  ;;  %v145_v39 = vld [vmem:[#allocation4 + $0x30] sm:$0xff] }
  0x37   :  { %382 = vmatmul.f32.vlgmr.msra.gmra.mxu3 %v6339_v1  ;;  %211 = vmatpush.msra.mxu1 %v92_v3  ;;  %v146_v40 = vld [vmem:[#allocation4 + $0x38] sm:$0xff] }
  0x38   :  { %387 = vmatpush.msrb.mxu3 %v361_v2  ;;  %212 = vmatmul.f32.vlgmr.msra.gmra.mxu1 %v139_v61  ;;  %v147_v41 = vld [vmem:[%s11919_s4] sm:$0x7] }
  0x39   :  { %407 = vmatpush.msrb.mxu0 %v362_v6  ;;  %v6347_v42 = vperm.slane %v147_v41, 0  ;;  %v6350_v45 = vperm.slane %v147_v41, 1  ;;  %v6352_v46 = vperm.slane %v147_v41, 2 }
  0x3a   :  { %388 = vmatpush.msrb.mxu3 %v358_v5 }
  0x3b   :  { %408 = vmatpush.msrb.mxu0 %v359_v10 }
  0x3c   :  { %389 = vmatpush.msrb.mxu3 %v355_v7  ;;  %174 = vmatmul.f32.gmra.mxu0 %v140_v8 }
  0x3d   :  { %256 = vmatmul.f32.gmra.mxu2 %v140_v8  ;;  %409 = vmatpush.msrb.mxu0 %v356_v12 }
  0x3e   :  { %390 = vmatpush.msrb.mxu3 %v352_v9 }
  0x3f   :  { %410 = vmatpush.msrb.mxu0 %v353_v14 }
  0x40   :  { %391 = vmatpush.msrb.mxu3 %v349_v11  ;;  %215 = vmatmul.f32.gmra.mxu1 %v140_v8 }
  0x41   :  { %411 = vmatpush.msrb.mxu0 %v350_v18 }
  0x42   :  { %392 = vmatpush.msrb.mxu3 %v346_v13 }
  0x43   :  { %412 = vmatpush.msrb.mxu0 %v347_v20 }
  0x44   :  { %393 = vmatpush.msrb.mxu3 %v343_v15  ;;  %177 = vmatmul.f32.gmra.mxu0 %v141_v16 }
  0x45   :  { %259 = vmatmul.f32.gmra.mxu2 %v141_v16  ;;  %413 = vmatpush.msrb.mxu0 %v344_v22 }
  0x46   :  { %394 = vmatpush.msrb.mxu3 %v340_v17 }
  0x47   :  { %414 = vmatpush.msrb.mxu0 %v341_v26 }
  0x48   :  { %395 = vmatpush.msrb.mxu3 %v337_v19  ;;  %218 = vmatmul.f32.gmra.mxu1 %v141_v16 }
  0x49   :  { %415 = vmatpush.msrb.mxu0 %v338_v28 }
  0x4a   :  { %396 = vmatpush.msrb.mxu3 %v334_v21 }
  0x4b   :  { %416 = vmatpush.msrb.mxu0 %v335_v30 }
  0x4c   :  { %397 = vmatpush.msrb.mxu3 %v331_v23  ;;  %180 = vmatmul.f32.gmra.mxu0 %v142_v24 }
  0x4d   :  { %262 = vmatmul.f32.gmra.mxu2 %v142_v24  ;;  %417 = vmatpush.msrb.mxu0 %v332_v33 }
  0x4e   :  { %398 = vmatpush.msrb.mxu3 %v328_v25 }
  0x4f   :  { %418 = vmatpush.msrb.mxu0 %v329_v34 }
  0x50   :  { %399 = vmatpush.msrb.mxu3 %v325_v27  ;;  %221 = vmatmul.f32.gmra.mxu1 %v142_v24 }
  0x51   :  { %419 = vmatpush.msrb.mxu0 %v326_v35 }
  0x52   :  { %400 = vmatpush.msrb.mxu3 %v322_v29 }
  0x53   :  { %420 = vmatpush.msrb.mxu0 %v323_v36 }
  0x54   :  { %401 = vmatpush.msrb.mxu3 %v319_v31  ;;  %183 = vmatmul.f32.gmra.mxu0 %v143_v32 }
  0x55   :  { %402 = vmatmul.f32.vlgmr.msrb.gmra.mxu3 %v6339_v1  ;;  %265 = vmatmul.f32.gmra.mxu2 %v143_v32 }
  0x56   :  { %421 = vmatpush.msrb.mxu0 %v320_v38 }
  0x58   :  { %224 = vmatmul.f32.gmra.mxu1 %v143_v32 }
  0x5c   :  { %186 = vmatmul.f32.gmra.mxu0 %v144_v37 }
  0x5d   :  { %268 = vmatmul.f32.gmra.mxu2 %v144_v37 }
  0x60   :  { %227 = vmatmul.f32.gmra.mxu1 %v144_v37 }
  0x64   :  { %189 = vmatmul.f32.gmra.mxu0 %v145_v39 }
  0x65   :  { %271 = vmatmul.f32.gmra.mxu2 %v145_v39 }
  0x68   :  { %230 = vmatmul.f32.gmra.mxu1 %v145_v39 }
  0x6c   :  { %192 = vmatmul.f32.gmra.mxu0 %v146_v40 }
  0x6d   :  { %274 = vmatmul.f32.gmra.mxu2 %v146_v40 }
  0x70   :  { %233 = vmatmul.f32.gmra.mxu1 %v146_v40 }
  0x74   :  { %422 = vmatmul.f32.vlgmr.msrb.gmra.mxu0 %v6339_v1 }
  0xb1   :  { %v172_v43 = vpop.f32.mrf.mxu0 }
  0xb2   :  { %v173_v44 = vadd.f32 %v172_v43, %v6347_v42 }
  0xb4   :  { %278 = vst [vmem:[#allocation3] sm:$0xff] %v173_v44 }
  0xb5   :  { %v213_v47 = vpop.f32.mrf.mxu1 }
  0xb6   :  { %v214_v48 = vadd.f32 %v213_v47, %v6350_v45 }
  0xb8   :  { %v254_v49 = vpop.f32.mrf.mxu2  ;;  %279 = vst [vmem:[#allocation3 + $0x8] sm:$0xff] %v214_v48 }
  0xb9   :  { %v255_v50 = vadd.f32 %v254_v49, %v6352_v46  ;;  %v175_v51 = vpop.f32.mrf.mxu0 }
  0xba   :  { %v176_v52 = vadd.f32 %v175_v51, %v6347_v42  ;;  %v6358_v56 = vpop.f32.mrf.mxu3 }
  0xbb   :  { %280 = vst [vmem:[#allocation3 + $0x10] sm:$0xff] %v255_v50  ;;  %v427_v0 = vrot.slane %v6358_v56, 1  ;;  %v428_v12 = vrot.slane %v6358_v56, 2  ;;  %v429_v25 = vrot.slane %v6358_v56, 3 }
  0xbc   :  { %281 = vst [vmem:[#allocation3 + $0x18] sm:$0xff] %v176_v52 }
  0xbd   :  { %v216_v53 = vpop.f32.mrf.mxu1 }
  0xbe   :  { %v217_v54 = vadd.f32 %v216_v53, %v6350_v45 }
  0xc0   :  { %v257_v55 = vpop.f32.mrf.mxu2  ;;  %282 = vst [vmem:[#allocation3 + $0x20] sm:$0xff] %v217_v54 }
  0xc1   :  { %v258_v57 = vadd.f32 %v257_v55, %v6352_v46  ;;  %v178_v58 = vpop.f32.mrf.mxu0 }
  0xc2   :  { %v179_v59 = vadd.f32 %v178_v58, %v6347_v42  ;;  %v6362_v60 = vld [vmem:[#allocation3] ss:$8 sm:$0x7] }
  0xc3   :  { %283 = vst [vmem:[#allocation3 + $0x28] sm:$0xff] %v258_v57  ;;  %v441_v61 = vadd.f32 %v6358_v56, %v6362_v60  ;;  %v609_v28 = vrot.slane %v6362_v60, 1 }
  0xc4   :  { %284 = vst [vmem:[#allocation3 + $0x30] sm:$0xff] %v179_v59 }
  0xc5   :  { %v5323_v62 = vmul.f32 -1.442695, %v441_v61  ;;  %v219_v63 = vpop.f32.mrf.mxu1 }
  0xc6   :  { %v220_v2 = vadd.f32 %v219_v63, %v6350_v45 }
  0xc7   :  { %5468 = vpow2.f32 %v5323_v62 }
  0xc8   :  { %v260_v3 = vpop.f32.mrf.mxu2  ;;  %285 = vst [vmem:[#allocation3 + $0x38] sm:$0xff] %v220_v2 }
  0xc9   :  { %v261_v4 = vadd.f32 %v260_v3, %v6352_v46  ;;  %v181_v5 = vpop.f32.mrf.mxu0 }
  0xca   :  { %v6369_v6 = vld [vmem:[#allocation3 + $0x18] ss:$8 sm:$0x7]  ;;  %v182_v7 = vadd.f32 %v181_v5, %v6347_v42 }
  0xcb   :  { %v442_v8 = vadd.f32 %v427_v0, %v6369_v6  ;;  %286 = vst [vmem:[#allocation3 + $0x40] sm:$0xff] %v261_v4  ;;  %v610_v36 = vrot.slane %v6369_v6, 1 }
  0xcc   :  { %287 = vst [vmem:[#allocation3 + $0x48] sm:$0xff] %v182_v7 }
  0xcd   :  { %v5469_v9 = vpop.eup %5468  ;;  %v5324_v10 = vmul.f32 -1.442695, %v442_v8  ;;  %v222_v11 = vpop.f32.mrf.mxu1 }
  0xce   :  { %v6374_v13 = vadd.f32 1.0, %v5469_v9  ;;  %v223_v14 = vadd.f32 %v222_v11, %v6350_v45  ;;  %v430_v9 = vrot.slane %v6358_v56, 4 }
  0xcf   :  { %5470 = vpow2.f32 %v5324_v10  ;;  %v431_v10 = vrot.slane %v6358_v56, 5 }
  0xd0   :  { %v263_v15 = vpop.f32.mrf.mxu2  ;;  %288 = vst [vmem:[#allocation3 + $0x50] sm:$0xff] %v223_v14  ;;  %5472 = vrcp.f32 %v6374_v13  ;;  %v490_v4 = vand.u32 2147483647, %v6374_v13  ;;  %v492_v8 = vand.u32 2147483648, %v6374_v13  ;;  %v432_v14 = vrot.slane %v6358_v56, 6 }
  0xd1   :  { %v264_v16 = vadd.f32 %v263_v15, %v6352_v46  ;;  %v184_v17 = vpop.f32.mrf.mxu0  ;;  %v433_v15 = vrot.slane %v6358_v56, 7  ;;  %vm486_vm0 = vweird.f32 %v6374_v13 }
  0xd2   :  { %v185_v18 = vadd.f32 %v184_v17, %v6347_v42  ;;  %v6379_v19 = vld [vmem:[#allocation3 + $0x30] ss:$8 sm:$0x7]  ;;  %vm6427_vm1 = vcmp.eq.f32.partialorder %v490_v4, 8.507059e+37 }
  0xd3   :  { %289 = vst [vmem:[#allocation3 + $0x58] sm:$0xff] %v264_v16  ;;  %v443_v20 = vadd.f32 %v428_v12, %v6379_v19  ;;  %v611_v37 = vrot.slane %v6379_v19, 1  ;;  %v828_v16 = vrot.slane %v6362_v60, 2 }
  0xd4   :  { %290 = vst [vmem:[#allocation3 + $0x60] sm:$0xff] %v185_v18 }
  0xd5   :  { %v5471_v21 = vpop.eup %5470  ;;  %v5325_v22 = vmul.f32 -1.442695, %v443_v20  ;;  %v225_v24 = vpop.f32.mrf.mxu1 }
  0xd6   :  { %v6383_v23 = vadd.f32 1.0, %v5471_v21  ;;  %v226_v27 = vadd.f32 %v225_v24, %v6350_v45  ;;  %v6391_v30 = vpop.eup %5472 }
  0xd7   :  { %5474 = vpow2.f32 %v5325_v22  ;;  %v482_v41 = vmul.f32 %v6391_v30, %v6374_v13  ;;  %vm487_vm2 = vweird.f32 %v6391_v30 }
  0xd8   :  { %v6386_v26 = vpop.f32.mrf.mxu3  ;;  %5476 = vrcp.f32 %v6383_v23  ;;  %v266_v29 = vpop.f32.mrf.mxu2  ;;  %291 = vst [vmem:[#allocation3 + $0x68] sm:$0xff] %v226_v27  ;;  %v493_v27 = vor.u32 1.1754944e-38, %v492_v8  ;;  %vm501_vm3 = vweird.f32 %v6383_v23  ;;  %vm6458_vm5 = vmor %vm486_vm0, %vm487_vm2 }
  0xd9   :  { %v626_v31 = vrot.slane %v6386_v26, 1  ;;  %v627_v32 = vrot.slane %v6386_v26, 2  ;;  %v628_v33 = vrot.slane %v6386_v26, 3  ;;  %v187_v34 = vpop.f32.mrf.mxu0  ;;  %v640_v38 = vadd.f32 %v609_v28, %v6386_v26 }
  0xda   :  { %v6396_v35 = vld [vmem:[#allocation3 + $0x48] ss:$8 sm:$0x7]  ;;  %v483_v57 = vsub.f32 1.0, %v482_v41  ;;  %v267_v62 = vadd.f32 %v266_v29, %v6352_v46  ;;  %v188_v63 = vadd.f32 %v187_v34, %v6347_v42  ;;  %v505_v28 = vand.u32 2147483647, %v6383_v23 }
  0xdb   :  { %v444_v39 = vadd.f32 %v429_v25, %v6396_v35  ;;  %v612_v40 = vrot.slane %v6396_v35, 1  ;;  %v641_v43 = vadd.f32 %v626_v31, %v610_v36  ;;  %v642_v44 = vadd.f32 %v627_v32, %v611_v37 }
  0xdc   :  { %v5331_v50 = vmul.f32 -1.442695, %v640_v38  ;;  %292 = vst [vmem:[#allocation3 + $0x70] sm:$0xff] %v267_v62  ;;  %v484_v11 = vmul.f32 %v6391_v30, %v483_v57  ;;  %v507_v29 = vand.u32 2147483648, %v6383_v23  ;;  %vm6462_vm6 = vcmp.eq.f32.partialorder %v505_v28, 8.507059e+37 }
  0xdd   :  { %v5475_v47 = vpop.eup %5474  ;;  %v5326_v48 = vmul.f32 -1.442695, %v444_v39  ;;  %v643_v49 = vadd.f32 %v628_v33, %v612_v40  ;;  %v5332_v52 = vmul.f32 -1.442695, %v641_v43  ;;  %v228_v53 = vpop.f32.mrf.mxu1  ;;  %v5333_v55 = vmul.f32 -1.442695, %v642_v44 }
  0xde   :  { %v6405_v51 = vpop.eup %5476  ;;  %v6409_v61 = vadd.f32 1.0, %v5475_v47  ;;  %v229_v0 = vadd.f32 %v228_v53, %v6350_v45  ;;  %293 = vst [vmem:[#allocation3 + $0x78] sm:$0xff] %v188_v63  ;;  %v485_v34 = vadd.f32 %v6391_v30, %v484_v11  ;;  %v630_v53 = vrot.slane %v6386_v26, 5 }
  0xdf   :  { %v497_v54 = vmul.f32 %v6405_v51, %v6383_v23  ;;  %5478 = vpow2.f32 %v5326_v48  ;;  %v5334_v58 = vmul.f32 -1.442695, %v643_v49  ;;  %vm502_vm4 = vweird.f32 %v6405_v51 }
  0xe0   :  { %v269_v59 = vpop.f32.mrf.mxu2  ;;  %5480 = vpow2.f32 %v5331_v50  ;;  %294 = vst [vmem:[#allocation3 + $0x80] sm:$0xff] %v229_v0  ;;  %v508_v49 = vor.u32 1.1754944e-38, %v507_v29  ;;  %v629_v50 = vrot.slane %v6386_v26, 4  ;;  %v489_v13 = vsel %vm6458_vm5, %v6391_v30, %v485_v34  ;;  %vm6479_vm7 = vmor %vm501_vm3, %vm502_vm4 }
  0xe1   :  { %5482 = vpow2.f32 %v5332_v52  ;;  %v270_v2 = vadd.f32 %v269_v59, %v6352_v46  ;;  %v190_v3 = vpop.f32.mrf.mxu0  ;;  %v498_v5 = vsub.f32 1.0, %v497_v54  ;;  %v631_v59 = vrot.slane %v6386_v26, 6 }
  0xe2   :  { %5484 = vpow2.f32 %v5333_v55  ;;  %v191_v7 = vadd.f32 %v190_v3, %v6347_v42  ;;  %v522_v55 = vand.u32 2147483648, %v6409_v61  ;;  %v632_v62 = vrot.slane %v6386_v26, 7 }
  0xe3   :  { %5486 = vpow2.f32 %v5334_v58  ;;  %295 = vst [vmem:[#allocation3 + $0x88] sm:$0xff] %v270_v2  ;;  %v499_v22 = vmul.f32 %v6405_v51, %v498_v5  ;;  %v6471_v54 = vld [vmem:[#allocation3 + $0x60] ss:$8 sm:$0x7]  ;;  %v877_v63 = vrot.slane %v6339_v1, 1  ;;  %v878_v23 = vrot.slane %v6339_v1, 2 }
  0xe4   :  { %5488 = vrcp.f32 %v6409_v61  ;;  %296 = vst [vmem:[#allocation3 + $0x90] sm:$0xff] %v191_v7  ;;  %v879_v3 = vrot.slane %v6339_v1, 3  ;;  %v445_v4 = vadd.f32 %v430_v9, %v6471_v54  ;;  %v613_v5 = vrot.slane %v6471_v54, 1 }
  0xe5   :  { %v5479_v12 = vpop.eup %5478  ;;  %v231_v18 = vpop.f32.mrf.mxu1  ;;  %v500_v43 = vadd.f32 %v6405_v51, %v499_v22  ;;  %v6503_v7 = vsel %vm6427_vm1, %v493_v27, %v489_v13 }
  0xe6   :  { %v5481_v20 = vpop.eup %5480  ;;  %v232_v24 = vadd.f32 %v231_v18, %v6350_v45  ;;  %v6468_v52 = vadd.f32 1.0, %v5479_v12  ;;  %v520_v12 = vand.u32 2147483647, %v6409_v61  ;;  %v6513_v18 = vor.u32 1.1754944e-38, %v522_v55 }
  0xe7   :  { %v5483_v25 = vpop.eup %5482  ;;  %v6435_v31 = vadd.f32 1.0, %v5481_v20  ;;  %v504_v0 = vsel %vm6479_vm7, %v6405_v51, %v500_v43  ;;  %v5327_v22 = vmul.f32 -1.442695, %v445_v4  ;;  %v644_v28 = vadd.f32 %v629_v50, %v613_v5 }
  0xe8   :  { %v272_v32 = vpop.f32.mrf.mxu2  ;;  %v5485_v33 = vpop.eup %5484  ;;  %v6439_v36 = vadd.f32 1.0, %v5483_v25  ;;  %297 = vst [vmem:[#allocation3 + $0x98] sm:$0xff] %v232_v24  ;;  %v6522_v24 = vsel %vm6462_vm6, %v508_v49, %v504_v0  ;;  %v535_v29 = vand.u32 2147483647, %v6468_v52 }
  0xe9   :  { %v273_v37 = vadd.f32 %v272_v32, %v6352_v46  ;;  %v5487_v38 = vpop.eup %5486  ;;  %v6443_v39 = vadd.f32 1.0, %v5485_v33  ;;  %5490 = vrcp.f32 %v6435_v31  ;;  %v691_v33 = vand.u32 2147483648, %v6435_v31  ;;  %v193_v40 = vpop.f32.mrf.mxu0 }
  0xea   :  { %v6447_v41 = vpop.eup %5488  ;;  %v6451_v44 = vadd.f32 1.0, %v5487_v38  ;;  %5492 = vrcp.f32 %v6439_v36  ;;  %v6510_v51 = vld [vmem:[#allocation3 + $0x78] ss:$8 sm:$0x7]  ;;  %vm685_vm8 = vweird.f32 %v6435_v31  ;;  %v689_v38 = vand.u32 2147483647, %v6435_v31 }
  0xeb   :  { %298 = vst [vmem:[#allocation3 + $0xa0] sm:$0xff] %v273_v37  ;;  %5494 = vrcp.f32 %v6443_v39  ;;  %v6485_v58 = vmul.f32 %v6447_v41, %v6409_v61  ;;  %v446_v34 = vadd.f32 %v431_v10, %v6510_v51  ;;  %v614_v37 = vrot.slane %v6510_v51, 1 }
  0xec   :  { %5496 = vrcp.f32 %v6451_v44  ;;  %v5335_v50 = vmul.f32 -1.442695, %v644_v28  ;;  %vm700_vm9 = vweird.f32 %v6439_v36  ;;  %v704_v0 = vand.u32 2147483647, %v6439_v36 }
  0xed   :  { %5498 = vrcp.f32 %v6468_v52  ;;  %v513_v20 = vsub.f32 1.0, %v6485_v58  ;;  %v5328_v13 = vmul.f32 -1.442695, %v446_v34  ;;  %v645_v55 = vadd.f32 %v630_v53, %v614_v37 }
  0xee   :  { %5500 = vpow2.f32 %v5327_v22  ;;  %v706_v4 = vand.u32 2147483648, %v6439_v36  ;;  %vm715_vm10 = vweird.f32 %v6443_v39  ;;  %vm6552_vm11 = vcmp.eq.f32.partialorder %v689_v38, 8.507059e+37 }
  0xef   :  { %v6496_v2 = vpop.eup %5490  ;;  %5502 = vpow2.f32 %v5335_v50  ;;  %v721_v34 = vand.u32 2147483648, %v6443_v39  ;;  %vm6560_vm13 = vcmp.eq.f32.partialorder %v704_v0, 8.507059e+37  ;;  %vm730_vm14 = vweird.f32 %v6451_v44 }
  0xf0   :  { %v6505_v8 = vpop.eup %5492  ;;  %v681_v11 = vmul.f32 %v6496_v2, %v6435_v31  ;;  %5504 = vpow2.f32 %v5328_v13  ;;  %vm686_vm12 = vweird.f32 %v6496_v2  ;;  %v707_v50 = vor.u32 1.1754944e-38, %v706_v4 }
  0xf1   :  { %v6515_v9 = vpop.eup %5494  ;;  %v696_v21 = vmul.f32 %v6505_v8, %v6439_v36  ;;  %vm701_vm15 = vweird.f32 %v6505_v8  ;;  %vm6578_vm1 = vmor %vm685_vm8, %vm686_vm12  ;;  %vm517_vm5 = vweird.f32 %v6447_v41  ;;  %vm516_vm8 = vweird.f32 %v6409_v61 }
  0xf2   :  { %v682_v25 = vsub.f32 1.0, %v681_v11  ;;  %v711_v27 = vmul.f32 %v6515_v9, %v6443_v39  ;;  %v6527_v32 = vpop.eup %5496  ;;  %v6538_v48 = vld [vmem:[#allocation3 + $0x90] ss:$8 sm:$0x7]  ;;  %v692_v11 = vor.u32 1.1754944e-38, %v691_v33  ;;  %vm716_vm0 = vweird.f32 %v6515_v9  ;;  %vm6596_vm3 = vmor %vm700_vm9, %vm701_vm15 }
  0xf3   :  { %v697_v43 = vsub.f32 1.0, %v696_v21  ;;  %v726_v47 = vmul.f32 %v6527_v32, %v6451_v44  ;;  %v6540_v57 = vpop.eup %5498  ;;  %v5336_v21 = vmul.f32 -1.442695, %v645_v55  ;;  %v447_v22 = vadd.f32 %v432_v14, %v6538_v48  ;;  %vm6613_vm4 = vmor %vm715_vm10, %vm716_vm0 }
  0xf4   :  { %v712_v49 = vsub.f32 1.0, %v711_v27  ;;  %v683_v10 = vmul.f32 %v6496_v2, %v682_v25  ;;  %v719_v25 = vand.u32 2147483647, %v6443_v39  ;;  %v5501_v27 = vpop.eup %5500  ;;  %v6567_v38 = vmul.f32 %v6540_v57, %v6468_v52 }
  0xf5   :  { %v727_v5 = vsub.f32 1.0, %v726_v47  ;;  %v698_v53 = vmul.f32 %v6505_v8, %v697_v43  ;;  %5506 = vpow2.f32 %v5336_v21  ;;  %v5329_v37 = vmul.f32 -1.442695, %v447_v22  ;;  %v5503_v0 = vpop.eup %5502  ;;  %v275_v22 = vpop.f32.mrf.mxu2 }
  0xf6   :  { %v713_v33 = vmul.f32 %v6515_v9, %v712_v49  ;;  %v684_v14 = vadd.f32 %v6496_v2, %v683_v10  ;;  %v736_v49 = vand.u32 2147483648, %v6451_v44  ;;  %v6574_v55 = vadd.f32 1.0, %v5501_v27  ;;  %v234_v10 = vpop.f32.mrf.mxu1 }
  0xf7   :  { %v728_v47 = vmul.f32 %v6527_v32, %v727_v5  ;;  %v699_v13 = vadd.f32 %v6505_v8, %v698_v53  ;;  %vm731_vm2 = vweird.f32 %v6527_v32  ;;  %5508 = vpow2.f32 %v5329_v37  ;;  %v5505_v53 = vpop.eup %5504 }
  0xf8   :  { %v714_v4 = vadd.f32 %v6515_v9, %v713_v33  ;;  %v615_v21 = vrot.slane %v6538_v48, 1  ;;  %v688_v27 = vsel %vm6578_vm1, %v6496_v2, %v684_v14  ;;  %5510 = vrcp.f32 %v6574_v55  ;;  %vm6636_vm7 = vmor %vm730_vm14, %vm731_vm2 }
  0xf9   :  { %v729_v30 = vadd.f32 %v6527_v32, %v728_v47  ;;  %v6590_v31 = vadd.f32 1.0, %v5503_v0  ;;  %v6600_v37 = vadd.f32 1.0, %v5505_v53  ;;  %v194_v14 = vadd.f32 %v193_v40, %v6347_v42  ;;  %v976_v40 = vld [vmem:[#allocation10 + $0x168] sm:$0xff] }
  0xfa   :  { %v646_v2 = vadd.f32 %v631_v59, %v615_v21  ;;  %v235_v47 = vadd.f32 %v234_v10, %v6350_v45  ;;  %v703_v0 = vsel %vm6596_vm3, %v6505_v8, %v699_v13  ;;  %v276_v42 = vadd.f32 %v275_v22, %v6352_v46  ;;  %1004 = vmatpush.msrb.mxu1 %v976_v40 }
  0xfb   :  { %v5507_v17 = vpop.eup %5506  ;;  %5512 = vrcp.f32 %v6590_v31  ;;  %v718_v45 = vsel %vm6613_vm4, %v6515_v9, %v714_v4  ;;  %v734_v59 = vand.u32 2147483647, %v6451_v44  ;;  %299 = vst [vmem:[#allocation3 + $0xa8] sm:$0xff] %v194_v14  ;;  %v528_v8 = vsub.f32 1.0, %v6567_v38 }
  0xfc   :  { %v6618_v5 = vadd.f32 1.0, %v5507_v17  ;;  %5514 = vrcp.f32 %v6600_v37  ;;  %v5337_v39 = vmul.f32 -1.442695, %v646_v2  ;;  %v6630_v17 = vsel %vm6552_vm11, %v692_v11, %v688_v27  ;;  %300 = vst [vmem:[#allocation3 + $0xb0] sm:$0xff] %v235_v47 }
  0xfd   :  { %vm720_vm6 = vcmp.eq.f32.partialorder %v719_v25, 8.507059e+37  ;;  %v722_v46 = vor.u32 1.1754944e-38, %v721_v34  ;;  %v5509_v13 = vpop.eup %5508  ;;  %v6643_v38 = vsel %vm6560_vm13, %v707_v50, %v703_v0  ;;  %v733_v11 = vsel %vm6636_vm7, %v6527_v32, %v729_v30  ;;  %301 = vst [vmem:[#allocation3 + $0xb8] sm:$0xff] %v276_v42  ;;  %vm6723_vm13 = vmor %vm516_vm8, %vm517_vm5 }
  0xfe   :  { %v737_v25 = vor.u32 1.1754944e-38, %v736_v49  ;;  %5516 = vpow2.f32 %v5337_v39  ;;  %v6648_v44 = vpop.eup %5510  ;;  %v6653_v34 = vadd.f32 1.0, %v5509_v13  ;;  %v514_v43 = vmul.f32 %v6447_v41, %v513_v20 }
  0xff   :  { %v6650_v28 = vsel %vm720_vm6, %v722_v46, %v718_v45  ;;  %5518 = vrcp.f32 %v6618_v5  ;;  %vm531_vm9 = vweird.f32 %v6468_v52  ;;  %vm735_vm10 = vcmp.eq.f32.partialorder %v734_v59, 8.507059e+37 }
 0x100   :  { %v832_v32 = vrot.slane %v6471_v54, 2  ;;  %v833_v50 = vrot.slane %v6510_v51, 2  ;;  %v6664_v10 = vsel %vm735_vm10, %v737_v25, %v733_v11  ;;  %5520 = vrcp.f32 %v6653_v34 }
 0x101   :  { %v6662_v49 = vpop.eup %5512  ;;  %v529_v4 = vmul.f32 %v6540_v57, %v528_v8  ;;  %v542_v58 = vmul.f32 %v6648_v44, %v6574_v55  ;;  %v6676_v53 = vmul.f32 %v6630_v17, %v6339_v1  ;;  %v6681_v27 = vmul.f32 %v877_v63, %v6643_v38 }
 0x102   :  { %v6670_v20 = vpop.eup %5514  ;;  %vm6685_vm11 = vcmp.eq.f32.partialorder %v520_v12, 8.507059e+37  ;;  %v6692_v2 = vmul.f32 %v878_v23, %v6650_v28  ;;  %v515_v14 = vadd.f32 %v6447_v41, %v514_v43  ;;  %v537_v47 = vand.u32 2147483648, %v6468_v52 }
 0x103   :  { %v557_v0 = vmul.f32 %v6670_v20, %v6600_v37  ;;  %v6702_v12 = vmul.f32 %v879_v3, %v6664_v10  ;;  %v834_v42 = vrot.slane %v6538_v48, 2  ;;  %vm532_vm12 = vweird.f32 %v6540_v57 }
 0x104   :  { %v5517_v63 = vpop.eup %5516  ;;  %v741_v40 = vmul.f32 %v6662_v49, %v6590_v31  ;;  %v6712_v59 = vld [vmem:[#allocation3 + $0xa8] ss:$8 sm:$0x7]  ;;  %v530_v39 = vadd.f32 %v6540_v57, %v529_v4  ;;  %v543_v8 = vsub.f32 1.0, %v542_v58  ;;  %vm6729_vm14 = vcmp.eq.f32.partialorder %v535_v29, 8.507059e+37  ;;  %vm6749_vm0 = vmor %vm531_vm9, %vm532_vm12 }
 0x105   :  { %v6706_v23 = vpop.eup %5518  ;;  %v6710_v45 = vadd.f32 1.0, %v5517_v63  ;;  %v448_v1 = vadd.f32 %v433_v15, %v6712_v59  ;;  %v616_v3 = vrot.slane %v6712_v59, 1  ;;  %v558_v13 = vsub.f32 1.0, %v557_v0 }
 0x106   :  { %v6733_v11 = vpop.eup %5520  ;;  %v519_v56 = vsel %vm6723_vm13, %v6447_v41, %v515_v14  ;;  %v538_v61 = vor.u32 1.1754944e-38, %v537_v47  ;;  %vm546_vm15 = vweird.f32 %v6574_v55  ;;  %v550_v15 = vand.u32 2147483647, %v6574_v55 }
 0x107   :  { %5522 = vrcp.f32 %v6710_v45  ;;  %v756_v29 = vmul.f32 %v6706_v23, %v6618_v5  ;;  %v5330_v25 = vmul.f32 -1.442695, %v448_v1  ;;  %v647_v43 = vadd.f32 %v632_v62, %v616_v3 }
 0x108   :  { %v572_v41 = vmul.f32 %v6733_v11, %v6653_v34  ;;  %v742_v58 = vsub.f32 1.0, %v741_v40  ;;  %v534_v14 = vsel %vm6749_vm0, %v6540_v57, %v530_v39  ;;  %v544_v47 = vmul.f32 %v6648_v44, %v543_v8 }
 0x109   :  { %v552_v26 = vand.u32 2147483648, %v6574_v55  ;;  %5524 = vpow2.f32 %v5330_v25  ;;  %v5338_v62 = vmul.f32 -1.442695, %v647_v43  ;;  %v559_v52 = vmul.f32 %v6670_v20, %v558_v13 }
 0x10a   :  { %v573_v0 = vsub.f32 1.0, %v572_v41  ;;  %v6764_v63 = vsel %vm6685_vm11, %v6513_v18, %v519_v56  ;;  %vm547_vm1 = vweird.f32 %v6648_v44  ;;  %v565_v40 = vand.u32 2147483647, %v6600_v37 }
 0x10b   :  { %v567_v57 = vand.u32 2147483648, %v6600_v37  ;;  %v757_v39 = vsub.f32 1.0, %v756_v29  ;;  %5526 = vpow2.f32 %v5338_v62  ;;  %v6771_v8 = vsel %vm6729_vm14, %v538_v61, %v534_v14  ;;  %vm6798_vm8 = vmor %vm546_vm15, %vm547_vm1 }
 0x10c   :  { %vm6773_vm2 = vcmp.eq.f32.partialorder %v550_v15, 8.507059e+37  ;;  %v553_v18 = vor.u32 1.1754944e-38, %v552_v26  ;;  %vm561_vm3 = vweird.f32 %v6600_v37  ;;  %v574_v33 = vmul.f32 %v6733_v11, %v573_v0 }
 0x10d   :  { %v6777_v3 = vpop.eup %5522  ;;  %v743_v46 = vmul.f32 %v6662_v49, %v742_v58  ;;  %v545_v13 = vadd.f32 %v6648_v44, %v544_v47  ;;  %v560_v56 = vadd.f32 %v6670_v20, %v559_v52  ;;  %vm562_vm4 = vweird.f32 %v6670_v20 }
 0x10e   :  { %vm576_vm5 = vweird.f32 %v6653_v34  ;;  %v771_v9 = vmul.f32 %v6777_v3, %v6710_v45  ;;  %vm6788_vm6 = vcmp.eq.f32.partialorder %v565_v40, 8.507059e+37  ;;  %v568_v15 = vor.u32 1.1754944e-38, %v567_v57  ;;  %vm6809_vm10 = vmor %vm561_vm3, %vm562_vm4 }
 0x10f   :  { %vm745_vm7 = vweird.f32 %v6590_v31  ;;  %v5525_v29 = vpop.eup %5524  ;;  %vm577_vm9 = vweird.f32 %v6733_v11  ;;  %v580_v4 = vand.u32 2147483647, %v6653_v34  ;;  %v758_v41 = vmul.f32 %v6706_v23, %v757_v39 }
 0x110   :  { %v6805_v58 = vadd.f32 1.0, %v5525_v29  ;;  %v575_v55 = vadd.f32 %v6733_v11, %v574_v33  ;;  %v744_v47 = vadd.f32 %v6662_v49, %v743_v46  ;;  %vm746_vm11 = vweird.f32 %v6662_v49  ;;  %vm6831_vm12 = vmor %vm576_vm5, %vm577_vm9  ;;  %v423_v33 = vpop.f32.mrf.mxu0 }
 0x111   :  { %v5527_v26 = vpop.eup %5526  ;;  %v549_v62 = vsel %vm6798_vm8, %v6648_v44, %v545_v13  ;;  %v564_v52 = vsel %vm6809_vm10, %v6670_v20, %v560_v56  ;;  %v582_v37 = vand.u32 2147483648, %v6653_v34  ;;  %v751_v0 = vand.u32 2147483648, %v6590_v31  ;;  %v5460_v20 = vld [vmem:[%s11920_s5] ss:$0 sm:$0xff]  ;;  %vm6845_vm14 = vmor %vm745_vm7, %vm746_vm11 }
 0x112   :  { %v772_v40 = vsub.f32 1.0, %v771_v9  ;;  %5528 = vrcp.f32 %v6805_v58  ;;  %v6825_v57 = vadd.f32 1.0, %v5527_v26  ;;  %v749_v44 = vand.u32 2147483647, %v6590_v31 }
 0x113   :  { %vm6839_vm13 = vcmp.eq.f32.partialorder %v580_v4, 8.507059e+37  ;;  %v6850_v34 = vadd.f32 %v6706_v23, %v758_v41  ;;  %vm761_vm15 = vweird.f32 %v6706_v23  ;;  %v766_v56 = vand.u32 2147483648, %v6618_v5 }
 0x114   :  { %5530 = vrcp.f32 %v6825_v57  ;;  %v554_v9 = vsel %vm6773_vm2, %v553_v18, %v549_v62  ;;  %v579_v31 = vsel %vm6831_vm12, %v6733_v11, %v575_v55  ;;  %v748_v29 = vsel %vm6845_vm14, %v6662_v49, %v744_v47 }
 0x115   :  { %v569_v43 = vsel %vm6788_vm6, %v568_v15, %v564_v52  ;;  %v583_v4 = vor.u32 1.1754944e-38, %v582_v37  ;;  %v752_v41 = vor.u32 1.1754944e-38, %v751_v0  ;;  %vm760_vm0 = vweird.f32 %v6618_v5 }
 0x116   :  { %vm750_vm1 = vcmp.eq.f32.partialorder %v749_v44, 8.507059e+37  ;;  %vm6866_vm3 = vmor %vm760_vm0, %vm761_vm15  ;;  %v764_v1 = vand.u32 2147483647, %v6618_v5  ;;  %v773_v11 = vmul.f32 %v6777_v3, %v772_v40  ;;  %v6872_v18 = vadd.f32 %v5460_v20, %v423_v33 }
 0x117   :  { %v584_v49 = vsel %vm6839_vm13, %v583_v4, %v579_v31  ;;  %v6876_v61 = vsel %vm750_vm1, %v752_v41, %v748_v29  ;;  %v763_v15 = vsel %vm6866_vm3, %v6706_v23, %v6850_v34  ;;  %v767_v55 = vor.u32 1.1754944e-38, %v766_v56 }
 0x118   :  { %v5529_v47 = vpop.eup %5528  ;;  %vm591_vm2 = vweird.f32 %v6805_v58  ;;  %v595_v5 = vand.u32 2147483647, %v6805_v58  ;;  %vm776_vm4 = vweird.f32 %v6777_v3  ;;  %v806_v26 = vrot.slane %v6872_v18, 1 }
 0x119   :  { %v807_v62 = vrot.slane %v6872_v18, 2  ;;  %v587_v52 = vmul.f32 %v5529_v47, %v6805_v58  ;;  %v597_v37 = vand.u32 2147483648, %v6805_v58  ;;  %v808_v0 = vrot.slane %v6872_v18, 3  ;;  %v974_v58 = vld [vmem:[#allocation10 + $0x158] sm:$0xff] }
 0x11a   :  { %v809_v40 = vrot.slane %v6872_v18, 4  ;;  %v6891_v39 = vpop.eup %5530  ;;  %vm6893_vm5 = vcmp.eq.f32.partialorder %v764_v1, 8.507059e+37  ;;  %v6898_v20 = vadd.f32 %v6777_v3, %v773_v11  ;;  %vm775_vm6 = vweird.f32 %v6710_v45 }
 0x11b   :  { %v810_v33 = vrot.slane %v6872_v18, 5  ;;  %v811_v46 = vrot.slane %v6872_v18, 6  ;;  %v820_v13 = vmul.f32 %v6872_v18, %v6503_v7  ;;  %v786_v56 = vmul.f32 %v6891_v39, %v6825_v57  ;;  %vm6958_vm11 = vmor %vm775_vm6, %vm776_vm4 }
 0x11c   :  { %v588_v31 = vsub.f32 1.0, %v587_v52  ;;  %v779_v29 = vand.u32 2147483647, %v6710_v45  ;;  %v821_v4 = vmul.f32 %v806_v26, %v6522_v24  ;;  %vm592_vm7 = vweird.f32 %v5529_v47 }
 0x11d   :  { %v822_v41 = vmul.f32 %v807_v62, %v6764_v63  ;;  %v823_v1 = vmul.f32 %v808_v0, %v6771_v8  ;;  %v824_v11 = vmul.f32 %v809_v40, %v554_v9  ;;  %v787_v36 = vsub.f32 1.0, %v786_v56  ;;  %vm593_vm9 = vmor %vm591_vm2, %vm592_vm7 }
 0x11e   :  { %v589_v22 = vmul.f32 %v5529_v47, %v588_v31  ;;  %v825_v21 = vmul.f32 %v810_v33, %v569_v43  ;;  %v844_v7 = vadd.f32 %v828_v16, %v820_v13  ;;  %vm6913_vm8 = vcmp.eq.f32.partialorder %v595_v5, 8.507059e+37  ;;  %v6925_v16 = vld [vmem:[#allocation10 + $0x170] sm:$0xff]  ;;  %v6927_v5 = vld [vmem:[#allocation10 + $0x178] sm:$0xff] }
 0x11f   :  { %v826_v52 = vmul.f32 %v811_v46, %v584_v49  ;;  %v12071_v25 = vrot.slane %v6369_v6, 2  ;;  %v12072_v26 = vrot.slane %v6379_v19, 2  ;;  %v788_v8 = vmul.f32 %v6891_v39, %v787_v36  ;;  %1024 = vmatpush.msrb.mxu2 %v6925_v16  ;;  %1044 = vmatpush.msra.mxu3 %v6927_v5  ;;  %v6988_v46 = vld [vmem:[#allocation10 + $0x160] sm:$0xff] }
 0x120   :  { %v590_v62 = vadd.f32 %v5529_v47, %v589_v22  ;;  %v812_v9 = vrot.slane %v6872_v18, 7  ;;  %v12073_v43 = vrot.slane %v6396_v35, 2  ;;  %v598_v6 = vor.u32 1.1754944e-38, %v597_v37  ;;  %v970_v18 = vld [vmem:[#allocation10 + $0x138] sm:$0xff]  ;;  %v964_v37 = vld [vmem:[#allocation10 + $0x108] sm:$0xff] }
 0x121   :  { %v845_v24 = vadd.f32 %v12071_v25, %v821_v4  ;;  %v846_v63 = vadd.f32 %v12072_v26, %v822_v41  ;;  %v781_v19 = vand.u32 2147483648, %v6710_v45  ;;  %v848_v22 = vadd.f32 %v832_v32, %v824_v11  ;;  %v973_v25 = vld [vmem:[#allocation10 + $0x150] sm:$0xff]  ;;  %1025 = vmatpush.msrb.mxu2 %v974_v58  ;;  %v962_v4 = vld [vmem:[#allocation10 + $0xf8] sm:$0xff]  ;;  %1045 = vmatpush.msra.mxu3 %v6988_v46  ;;  %v6994_v41 = vld [vmem:[#allocation10 + $0x148] sm:$0xff] }
 0x122   :  { %v847_v60 = vadd.f32 %v12073_v43, %v823_v1  ;;  %5532 = vtanh.f32 %v844_v7  ;;  %v594_v35 = vsel %vm593_vm9, %v5529_v47, %v590_v62  ;;  %vm791_vm10 = vweird.f32 %v6891_v39  ;;  %1005 = vmatpush.msrb.mxu1 %v973_v25  ;;  %v971_v47 = vld [vmem:[#allocation10 + $0x140] sm:$0xff]  ;;  %v7017_v25 = vld [vmem:[#allocation10 + $0x118] sm:$0xff] }
 0x123   :  { %v849_v36 = vadd.f32 %v833_v50, %v825_v21  ;;  %5534 = vtanh.f32 %v845_v24  ;;  %v599_v49 = vsel %vm6913_vm8, %v598_v6, %v594_v35  ;;  %v789_v54 = vadd.f32 %v6891_v39, %v788_v8  ;;  %v967_v21 = vld [vmem:[#allocation10 + $0x120] sm:$0xff]  ;;  %1026 = vmatpush.msrb.mxu2 %v971_v47  ;;  %1046 = vmatpush.msra.mxu3 %v6994_v41 }
 0x124   :  { %v850_v32 = vadd.f32 %v834_v42, %v826_v52  ;;  %5536 = vtanh.f32 %v846_v63  ;;  %v6952_v51 = vsel %vm6893_vm5, %v767_v55, %v763_v15  ;;  %v796_v30 = vand.u32 2147483648, %v6825_v57  ;;  %v968_v42 = vld [vmem:[#allocation10 + $0x128] sm:$0xff]  ;;  %1006 = vmatpush.msrb.mxu1 %v970_v18  ;;  %v959_v6 = vld [vmem:[#allocation10 + $0xe0] sm:$0xff] }
 0x125   :  { %v827_v50 = vmul.f32 %v812_v9, %v599_v49  ;;  %5538 = vtanh.f32 %v847_v60  ;;  %v778_v23 = vsel %vm6958_vm11, %v6777_v3, %v6898_v20  ;;  %vm790_vm12 = vweird.f32 %v6825_v57  ;;  %v6985_v20 = vld [vmem:[#allocation7] sm:$0xff]  ;;  %1027 = vmatpush.msrb.mxu2 %v968_v42  ;;  %v952_v42 = vld [vmem:[#allocation10 + $0xa8] sm:$0xff] }
 0x126   :  { %v794_v34 = vand.u32 2147483647, %v6825_v57  ;;  %5540 = vtanh.f32 %v848_v22  ;;  %vm6969_vm13 = vcmp.eq.f32.partialorder %v779_v29, 8.507059e+37  ;;  %v782_v14 = vor.u32 1.1754944e-38, %v781_v19  ;;  %vm6975_vm14 = vmor %vm790_vm12, %vm791_vm10  ;;  %v965_v57 = vld [vmem:[#allocation10 + $0x110] sm:$0xff]  ;;  %1007 = vmatpush.msrb.mxu1 %v967_v21  ;;  %v958_v60 = vld [vmem:[#allocation10 + $0xd8] sm:$0xff] }
 0x127   :  { %v12080_v3 = vrot.slane %v6712_v59, 2  ;;  %5542 = vtanh.f32 %v849_v36  ;;  %v793_v40 = vsel %vm6975_vm14, %v6891_v39, %v789_v54  ;;  %v864_v44 = vsub.f32 1.0, %v6876_v61  ;;  %v961_v39 = vld [vmem:[#allocation10 + $0xf0] sm:$0xff]  ;;  %1028 = vmatpush.msrb.mxu2 %v965_v57 }
 0x128   :  { %v5533_v0 = vpop.eup %5532  ;;  %5544 = vtanh.f32 %v850_v32  ;;  %v880_v33 = vrot.slane %v6985_v20, 4  ;;  %v797_v13 = vor.u32 1.1754944e-38, %v796_v30  ;;  %v12081_v56 = vsub.f32 1.0, %v6630_v17  ;;  %1008 = vmatpush.msrb.mxu1 %v964_v37  ;;  %v7001_v17 = vld [vmem:[#allocation10 + $0x130] sm:$0xff]  ;;  %v956_v32 = vld [vmem:[#allocation10 + $0xc8] sm:$0xff] }
 0x129   :  { %v851_v55 = vadd.f32 %v12080_v3, %v827_v50  ;;  %v5535_v59 = vpop.eup %5534  ;;  %v881_v29 = vrot.slane %v6985_v20, 5  ;;  %v783_v11 = vsel %vm6969_vm13, %v782_v14, %v778_v23  ;;  %vm795_vm15 = vcmp.eq.f32.partialorder %v794_v34, 8.507059e+37  ;;  %1029 = vmatpush.msrb.mxu2 %v962_v4  ;;  %1047 = vmatpush.msra.mxu3 %v7001_v17  ;;  %v953_v23 = vld [vmem:[#allocation10 + $0xb0] sm:$0xff]  ;;  %v7038_v14 = vld [vmem:[#allocation10 + $0xe8] sm:$0xff] }
 0x12a   :  { %v868_v31 = vmul.f32 %v5533_v0, %v12081_v56  ;;  %v5537_v1 = vpop.eup %5536  ;;  %v865_v7 = vsub.f32 1.0, %v6952_v51  ;;  %v12082_v52 = vsub.f32 1.0, %v6643_v38  ;;  %v798_v63 = vsel %vm795_vm15, %v797_v13, %v793_v40  ;;  %1009 = vmatpush.msrb.mxu1 %v961_v39  ;;  %v949_v3 = vld [vmem:[#allocation10 + $0x90] sm:$0xff]  ;;  %v946_v0 = vld [vmem:[#allocation10 + $0x78] sm:$0xff]  ;;  %v947_v40 = vld [vmem:[#allocation10 + $0x80] sm:$0xff] }
 0x12b   :  { %5546 = vtanh.f32 %v851_v55  ;;  %v5539_v26 = vpop.eup %5538  ;;  %v12083_v62 = vsub.f32 1.0, %v6650_v28  ;;  %v882_v9 = vrot.slane %v6985_v20, 6  ;;  %v12085_v19 = vsub.f32 1.0, %v6664_v10  ;;  %v955_v10 = vld [vmem:[#allocation10 + $0xc0] sm:$0xff]  ;;  %1030 = vmatpush.msrb.mxu2 %v959_v6  ;;  %1048 = vmatpush.msra.mxu3 %v7017_v25  ;;  %v950_v55 = vld [vmem:[#allocation10 + $0x98] sm:$0xff]  ;;  %v7047_v57 = vld [vmem:[#allocation10 + $0xd0] sm:$0xff] }
 0x12c   :  { %v869_v24 = vmul.f32 %v5535_v59, %v12082_v52  ;;  %v7007_v43 = vadd.f32 %v6676_v53, %v868_v31  ;;  %v5541_v38 = vpop.eup %5540  ;;  %v883_v35 = vrot.slane %v6985_v20, 7  ;;  %v895_v36 = vmul.f32 %v880_v33, %v6876_v61  ;;  %1010 = vmatpush.msrb.mxu1 %v958_v60  ;;  %v943_v20 = vld [vmem:[#allocation10 + $0x60] sm:$0xff]  ;;  %v944_v33 = vld [vmem:[#allocation10 + $0x68] sm:$0xff]  ;;  %v941_v56 = vld [vmem:[#allocation10 + $0x50] sm:$0xff] }
 0x12d   :  { %v870_v8 = vmul.f32 %v5537_v1, %v12083_v62  ;;  %v871_v22 = vmul.f32 %v5539_v26, %v12085_v19  ;;  %v5543_v53 = vpop.eup %5542  ;;  %v866_v58 = vsub.f32 1.0, %v783_v11  ;;  %v872_v18 = vmul.f32 %v5541_v38, %v864_v44  ;;  %1031 = vmatpush.msrb.mxu2 %v956_v32  ;;  %v954_v44 = vld [vmem:[#allocation10 + $0xb8] sm:$0xff]  ;;  %v951_v59 = vld [vmem:[#allocation10 + $0xa0] sm:$0xff]  ;;  %v940_v13 = vld [vmem:[#allocation10 + $0x48] sm:$0xff] }
 0x12e   :  { %12084 = vst [vmem:[#allocation17_spill] sm:$0xff] %v7007_v43  ;;  %v7015_v28 = vadd.f32 %v6681_v27, %v869_v24  ;;  %v896_v49 = vmul.f32 %v881_v29, %v6952_v51  ;;  %v5545_v27 = vpop.eup %5544  ;;  %v867_v61 = vsub.f32 1.0, %v798_v63  ;;  %v873_v47 = vmul.f32 %v5543_v53, %v865_v7  ;;  %v7029_v51 = vld [vmem:[#allocation10 + $0x100] sm:$0xff]  ;;  %1011 = vmatpush.msrb.mxu1 %v955_v10  ;;  %v948_v31 = vld [vmem:[#allocation10 + $0x88] sm:$0xff]  ;;  %v937_v29 = vld [vmem:[#allocation10 + $0x30] sm:$0xff] }
 0x12f   :  { %v7021_v54 = vadd.f32 %v6692_v2, %v870_v8  ;;  %907 = vst [vmem:[#allocation12] sm:$0x1] %v7007_v43  ;;  %v7026_v48 = vadd.f32 %v6702_v12, %v871_v22  ;;  %v874_v30 = vmul.f32 %v5545_v27, %v866_v58  ;;  %v897_v50 = vmul.f32 %v882_v9, %v783_v11  ;;  %v938_v39 = vld [vmem:[#allocation10 + $0x38] sm:$0xff]  ;;  %v945_v4 = vld [vmem:[#allocation10 + $0x70] sm:$0xff]  ;;  %v935_v11 = vld [vmem:[#allocation10 + $0x20] sm:$0xff] }
 0x130   :  { %12086 = vst [vmem:[#allocation18_spill] sm:$0xff] %v7015_v28  ;;  %v7031_v21 = vadd.f32 %v895_v36, %v872_v18  ;;  %v898_v12 = vmul.f32 %v883_v35, %v798_v63  ;;  %v7035_v45 = vadd.f32 %v896_v49, %v873_v47  ;;  %1049 = vmatpush.msra.mxu3 %v7029_v51  ;;  %v934_v1 = vld [vmem:[#allocation10 + $0x18] sm:$0xff]  ;;  %v931_v52 = vld [vmem:[#allocation10] sm:$0xff]  ;;  %v932_v24 = vld [vmem:[#allocation10 + $0x8] sm:$0xff] }
 0x131   :  { %12087 = vst [vmem:[#allocation19_spill] sm:$0xff] %v7021_v54  ;;  %v5547_v2 = vpop.eup %5546  ;;  %v7040_v15 = vadd.f32 %v897_v50, %v874_v30  ;;  %1012 = vmatpush.msrb.mxu1 %v952_v42  ;;  %1032 = vmatpush.msrb.mxu2 %v953_v23  ;;  %v942_v7 = vld [vmem:[#allocation10 + $0x58] sm:$0xff]  ;;  %v939_v26 = vld [vmem:[#allocation10 + $0x40] sm:$0xff]  ;;  %v936_v63 = vld [vmem:[#allocation10 + $0x28] sm:$0xff] }
 0x132   :  { %12088 = vst [vmem:[#allocation20_spill] sm:$0xff] %v7026_v48  ;;  %v875_v34 = vmul.f32 %v5547_v2, %v867_v61  ;;  %1050 = vmatpush.msra.mxu3 %v7038_v14  ;;  %v933_v62 = vld [vmem:[#allocation10 + $0x10] sm:$0xff]  ;;  %v7081_v58 = vld [vmem:[#allocation3 + $0x61] ss:$8 sm:$0x7] }
 0x133   :  { %908 = vst [vmem:[#allocation12 + $0x8] sm:$0x1] %v7015_v28  ;;  %1013 = vmatpush.msrb.mxu1 %v949_v3  ;;  %1033 = vmatpush.msrb.mxu2 %v950_v55  ;;  %v7073_v9 = vld [vmem:[#allocation3 + $0x19] ss:$8 sm:$0x7] }
 0x134   :  { %12089 = vst [vmem:[#allocation21_spill] sm:$0xff] %v7031_v21  ;;  %v7044_v37 = vadd.f32 %v898_v12, %v875_v34  ;;  %1051 = vmatpush.msra.mxu3 %v7047_v57  ;;  %v7075_v6 = vld [vmem:[#allocation3 + $0x31] ss:$8 sm:$0x7] }
 0x135   :  { %909 = vst [vmem:[#allocation12 + $0x10] sm:$0x1] %v7021_v54  ;;  %1014 = vmatpush.msrb.mxu1 %v946_v0  ;;  %1034 = vmatpush.msrb.mxu2 %v947_v40  ;;  %v7079_v36 = vld [vmem:[#allocation3 + $0x49] ss:$8 sm:$0x7] }
 0x136   :  { %12090 = vst [vmem:[#allocation22_spill] sm:$0xff] %v7035_v45  ;;  %1052 = vmatpush.msra.mxu3 %v954_v44  ;;  %v7084_v49 = vld [vmem:[#allocation3 + $0x79] ss:$8 sm:$0x7] }
 0x137   :  { %910 = vst [vmem:[#allocation12 + $0x18] sm:$0x1] %v7026_v48  ;;  %1015 = vmatpush.msrb.mxu1 %v943_v20  ;;  %1035 = vmatpush.msrb.mxu2 %v944_v33  ;;  %v7087_v27 = vld [vmem:[#allocation3 + $0x91] ss:$8 sm:$0x7] }
 0x138   :  { %12091 = vst [vmem:[#allocation23_spill] sm:$0xff] %v7040_v15  ;;  %1053 = vmatpush.msra.mxu3 %v951_v59  ;;  %v7091_v42 = vld [vmem:[#allocation3 + $0xa9] ss:$8 sm:$0x7] }
 0x139   :  { %911 = vst [vmem:[#allocation12 + $0x20] sm:$0x1] %v7031_v21  ;;  %1016 = vmatpush.msrb.mxu1 %v940_v13  ;;  %1036 = vmatpush.msrb.mxu2 %v941_v56 }
 0x13a   :  { %12092 = vst [vmem:[#allocation24_spill] sm:$0xff] %v7044_v37  ;;  %1054 = vmatpush.msra.mxu3 %v948_v31 }
 0x13b   :  { %912 = vst [vmem:[#allocation12 + $0x28] sm:$0x1] %v7035_v45  ;;  %1017 = vmatpush.msrb.mxu1 %v937_v29  ;;  %1037 = vmatpush.msrb.mxu2 %v938_v39  ;;  %v1248_v29 = vrot.slane %v7073_v9, 1 }
 0x13c   :  { %913 = vst [vmem:[#allocation12 + $0x30] sm:$0x1] %v7040_v15  ;;  %1055 = vmatpush.msra.mxu3 %v945_v4 }
 0x13d   :  { %914 = vst [vmem:[#allocation12 + $0x38] sm:$0x1] %v7044_v37  ;;  %1018 = vmatpush.msrb.mxu1 %v934_v1  ;;  %1038 = vmatpush.msrb.mxu2 %v935_v11 }
 0x13e   :  { %987 = vst [vmem:[#allocation1] ss:$9 sm:$0xff] %v7007_v43  ;;  %1056 = vmatpush.msra.mxu3 %v942_v7 }
 0x13f   :  { %989 = vst [vmem:[#allocation1 + $0x1] ss:$9 sm:$0xff] %v7015_v28  ;;  %1019 = vmatpush.msrb.mxu1 %v931_v52  ;;  %1039 = vmatpush.msrb.mxu2 %v932_v24  ;;  %v1249_v24 = vrot.slane %v7075_v6, 1 }
 0x140   :  { %991 = vst [vmem:[#allocation1 + $0x2] ss:$9 sm:$0xff] %v7021_v54  ;;  %1057 = vmatpush.msra.mxu3 %v939_v26 }
 0x141   :  { %993 = vst [vmem:[#allocation1 + $0x3] ss:$9 sm:$0xff] %v7026_v48  ;;  %1647 = vmatpush.msra.mxu1 %v6925_v16  ;;  %1667 = vmatpush.msra.mxu2 %v6927_v5 }
 0x142   :  { %995 = vst [vmem:[#allocation1 + $0x4] ss:$9 sm:$0xff] %v7031_v21  ;;  %1058 = vmatpush.msra.mxu3 %v936_v63 }
 0x143   :  { %997 = vst [vmem:[#allocation1 + $0x5] ss:$9 sm:$0xff] %v7035_v45  ;;  %1668 = vmatpush.msra.mxu2 %v6988_v46  ;;  %v7070_v46 = vld [vmem:[#allocation3 + $0x1] ss:$8 sm:$0x7] }
 0x144   :  { %999 = vst [vmem:[#allocation1 + $0x6] ss:$9 sm:$0xff] %v7040_v15  ;;  %1059 = vmatpush.msra.mxu3 %v933_v62 }
 0x145   :  { %1001 = vst [vmem:[#allocation1 + $0x7] ss:$9 sm:$0xff] %v7044_v37  ;;  %1669 = vmatpush.msra.mxu2 %v6994_v41 }
 0x146   :  { %12093 = vst [vmem:[#allocation25_spill] sm:$0xff] %v7070_v46 }
 0x147   :  { %1670 = vmatpush.msra.mxu2 %v7001_v17  ;;  %12094 = vst [vmem:[#allocation26_spill] sm:$0xff] %v7073_v9 }
 0x148   :  { %12095 = vst [vmem:[#allocation27_spill] sm:$0xff] %v7075_v6 }
 0x149   :  { %1671 = vmatpush.msra.mxu2 %v7017_v25  ;;  %12096 = vst [vmem:[#allocation28_spill] sm:$0xff] %v7079_v36 }
 0x14a   :  { %12097 = vst [vmem:[#allocation29_spill] sm:$0xff] %v7081_v58 }
 0x14b   :  { %1672 = vmatpush.msra.mxu2 %v7029_v51  ;;  %12098 = vst [vmem:[#allocation30_spill] sm:$0xff] %v7084_v49 }
 0x14c   :  { %v1002_v8 = vld [vmem:[#allocation1] sm:$0xff]  ;;  %12099 = vst [vmem:[#allocation31_spill] sm:$0xff] %v7087_v27 }
 0x14d   :  { %1020 = vmatmul.f32.vlgmr.msrb.gmra.mxu1 %v1002_v8  ;;  %1040 = vmatmul.f32.vlgmr.msrb.gmra.mxu2 %v1002_v8  ;;  %12100 = vst [vmem:[#allocation32_spill] sm:$0xff] %v7091_v42 }
 0x14e   :  { %1060 = vmatmul.f32.vlgmr.msra.gmra.mxu3 %v1002_v8  ;;  %1673 = vmatpush.msra.mxu2 %v7038_v14  ;;  %v1251_v8 = vrot.slane %v7081_v58, 1 }
 0x150   :  { %1674 = vmatpush.msra.mxu2 %v7047_v57 }
 0x152   :  { %1675 = vmatpush.msra.mxu2 %v954_v44 }
 0x154   :  { %1676 = vmatpush.msra.mxu2 %v951_v59 }
 0x156   :  { %1677 = vmatpush.msra.mxu2 %v948_v31  ;;  %v1247_v31 = vrot.slane %v7070_v46, 1 }
 0x158   :  { %1678 = vmatpush.msra.mxu2 %v945_v4 }
 0x15a   :  { %1679 = vmatpush.msra.mxu2 %v942_v7 }
 0x15c   :  { %1680 = vmatpush.msra.mxu2 %v939_v26 }
 0x15e   :  { %1681 = vmatpush.msra.mxu2 %v936_v63 }
 0x160   :  { %1682 = vmatpush.msra.mxu2 %v933_v62  ;;  %v1250_v62 = vrot.slane %v7079_v36, 1 }
 0x1ca   :  { %v1021_v16 = vpop.f32.mrf.mxu1 }
 0x1cb   :  { %v1065_v5 = vrot.slane %v1021_v16, 1  ;;  %v1066_v41 = vrot.slane %v1021_v16, 2  ;;  %v1079_v17 = vadd.f32 %v1021_v16, %v7070_v46  ;;  %v1067_v60 = vrot.slane %v1021_v16, 3 }
 0x1cc   :  { %v1068_v38 = vrot.slane %v1021_v16, 4  ;;  %v1069_v22 = vrot.slane %v1021_v16, 5  ;;  %v1070_v25 = vrot.slane %v1021_v16, 6  ;;  %v1071_v51 = vrot.slane %v1021_v16, 7 }
 0x1cd   :  { %v1080_v19 = vadd.f32 %v1065_v5, %v7073_v9  ;;  %v1081_v35 = vadd.f32 %v1066_v41, %v7075_v6  ;;  %v5339_v53 = vmul.f32 -1.442695, %v1079_v17  ;;  %v1082_v18 = vadd.f32 %v1067_v60, %v7079_v36 }
 0x1ce   :  { %v1083_v10 = vadd.f32 %v1068_v38, %v7081_v58  ;;  %v1084_v61 = vadd.f32 %v1069_v22, %v7084_v49  ;;  %v1085_v2 = vadd.f32 %v1070_v25, %v7087_v27  ;;  %v1086_v34 = vadd.f32 %v1071_v51, %v7091_v42 }
 0x1cf   :  { %v5340_v32 = vmul.f32 -1.442695, %v1080_v19  ;;  %v5341_v47 = vmul.f32 -1.442695, %v1081_v35  ;;  %5548 = vpow2.f32 %v5339_v53  ;;  %v5342_v30 = vmul.f32 -1.442695, %v1082_v18 }
 0x1d0   :  { %v5343_v50 = vmul.f32 -1.442695, %v1083_v10  ;;  %v5344_v23 = vmul.f32 -1.442695, %v1084_v61  ;;  %v5345_v12 = vmul.f32 -1.442695, %v1085_v2  ;;  %v7098_v20 = vpop.f32.mrf.mxu2 }
 0x1d1   :  { %5550 = vpow2.f32 %v5340_v32  ;;  %v5346_v55 = vmul.f32 -1.442695, %v1086_v34  ;;  %v1264_v1 = vrot.slane %v7098_v20, 1  ;;  %v1265_v11 = vrot.slane %v7098_v20, 2 }
 0x1d2   :  { %5552 = vpow2.f32 %v5341_v47  ;;  %v1266_v7 = vrot.slane %v7098_v20, 3  ;;  %v1267_v26 = vrot.slane %v7098_v20, 4  ;;  %v1278_v5 = vadd.f32 %v1247_v31, %v7098_v20 }
 0x1d3   :  { %5554 = vpow2.f32 %v5342_v30  ;;  %v1279_v41 = vadd.f32 %v1264_v1, %v1248_v29  ;;  %v1280_v17 = vadd.f32 %v1265_v11, %v1249_v24  ;;  %v1268_v2 = vrot.slane %v7098_v20, 5 }
 0x1d4   :  { %5556 = vpow2.f32 %v5343_v50  ;;  %v1281_v19 = vadd.f32 %v1266_v7, %v1250_v62  ;;  %v1282_v22 = vadd.f32 %v1267_v26, %v1251_v8  ;;  %v5347_v10 = vmul.f32 -1.442695, %v1278_v5 }
 0x1d5   :  { %v5549_v14 = vpop.eup %5548  ;;  %5558 = vpow2.f32 %v5344_v23  ;;  %v5348_v32 = vmul.f32 -1.442695, %v1279_v41  ;;  %v5349_v61 = vmul.f32 -1.442695, %v1280_v17  ;;  %v1252_v34 = vrot.slane %v7084_v49, 1 }
 0x1d6   :  { %5560 = vpow2.f32 %v5345_v12  ;;  %v7094_v0 = vadd.f32 1.0, %v5549_v14  ;;  %v5350_v30 = vmul.f32 -1.442695, %v1281_v19  ;;  %v5351_v12 = vmul.f32 -1.442695, %v1282_v22 }
 0x1d7   :  { %v5551_v3 = vpop.eup %5550  ;;  %5562 = vpow2.f32 %v5346_v55  ;;  %v1269_v55 = vrot.slane %v7098_v20, 6  ;;  %v1283_v1 = vadd.f32 %v1268_v2, %v1252_v34  ;;  %v1270_v5 = vrot.slane %v7098_v20, 7 }
 0x1d8   :  { %v5553_v57 = vpop.eup %5552  ;;  %v7096_v44 = vadd.f32 1.0, %v5551_v3  ;;  %5564 = vrcp.f32 %v7094_v0  ;;  %v1130_v23 = vand.u32 2147483648, %v7094_v0  ;;  %vm1124_vm4 = vweird.f32 %v7094_v0 }
 0x1d9   :  { %v5555_v40 = vpop.eup %5554  ;;  %v7100_v59 = vadd.f32 1.0, %v5553_v57 }
 0x1da   :  { %v5557_v33 = vpop.eup %5556  ;;  %v7106_v4 = vadd.f32 1.0, %v5555_v40  ;;  %5566 = vrcp.f32 %v7096_v44  ;;  %v1145_v3 = vand.u32 2147483648, %v7096_v44  ;;  %v7159_v24 = vor.u32 1.1754944e-38, %v1130_v23 }
 0x1db   :  { %v5559_v13 = vpop.eup %5558  ;;  %v7111_v52 = vadd.f32 1.0, %v5557_v33  ;;  %5568 = vrcp.f32 %v7100_v59  ;;  %v1160_v22 = vand.u32 2147483648, %v7100_v59  ;;  %vm1139_vm5 = vweird.f32 %v7096_v44 }
 0x1dc   :  { %v5561_v39 = vpop.eup %5560  ;;  %v7116_v63 = vadd.f32 1.0, %v5559_v13  ;;  %5570 = vrcp.f32 %v7106_v4  ;;  %v1253_v13 = vrot.slane %v7087_v27, 1  ;;  %12101 = vst [vmem:[#allocation33_spill] sm:$0xff] %v7159_v24  ;;  %v7164_v8 = vor.u32 1.1754944e-38, %v1145_v3  ;;  %v1594_v24 = vld [vmem:[#allocation10 + $0x140] sm:$0xff] }
 0x1dd   :  { %v7121_v16 = vadd.f32 1.0, %v5561_v39  ;;  %v5563_v60 = vpop.eup %5562  ;;  %5572 = vrcp.f32 %v7111_v52  ;;  %v1254_v39 = vrot.slane %v7091_v42, 1  ;;  %v1175_v2 = vand.u32 2147483648, %v7106_v4 }
 0x1de   :  { %v7126_v35 = vpop.eup %5564  ;;  %5574 = vrcp.f32 %v7116_v63  ;;  %v7142_v14 = vadd.f32 1.0, %v5563_v60  ;;  %12102 = vst [vmem:[#allocation34_spill] sm:$0xff] %v7164_v8  ;;  %v1284_v41 = vadd.f32 %v1269_v55, %v1253_v13  ;;  %v7187_v51 = vor.u32 1.1754944e-38, %v1160_v22 }
 0x1df   :  { %5576 = vrcp.f32 %v7121_v16  ;;  %v1120_v29 = vmul.f32 %v7126_v35, %v7094_v0  ;;  %v1285_v33 = vadd.f32 %v1270_v5, %v1254_v39  ;;  %v7199_v25 = vor.u32 1.1754944e-38, %v1175_v2 }
 0x1e0   :  { %v7133_v47 = vpop.eup %5566  ;;  %5578 = vpow2.f32 %v5347_v10  ;;  %12103 = vst [vmem:[#allocation35_spill] sm:$0xff] %v7187_v51  ;;  %vm1125_vm0 = vweird.f32 %v7126_v35  ;;  %vm1154_vm6 = vweird.f32 %v7100_v59  ;;  %vm1169_vm7 = vweird.f32 %v7106_v4  ;;  %v5461_v51 = vld [vmem:[%s11920_s5] ss:$0 sm:$0xff] }
 0x1e1   :  { %v7138_v50 = vpop.eup %5568  ;;  %5580 = vpow2.f32 %v5348_v32  ;;  %v1135_v60 = vmul.f32 %v7133_v47, %v7096_v44  ;;  %12104 = vst [vmem:[#allocation36_spill] sm:$0xff] %v7199_v25  ;;  %vm1140_vm1 = vweird.f32 %v7133_v47  ;;  %vm7331_vm13 = vmor %vm1124_vm4, %vm1125_vm0  ;;  %v12128_v8 = vand.u32 2147483647, %v7094_v0 }
 0x1e2   :  { %v7146_v57 = vpop.eup %5570  ;;  %5582 = vpow2.f32 %v5349_v61  ;;  %v1121_v61 = vsub.f32 1.0, %v1120_v29  ;;  %v1150_v20 = vmul.f32 %v7138_v50, %v7100_v59  ;;  %v5353_v29 = vmul.f32 -1.442695, %v1284_v41  ;;  %vm7339_vm12 = vmor %vm1139_vm5, %vm1140_vm1 }
 0x1e3   :  { %v7151_v31 = vpop.eup %5572  ;;  %5584 = vpow2.f32 %v5350_v30  ;;  %v5352_v30 = vmul.f32 -1.442695, %v1283_v1  ;;  %vm1155_vm3 = vweird.f32 %v7138_v50  ;;  %vm1170_vm2 = vweird.f32 %v7146_v57 }
 0x1e4   :  { %v7156_v11 = vpop.eup %5574  ;;  %5586 = vpow2.f32 %v5351_v12  ;;  %v1165_v12 = vmul.f32 %v7146_v57, %v7106_v4  ;;  %v1180_v3 = vmul.f32 %v7151_v31, %v7111_v52  ;;  %v1151_v41 = vsub.f32 1.0, %v1150_v20  ;;  %vm7358_vm1 = vmor %vm1154_vm6, %vm1155_vm3 }
 0x1e5   :  { %v7162_v62 = vpop.eup %5576  ;;  %5588 = vrcp.f32 %v7142_v14  ;;  %v1195_v39 = vmul.f32 %v7156_v11, %v7116_v63  ;;  %vm7366_vm4 = vmor %vm1169_vm7, %vm1170_vm2  ;;  %vm7392_vm7 = vcmp.eq.f32.partialorder %v12128_v8, 8.507059e+37  ;;  %v1593_v8 = vld [vmem:[#allocation10 + $0x138] sm:$0xff] }
 0x1e6   :  { %v5579_v17 = vpop.eup %5578  ;;  %v1181_v22 = vsub.f32 1.0, %v1180_v3  ;;  %v1210_v56 = vmul.f32 %v7162_v62, %v7121_v16  ;;  %v1152_v3 = vmul.f32 %v7138_v50, %v1151_v41 }
 0x1e7   :  { %v5581_v32 = vpop.eup %5580  ;;  %v7174_v23 = vadd.f32 1.0, %v5579_v17  ;;  %v1136_v17 = vsub.f32 1.0, %v1135_v60  ;;  %v1122_v60 = vmul.f32 %v7126_v35, %v1121_v61  ;;  %v1196_v61 = vsub.f32 1.0, %v1195_v39 }
 0x1e8   :  { %v5583_v34 = vpop.eup %5582  ;;  %v7182_v55 = vadd.f32 1.0, %v5581_v32  ;;  %v1190_v32 = vand.u32 2147483648, %v7111_v52  ;;  %v1220_v39 = vand.u32 2147483648, %v7121_v16  ;;  %v1211_v41 = vsub.f32 1.0, %v1210_v56 }
 0x1e9   :  { %v5585_v13 = vpop.eup %5584  ;;  %v7184_v40 = vadd.f32 1.0, %v5583_v34  ;;  %5590 = vrcp.f32 %v7174_v23  ;;  %v1166_v34 = vsub.f32 1.0, %v1165_v12  ;;  %v1137_v38 = vmul.f32 %v7133_v47, %v1136_v17 }
 0x1ea   :  { %v5587_v1 = vpop.eup %5586  ;;  %v7189_v18 = vadd.f32 1.0, %v5585_v13  ;;  %5592 = vrcp.f32 %v7182_v55  ;;  %v5354_v13 = vmul.f32 -1.442695, %v1285_v33  ;;  %v7212_v12 = vor.u32 1.1754944e-38, %v1190_v32 }
 0x1eb   :  { %v7192_v53 = vpop.eup %5588  ;;  %5594 = vpow2.f32 %v5352_v30  ;;  %v7197_v5 = vadd.f32 1.0, %v5587_v1  ;;  %v1205_v17 = vand.u32 2147483648, %v7116_v63  ;;  %v7222_v19 = vadd.f32 %v7126_v35, %v1122_v60 }
 0x1ec   :  { %5596 = vrcp.f32 %v7184_v40  ;;  %v1225_v30 = vmul.f32 %v7192_v53, %v7142_v14  ;;  %12105 = vst [vmem:[#allocation37_spill] sm:$0xff] %v7212_v12  ;;  %v1182_v32 = vmul.f32 %v7151_v31, %v1181_v22  ;;  %v7229_v26 = vadd.f32 %v7133_v47, %v1137_v38  ;;  %v1597_v12 = vld [vmem:[#allocation10 + $0x158] sm:$0xff] }
 0x1ed   :  { %5598 = vpow2.f32 %v5353_v29  ;;  %v1167_v29 = vmul.f32 %v7146_v57, %v1166_v34  ;;  %v1197_v37 = vmul.f32 %v7156_v11, %v1196_v61  ;;  %v1235_v60 = vand.u32 2147483648, %v7142_v14  ;;  %1648 = vmatpush.msra.mxu1 %v1597_v12 }
 0x1ee   :  { %5600 = vrcp.f32 %v7189_v18  ;;  %v1226_v1 = vsub.f32 1.0, %v1225_v30  ;;  %v7243_v56 = vadd.f32 %v7138_v50, %v1152_v3  ;;  %v7248_v30 = vor.u32 1.1754944e-38, %v1205_v17 }
 0x1ef   :  { %v7209_v20 = vpop.eup %5590  ;;  %5602 = vrcp.f32 %v7197_v5  ;;  %v7246_v38 = vadd.f32 %v7146_v57, %v1167_v29  ;;  %v7257_v45 = vadd.f32 %v7151_v31, %v1182_v32  ;;  %v7259_v21 = vor.u32 1.1754944e-38, %v1220_v39  ;;  %1649 = vmatpush.msra.mxu1 %v1594_v24 }
 0x1f0   :  { %v7215_v33 = vpop.eup %5592  ;;  %5604 = vpow2.f32 %v5354_v13  ;;  %v1319_v22 = vmul.f32 %v7209_v20, %v7174_v23  ;;  %12106 = vst [vmem:[#allocation38_spill] sm:$0xff] %v7248_v30  ;;  %v1212_v17 = vmul.f32 %v7162_v62, %v1211_v41  ;;  %v1227_v48 = vmul.f32 %v7192_v53, %v1226_v1  ;;  %v1596_v30 = vld [vmem:[#allocation10 + $0x150] sm:$0xff] }
 0x1f1   :  { %v5595_v10 = vpop.eup %5594  ;;  %v1334_v13 = vmul.f32 %v7215_v33, %v7182_v55  ;;  %12107 = vst [vmem:[#allocation39_spill] sm:$0xff] %v7259_v21  ;;  %v7277_v39 = vor.u32 1.1754944e-38, %v1235_v60  ;;  %v1327_v41 = vand.u32 2147483647, %v7174_v23  ;;  %v1329_v1 = vand.u32 2147483648, %v7174_v23 }
 0x1f2   :  { %v7226_v2 = vpop.eup %5596  ;;  %v7261_v3 = vadd.f32 1.0, %v5595_v10  ;;  %v7275_v10 = vadd.f32 %v7156_v11, %v1197_v37  ;;  %v1320_v43 = vsub.f32 1.0, %v1319_v22  ;;  %v1342_v54 = vand.u32 2147483647, %v7182_v55 }
 0x1f3   :  { %v5599_v7 = vpop.eup %5598  ;;  %v1349_v61 = vmul.f32 %v7226_v2, %v7184_v40  ;;  %12109 = vst [vmem:[#allocation41_spill] sm:$0xff] %v7277_v39  ;;  %v1335_v42 = vsub.f32 1.0, %v1334_v13  ;;  %v1344_v49 = vand.u32 2147483648, %v7182_v55  ;;  %v7288_v37 = vadd.f32 %v7162_v62, %v1212_v17  ;;  %v1582_v39 = vld [vmem:[#allocation10 + $0xe0] sm:$0xff] }
 0x1f4   :  { %v7238_v15 = vpop.eup %5600  ;;  %v7270_v28 = vadd.f32 1.0, %v5599_v7  ;;  %12108 = vst [vmem:[#allocation40_spill] sm:$0xff] %v7275_v10  ;;  %5606 = vrcp.f32 %v7261_v3  ;;  %v7291_v60 = vadd.f32 %v7192_v53, %v1227_v48  ;;  %v1321_v13 = vmul.f32 %v7209_v20, %v1320_v43 }
 0x1f5   :  { %v7252_v34 = vpop.eup %5602  ;;  %v1364_v29 = vmul.f32 %v7238_v15, %v7189_v18  ;;  %v1350_v27 = vsub.f32 1.0, %v1349_v61  ;;  %12110 = vst [vmem:[#allocation42_spill] sm:$0xff] %v7288_v37  ;;  %vm1323_vm10 = vweird.f32 %v7174_v23  ;;  %v1336_v61 = vmul.f32 %v7215_v33, %v1335_v42 }
 0x1f6   :  { %v5605_v32 = vpop.eup %5604  ;;  %v1379_v7 = vmul.f32 %v7252_v34, %v7197_v5  ;;  %12111 = vst [vmem:[#allocation43_spill] sm:$0xff] %v7291_v60  ;;  %5608 = vrcp.f32 %v7270_v28  ;;  %vm1338_vm11 = vweird.f32 %v7182_v55  ;;  %vm7308_vm9 = vcmp.eq.f32.partialorder %v1327_v41, 8.507059e+37 }
 0x1f7   :  { %v1365_v58 = vsub.f32 1.0, %v1364_v29  ;;  %v7293_v22 = vadd.f32 1.0, %v5605_v32  ;;  %v7302_v29 = vor.u32 1.1754944e-38, %v1329_v1  ;;  %v1351_v48 = vmul.f32 %v7226_v2, %v1350_v27 }
 0x1f8   :  { %v1380_v17 = vsub.f32 1.0, %v1379_v7  ;;  %vm7312_vm8 = vcmp.eq.f32.partialorder %v1342_v54, 8.507059e+37  ;;  %v7316_v32 = vor.u32 1.1754944e-38, %v1344_v49  ;;  %v1357_v1 = vand.u32 2147483647, %v7184_v40  ;;  %v1599_v54 = vld [vmem:[#allocation10 + $0x168] sm:$0xff] }
 0x1f9   :  { %v1366_v27 = vmul.f32 %v7238_v15, %v1365_v58  ;;  %vm1324_vm14 = vweird.f32 %v7209_v20  ;;  %v1359_v7 = vand.u32 2147483648, %v7184_v40  ;;  %5610 = vrcp.f32 %v7293_v22  ;;  %1627 = vmatpush.msra.mxu0 %v1599_v54  ;;  %2250 = vmatpush.msrb.mxu3 %v1599_v54  ;;  %v12188_v58 = vld [vmem:[#allocation33_spill] sm:$0xff] }
 0x1fa   :  { %v7325_v41 = vpop.eup %5606  ;;  %v7345_v36 = vadd.f32 %v7209_v20, %v1321_v13  ;;  %v7348_v6 = vadd.f32 %v7215_v33, %v1336_v61  ;;  %vm1339_vm0 = vweird.f32 %v7215_v33  ;;  %v1372_v9 = vand.u32 2147483647, %v7189_v18  ;;  %vm7379_vm3 = vmor %vm1323_vm10, %vm1324_vm14 }
 0x1fb   :  { %v1352_v61 = vadd.f32 %v7226_v2, %v1351_v48  ;;  %vm1354_vm15 = vweird.f32 %v7226_v2  ;;  %v1374_v54 = vand.u32 2147483648, %v7189_v18  ;;  %v1381_v21 = vmul.f32 %v7252_v34, %v1380_v17  ;;  %1628 = vmatpush.msra.mxu0 %v1596_v30  ;;  %vm7400_vm10 = vmor %vm1338_vm11, %vm1339_vm0  ;;  %2251 = vmatpush.msrb.mxu3 %v1596_v30 }
 0x1fc   :  { %v7352_v46 = vpop.eup %5608  ;;  %vm7383_vm2 = vcmp.eq.f32.partialorder %v1357_v1, 8.507059e+37  ;;  %v1367_v48 = vadd.f32 %v7238_v15, %v1366_v27  ;;  %v1389_v17 = vand.u32 2147483648, %v7197_v5  ;;  %v12129_v23 = vmov 0 }
 0x1fd   :  { %v12130_v23 = vsel %vm7392_vm7, 4294967295, %v12129_v23  ;;  %v1360_v27 = vor.u32 1.1754944e-38, %v1359_v7  ;;  %v7407_v12 = vmul.f32 %v7325_v41, %v7261_v3  ;;  %v1404_v0 = vand.u32 2147483648, %v7261_v3  ;;  %1629 = vmatpush.msra.mxu0 %v1593_v8  ;;  %2252 = vmatpush.msrb.mxu3 %v1593_v8  ;;  %v1588_v8 = vld [vmem:[#allocation10 + $0x110] sm:$0xff] }
 0x1fe   :  { %12131 = vst [vmem:[#allocation44_spill] sm:$0xff] %v12130_v23  ;;  %v12134_v23 = vand.u32 2147483647, %v7096_v44  ;;  %v12135_v55 = vmov 0  ;;  %v12137_v60 = vand.u32 2147483647, %v7100_v59  ;;  %v1326_v59 = vsel %vm7379_vm3, %v7209_v20, %v7345_v36 }
 0x1ff   :  { %v12138_v7 = vmov 0  ;;  %v12140_v37 = vand.u32 2147483647, %v7106_v4  ;;  %v12141_v10 = vmov 0  ;;  %v12143_v30 = vand.u32 2147483647, %v7111_v52  ;;  %v7456_v25 = vpop.eup %5610 }
 0x200   :  { %vm7412_vm5 = vcmp.eq.f32.partialorder %v12134_v23, 8.507059e+37  ;;  %vm7418_vm11 = vcmp.eq.f32.partialorder %v12137_v60, 8.507059e+37  ;;  %v12144_v44 = vmov 0  ;;  %v1341_v4 = vsel %vm7400_vm10, %v7215_v33, %v7348_v6  ;;  %v1585_v60 = vld [vmem:[#allocation10 + $0xf8] sm:$0xff] }
 0x201   :  { %v12136_v55 = vsel %vm7412_vm5, 4294967295, %v12135_v55  ;;  %v12139_v7 = vsel %vm7418_vm11, 4294967295, %v12138_v7  ;;  %vm7424_vm0 = vcmp.eq.f32.partialorder %v12140_v37, 8.507059e+37  ;;  %vm7430_vm14 = vcmp.eq.f32.partialorder %v12143_v30, 8.507059e+37  ;;  %v12190_v30 = vld [vmem:[#allocation34_spill] sm:$0xff] }
 0x202   :  { %v12142_v10 = vsel %vm7424_vm0, 4294967295, %v12141_v10  ;;  %v12145_v44 = vsel %vm7430_vm14, 4294967295, %v12144_v44  ;;  %vm12146_vm6 = vweird.f32 %v7184_v40  ;;  %vm7450_vm11 = vcmp.eq.f32.partialorder %v1372_v9, 8.507059e+37 }
 0x203   :  { %vm7446_vm0 = vmor %vm12146_vm6, %vm1354_vm15  ;;  %v1409_v36 = vmul.f32 %v7352_v46, %v7270_v28  ;;  %v12151_v6 = vand.u32 2147483647, %v7116_v63  ;;  %v12152_v20 = vmov 0  ;;  %v12154_v40 = vand.u32 2147483647, %v7121_v16 }
 0x204   :  { %v12155_v33 = vmov 0  ;;  %v12157_v9 = vand.u32 2147483647, %v7142_v14  ;;  %v12158_v23 = vmov 0  ;;  %v1356_v1 = vsel %vm7446_vm0, %v7226_v2, %v1352_v61 }
 0x205   :  { %vm7460_vm3 = vcmp.eq.f32.partialorder %v12151_v6, 8.507059e+37  ;;  %vm7466_vm15 = vcmp.eq.f32.partialorder %v12154_v40, 8.507059e+37  ;;  %vm12161_vm10 = vweird.f32 %v7238_v15  ;;  %v1375_v6 = vor.u32 1.1754944e-38, %v1374_v54 }
 0x206   :  { %v12153_v20 = vsel %vm7460_vm3, 4294967295, %v12152_v20  ;;  %v12156_v33 = vsel %vm7466_vm15, 4294967295, %v12155_v33  ;;  %vm7472_vm6 = vcmp.eq.f32.partialorder %v12157_v9, 8.507059e+37  ;;  %vm12162_vm3 = vweird.f32 %v7189_v18  ;;  %v1590_v9 = vld [vmem:[#allocation10 + $0x120] sm:$0xff]  ;;  %v12194_v18 = vld [vmem:[#allocation36_spill] sm:$0xff] }
 0x207   :  { %v12159_v23 = vsel %vm7472_vm6, 4294967295, %v12158_v23  ;;  %vm7483_vm14 = vmor %vm12162_vm3, %vm12161_vm10  ;;  %v7488_v40 = vadd.f32 %v7252_v34, %v1381_v21  ;;  %vm12165_vm0 = vweird.f32 %v7151_v31  ;;  %vm12166_vm6 = vweird.f32 %v7111_v52  ;;  %1630 = vmatpush.msra.mxu0 %v1590_v9  ;;  %2253 = vmatpush.msrb.mxu3 %v1590_v9  ;;  %v12196_v52 = vld [vmem:[#allocation37_spill] sm:$0xff] }
 0x208   :  { %12160 = vst [vmem:[#allocation45_spill] sm:$0xff] %v12159_v23  ;;  %v1591_v23 = vld [vmem:[#allocation10 + $0x128] sm:$0xff]  ;;  %vm7495_vm5 = vmor %vm12166_vm6, %vm12165_vm0  ;;  %v1371_v2 = vsel %vm7483_vm14, %v7238_v15, %v1367_v48  ;;  %v1387_v21 = vand.u32 2147483647, %v7197_v5  ;;  %v7503_v61 = vor.u32 1.1754944e-38, %v1389_v17  ;;  %vm12169_vm3 = vweird.f32 %v7156_v11 }
 0x209   :  { %v1402_v24 = vand.u32 2147483647, %v7261_v3  ;;  %vm12170_vm10 = vweird.f32 %v7116_v63  ;;  %v7517_v54 = vsel %vm7308_vm9, %v7302_v29, %v1326_v59  ;;  %v7522_v15 = vsel %vm7312_vm8, %v7316_v32, %v1341_v4  ;;  %1650 = vmatpush.msra.mxu1 %v1591_v23  ;;  %v1587_v63 = vld [vmem:[#allocation10 + $0x108] sm:$0xff]  ;;  %v1584_v4 = vld [vmem:[#allocation10 + $0xf0] sm:$0xff] }
 0x20a   :  { %vm7510_vm15 = vmor %vm12170_vm10, %vm12169_vm3  ;;  %v1395_v48 = vsub.f32 1.0, %v7407_v12  ;;  %v7525_v17 = vor.u32 1.1754944e-38, %v1404_v0  ;;  %v7529_v37 = vsel %vm7383_vm2, %v1360_v27, %v1356_v1  ;;  %vm12173_vm9 = vweird.f32 %v7252_v34  ;;  %1631 = vmatpush.msra.mxu0 %v1587_v63  ;;  %v1061_v0 = vpop.f32.mrf.mxu3  ;;  %2254 = vmatpush.msrb.mxu3 %v1587_v63  ;;  %v1578_v63 = vld [vmem:[#allocation10 + $0xc0] sm:$0xff] }
 0x20b   :  { %vm12174_vm14 = vweird.f32 %v7197_v5  ;;  %v1410_v43 = vsub.f32 1.0, %v1409_v36  ;;  %v1417_v42 = vand.u32 2147483647, %v7270_v28  ;;  %v7542_v32 = vmul.f32 %v7456_v25, %v7293_v22  ;;  %1651 = vmatpush.msra.mxu1 %v1588_v8  ;;  %v1579_v8 = vld [vmem:[#allocation10 + $0xc8] sm:$0xff] }
 0x20c   :  { %vm7535_vm6 = vmor %vm12174_vm14, %vm12173_vm9  ;;  %vm12177_vm8 = vweird.f32 %v7162_v62  ;;  %vm12178_vm2 = vweird.f32 %v7121_v16  ;;  %v7557_v27 = vsel %vm7450_vm11, %v1375_v6, %v1371_v2  ;;  %v1127_v59 = vsel %vm7331_vm13, %v7126_v35, %v7222_v19  ;;  %1632 = vmatpush.msra.mxu0 %v1584_v4  ;;  %v12185_v19 = vld [vmem:[#allocation40_spill] sm:$0xff]  ;;  %2255 = vmatpush.msrb.mxu3 %v1584_v4  ;;  %v12192_v6 = vld [vmem:[#allocation35_spill] sm:$0xff] }
 0x20d   :  { %vm7551_vm0 = vmor %vm12178_vm2, %vm12177_vm8  ;;  %v1386_v12 = vsel %vm7535_vm6, %v7252_v34, %v7488_v40  ;;  %v1142_v16 = vsel %vm7339_vm12, %v7133_v47, %v7229_v26  ;;  %vm12181_vm11 = vweird.f32 %v7192_v53  ;;  %vm12182_vm3 = vweird.f32 %v7142_v14  ;;  %1652 = vmatpush.msra.mxu1 %v1585_v60  ;;  %v1576_v60 = vld [vmem:[#allocation10 + $0xb0] sm:$0xff] }
 0x20e   :  { %vm7575_vm10 = vmor %vm12182_vm3, %vm12181_vm11  ;;  %v1419_v23 = vand.u32 2147483648, %v7270_v28  ;;  %v1157_v35 = vsel %vm7358_vm1, %v7138_v50, %v7243_v56  ;;  %v1172_v47 = vsel %vm7366_vm4, %v7146_v57, %v7246_v38  ;;  %v1187_v14 = vsel %vm7495_vm5, %v7151_v31, %v7257_v45  ;;  %v12186_v56 = vld [vmem:[#allocation42_spill] sm:$0xff]  ;;  %v12187_v38 = vld [vmem:[#allocation43_spill] sm:$0xff] }
 0x20f   :  { %v7593_v26 = vmul.f32 %v7325_v41, %v1395_v48  ;;  %v1202_v50 = vsel %vm7510_vm15, %v7156_v11, %v12185_v19  ;;  %v1217_v57 = vsel %vm7551_vm0, %v7162_v62, %v12186_v56  ;;  %v1232_v45 = vsel %vm7575_vm10, %v7192_v53, %v12187_v38  ;;  %v1581_v31 = vld [vmem:[#allocation10 + $0xd8] sm:$0xff]  ;;  %1653 = vmatpush.msra.mxu1 %v1582_v39  ;;  %v1560_v34 = vld [vmem:[#allocation10 + $0x30] sm:$0xff] }
 0x210   :  { %vm1399_vm12 = vweird.f32 %v7325_v41  ;;  %v7609_v49 = vmul.f32 %v7352_v46, %v1410_v43  ;;  %v1425_v11 = vsub.f32 1.0, %v7542_v32  ;;  %v1132_v1 = vsel %vm7392_vm7, %v12188_v58, %v1127_v59  ;;  %1633 = vmatpush.msra.mxu0 %v1581_v31  ;;  %v12202_v32 = vld [vmem:[#allocation39_spill] sm:$0xff]  ;;  %2256 = vmatpush.msrb.mxu3 %v1581_v31  ;;  %v1573_v38 = vld [vmem:[#allocation10 + $0x98] sm:$0xff]  ;;  %v12209_v58 = vld [vmem:[#allocation25_spill] sm:$0xff] }
 0x211   :  { %v1442_v62 = vadd.f32 %v5461_v51, %v1061_v0  ;;  %vm12191_vm13 = vnez %v12136_v55  ;;  %vm12193_vm1 = vnez %v12139_v7  ;;  %vm12195_vm4 = vnez %v12142_v10  ;;  %v12200_v55 = vld [vmem:[#allocation38_spill] sm:$0xff]  ;;  %v12204_v51 = vld [vmem:[#allocation41_spill] sm:$0xff]  ;;  %1654 = vmatpush.msra.mxu1 %v1579_v8 }
 0x212   :  { %v1147_v53 = vsel %vm12191_vm13, %v12190_v30, %v1142_v16  ;;  %v1162_v9 = vsel %vm12193_vm1, %v12192_v6, %v1157_v35  ;;  %v1177_v2 = vsel %vm12195_vm4, %v12194_v18, %v1172_v47  ;;  %vm12197_vm5 = vnez %v12145_v44  ;;  %v12205_v44 = vld [vmem:[#allocation45_spill] sm:$0xff]  ;;  %1634 = vmatpush.msra.mxu0 %v1578_v63 }
 0x213   :  { %v1192_v48 = vsel %vm12197_vm5, %v12196_v52, %v1187_v14  ;;  %vm7627_vm7 = vcmp.eq.f32.partialorder %v1387_v21, 8.507059e+37  ;;  %vm1398_vm15 = vweird.f32 %v7261_v3  ;;  %vm12201_vm9 = vnez %v12153_v20  ;;  %v1575_v20 = vld [vmem:[#allocation10 + $0xa8] sm:$0xff]  ;;  %2257 = vmatpush.msrb.mxu3 %v1578_v63  ;;  %1655 = vmatpush.msra.mxu1 %v1576_v60  ;;  %v1569_v63 = vld [vmem:[#allocation10 + $0x78] sm:$0xff]  ;;  %v7665_v8 = vld [vmem:[#allocation10 + $0x80] sm:$0xff] }
 0x214   :  { %v1207_v7 = vsel %vm12201_vm9, %v12200_v55, %v1202_v50  ;;  %vm12203_vm14 = vnez %v12156_v33  ;;  %vm12206_vm8 = vnez %v12205_v44  ;;  %v1444_v0 = vrot.slane %v1442_v62, 1  ;;  %1635 = vmatpush.msra.mxu0 %v1575_v20  ;;  %12219 = vst [vmem:[#allocation40_spill] sm:$0xff] %v7665_v8  ;;  %vm7696_vm1 = vmor %vm1398_vm15, %vm1399_vm12 }
 0x215   :  { %v1222_v10 = vsel %vm12203_vm14, %v12202_v32, %v1217_v57  ;;  %v1237_v5 = vsel %vm12206_vm8, %v12204_v51, %v1232_v45  ;;  %vm1413_vm2 = vweird.f32 %v7270_v28  ;;  %v1445_v21 = vrot.slane %v1442_v62, 2  ;;  %v1572_v57 = vld [vmem:[#allocation10 + $0x90] sm:$0xff]  ;;  %1656 = vmatpush.msra.mxu1 %v1573_v38  ;;  %2258 = vmatpush.msrb.mxu3 %v1575_v20 }
 0x216   :  { %v1446_v59 = vrot.slane %v1442_v62, 3  ;;  %v1447_v16 = vrot.slane %v1442_v62, 4  ;;  %v1448_v4 = vrot.slane %v1442_v62, 5  ;;  %vm1428_vm0 = vweird.f32 %v7293_v22  ;;  %1636 = vmatpush.msra.mxu0 %v1572_v57  ;;  %v12225_v20 = vld [vmem:[#allocation31_spill] sm:$0xff] }
 0x217   :  { %v1449_v33 = vrot.slane %v1442_v62, 6  ;;  %v1450_v36 = vrot.slane %v1442_v62, 7  ;;  %v1458_v35 = vmul.f32 %v1442_v62, %v1132_v1  ;;  %v1459_v47 = vmul.f32 %v1444_v0, %v1147_v53  ;;  %v12211_v62 = vld [vmem:[#allocation26_spill] sm:$0xff]  ;;  %1657 = vmatpush.msra.mxu1 %v7665_v8  ;;  %2259 = vmatpush.msrb.mxu3 %v1572_v57 }
 0x218   :  { %v1460_v14 = vmul.f32 %v1445_v21, %v1162_v9  ;;  %v1461_v19 = vmul.f32 %v1446_v59, %v1177_v2  ;;  %v1462_v50 = vmul.f32 %v1447_v16, %v1192_v48  ;;  %v1463_v56 = vmul.f32 %v1448_v4, %v1207_v7  ;;  %v12215_v9 = vld [vmem:[#allocation27_spill] sm:$0xff]  ;;  %v12217_v2 = vld [vmem:[#allocation28_spill] sm:$0xff]  ;;  %1637 = vmatpush.msra.mxu0 %v1569_v63  ;;  %v7678_v59 = vld [vmem:[#allocation10 + $0x68] sm:$0xff] }
 0x219   :  { %vm7645_vm11 = vcmp.eq.f32.partialorder %v1402_v24, 8.507059e+37  ;;  %v1426_v31 = vmul.f32 %v7456_v25, %v1425_v11  ;;  %v1464_v39 = vmul.f32 %v1449_v33, %v1222_v10  ;;  %v12210_v13 = vrot.slane %v12209_v58, 2  ;;  %12224 = vst [vmem:[#allocation42_spill] sm:$0xff] %v7678_v59  ;;  %v1563_v16 = vld [vmem:[#allocation10 + $0x48] sm:$0xff]  ;;  %1658 = vmatpush.msra.mxu1 %v7678_v59  ;;  %2260 = vmatpush.msrb.mxu3 %v1569_v63 }
 0x21a   :  { %v12212_v30 = vrot.slane %v12211_v62, 2  ;;  %vm1414_vm3 = vweird.f32 %v7352_v46  ;;  %vm7657_vm10 = vcmp.eq.f32.partialorder %v1417_v42, 8.507059e+37  ;;  %v1465_v24 = vmul.f32 %v1450_v36, %v1237_v5  ;;  %v12220_v42 = vld [vmem:[#allocation29_spill] sm:$0xff]  ;;  %v12222_v5 = vld [vmem:[#allocation30_spill] sm:$0xff] }
 0x21b   :  { %v1482_v1 = vadd.f32 %v12210_v13, %v1458_v35  ;;  %v12216_v18 = vrot.slane %v12215_v9, 2  ;;  %v12218_v52 = vrot.slane %v12217_v2, 2  ;;  %v1397_v55 = vadd.f32 %v7325_v41, %v7593_v26  ;;  %v1566_v26 = vld [vmem:[#allocation10 + $0x60] sm:$0xff]  ;;  %vm7712_vm6 = vmor %vm1413_vm2, %vm1414_vm3  ;;  %v12238_v9 = vld [vmem:[#allocation18_spill] sm:$0xff] }
 0x21c   :  { %v1483_v53 = vadd.f32 %v12212_v30, %v1459_v47  ;;  %v1432_v7 = vand.u32 2147483647, %v7293_v22  ;;  %v12221_v32 = vrot.slane %v12220_v42, 2  ;;  %v1412_v51 = vadd.f32 %v7352_v46, %v7609_v49  ;;  %1638 = vmatpush.msra.mxu0 %v1566_v26  ;;  %v1564_v49 = vld [vmem:[#allocation10 + $0x50] sm:$0xff]  ;;  %2261 = vmatpush.msrb.mxu3 %v1566_v26  ;;  %v12237_v13 = vld [vmem:[#allocation17_spill] sm:$0xff] }
 0x21d   :  { %v1484_v11 = vadd.f32 %v12216_v18, %v1460_v14  ;;  %v1485_v48 = vadd.f32 %v12218_v52, %v1461_v19  ;;  %5612 = vtanh.f32 %v1482_v1  ;;  %v1434_v44 = vand.u32 2147483648, %v7293_v22  ;;  %v12229_v14 = vld [vmem:[#allocation32_spill] sm:$0xff]  ;;  %1659 = vmatpush.msra.mxu1 %v1564_v49  ;;  %v1554_v30 = vld [vmem:[#allocation10] sm:$0xff] }
 0x21e   :  { %v1486_v10 = vadd.f32 %v12221_v32, %v1462_v50  ;;  %v12223_v0 = vrot.slane %v12222_v5, 2  ;;  %5614 = vtanh.f32 %v1483_v53  ;;  %v1427_v4 = vadd.f32 %v7456_v25, %v1426_v31  ;;  %1639 = vmatpush.msra.mxu0 %v1563_v16  ;;  %v1558_v31 = vld [vmem:[#allocation10 + $0x20] sm:$0xff]  ;;  %2262 = vmatpush.msrb.mxu3 %v1563_v16  ;;  %v12245_v16 = vld [vmem:[#allocation22_spill] sm:$0xff] }
 0x21f   :  { %vm1429_vm13 = vweird.f32 %v7456_v25  ;;  %v12226_v60 = vrot.slane %v12225_v20, 2  ;;  %5616 = vtanh.f32 %v1484_v11  ;;  %v1391_v36 = vsel %vm7627_vm7, %v7503_v61, %v1386_v12 }
 0x220   :  { %v1487_v21 = vadd.f32 %v12223_v0, %v1463_v56  ;;  %v1420_v47 = vor.u32 1.1754944e-38, %v1419_v23  ;;  %v12230_v29 = vrot.slane %v12229_v14, 2  ;;  %5618 = vtanh.f32 %v1485_v48  ;;  %v1561_v23 = vld [vmem:[#allocation10 + $0x38] sm:$0xff]  ;;  %vm7725_vm12 = vmor %vm1428_vm0, %vm1429_vm13  ;;  %1640 = vmatpush.msra.mxu0 %v1560_v34  ;;  %2263 = vmatpush.msrb.mxu3 %v1560_v34  ;;  %v6109_v0 = vld [vmem:[#allocation10 + $0x8] sm:$0xff] }
 0x221   :  { %v1488_v33 = vadd.f32 %v12226_v60, %v1464_v39  ;;  %v1401_v40 = vsel %vm7696_vm1, %v7325_v41, %v1397_v55  ;;  %v1498_v61 = vsub.f32 1.0, %v7517_v54  ;;  %v1499_v12 = vsub.f32 1.0, %v7522_v15  ;;  %v1557_v56 = vld [vmem:[#allocation10 + $0x18] sm:$0xff]  ;;  %1660 = vmatpush.msra.mxu1 %v1561_v23 }
 0x222   :  { %v1489_v19 = vadd.f32 %v12230_v29, %v1465_v24  ;;  %5620 = vtanh.f32 %v1486_v10  ;;  %v1416_v41 = vsel %vm7712_vm6, %v7352_v46, %v1412_v51  ;;  %vm7729_vm4 = vcmp.eq.f32.partialorder %v1432_v7, 8.507059e+37  ;;  %1641 = vmatpush.msra.mxu0 %v1557_v56  ;;  %v12241_v55 = vld [vmem:[#allocation20_spill] sm:$0xff]  ;;  %v12243_v51 = vld [vmem:[#allocation21_spill] sm:$0xff]  ;;  %2264 = vmatpush.msrb.mxu3 %v1557_v56 }
 0x223   :  { %v1500_v50 = vsub.f32 1.0, %v7529_v37  ;;  %5622 = vtanh.f32 %v1487_v21  ;;  %v5613_v57 = vpop.eup %5612  ;;  %v1431_v46 = vsel %vm7725_vm12, %v7456_v25, %v1427_v4  ;;  %v1435_v38 = vor.u32 1.1754944e-38, %v1434_v44  ;;  %1661 = vmatpush.msra.mxu1 %v1558_v31  ;;  %v7789_v23 = vld [vmem:[#allocation3 + $0x2] ss:$8 sm:$0x7] }
 0x224   :  { %v1501_v22 = vsub.f32 1.0, %v7557_v27  ;;  %5624 = vtanh.f32 %v1488_v33  ;;  %v5615_v39 = vpop.eup %5614  ;;  %v1406_v58 = vsel %vm7645_vm11, %v7525_v17, %v1401_v40  ;;  %v1514_v1 = vmul.f32 %v7517_v54, %v12237_v13  ;;  %v12239_v54 = vld [vmem:[#allocation19_spill] sm:$0xff]  ;;  %1642 = vmatpush.msra.mxu0 %v1554_v30  ;;  %2265 = vmatpush.msrb.mxu3 %v1554_v30  ;;  %12253 = vst [vmem:[#allocation39_spill] sm:$0xff] %v7789_v23 }
 0x225   :  { %5626 = vtanh.f32 %v1489_v19  ;;  %v1506_v62 = vmul.f32 %v5613_v57, %v1498_v61  ;;  %v5617_v25 = vpop.eup %5616  ;;  %v1421_v53 = vsel %vm7657_vm10, %v1420_v47, %v1416_v41  ;;  %v1502_v24 = vsub.f32 1.0, %v1391_v36  ;;  %1662 = vmatpush.msra.mxu1 %v6109_v0  ;;  %v12247_v33 = vld [vmem:[#allocation23_spill] sm:$0xff]  ;;  %v12249_v47 = vld [vmem:[#allocation24_spill] sm:$0xff] }
 0x226   :  { %v1515_v18 = vmul.f32 %v7522_v15, %v12238_v9  ;;  %v1507_v11 = vmul.f32 %v5615_v39, %v1499_v12  ;;  %v5619_v45 = vpop.eup %5618  ;;  %v1436_v17 = vsel %vm7729_vm4, %v1435_v38, %v1431_v46  ;;  %v1516_v2 = vmul.f32 %v7529_v37, %v12239_v54  ;;  %v7791_v41 = vld [vmem:[#allocation3 + $0x1a] ss:$8 sm:$0x7] }
 0x227   :  { %v1508_v52 = vmul.f32 %v5617_v25, %v1500_v50  ;;  %v7751_v48 = vadd.f32 %v1514_v1, %v1506_v62  ;;  %v1503_v63 = vsub.f32 1.0, %v1406_v58  ;;  %v1517_v7 = vmul.f32 %v7557_v27, %v12241_v55  ;;  %12254 = vst [vmem:[#allocation41_spill] sm:$0xff] %v7791_v41  ;;  %v7795_v57 = vld [vmem:[#allocation3 + $0x32] ss:$8 sm:$0x7] }
 0x228   :  { %v5621_v6 = vpop.eup %5620  ;;  %v1509_v15 = vmul.f32 %v5619_v45, %v1501_v22  ;;  %v7755_v42 = vadd.f32 %v1515_v18, %v1507_v11  ;;  %v1504_v10 = vsub.f32 1.0, %v1421_v53  ;;  %v1518_v44 = vmul.f32 %v1391_v36, %v12243_v51  ;;  %12255 = vst [vmem:[#allocation45_spill] sm:$0xff] %v7795_v57  ;;  %v7798_v39 = vld [vmem:[#allocation3 + $0x4a] ss:$8 sm:$0x7] }
 0x229   :  { %12240 = vst [vmem:[#allocation43_spill] sm:$0xff] %v7751_v48  ;;  %v5623_v32 = vpop.eup %5622  ;;  %v1510_v5 = vmul.f32 %v5621_v6, %v1502_v24  ;;  %v7758_v37 = vadd.f32 %v1516_v2, %v1508_v52  ;;  %v1505_v26 = vsub.f32 1.0, %v1436_v17  ;;  %v1519_v27 = vmul.f32 %v1406_v58, %v12245_v16  ;;  %v7800_v1 = vld [vmem:[#allocation3 + $0x62] ss:$8 sm:$0x7] }
 0x22a   :  { %12242 = vst [vmem:[#allocation33_spill] sm:$0xff] %v7755_v42  ;;  %v5625_v21 = vpop.eup %5624  ;;  %v1511_v4 = vmul.f32 %v5623_v32, %v1503_v63  ;;  %v7762_v20 = vadd.f32 %v1517_v7, %v1509_v15  ;;  %v1520_v49 = vmul.f32 %v1421_v53, %v12247_v33  ;;  %v1521_v14 = vmul.f32 %v1436_v17, %v12249_v47  ;;  %v7803_v30 = vld [vmem:[#allocation3 + $0x7a] ss:$8 sm:$0x7] }
 0x22b   :  { %12244 = vst [vmem:[#allocation44_spill] sm:$0xff] %v7758_v37  ;;  %v5627_v60 = vpop.eup %5626  ;;  %v1512_v36 = vmul.f32 %v5625_v21, %v1504_v10  ;;  %v7766_v35 = vadd.f32 %v1518_v44, %v1510_v5  ;;  %v7806_v53 = vld [vmem:[#allocation3 + $0x92] ss:$8 sm:$0x7]  ;;  %v1870_v7 = vrot.slane %v7789_v23, 1 }
 0x22c   :  { %1530 = vst [vmem:[#allocation12 + $0x1] sm:$0x1] %v7751_v48  ;;  %v1513_v29 = vmul.f32 %v5627_v60, %v1505_v26  ;;  %v7770_v19 = vadd.f32 %v1519_v27, %v1511_v4  ;;  %v7810_v17 = vld [vmem:[#allocation3 + $0xaa] ss:$8 sm:$0x7]  ;;  %v1871_v60 = vrot.slane %v7791_v41, 1 }
 0x22d   :  { %12246 = vst [vmem:[#allocation34_spill] sm:$0xff] %v7762_v20  ;;  %v7773_v34 = vadd.f32 %v1520_v49, %v1512_v36 }
 0x22e   :  { %1531 = vst [vmem:[#allocation12 + $0x9] sm:$0x1] %v7755_v42  ;;  %v7776_v40 = vadd.f32 %v1521_v14, %v1513_v29  ;;  %v1872_v14 = vrot.slane %v7795_v57, 1 }
 0x22f   :  { %12248 = vst [vmem:[#allocation35_spill] sm:$0xff] %v7766_v35 }
 0x230   :  { %1532 = vst [vmem:[#allocation12 + $0x11] sm:$0x1] %v7758_v37 }
 0x231   :  { %12250 = vst [vmem:[#allocation36_spill] sm:$0xff] %v7770_v19 }
 0x232   :  { %1533 = vst [vmem:[#allocation12 + $0x19] sm:$0x1] %v7762_v20 }
 0x233   :  { %12251 = vst [vmem:[#allocation37_spill] sm:$0xff] %v7773_v34 }
 0x234   :  { %1534 = vst [vmem:[#allocation12 + $0x21] sm:$0x1] %v7766_v35 }
 0x235   :  { %12252 = vst [vmem:[#allocation38_spill] sm:$0xff] %v7776_v40 }
 0x236   :  { %1535 = vst [vmem:[#allocation12 + $0x29] sm:$0x1] %v7770_v19 }
 0x237   :  { %1536 = vst [vmem:[#allocation12 + $0x31] sm:$0x1] %v7773_v34 }
 0x238   :  { %1537 = vst [vmem:[#allocation12 + $0x39] sm:$0x1] %v7776_v40 }
 0x239   :  { %1610 = vst [vmem:[#allocation1] ss:$9 sm:$0xff] %v7751_v48 }
 0x23a   :  { %1612 = vst [vmem:[#allocation1 + $0x1] ss:$9 sm:$0xff] %v7755_v42 }
 0x23b   :  { %1614 = vst [vmem:[#allocation1 + $0x2] ss:$9 sm:$0xff] %v7758_v37 }
 0x23c   :  { %1616 = vst [vmem:[#allocation1 + $0x3] ss:$9 sm:$0xff] %v7762_v20 }
 0x23d   :  { %1618 = vst [vmem:[#allocation1 + $0x4] ss:$9 sm:$0xff] %v7766_v35 }
 0x23e   :  { %1620 = vst [vmem:[#allocation1 + $0x5] ss:$9 sm:$0xff] %v7770_v19 }
 0x23f   :  { %1622 = vst [vmem:[#allocation1 + $0x6] ss:$9 sm:$0xff] %v7773_v34 }
 0x240   :  { %1624 = vst [vmem:[#allocation1 + $0x7] ss:$9 sm:$0xff] %v7776_v40 }
 0x241   :  { %12256 = vst [vmem:[#allocation25_spill] sm:$0xff] %v7798_v39 }
 0x242   :  { %12257 = vst [vmem:[#allocation26_spill] sm:$0xff] %v7800_v1 }
 0x243   :  { %12258 = vst [vmem:[#allocation27_spill] sm:$0xff] %v7803_v30 }
 0x244   :  { %12259 = vst [vmem:[#allocation28_spill] sm:$0xff] %v7806_v53 }
 0x245   :  { %12260 = vst [vmem:[#allocation29_spill] sm:$0xff] %v7810_v17 }
 0x247   :  { %v1625_v3 = vld [vmem:[#allocation1] sm:$0xff] }
 0x248   :  { %1643 = vmatmul.f32.vlgmr.msra.gmra.mxu0 %v1625_v3  ;;  %1663 = vmatmul.f32.vlgmr.msra.gmra.mxu1 %v1625_v3 }
 0x249   :  { %1683 = vmatmul.f32.vlgmr.msra.gmra.mxu2 %v1625_v3 }
 0x2c5   :  { %v1644_v61 = vpop.f32.mrf.mxu0  ;;  %v7813_v63 = vpop.f32.mrf.mxu1 }
 0x2c6   :  { %v1688_v12 = vrot.slane %v1644_v61, 1  ;;  %v1689_v28 = vrot.slane %v1644_v61, 2  ;;  %v1702_v43 = vadd.f32 %v1644_v61, %v7789_v23  ;;  %v1690_v56 = vrot.slane %v1644_v61, 3  ;;  %v6111_v23 = vld [vmem:[#allocation10 + $0x140] sm:$0xff] }
 0x2c7   :  { %v1691_v46 = vrot.slane %v1644_v61, 4  ;;  %v1692_v38 = vrot.slane %v1644_v61, 5  ;;  %v1693_v58 = vrot.slane %v1644_v61, 6  ;;  %v1694_v24 = vrot.slane %v1644_v61, 7 }
 0x2c8   :  { %v1703_v50 = vadd.f32 %v1688_v12, %v7791_v41  ;;  %v1704_v22 = vadd.f32 %v1689_v28, %v7795_v57  ;;  %v5355_v31 = vmul.f32 -1.442695, %v1702_v43  ;;  %v1705_v62 = vadd.f32 %v1690_v56, %v7798_v39  ;;  %v8064_v41 = vld [vmem:[#allocation10 + $0x148] sm:$0xff] }
 0x2c9   :  { %v1706_v25 = vadd.f32 %v1691_v46, %v7800_v1  ;;  %v1707_v9 = vadd.f32 %v1692_v38, %v7803_v30  ;;  %v1708_v11 = vadd.f32 %v1693_v58, %v7806_v53  ;;  %v1709_v2 = vadd.f32 %v1694_v24, %v7810_v17  ;;  %12273 = vst [vmem:[#allocation24_spill] sm:$0xff] %v8064_v41 }
 0x2ca   :  { %v5356_v13 = vmul.f32 -1.442695, %v1703_v50  ;;  %5628 = vpow2.f32 %v5355_v31  ;;  %v5357_v18 = vmul.f32 -1.442695, %v1704_v22  ;;  %v5358_v45 = vmul.f32 -1.442695, %v1705_v62 }
 0x2cb   :  { %v5359_v54 = vmul.f32 -1.442695, %v1706_v25  ;;  %v5360_v52 = vmul.f32 -1.442695, %v1707_v9  ;;  %v5361_v6 = vmul.f32 -1.442695, %v1708_v11  ;;  %v1901_v10 = vadd.f32 %v1870_v7, %v7813_v63 }
 0x2cc   :  { %5630 = vpow2.f32 %v5356_v13  ;;  %v5362_v32 = vmul.f32 -1.442695, %v1709_v2  ;;  %v1887_v27 = vrot.slane %v7813_v63, 1  ;;  %v1888_v33 = vrot.slane %v7813_v63, 2 }
 0x2cd   :  { %5632 = vpow2.f32 %v5357_v18  ;;  %v5363_v49 = vmul.f32 -1.442695, %v1901_v10  ;;  %v1889_v29 = vrot.slane %v7813_v63, 3  ;;  %v1873_v12 = vrot.slane %v7798_v39, 1 }
 0x2ce   :  { %5634 = vpow2.f32 %v5358_v45  ;;  %v1890_v28 = vrot.slane %v7813_v63, 4  ;;  %v1874_v56 = vrot.slane %v7800_v1, 1  ;;  %v1891_v46 = vrot.slane %v7813_v63, 5 }
 0x2cf   :  { %5636 = vpow2.f32 %v5359_v54  ;;  %v1902_v38 = vadd.f32 %v1887_v27, %v1871_v60  ;;  %v1892_v31 = vrot.slane %v7813_v63, 6  ;;  %v1903_v58 = vadd.f32 %v1888_v33, %v1872_v14 }
 0x2d0   :  { %v5629_v55 = vpop.eup %5628  ;;  %5638 = vpow2.f32 %v5360_v52  ;;  %v1875_v62 = vrot.slane %v7803_v30, 1  ;;  %v1904_v25 = vadd.f32 %v1889_v29, %v1873_v12  ;;  %v1876_v18 = vrot.slane %v7806_v53, 1 }
 0x2d1   :  { %5640 = vpow2.f32 %v5361_v6  ;;  %v7817_v51 = vadd.f32 1.0, %v5629_v55  ;;  %v1893_v11 = vrot.slane %v7813_v63, 7  ;;  %v1905_v45 = vadd.f32 %v1890_v28, %v1874_v56 }
 0x2d2   :  { %v5631_v15 = vpop.eup %5630  ;;  %5642 = vpow2.f32 %v5362_v32  ;;  %v1877_v52 = vrot.slane %v7810_v17, 1  ;;  %v5364_v6 = vmul.f32 -1.442695, %v1902_v38  ;;  %v1906_v7 = vadd.f32 %v1891_v46, %v1875_v62 }
 0x2d3   :  { %v5633_v44 = vpop.eup %5632  ;;  %v7819_v5 = vadd.f32 1.0, %v5631_v15  ;;  %5644 = vrcp.f32 %v7817_v51  ;;  %v1907_v15 = vadd.f32 %v1892_v31, %v1876_v18  ;;  %v5365_v32 = vmul.f32 -1.442695, %v1903_v58 }
 0x2d4   :  { %v5635_v4 = vpop.eup %5634  ;;  %v7828_v47 = vadd.f32 1.0, %v5633_v44  ;;  %v5366_v44 = vmul.f32 -1.442695, %v1904_v25  ;;  %v1908_v60 = vadd.f32 %v1893_v11, %v1877_v52  ;;  %v5367_v33 = vmul.f32 -1.442695, %v1905_v45 }
 0x2d5   :  { %v5637_v36 = vpop.eup %5636  ;;  %5646 = vrcp.f32 %v7819_v5  ;;  %v7837_v50 = vadd.f32 1.0, %v5635_v4  ;;  %v1753_v14 = vand.u32 2147483648, %v7817_v51  ;;  %v5368_v12 = vmul.f32 -1.442695, %v1906_v7 }
 0x2d6   :  { %v5639_v3 = vpop.eup %5638  ;;  %v7841_v22 = vadd.f32 1.0, %v5637_v36  ;;  %5648 = vpow2.f32 %v5363_v49  ;;  %v5369_v28 = vmul.f32 -1.442695, %v1907_v15  ;;  %v1783_v46 = vand.u32 2147483648, %v7828_v47 }
 0x2d7   :  { %v5641_v43 = vpop.eup %5640  ;;  %v7844_v13 = vadd.f32 1.0, %v5639_v3  ;;  %5650 = vrcp.f32 %v7828_v47  ;;  %v1768_v3 = vand.u32 2147483648, %v7819_v5  ;;  %v1798_v38 = vand.u32 2147483648, %v7837_v50 }
 0x2d8   :  { %v5643_v24 = vpop.eup %5642  ;;  %v7848_v9 = vadd.f32 1.0, %v5641_v43  ;;  %5652 = vrcp.f32 %v7837_v50  ;;  %v7889_v11 = vor.u32 1.1754944e-38, %v1753_v14  ;;  %vm1747_vm7 = vweird.f32 %v7817_v51 }
 0x2d9   :  { %v7852_v54 = vpop.eup %5644  ;;  %5654 = vrcp.f32 %v7841_v22  ;;  %v7863_v4 = vadd.f32 1.0, %v5643_v24  ;;  %v7902_v14 = vor.u32 1.1754944e-38, %v1798_v38 }
 0x2da   :  { %5656 = vrcp.f32 %v7844_v13  ;;  %v1743_v36 = vmul.f32 %v7852_v54, %v7817_v51  ;;  %vm1748_vm5 = vweird.f32 %v7852_v54 }
 0x2db   :  { %v7857_v55 = vpop.eup %5646  ;;  %5658 = vrcp.f32 %v7848_v9  ;;  %12261 = vst [vmem:[#allocation30_spill] sm:$0xff] %v7902_v14  ;;  %vm8070_vm6 = vmor %vm1747_vm7, %vm1748_vm5 }
 0x2dc   :  { %v5649_v27 = vpop.eup %5648  ;;  %v1758_v29 = vmul.f32 %v7857_v55, %v7819_v5  ;;  %5660 = vpow2.f32 %v5364_v6  ;;  %v1744_v18 = vsub.f32 1.0, %v1743_v36  ;;  %v7893_v6 = vor.u32 1.1754944e-38, %v1768_v3 }
 0x2dd   :  { %v7866_v49 = vpop.eup %5650  ;;  %5662 = vpow2.f32 %v5365_v32  ;;  %v7885_v25 = vadd.f32 1.0, %v5649_v27  ;;  %v1813_v32 = vand.u32 2147483648, %v7841_v22  ;;  %v7898_v27 = vor.u32 1.1754944e-38, %v1783_v46 }
 0x2de   :  { %v7874_v43 = vpop.eup %5652  ;;  %5664 = vpow2.f32 %v5366_v44  ;;  %v1773_v62 = vmul.f32 %v7866_v49, %v7828_v47  ;;  %v1759_v45 = vsub.f32 1.0, %v1758_v29  ;;  %v1745_v46 = vmul.f32 %v7852_v54, %v1744_v18 }
 0x2df   :  { %v7879_v31 = vpop.eup %5654  ;;  %5666 = vrcp.f32 %v7863_v4  ;;  %v1788_v36 = vmul.f32 %v7874_v43, %v7837_v50  ;;  %v7918_v21 = vor.u32 1.1754944e-38, %v1813_v32  ;;  %v5370_v18 = vmul.f32 -1.442695, %v1908_v60  ;;  %v5462_v60 = vld [vmem:[%s11920_s5] ss:$0 sm:$0xff] }
 0x2e0   :  { %v7887_v24 = vpop.eup %5656  ;;  %5668 = vpow2.f32 %v5367_v33  ;;  %v1803_v33 = vmul.f32 %v7879_v31, %v7841_v22  ;;  %v1774_v3 = vsub.f32 1.0, %v1773_v62  ;;  %v1760_v61 = vmul.f32 %v7857_v55, %v1759_v45 }
 0x2e1   :  { %v7891_v52 = vpop.eup %5658  ;;  %v1818_v10 = vmul.f32 %v7887_v24, %v7844_v13  ;;  %5670 = vrcp.f32 %v7885_v25  ;;  %12262 = vst [vmem:[#allocation31_spill] sm:$0xff] %v7918_v21  ;;  %v1789_v15 = vsub.f32 1.0, %v1788_v36  ;;  %v7929_v32 = vadd.f32 %v7852_v54, %v1745_v46 }
 0x2e2   :  { %v5661_v44 = vpop.eup %5660  ;;  %v1804_v7 = vsub.f32 1.0, %v1803_v33  ;;  %v1775_v45 = vmul.f32 %v7866_v49, %v1774_v3  ;;  %v1833_v38 = vmul.f32 %v7891_v52, %v7848_v9  ;;  %v1828_v62 = vand.u32 2147483648, %v7844_v13 }
 0x2e3   :  { %v5663_v29 = vpop.eup %5662  ;;  %v7908_v63 = vadd.f32 1.0, %v5661_v44  ;;  %v1790_v3 = vmul.f32 %v7874_v43, %v1789_v15  ;;  %v1843_v46 = vand.u32 2147483648, %v7848_v9  ;;  %v1952_v20 = vand.u32 2147483648, %v7885_v25 }
 0x2e4   :  { %v5665_v2 = vpop.eup %5664  ;;  %v7914_v16 = vadd.f32 1.0, %v5663_v29  ;;  %v1819_v29 = vsub.f32 1.0, %v1818_v10  ;;  %v7952_v56 = vadd.f32 %v7866_v49, %v1775_v45  ;;  %v1834_v40 = vsub.f32 1.0, %v1833_v38 }
 0x2e5   :  { %v7916_v26 = vpop.eup %5666  ;;  %v7921_v0 = vadd.f32 1.0, %v5665_v2  ;;  %5672 = vrcp.f32 %v7908_v63  ;;  %v7932_v2 = vadd.f32 %v7857_v55, %v1760_v61  ;;  %v1684_v61 = vpop.f32.mrf.mxu2  ;;  %v7958_v19 = vor.u32 1.1754944e-38, %v1828_v62 }
 0x2e6   :  { %v5669_v44 = vpop.eup %5668  ;;  %5674 = vrcp.f32 %v7914_v16  ;;  %v1820_v10 = vmul.f32 %v7887_v24, %v1819_v29  ;;  %v7972_v62 = vadd.f32 %v7874_v43, %v1790_v3  ;;  %v1835_v48 = vmul.f32 %v7891_v52, %v1834_v40 }
 0x2e7   :  { %5676 = vpow2.f32 %v5368_v12  ;;  %v7938_v36 = vpop.eup %5670  ;;  %v1848_v12 = vmul.f32 %v7916_v26, %v7863_v4  ;;  %v7943_v33 = vadd.f32 1.0, %v5669_v44  ;;  %v1858_v44 = vand.u32 2147483648, %v7863_v4  ;;  %12263 = vst [vmem:[#allocation32_spill] sm:$0xff] %v7958_v19 }
 0x2e8   :  { %5678 = vpow2.f32 %v5369_v28  ;;  %v1805_v28 = vmul.f32 %v7879_v31, %v1804_v7  ;;  %v1942_v7 = vmul.f32 %v7938_v36, %v7885_v25  ;;  %v7983_v42 = vadd.f32 %v7887_v24, %v1820_v10 }
 0x2e9   :  { %5680 = vrcp.f32 %v7921_v0  ;;  %v1849_v45 = vsub.f32 1.0, %v1848_v12  ;;  %v7986_v17 = vor.u32 1.1754944e-38, %v1858_v44  ;;  %v1950_v53 = vand.u32 2147483647, %v7885_v25  ;;  %v8023_v12 = vld [vmem:[#allocation10 + $0x178] sm:$0xff] }
 0x2ea   :  { %5682 = vpow2.f32 %v5370_v18  ;;  %v7964_v18 = vadd.f32 %v5462_v60, %v1684_v61  ;;  %v7975_v37 = vadd.f32 %v7879_v31, %v1805_v28  ;;  %v7977_v60 = vor.u32 1.1754944e-38, %v1843_v46  ;;  %12268 = vst [vmem:[#allocation21_spill] sm:$0xff] %v8023_v12  ;;  %2290 = vmatpush.msrb.mxu1 %v8023_v12 }
 0x2eb   :  { %v7949_v58 = vpop.eup %5672  ;;  %5684 = vrcp.f32 %v7943_v33  ;;  %12266 = vst [vmem:[#allocation19_spill] sm:$0xff] %v7986_v17  ;;  %v1943_v46 = vsub.f32 1.0, %v1942_v7  ;;  %v1850_v59 = vmul.f32 %v7916_v26, %v1849_v45  ;;  %vm1946_vm15 = vweird.f32 %v7885_v25 }
 0x2ec   :  { %v7956_v34 = vpop.eup %5674  ;;  %v1957_v15 = vmul.f32 %v7949_v58, %v7908_v63  ;;  %12264 = vst [vmem:[#allocation17_spill] sm:$0xff] %v7964_v18  ;;  %v7995_v10 = vor.u32 1.1754944e-38, %v1952_v20  ;;  %v8011_v20 = vadd.f32 %v7891_v52, %v1835_v48  ;;  %vm1961_vm0 = vweird.f32 %v7908_v63  ;;  %v2223_v48 = vld [vmem:[#allocation10 + $0x170] sm:$0xff] }
 0x2ed   :  { %v5677_v35 = vpop.eup %5676  ;;  %v1972_v38 = vmul.f32 %v7956_v34, %v7914_v16  ;;  %12265 = vst [vmem:[#allocation18_spill] sm:$0xff] %v7977_v60  ;;  %v1944_v7 = vmul.f32 %v7938_v36, %v1943_v46  ;;  %v1965_v44 = vand.u32 2147483647, %v7908_v63  ;;  %v1967_v46 = vand.u32 2147483648, %v7908_v63  ;;  %2270 = vmatpush.msrb.mxu0 %v2223_v48  ;;  %2893 = vmatpush.msra.mxu3 %v2223_v48  ;;  %v8107_v60 = vld [vmem:[#allocation10 + $0x130] sm:$0xff] }
 0x2ee   :  { %v5679_v29 = vpop.eup %5678  ;;  %v7990_v28 = vadd.f32 1.0, %v5677_v35  ;;  %v1958_v30 = vsub.f32 1.0, %v1957_v15  ;;  %12267 = vst [vmem:[#allocation20_spill] sm:$0xff] %v8011_v20  ;;  %vm8035_vm13 = vcmp.eq.f32.partialorder %v1950_v53, 8.507059e+37  ;;  %vm1976_vm1 = vweird.f32 %v7914_v16  ;;  %v12352_v20 = vld [vmem:[#allocation32_spill] sm:$0xff] }
 0x2ef   :  { %v7980_v61 = vpop.eup %5680  ;;  %v1973_v40 = vsub.f32 1.0, %v1972_v38  ;;  %v7999_v1 = vadd.f32 1.0, %v5679_v29  ;;  %vm1947_vm4 = vweird.f32 %v7938_v36  ;;  %v1980_v53 = vand.u32 2147483647, %v7914_v16  ;;  %12283 = vst [vmem:[#allocation46_spill] sm:$0xff] %v8107_v60 }
 0x2f0   :  { %v5683_v3 = vpop.eup %5682  ;;  %v8003_v35 = vmul.f32 %v7980_v61, %v7921_v0  ;;  %v1959_v15 = vmul.f32 %v7949_v58, %v1958_v30  ;;  %5686 = vrcp.f32 %v7990_v28  ;;  %v1982_v12 = vand.u32 2147483648, %v7914_v16  ;;  %vm8099_vm10 = vmor %vm1946_vm15, %vm1947_vm4 }
 0x2f1   :  { %v8007_v45 = vpop.eup %5684  ;;  %v8013_v38 = vadd.f32 1.0, %v5683_v3  ;;  %v8028_v3 = vadd.f32 %v7916_v26, %v1850_v59  ;;  %v1974_v30 = vmul.f32 %v7956_v34, %v1973_v40  ;;  %5688 = vrcp.f32 %v7999_v1  ;;  %v8046_v40 = vld [vmem:[#allocation10 + $0x160] sm:$0xff] }
 0x2f2   :  { %v1988_v59 = vsub.f32 1.0, %v8003_v35  ;;  %v8043_v39 = vmul.f32 %v8007_v45, %v7943_v33  ;;  %12272 = vst [vmem:[#allocation23_spill] sm:$0xff] %v8046_v40  ;;  %v6110_v35 = vld [vmem:[#allocation10 + $0x158] sm:$0xff]  ;;  %2291 = vmatpush.msrb.mxu1 %v8046_v40  ;;  %v8057_v48 = vadd.f32 %v7938_v36, %v1944_v7  ;;  %v8060_v57 = vadd.f32 %v7949_v58, %v1959_v15 }
 0x2f3   :  { %12269 = vst [vmem:[#allocation22_spill] sm:$0xff] %v8028_v3  ;;  %5690 = vrcp.f32 %v8013_v38  ;;  %2271 = vmatpush.msrb.mxu0 %v6110_v35  ;;  %vm1962_vm12 = vweird.f32 %v7949_v58  ;;  %v1997_v8 = vand.u32 2147483648, %v7921_v0  ;;  %vm8076_vm2 = vcmp.eq.f32.partialorder %v1965_v44, 8.507059e+37  ;;  %v12362_v21 = vld [vmem:[#allocation17_spill] sm:$0xff] }
 0x2f4   :  { %v8081_v15 = vadd.f32 %v7956_v34, %v1974_v30  ;;  %vm1977_vm11 = vweird.f32 %v7956_v34  ;;  %v1995_v40 = vand.u32 2147483647, %v7921_v0  ;;  %2292 = vmatpush.msrb.mxu1 %v8064_v41  ;;  %v12278_v18 = vand.u32 2147483647, %v7817_v51  ;;  %vm8132_vm14 = vmor %vm1961_vm0, %vm1962_vm12 }
 0x2f5   :  { %2272 = vmatpush.msrb.mxu0 %v6111_v23  ;;  %v1989_v23 = vmul.f32 %v7980_v61, %v1988_v59  ;;  %v2003_v41 = vsub.f32 1.0, %v8043_v39  ;;  %v2012_v51 = vand.u32 2147483648, %v7943_v33  ;;  %v12284_v3 = vand.u32 2147483647, %v7819_v5  ;;  %vm8168_vm3 = vmor %vm1976_vm1, %vm1977_vm11 }
 0x2f6   :  { %v8086_v17 = vpop.eup %5686  ;;  %vm8090_vm5 = vcmp.eq.f32.partialorder %v12278_v18, 8.507059e+37  ;;  %v2027_v18 = vand.u32 2147483648, %v7990_v28  ;;  %v12287_v25 = vand.u32 2147483647, %v7828_v47  ;;  %v12288_v19 = vmov 0  ;;  %2293 = vmatpush.msrb.mxu1 %v8107_v60  ;;  %v8228_v60 = vld [vmem:[#allocation10 + $0x100] sm:$0xff] }
 0x2f7   :  { %vm8111_vm7 = vcmp.eq.f32.partialorder %v12284_v3, 8.507059e+37  ;;  %v12291_v39 = vand.u32 2147483647, %v7837_v50  ;;  %v12292_v59 = vmov 0  ;;  %vm8136_vm8 = vcmp.eq.f32.partialorder %v1980_v53, 8.507059e+37  ;;  %v6113_v3 = vld [vmem:[#allocation10 + $0x110] sm:$0xff] }
 0x2f8   :  { %vm8117_vm15 = vcmp.eq.f32.partialorder %v12287_v25, 8.507059e+37  ;;  %v1968_v25 = vor.u32 1.1754944e-38, %v1967_v46  ;;  %v1983_v14 = vor.u32 1.1754944e-38, %v1982_v12  ;;  %v12299_v63 = vand.u32 2147483647, %v7841_v22 }
 0x2f9   :  { %v12289_v19 = vsel %vm8117_vm15, 4294967295, %v12288_v19  ;;  %vm8123_vm4 = vcmp.eq.f32.partialorder %v12291_v39, 8.507059e+37  ;;  %v6112_v39 = vld [vmem:[#allocation10 + $0x128] sm:$0xff]  ;;  %v12302_v46 = vand.u32 2147483647, %v7844_v13  ;;  %v12303_v53 = vmov 0 }
 0x2fa   :  { %12290 = vst [vmem:[#allocation47_spill] sm:$0xff] %v12289_v19  ;;  %v12293_v59 = vsel %vm8123_vm4, 4294967295, %v12292_v59  ;;  %2273 = vmatpush.msrb.mxu0 %v6112_v39  ;;  %vm8146_vm0 = vcmp.eq.f32.partialorder %v12299_v63, 8.507059e+37  ;;  %v1949_v12 = vsel %vm8099_vm10, %v7938_v36, %v8057_v48  ;;  %v1964_v39 = vsel %vm8132_vm14, %v7949_v58, %v8060_v57  ;;  %v6116_v57 = vld [vmem:[#allocation10 + $0xc8] sm:$0xff]  ;;  %v12363_v48 = vld [vmem:[#allocation19_spill] sm:$0xff] }
 0x2fb   :  { %12294 = vst [vmem:[#allocation48_spill] sm:$0xff] %v12293_v59  ;;  %v8142_v59 = vpop.eup %5688  ;;  %vm8152_vm12 = vcmp.eq.f32.partialorder %v12302_v46, 8.507059e+37  ;;  %v8172_v46 = vor.u32 1.1754944e-38, %v1997_v8  ;;  %vm12308_vm10 = vweird.f32 %v7857_v55  ;;  %vm12309_vm14 = vweird.f32 %v7819_v5 }
 0x2fc   :  { %v12304_v53 = vsel %vm8152_vm12, 4294967295, %v12303_v53  ;;  %v8177_v36 = vpop.eup %5690  ;;  %vm8183_vm9 = vmor %vm12309_vm14, %vm12308_vm10  ;;  %v12312_v16 = vand.u32 2147483647, %v7848_v9  ;;  %v12313_v58 = vmov 0  ;;  %v1979_v8 = vsel %vm8168_vm3, %v7956_v34, %v8081_v15  ;;  %2274 = vmatpush.msrb.mxu0 %v6113_v3  ;;  %v12351_v34 = vld [vmem:[#allocation31_spill] sm:$0xff] }
 0x2fd   :  { %12305 = vst [vmem:[#allocation49_spill] sm:$0xff] %v12304_v53  ;;  %v8175_v53 = vld [vmem:[#allocation10 + $0x118] sm:$0xff]  ;;  %vm8198_vm12 = vcmp.eq.f32.partialorder %v1995_v40, 8.507059e+37  ;;  %v8204_v5 = vmul.f32 %v8086_v17, %v7990_v28  ;;  %vm12317_vm10 = vweird.f32 %v7866_v49  ;;  %vm12318_vm3 = vweird.f32 %v7828_v47  ;;  %v12356_v47 = vld [vmem:[#allocation22_spill] sm:$0xff] }
 0x2fe   :  { %vm8189_vm11 = vcmp.eq.f32.partialorder %v12312_v16, 8.507059e+37  ;;  %2294 = vmatpush.msrb.mxu1 %v8175_v53  ;;  %vm8212_vm14 = vmor %vm12318_vm3, %vm12317_vm10  ;;  %v12321_v40 = vand.u32 2147483647, %v7863_v4  ;;  %v12322_v15 = vmov 0  ;;  %v1990_v63 = vadd.f32 %v7980_v61, %v1989_v23 }
 0x2ff   :  { %v12314_v58 = vsel %vm8189_vm11, 4294967295, %v12313_v58  ;;  %v2004_v16 = vmul.f32 %v8007_v45, %v2003_v41  ;;  %v8224_v3 = vor.u32 1.1754944e-38, %v2012_v51  ;;  %v8226_v30 = vor.u32 1.1754944e-38, %v2027_v18 }
 0x300   :  { %vm8218_vm1 = vcmp.eq.f32.partialorder %v12321_v40, 8.507059e+37  ;;  %vm12324_vm10 = vweird.f32 %v7874_v43  ;;  %vm12325_vm3 = vweird.f32 %v7837_v50  ;;  %v8241_v23 = vsel %vm8035_vm13, %v7995_v10, %v1949_v12  ;;  %v6114_v50 = vld [vmem:[#allocation10 + $0xf8] sm:$0xff]  ;;  %2295 = vmatpush.msrb.mxu1 %v8228_v60 }
 0x301   :  { %v12323_v15 = vsel %vm8218_vm1, 4294967295, %v12322_v15  ;;  %vm8234_vm11 = vmor %vm12325_vm3, %vm12324_vm10  ;;  %v8245_v41 = vsel %vm8076_vm2, %v1968_v25, %v1964_v39  ;;  %vm2007_vm1 = vweird.f32 %v8007_v45  ;;  %v8250_v51 = vmul.f32 %v8142_v59, %v7999_v1  ;;  %2275 = vmatpush.msrb.mxu0 %v6114_v50  ;;  %v6117_v50 = vld [vmem:[#allocation10 + $0xb0] sm:$0xff] }
 0x302   :  { %vm12328_vm10 = vweird.f32 %v7879_v31  ;;  %vm12329_vm3 = vweird.f32 %v7841_v22  ;;  %v8263_v29 = vsel %vm8136_vm8, %v1983_v14, %v1979_v8  ;;  %v2040_v7 = vand.u32 2147483647, %v7999_v1  ;;  %v8274_v22 = vld [vmem:[#allocation10 + $0xe8] sm:$0xff] }
 0x303   :  { %vm8257_vm13 = vmor %vm12329_vm3, %vm12328_vm10  ;;  %v8268_v18 = vmul.f32 %v8177_v36, %v8013_v38  ;;  %v1750_v25 = vsel %vm8070_vm6, %v7852_v54, %v7929_v32  ;;  %vm12332_vm2 = vweird.f32 %v7980_v61  ;;  %vm12333_vm10 = vweird.f32 %v7921_v0  ;;  %v6115_v32 = vld [vmem:[#allocation10 + $0xe0] sm:$0xff]  ;;  %2296 = vmatpush.msrb.mxu1 %v8274_v22 }
 0x304   :  { %vm8280_vm3 = vmor %vm12333_vm10, %vm12332_vm2  ;;  %vm2006_vm8 = vweird.f32 %v7943_v33  ;;  %v2018_v14 = vsub.f32 1.0, %v8204_v5  ;;  %v1765_v35 = vsel %vm8183_vm9, %v7857_v55, %v7932_v2  ;;  %v1780_v54 = vsel %vm8212_vm14, %v7866_v49, %v7952_v56  ;;  %2276 = vmatpush.msrb.mxu0 %v6115_v32  ;;  %v8315_v2 = vld [vmem:[#allocation10 + $0xd0] sm:$0xff] }
 0x305   :  { %v1795_v0 = vsel %vm8234_vm11, %v7874_v43, %v7972_v62  ;;  %vm12336_vm6 = vweird.f32 %v7887_v24  ;;  %vm12337_vm2 = vweird.f32 %v7844_v13  ;;  %v1994_v55 = vsel %vm8280_vm3, %v7980_v61, %v1990_v63  ;;  %2297 = vmatpush.msrb.mxu1 %v8315_v2  ;;  %v6118_v13 = vld [vmem:[#allocation10 + $0x98] sm:$0xff] }
 0x306   :  { %vm8302_vm10 = vmor %vm12337_vm2, %vm12336_vm6  ;;  %v8310_v49 = vadd.f32 %v8007_v45, %v2004_v16  ;;  %v2042_v56 = vand.u32 2147483648, %v7999_v1  ;;  %v2055_v43 = vand.u32 2147483647, %v8013_v38  ;;  %vm12340_vm9 = vweird.f32 %v7891_v52  ;;  %2277 = vmatpush.msrb.mxu0 %v6116_v57  ;;  %v12355_v16 = vld [vmem:[#allocation20_spill] sm:$0xff] }
 0x307   :  { %vm12341_vm11 = vweird.f32 %v7848_v9  ;;  %vm2022_vm3 = vweird.f32 %v8086_v17  ;;  %v2033_v62 = vsub.f32 1.0, %v8250_v51  ;;  %v1755_v61 = vsel %vm8090_vm5, %v7889_v11, %v1750_v25  ;;  %v12360_v25 = vld [vmem:[#allocation18_spill] sm:$0xff] }
 0x308   :  { %vm8321_vm14 = vmor %vm12341_vm11, %vm12340_vm9  ;;  %v1810_v39 = vsel %vm8257_vm13, %v7879_v31, %v7975_v37  ;;  %v1825_v9 = vsel %vm8302_vm10, %v7887_v24, %v7983_v42  ;;  %vm12344_vm6 = vweird.f32 %v7916_v26  ;;  %vm12345_vm2 = vweird.f32 %v7863_v4  ;;  %v12349_v24 = vld [vmem:[#allocation30_spill] sm:$0xff]  ;;  %v8357_v4 = vld [vmem:[#allocation10 + $0xb8] sm:$0xff]  ;;  %2278 = vmatpush.msrb.mxu0 %v6117_v50 }
 0x309   :  { %vm8342_vm9 = vmor %vm12345_vm2, %vm12344_vm6  ;;  %v2048_v11 = vsub.f32 1.0, %v8268_v18  ;;  %v1770_v37 = vsel %vm8111_vm7, %v7893_v6, %v1765_v35  ;;  %v1785_v42 = vsel %vm8117_vm15, %v7898_v27, %v1780_v54  ;;  %v1800_v5 = vsel %vm8123_vm4, %v12349_v24, %v1795_v0  ;;  %v12353_v6 = vld [vmem:[#allocation49_spill] sm:$0xff]  ;;  %2298 = vmatpush.msrb.mxu1 %v8357_v4 }
 0x30a   :  { %vm2021_vm5 = vweird.f32 %v7990_v28  ;;  %v1815_v40 = vsel %vm8146_vm0, %v12351_v34, %v1810_v39  ;;  %vm12354_vm7 = vnez %v12353_v6  ;;  %v1840_v27 = vsel %vm8321_vm14, %v7891_v52, %v12355_v16  ;;  %2279 = vmatpush.msrb.mxu0 %v6118_v13  ;;  %v12378_v16 = vld [vmem:[#allocation40_spill] sm:$0xff]  ;;  %vm8431_vm11 = vmor %vm2006_vm8, %vm2007_vm1  ;;  %v12383_v50 = vld [vmem:[#allocation45_spill] sm:$0xff] }
 0x30b   :  { %v1830_v63 = vsel %vm12354_vm7, %v12352_v20, %v1825_v9  ;;  %v1855_v51 = vsel %vm8342_vm9, %v7916_v26, %v12356_v47  ;;  %v8377_v19 = vsel %vm8198_vm12, %v8172_v46, %v1994_v55  ;;  %v12357_v10 = vand.u32 2147483647, %v7943_v33  ;;  %v8392_v46 = vld [vmem:[#allocation10 + $0xa0] sm:$0xff]  ;;  %v8447_v33 = vld [vmem:[#allocation10 + $0x70] sm:$0xff]  ;;  %vm8474_vm6 = vmor %vm2021_vm5, %vm2022_vm3 }
 0x30c   :  { %v2019_v52 = vmul.f32 %v8086_v17, %v2018_v14  ;;  %vm2036_vm4 = vweird.f32 %v7999_v1  ;;  %vm12361_vm0 = vnez %v12314_v58  ;;  %v2081_v35 = vmul.f32 %v12362_v21, %v1755_v61  ;;  %2299 = vmatpush.msrb.mxu1 %v8392_v46  ;;  %v12376_v20 = vld [vmem:[#allocation41_spill] sm:$0xff]  ;;  %2280 = vmatpush.msrb.mxu0 %v12378_v16  ;;  %v12415_v1 = vld [vmem:[#allocation38_spill] sm:$0xff] }
 0x30d   :  { %vm8381_vm15 = vcmp.eq.f32.partialorder %v12357_v10, 8.507059e+37  ;;  %v1845_v26 = vsel %vm12361_vm0, %v12360_v25, %v1840_v27  ;;  %vm2051_vm12 = vweird.f32 %v8013_v38  ;;  %vm12364_vm13 = vnez %v12323_v15  ;;  %v6121_v16 = vld [vmem:[#allocation10 + $0x20] sm:$0xff]  ;;  %v8524_v27 = vld [vmem:[#allocation10 + $0x10] sm:$0xff] }
 0x30e   :  { %v1860_v54 = vsel %vm12364_vm13, %v12363_v48, %v1855_v51  ;;  %v12365_v14 = vrot.slane %v12362_v21, 1  ;;  %v12366_v32 = vrot.slane %v12362_v21, 2  ;;  %v12367_v58 = vrot.slane %v12362_v21, 3 }
 0x30f   :  { %v2034_v61 = vmul.f32 %v8142_v59, %v2033_v62  ;;  %v2073_v39 = vrot.slane %v12362_v21, 7  ;;  %v12368_v9 = vrot.slane %v12362_v21, 4  ;;  %v12369_v15 = vrot.slane %v12362_v21, 5 }
 0x310   :  { %v2082_v0 = vmul.f32 %v12365_v14, %v1770_v37  ;;  %v2083_v12 = vmul.f32 %v12366_v32, %v1785_v42  ;;  %v2084_v55 = vmul.f32 %v12367_v58, %v1800_v5  ;;  %v8411_v37 = vld [vmem:[#allocation10 + $0x88] sm:$0xff]  ;;  %v12370_v31 = vand.u32 2147483647, %v7990_v28  ;;  %v12374_v5 = vld [vmem:[#allocation39_spill] sm:$0xff] }
 0x311   :  { %v2085_v57 = vmul.f32 %v12368_v9, %v1815_v40  ;;  %v2086_v8 = vmul.f32 %v12369_v15, %v1830_v63  ;;  %v2049_v62 = vmul.f32 %v8177_v36, %v2048_v11  ;;  %v12373_v24 = vrot.slane %v12362_v21, 6  ;;  %2300 = vmatpush.msrb.mxu1 %v8411_v37  ;;  %v12387_v14 = vld [vmem:[#allocation26_spill] sm:$0xff]  ;;  %v12390_v58 = vld [vmem:[#allocation27_spill] sm:$0xff]  ;;  %v12407_v11 = vld [vmem:[#allocation21_spill] sm:$0xff] }
 0x312   :  { %vm8415_vm10 = vcmp.eq.f32.partialorder %v12370_v31, 8.507059e+37  ;;  %v12375_v34 = vrot.slane %v12374_v5, 2  ;;  %v12377_v6 = vrot.slane %v12376_v20, 2  ;;  %vm8437_vm14 = vcmp.eq.f32.partialorder %v2040_v7, 8.507059e+37  ;;  %v12389_v32 = vld [vmem:[#allocation42_spill] sm:$0xff]  ;;  %v12410_v15 = vld [vmem:[#allocation23_spill] sm:$0xff] }
 0x313   :  { %v2087_v44 = vmul.f32 %v12373_v24, %v1845_v26  ;;  %v2057_v47 = vand.u32 2147483648, %v8013_v38  ;;  %v2088_v51 = vmul.f32 %v2073_v39, %v1860_v54  ;;  %v12384_v10 = vrot.slane %v12383_v50, 2  ;;  %v12385_v26 = vld [vmem:[#allocation25_spill] sm:$0xff]  ;;  %2281 = vmatpush.msrb.mxu0 %v12389_v32  ;;  %2301 = vmatpush.msrb.mxu1 %v8447_v33  ;;  %v8462_v39 = vld [vmem:[#allocation10 + $0x58] sm:$0xff]  ;;  %v2178_v20 = vld [vmem:[#allocation10 + $0x8] sm:$0xff] }
 0x314   :  { %v2105_v40 = vadd.f32 %v12375_v34, %v2081_v35  ;;  %v2106_v63 = vadd.f32 %v12377_v6, %v2082_v0  ;;  %v12386_v21 = vrot.slane %v12385_v26, 2  ;;  %v2009_v7 = vsel %vm8431_vm11, %v8007_v45, %v8310_v49  ;;  %v12392_v49 = vld [vmem:[#allocation28_spill] sm:$0xff]  ;;  %v12404_v50 = vld [vmem:[#allocation43_spill] sm:$0xff] }
 0x315   :  { %v2107_v25 = vadd.f32 %v12384_v10, %v2083_v12  ;;  %v2020_v48 = vadd.f32 %v8086_v17, %v2019_v52  ;;  %v12388_v0 = vrot.slane %v12387_v14, 2  ;;  %v2035_v12 = vadd.f32 %v8142_v59, %v2034_v61  ;;  %v8468_v61 = vld [vmem:[#allocation10 + $0x40] sm:$0xff]  ;;  %2302 = vmatpush.msrb.mxu1 %v8462_v39  ;;  %v6120_v34 = vld [vmem:[#allocation10 + $0x38] sm:$0xff] }
 0x316   :  { %v2108_v35 = vadd.f32 %v12386_v21, %v2084_v55  ;;  %5692 = vtanh.f32 %v2105_v40  ;;  %vm2037_vm1 = vweird.f32 %v8142_v59  ;;  %v12391_v55 = vrot.slane %v12390_v58, 2  ;;  %v8503_v40 = vld [vmem:[#allocation10 + $0x28] sm:$0xff]  ;;  %v12405_v21 = vld [vmem:[#allocation33_spill] sm:$0xff] }
 0x317   :  { %v2109_v54 = vadd.f32 %v12388_v0, %v2085_v57  ;;  %5694 = vtanh.f32 %v2106_v63  ;;  %v2050_v45 = vadd.f32 %v8177_v36, %v2049_v62  ;;  %vm2052_vm8 = vweird.f32 %v8177_v36  ;;  %v6119_v57 = vld [vmem:[#allocation10 + $0x50] sm:$0xff]  ;;  %v12398_v62 = vld [vmem:[#allocation29_spill] sm:$0xff]  ;;  %vm8499_vm3 = vmor %vm2036_vm4, %vm2037_vm1  ;;  %2303 = vmatpush.msrb.mxu1 %v8468_v61 }
 0x318   :  { %v2110_v13 = vadd.f32 %v12391_v55, %v2086_v8  ;;  %v12393_v52 = vrot.slane %v12392_v49, 2  ;;  %5696 = vtanh.f32 %v2107_v25  ;;  %2282 = vmatpush.msrb.mxu0 %v6119_v57  ;;  %v2043_v8 = vor.u32 1.1754944e-38, %v2042_v56  ;;  %vm8512_vm9 = vmor %vm2051_vm12, %vm2052_vm8  ;;  %v12409_v49 = vld [vmem:[#allocation35_spill] sm:$0xff] }
 0x319   :  { %vm8482_vm2 = vcmp.eq.f32.partialorder %v2055_v43, 8.507059e+37  ;;  %v12399_v24 = vrot.slane %v12398_v62, 2  ;;  %5698 = vtanh.f32 %v2108_v35  ;;  %v2014_v28 = vsel %vm8381_vm15, %v8224_v3, %v2009_v7  ;;  %2304 = vmatpush.msrb.mxu1 %v8503_v40  ;;  %v12406_v7 = vld [vmem:[#allocation44_spill] sm:$0xff]  ;;  %v12412_v43 = vld [vmem:[#allocation37_spill] sm:$0xff] }
 0x31a   :  { %v2111_v9 = vadd.f32 %v12393_v52, %v2087_v44  ;;  %v2024_v56 = vsel %vm8474_vm6, %v8086_v17, %v2020_v48  ;;  %v2058_v5 = vor.u32 1.1754944e-38, %v2057_v47  ;;  %5700 = vtanh.f32 %v2109_v54  ;;  %2283 = vmatpush.msrb.mxu0 %v6120_v34  ;;  %v12411_v62 = vld [vmem:[#allocation36_spill] sm:$0xff] }
 0x31b   :  { %v2112_v44 = vadd.f32 %v12399_v24, %v2088_v51  ;;  %v2039_v3 = vsel %vm8499_vm3, %v8142_v59, %v2035_v12  ;;  %v2121_v17 = vsub.f32 1.0, %v8241_v23  ;;  %v2122_v18 = vsub.f32 1.0, %v8245_v41  ;;  %2305 = vmatpush.msrb.mxu1 %v8524_v27 }
 0x31c   :  { %5702 = vtanh.f32 %v2110_v13  ;;  %v5693_v6 = vpop.eup %5692  ;;  %v2054_v59 = vsel %vm8512_vm9, %v8177_v36, %v2050_v45  ;;  %v2123_v63 = vsub.f32 1.0, %v8263_v29  ;;  %v2124_v38 = vsub.f32 1.0, %v8377_v19  ;;  %2284 = vmatpush.msrb.mxu0 %v6121_v16 }
 0x31d   :  { %5704 = vtanh.f32 %v2111_v9  ;;  %v5695_v47 = vpop.eup %5694  ;;  %v2029_v51 = vsel %vm8415_vm10, %v8226_v30, %v2024_v56  ;;  %v2137_v10 = vmul.f32 %v8241_v23, %v12404_v50  ;;  %v2129_v25 = vmul.f32 %v5693_v6, %v2121_v17 }
 0x31e   :  { %5706 = vtanh.f32 %v2112_v44  ;;  %v5697_v36 = vpop.eup %5696  ;;  %v2044_v26 = vsel %vm8437_vm14, %v2043_v8, %v2039_v3  ;;  %v2138_v35 = vmul.f32 %v8245_v41, %v12405_v21  ;;  %v2139_v48 = vmul.f32 %v8263_v29, %v12406_v7  ;;  %2285 = vmatpush.msrb.mxu0 %v2178_v20  ;;  %v12408_v41 = vld [vmem:[#allocation34_spill] sm:$0xff]  ;;  %v12414_v3 = vld [vmem:[#allocation24_spill] sm:$0xff] }
 0x31f   :  { %v2130_v14 = vmul.f32 %v5695_v47, %v2122_v18  ;;  %v5699_v30 = vpop.eup %5698  ;;  %v2059_v23 = vsel %vm8482_vm2, %v2058_v5, %v2054_v59  ;;  %v2125_v42 = vsub.f32 1.0, %v2014_v28  ;;  %v2131_v0 = vmul.f32 %v5697_v36, %v2123_v63  ;;  %v12418_v59 = vld [vmem:[#allocation46_spill] sm:$0xff] }
 0x320   :  { %v8540_v54 = vadd.f32 %v2137_v10, %v2129_v25  ;;  %2913 = vmatpush.msra.mxu0 %v12407_v11  ;;  %v5701_v32 = vpop.eup %5700  ;;  %v2126_v12 = vsub.f32 1.0, %v2029_v51  ;;  %v2140_v58 = vmul.f32 %v8377_v19, %v12408_v41  ;;  %v2132_v29 = vmul.f32 %v5699_v30, %v2124_v38  ;;  %v8612_v30 = vld [vmem:[#allocation3 + $0x93] ss:$8 sm:$0x7] }
 0x321   :  { %v8546_v55 = vadd.f32 %v2138_v35, %v2130_v14  ;;  %v2127_v45 = vsub.f32 1.0, %v2044_v26  ;;  %v2141_v52 = vmul.f32 %v2014_v28, %v12409_v49  ;;  %v2133_v9 = vmul.f32 %v5701_v32, %v2125_v42  ;;  %v8618_v49 = vld [vmem:[#allocation3 + $0xab] ss:$8 sm:$0x7] }
 0x322   :  { %v5703_v13 = vpop.eup %5702  ;;  %v8549_v57 = vadd.f32 %v2139_v48, %v2131_v0  ;;  %2153 = vst [vmem:[#allocation12 + $0x2] sm:$0x1] %v8540_v54  ;;  %2914 = vmatpush.msra.mxu0 %v12410_v15  ;;  %v2128_v31 = vsub.f32 1.0, %v2059_v23  ;;  %v2142_v24 = vmul.f32 %v2029_v51, %v12411_v62  ;;  %v8554_v19 = vadd.f32 %v2140_v58, %v2132_v29  ;;  %v8610_v48 = vld [vmem:[#allocation3 + $0x7b] ss:$8 sm:$0x7] }
 0x323   :  { %v5705_v8 = vpop.eup %5704  ;;  %v2134_v44 = vmul.f32 %v5703_v13, %v2126_v12  ;;  %2154 = vst [vmem:[#allocation12 + $0xa] sm:$0x1] %v8546_v55  ;;  %v2143_v5 = vmul.f32 %v2044_v26, %v12412_v43  ;;  %v8558_v34 = vadd.f32 %v2141_v52, %v2133_v9  ;;  %v2144_v17 = vmul.f32 %v2059_v23, %v12415_v1 }
 0x324   :  { %v5707_v56 = vpop.eup %5706  ;;  %v2135_v28 = vmul.f32 %v5705_v8, %v2127_v45  ;;  %2155 = vst [vmem:[#allocation12 + $0x12] sm:$0x1] %v8549_v57  ;;  %2915 = vmatpush.msra.mxu0 %v12414_v3  ;;  %v2498_v11 = vrot.slane %v8610_v48, 1  ;;  %v2499_v32 = vrot.slane %v8612_v30, 1 }
 0x325   :  { %12413 = vst [vmem:[#allocation47_spill] sm:$0xff] %v8558_v34  ;;  %v2136_v18 = vmul.f32 %v5707_v56, %v2128_v31  ;;  %v8563_v20 = vadd.f32 %v2142_v24, %v2134_v44  ;;  %v5463_v24 = vld [vmem:[%s11920_s5] ss:$0 sm:$0xff]  ;;  %v2500_v44 = vrot.slane %v8618_v49, 1 }
 0x326   :  { %2156 = vst [vmem:[#allocation12 + $0x1a] sm:$0x1] %v8554_v19  ;;  %v8566_v6 = vadd.f32 %v2143_v5, %v2135_v28  ;;  %2916 = vmatpush.msra.mxu0 %v12418_v59 }
 0x327   :  { %12416 = vst [vmem:[#allocation30_spill] sm:$0xff] %v8563_v20  ;;  %v8570_v63 = vadd.f32 %v2144_v17, %v2136_v18 }
 0x328   :  { %12417 = vst [vmem:[#allocation48_spill] sm:$0xff] %v8566_v6  ;;  %2917 = vmatpush.msra.mxu0 %v8175_v53  ;;  %v8595_v53 = vld [vmem:[#allocation3 + $0x3] ss:$8 sm:$0x7] }
 0x329   :  { %2157 = vst [vmem:[#allocation12 + $0x22] sm:$0x1] %v8558_v34 }
 0x32a   :  { %12419 = vst [vmem:[#allocation31_spill] sm:$0xff] %v8570_v63  ;;  %2918 = vmatpush.msra.mxu0 %v8228_v60 }
 0x32b   :  { %2158 = vst [vmem:[#allocation12 + $0x2a] sm:$0x1] %v8563_v20 }
 0x32c   :  { %2159 = vst [vmem:[#allocation12 + $0x32] sm:$0x1] %v8566_v6  ;;  %2919 = vmatpush.msra.mxu0 %v8274_v22  ;;  %v8597_v22 = vld [vmem:[#allocation3 + $0x1b] ss:$8 sm:$0x7] }
 0x32d   :  { %2160 = vst [vmem:[#allocation12 + $0x3a] sm:$0x1] %v8570_v63 }
 0x32e   :  { %2233 = vst [vmem:[#allocation1] ss:$9 sm:$0xff] %v8540_v54  ;;  %2920 = vmatpush.msra.mxu0 %v8315_v2  ;;  %v8599_v2 = vld [vmem:[#allocation3 + $0x33] ss:$8 sm:$0x7] }
 0x32f   :  { %2235 = vst [vmem:[#allocation1 + $0x1] ss:$9 sm:$0xff] %v8546_v55 }
 0x330   :  { %2237 = vst [vmem:[#allocation1 + $0x2] ss:$9 sm:$0xff] %v8549_v57  ;;  %2921 = vmatpush.msra.mxu0 %v8357_v4  ;;  %v8601_v4 = vld [vmem:[#allocation3 + $0x4b] ss:$8 sm:$0x7] }
 0x331   :  { %2239 = vst [vmem:[#allocation1 + $0x3] ss:$9 sm:$0xff] %v8554_v19 }
 0x332   :  { %2241 = vst [vmem:[#allocation1 + $0x4] ss:$9 sm:$0xff] %v8558_v34  ;;  %2922 = vmatpush.msra.mxu0 %v8392_v46  ;;  %v8603_v46 = vld [vmem:[#allocation3 + $0x63] ss:$8 sm:$0x7] }
 0x333   :  { %2243 = vst [vmem:[#allocation1 + $0x5] ss:$9 sm:$0xff] %v8563_v20  ;;  %v2497_v51 = vrot.slane %v8603_v46, 1  ;;  %v2824_v34 = vld [vmem:[#allocation10 + $0xc0] sm:$0xff] }
 0x334   :  { %2245 = vst [vmem:[#allocation1 + $0x6] ss:$9 sm:$0xff] %v8566_v6  ;;  %2923 = vmatpush.msra.mxu0 %v8411_v37 }
 0x335   :  { %2247 = vst [vmem:[#allocation1 + $0x7] ss:$9 sm:$0xff] %v8570_v63 }
 0x336   :  { %2924 = vmatpush.msra.mxu0 %v8447_v33  ;;  %v2493_v33 = vrot.slane %v8595_v53, 1  ;;  %12420 = vst [vmem:[#allocation32_spill] sm:$0xff] %v8618_v49 }
 0x338   :  { %2925 = vmatpush.msra.mxu0 %v8462_v39  ;;  %v2494_v39 = vrot.slane %v8597_v22, 1 }
 0x33a   :  { %2926 = vmatpush.msra.mxu0 %v8468_v61  ;;  %v2495_v61 = vrot.slane %v8599_v2, 1 }
 0x33c   :  { %v2248_v60 = vld [vmem:[#allocation1] sm:$0xff]  ;;  %2927 = vmatpush.msra.mxu0 %v8503_v40  ;;  %v2496_v40 = vrot.slane %v8601_v4, 1 }
 0x33d   :  { %2266 = vmatmul.f32.vlgmr.msrb.gmra.mxu3 %v2248_v60  ;;  %2286 = vmatmul.f32.vlgmr.msrb.gmra.mxu0 %v2248_v60 }
 0x33e   :  { %2306 = vmatmul.f32.vlgmr.msrb.gmra.mxu1 %v2248_v60  ;;  %2928 = vmatpush.msra.mxu0 %v8524_v27 }
 0x3ba   :  { %v2287_v37 = vpop.f32.mrf.mxu0 }
 0x3bb   :  { %v2510_v38 = vrot.slane %v2287_v37, 1  ;;  %v2511_v16 = vrot.slane %v2287_v37, 2  ;;  %v2512_v27 = vrot.slane %v2287_v37, 3  ;;  %v2513_v47 = vrot.slane %v2287_v37, 4  ;;  %v2307_v43 = vpop.f32.mrf.mxu1 }
 0x3bc   :  { %v2524_v50 = vadd.f32 %v2493_v33, %v2287_v37  ;;  %v2514_v23 = vrot.slane %v2287_v37, 5  ;;  %v2515_v0 = vrot.slane %v2287_v37, 6  ;;  %v2516_v15 = vrot.slane %v2287_v37, 7 }
 0x3bd   :  { %v2525_v10 = vadd.f32 %v2510_v38, %v2494_v39  ;;  %v2526_v25 = vadd.f32 %v2511_v16, %v2495_v61  ;;  %v2527_v36 = vadd.f32 %v2512_v27, %v2496_v40  ;;  %v2528_v26 = vadd.f32 %v2513_v47, %v2497_v51 }
 0x3be   :  { %v5379_v21 = vmul.f32 -1.442695, %v2524_v50  ;;  %v2529_v41 = vadd.f32 %v2514_v23, %v2498_v11  ;;  %v2530_v58 = vadd.f32 %v2515_v0, %v2499_v32  ;;  %v2531_v28 = vadd.f32 %v2516_v15, %v2500_v44 }
 0x3bf   :  { %v5380_v35 = vmul.f32 -1.442695, %v2525_v10  ;;  %v5381_v7 = vmul.f32 -1.442695, %v2526_v25  ;;  %v5382_v14 = vmul.f32 -1.442695, %v2527_v36  ;;  %v8634_v1 = vadd.f32 %v5463_v24, %v2307_v43 }
 0x3c0   :  { %5708 = vpow2.f32 %v5379_v21  ;;  %v5383_v42 = vmul.f32 -1.442695, %v2528_v26  ;;  %v5384_v52 = vmul.f32 -1.442695, %v2529_v41  ;;  %v5385_v8 = vmul.f32 -1.442695, %v2530_v58  ;;  %v2267_v59 = vpop.f32.mrf.mxu3 }
 0x3c1   :  { %5710 = vpow2.f32 %v5380_v35  ;;  %v5386_v61 = vmul.f32 -1.442695, %v2531_v28  ;;  %v2311_v50 = vrot.slane %v2267_v59, 1  ;;  %v2312_v26 = vrot.slane %v2267_v59, 2 }
 0x3c2   :  { %5712 = vpow2.f32 %v5381_v7  ;;  %v2313_v21 = vrot.slane %v2267_v59, 3  ;;  %v2315_v32 = vrot.slane %v2267_v59, 5  ;;  %v2827_v7 = vld [vmem:[#allocation10 + $0xd8] sm:$0xff] }
 0x3c3   :  { %5714 = vpow2.f32 %v5382_v14 }
 0x3c4   :  { %5716 = vpow2.f32 %v5383_v42  ;;  %v2314_v42 = vrot.slane %v2267_v59, 4  ;;  %v8680_v24 = vadd.f32 %v2313_v21, %v8601_v4 }
 0x3c6   :  { %v5709_v12 = vpop.eup %5708 }
 0x3c7   :  { %v8616_v29 = vadd.f32 1.0, %v5709_v12  ;;  %v5711_v13 = vpop.eup %5710  ;;  %v2316_v12 = vrot.slane %v2267_v59, 6 }
 0x3c8   :  { %v5713_v45 = vpop.eup %5712  ;;  %v8620_v62 = vadd.f32 1.0, %v5711_v13  ;;  %v2317_v13 = vrot.slane %v2267_v59, 7 }
 0x3c9   :  { %v5715_v9 = vpop.eup %5714  ;;  %5718 = vrcp.f32 %v8616_v29  ;;  %v8627_v56 = vadd.f32 1.0, %v5713_v45  ;;  %v8667_v45 = vadd.f32 %v2267_v59, %v8595_v53  ;;  %v2575_v44 = vand.u32 2147483648, %v8616_v29 }
 0x3ca   :  { %v5717_v31 = vpop.eup %5716  ;;  %5720 = vpow2.f32 %v5384_v52  ;;  %v8629_v5 = vadd.f32 1.0, %v5715_v9  ;;  %v8670_v52 = vadd.f32 %v2311_v50, %v8597_v22  ;;  %v2590_v43 = vand.u32 2147483648, %v8620_v62 }
 0x3cb   :  { %5722 = vpow2.f32 %v5385_v8  ;;  %v8631_v3 = vadd.f32 1.0, %v5717_v31  ;;  %v8677_v31 = vadd.f32 %v2312_v26, %v8599_v2  ;;  %v8687_v59 = vadd.f32 %v2314_v42, %v8603_v46 }
 0x3cc   :  { %5724 = vrcp.f32 %v8620_v62  ;;  %v8696_v50 = vadd.f32 %v2316_v12, %v8612_v30  ;;  %vm2569_vm5 = vweird.f32 %v8616_v29  ;;  %v8704_v21 = vadd.f32 %v2317_v13, %v8618_v49 }
 0x3cd   :  { %5726 = vrcp.f32 %v8627_v56  ;;  %v2573_v58 = vand.u32 2147483647, %v8616_v29  ;;  %v2605_v38 = vand.u32 2147483648, %v8627_v56  ;;  %v2576_v12 = vor.u32 1.1754944e-38, %v2575_v44 }
 0x3ce   :  { %5728 = vrcp.f32 %v8629_v5  ;;  %v8710_v23 = vor.u32 1.1754944e-38, %v2590_v43  ;;  %vm2584_vm7 = vweird.f32 %v8620_v62  ;;  %v2603_v39 = vand.u32 2147483647, %v8627_v56 }
 0x3cf   :  { %v8639_v60 = vpop.eup %5718  ;;  %5730 = vrcp.f32 %v8631_v3  ;;  %v2620_v33 = vand.u32 2147483648, %v8629_v5  ;;  %vm2599_vm15 = vweird.f32 %v8627_v56  ;;  %vm8725_vm0 = vcmp.eq.f32.partialorder %v2573_v58, 8.507059e+37 }
 0x3d0   :  { %v5721_v16 = vpop.eup %5720  ;;  %v2565_v25 = vmul.f32 %v8639_v60, %v8616_v29  ;;  %5732 = vpow2.f32 %v5386_v61  ;;  %vm2570_vm4 = vweird.f32 %v8639_v60  ;;  %v8730_v37 = vor.u32 1.1754944e-38, %v2605_v38  ;;  %v2845_v29 = vld [vmem:[#allocation10 + $0x168] sm:$0xff] }
 0x3d1   :  { %v5723_v10 = vpop.eup %5722  ;;  %v8661_v11 = vadd.f32 1.0, %v5721_v16  ;;  %v8693_v16 = vadd.f32 %v2315_v32, %v8610_v48  ;;  %vm2614_vm12 = vweird.f32 %v8629_v5  ;;  %vm2629_vm10 = vweird.f32 %v8631_v3  ;;  %vm8745_vm1 = vmor %vm2569_vm5, %vm2570_vm4  ;;  %2873 = vmatpush.msrb.mxu2 %v2845_v29  ;;  %3496 = vmatpush.msra.mxu1 %v2845_v29 }
 0x3d2   :  { %v8654_v35 = vpop.eup %5724  ;;  %v2566_v15 = vsub.f32 1.0, %v2565_v25  ;;  %v8698_v25 = vadd.f32 1.0, %v5723_v10  ;;  %v2588_v10 = vand.u32 2147483647, %v8620_v62  ;;  %v2621_v38 = vor.u32 1.1754944e-38, %v2620_v33 }
 0x3d3   :  { %v8659_v0 = vpop.eup %5726  ;;  %v2580_v8 = vmul.f32 %v8654_v35, %v8620_v62  ;;  %5734 = vrcp.f32 %v8661_v11  ;;  %vm2585_vm13 = vweird.f32 %v8654_v35  ;;  %vm8758_vm6 = vcmp.eq.f32.partialorder %v2603_v39, 8.507059e+37 }
 0x3d4   :  { %v8663_v41 = vpop.eup %5728  ;;  %v2595_v28 = vmul.f32 %v8659_v0, %v8627_v56  ;;  %v2567_v27 = vmul.f32 %v8639_v60, %v2566_v15  ;;  %v2635_v15 = vand.u32 2147483648, %v8631_v3  ;;  %5736 = vrcp.f32 %v8698_v25  ;;  %vm8785_vm5 = vmor %vm2584_vm7, %vm2585_vm13 }
 0x3d5   :  { %v8672_v9 = vpop.eup %5730  ;;  %v2610_v61 = vmul.f32 %v8663_v41, %v8629_v5  ;;  %v2581_v32 = vsub.f32 1.0, %v2580_v8  ;;  %v2618_v8 = vand.u32 2147483647, %v8629_v5  ;;  %vm8737_vm11 = vcmp.eq.f32.partialorder %v2588_v10, 8.507059e+37 }
 0x3d6   :  { %v2625_v26 = vmul.f32 %v8672_v9, %v8631_v3  ;;  %v5733_v42 = vpop.eup %5732  ;;  %v2596_v40 = vsub.f32 1.0, %v2595_v28  ;;  %v2568_v28 = vadd.f32 %v8639_v60, %v2567_v27  ;;  %v2633_v27 = vand.u32 2147483647, %v8631_v3 }
 0x3d7   :  { %v2611_v13 = vsub.f32 1.0, %v2610_v61  ;;  %v8716_v14 = vadd.f32 1.0, %v5733_v42  ;;  %v2582_v42 = vmul.f32 %v8654_v35, %v2581_v32  ;;  %vm2600_vm14 = vweird.f32 %v8659_v0 }
 0x3d8   :  { %v2626_v44 = vsub.f32 1.0, %v2625_v26  ;;  %v2597_v26 = vmul.f32 %v8659_v0, %v2596_v40  ;;  %v2636_v32 = vor.u32 1.1754944e-38, %v2635_v15  ;;  %vm2615_vm8 = vweird.f32 %v8663_v41  ;;  %vm8798_vm4 = vmor %vm2599_vm15, %vm2600_vm14 }
 0x3d9   :  { %v8721_v43 = vpop.eup %5734  ;;  %v2612_v58 = vmul.f32 %v8663_v41, %v2611_v13  ;;  %v2572_v33 = vsel %vm8745_vm1, %v8639_v60, %v2568_v28  ;;  %v2583_v13 = vadd.f32 %v8654_v35, %v2582_v42  ;;  %vm8762_vm2 = vcmp.eq.f32.partialorder %v2618_v8, 8.507059e+37  ;;  %vm8816_vm7 = vmor %vm2614_vm12, %vm2615_vm8 }
 0x3da   :  { %v2627_v40 = vmul.f32 %v8672_v9, %v2626_v44  ;;  %v2640_v10 = vmul.f32 %v8721_v43, %v8661_v11  ;;  %vm2630_vm3 = vweird.f32 %v8672_v9  ;;  %v5371_v44 = vmul.f32 -1.442695, %v8667_v45  ;;  %v8768_v36 = vpop.eup %5736 }
 0x3db   :  { %v2598_v51 = vadd.f32 %v8659_v0, %v2597_v26  ;;  %vm8771_vm9 = vcmp.eq.f32.partialorder %v2633_v27, 8.507059e+37  ;;  %5738 = vrcp.f32 %v8716_v14  ;;  %v5372_v60 = vmul.f32 -1.442695, %v8670_v52 }
 0x3dc   :  { %v5373_v39 = vmul.f32 -1.442695, %v8677_v31  ;;  %v2613_v8 = vadd.f32 %v8663_v41, %v2612_v58  ;;  %5740 = vpow2.f32 %v5371_v44  ;;  %v5374_v28 = vmul.f32 -1.442695, %v8680_v24 }
 0x3dd   :  { %v5375_v45 = vmul.f32 -1.442695, %v8687_v59  ;;  %v2628_v26 = vadd.f32 %v8672_v9, %v2627_v40  ;;  %v2641_v52 = vsub.f32 1.0, %v2640_v10  ;;  %5742 = vpow2.f32 %v5372_v60 }
 0x3de   :  { %v5376_v31 = vmul.f32 -1.442695, %v8693_v16  ;;  %v2587_v24 = vsel %vm8785_vm5, %v8654_v35, %v2583_v13  ;;  %v2650_v59 = vand.u32 2147483648, %v8661_v11  ;;  %v2655_v27 = vmul.f32 %v8768_v36, %v8698_v25 }
 0x3df   :  { %5744 = vpow2.f32 %v5373_v39  ;;  %v8807_v16 = vsel %vm8725_vm0, %v2576_v12, %v2572_v33  ;;  %v2602_v35 = vsel %vm8798_vm4, %v8659_v0, %v2598_v51  ;;  %vm2644_vm15 = vweird.f32 %v8661_v11  ;;  %vm8829_vm0 = vmor %vm2629_vm10, %vm2630_vm3  ;;  %v2839_v51 = vld [vmem:[#allocation10 + $0x138] sm:$0xff] }
 0x3e0   :  { %5746 = vpow2.f32 %v5374_v28  ;;  %v5377_v58 = vmul.f32 -1.442695, %v8696_v50  ;;  %v2617_v12 = vsel %vm8816_vm7, %v8663_v41, %v2613_v8  ;;  %v2665_v5 = vand.u32 2147483648, %v8698_v25  ;;  %v2831_v33 = vld [vmem:[#allocation10 + $0xf8] sm:$0xff] }
 0x3e1   :  { %5748 = vpow2.f32 %v5375_v45  ;;  %v5378_v0 = vmul.f32 -1.442695, %v8704_v21  ;;  %v8835_v61 = vpop.eup %5738  ;;  %v8840_v50 = vsel %vm8737_vm11, %v8710_v23, %v2587_v24  ;;  %v2632_v3 = vsel %vm8829_vm0, %v8672_v9, %v2628_v26  ;;  %v2842_v26 = vld [vmem:[#allocation10 + $0x150] sm:$0xff] }
 0x3e2   :  { %v2642_v41 = vmul.f32 %v8721_v43, %v2641_v52  ;;  %5750 = vpow2.f32 %v5376_v31  ;;  %v5741_v40 = vpop.eup %5740  ;;  %vm2645_vm12 = vweird.f32 %v8721_v43  ;;  %v8847_v10 = vor.u32 1.1754944e-38, %v2650_v59  ;;  %v2843_v52 = vld [vmem:[#allocation10 + $0x158] sm:$0xff]  ;;  %2874 = vmatpush.msrb.mxu2 %v2842_v26  ;;  %3497 = vmatpush.msra.mxu1 %v2842_v26  ;;  %v2837_v26 = vld [vmem:[#allocation10 + $0x128] sm:$0xff] }
 0x3e3   :  { %v2656_v21 = vsub.f32 1.0, %v2655_v27  ;;  %v5743_v13 = vpop.eup %5742  ;;  %v8853_v18 = vsel %vm8758_vm6, %v8730_v37, %v2602_v35  ;;  %v8857_v23 = vsel %vm8762_vm2, %v2621_v38, %v2617_v12  ;;  %5752 = vpow2.f32 %v5377_v58  ;;  %2894 = vmatpush.msra.mxu3 %v2843_v52  ;;  %vm8893_vm13 = vmor %vm2644_vm15, %vm2645_vm12  ;;  %v2834_v58 = vld [vmem:[#allocation10 + $0x110] sm:$0xff] }
 0x3e4   :  { %12441 = vst [vmem:[#allocation49_spill] sm:$0xff] %v8857_v23  ;;  %v8859_v9 = vadd.f32 1.0, %v5741_v40  ;;  %v8863_v60 = vsel %vm8771_vm9, %v2636_v32, %v2632_v3  ;;  %v8865_v39 = vor.u32 1.1754944e-38, %v2665_v5  ;;  %5754 = vpow2.f32 %v5378_v0  ;;  %v2840_v5 = vld [vmem:[#allocation10 + $0x140] sm:$0xff]  ;;  %2875 = vmatpush.msrb.mxu2 %v2839_v51  ;;  %3498 = vmatpush.msra.mxu1 %v2839_v51 }
 0x3e5   :  { %v5745_v44 = vpop.eup %5744  ;;  %12442 = vst [vmem:[#allocation20_spill] sm:$0xff] %v8863_v60  ;;  %v8867_v8 = vadd.f32 1.0, %v5743_v13  ;;  %v8870_v28 = vadd.f32 %v8721_v43, %v2642_v41  ;;  %v2657_v17 = vmul.f32 %v8768_v36, %v2656_v21  ;;  %v8879_v45 = vmul.f32 %v8835_v61, %v8716_v14  ;;  %2895 = vmatpush.msra.mxu3 %v2840_v5  ;;  %v2833_v41 = vld [vmem:[#allocation10 + $0x108] sm:$0xff] }
 0x3e6   :  { %v5747_v37 = vpop.eup %5746  ;;  %v8873_v15 = vadd.f32 1.0, %v5745_v44  ;;  %5756 = vrcp.f32 %v8859_v9  ;;  %v2376_v12 = vand.u32 2147483648, %v8859_v9  ;;  %v8908_v40 = vmul.f32 %v8807_v16, %v8540_v54 }
 0x3e7   :  { %v5749_v32 = vpop.eup %5748  ;;  %v8881_v42 = vadd.f32 1.0, %v5747_v37  ;;  %5758 = vrcp.f32 %v8867_v8  ;;  %v2391_v21 = vand.u32 2147483648, %v8867_v8  ;;  %v8912_v44 = vadd.f32 %v8768_v36, %v2657_v17  ;;  %2896 = vmatpush.msra.mxu3 %v2837_v26 }
 0x3e8   :  { %v5751_v31 = vpop.eup %5750  ;;  %v8887_v27 = vadd.f32 1.0, %v5749_v32  ;;  %5760 = vrcp.f32 %v8873_v15  ;;  %v2836_v32 = vld [vmem:[#allocation10 + $0x120] sm:$0xff]  ;;  %vm2370_vm10 = vweird.f32 %v8859_v9  ;;  %v2374_v54 = vand.u32 2147483647, %v8859_v9 }
 0x3e9   :  { %v5753_v0 = vpop.eup %5752  ;;  %v8915_v37 = vadd.f32 1.0, %v5751_v31  ;;  %5762 = vrcp.f32 %v8881_v42  ;;  %v2389_v5 = vand.u32 2147483647, %v8867_v8  ;;  %v2406_v17 = vand.u32 2147483648, %v8873_v15  ;;  %2876 = vmatpush.msrb.mxu2 %v2836_v32  ;;  %3499 = vmatpush.msra.mxu1 %v2836_v32 }
 0x3ea   :  { %v5755_v13 = vpop.eup %5754  ;;  %5764 = vrcp.f32 %v8887_v27  ;;  %v8929_v51 = vor.u32 1.1754944e-38, %v2376_v12  ;;  %vm2385_vm11 = vweird.f32 %v8867_v8  ;;  %v2404_v24 = vand.u32 2147483647, %v8873_v15  ;;  %2897 = vmatpush.msra.mxu3 %v2834_v58 }
 0x3eb   :  { %v8933_v56 = vadd.f32 1.0, %v5753_v0  ;;  %v8937_v26 = vor.u32 1.1754944e-38, %v2391_v21  ;;  %vm2400_vm14 = vweird.f32 %v8873_v15  ;;  %v2419_v62 = vand.u32 2147483647, %v8881_v42  ;;  %2877 = vmatpush.msrb.mxu2 %v2833_v41  ;;  %v2830_v0 = vld [vmem:[#allocation10 + $0xf0] sm:$0xff]  ;;  %3500 = vmatpush.msra.mxu1 %v2833_v41 }
 0x3ec   :  { %v8918_v52 = vpop.eup %5756  ;;  %v8943_v29 = vadd.f32 1.0, %v5755_v13  ;;  %v2421_v32 = vand.u32 2147483648, %v8881_v42  ;;  %5766 = vrcp.f32 %v8915_v37  ;;  %vm8948_vm8 = vcmp.eq.f32.partialorder %v2374_v54, 8.507059e+37  ;;  %2898 = vmatpush.msra.mxu3 %v2831_v33  ;;  %v2828_v33 = vld [vmem:[#allocation10 + $0xe0] sm:$0xff] }
 0x3ed   :  { %v8925_v31 = vpop.eup %5758  ;;  %v2366_v38 = vmul.f32 %v8918_v52, %v8859_v9  ;;  %vm2371_vm1 = vweird.f32 %v8918_v52  ;;  %v8954_v13 = vor.u32 1.1754944e-38, %v2406_v17  ;;  %vm2415_vm6 = vweird.f32 %v8881_v42  ;;  %2878 = vmatpush.msrb.mxu2 %v2830_v0  ;;  %3501 = vmatpush.msra.mxu1 %v2830_v0 }
 0x3ee   :  { %v2381_v59 = vmul.f32 %v8925_v31, %v8867_v8  ;;  %v8941_v12 = vpop.eup %5760  ;;  %vm2386_vm2 = vweird.f32 %v8925_v31  ;;  %vm8961_vm3 = vcmp.eq.f32.partialorder %v2389_v5, 8.507059e+37  ;;  %vm8965_vm9 = vcmp.eq.f32.partialorder %v2404_v24, 8.507059e+37  ;;  %2899 = vmatpush.msra.mxu3 %v2828_v33  ;;  %vm8993_vm15 = vmor %vm2370_vm10, %vm2371_vm1 }
 0x3ef   :  { %v2367_v3 = vsub.f32 1.0, %v2366_v38  ;;  %v2396_v58 = vmul.f32 %v8941_v12, %v8873_v15  ;;  %v8957_v38 = vpop.eup %5762  ;;  %vm2430_vm5 = vweird.f32 %v8887_v27  ;;  %v2434_v17 = vand.u32 2147483647, %v8887_v27  ;;  %2879 = vmatpush.msrb.mxu2 %v2827_v7  ;;  %3502 = vmatpush.msra.mxu1 %v2827_v7  ;;  %vm9010_vm10 = vmor %vm2385_vm11, %vm2386_vm2 }
 0x3f0   :  { %v2382_v47 = vsub.f32 1.0, %v2381_v59  ;;  %v8971_v63 = vpop.eup %5764  ;;  %v2411_v5 = vmul.f32 %v8957_v38, %v8881_v42  ;;  %vm8976_vm4 = vcmp.eq.f32.partialorder %v2419_v62, 8.507059e+37  ;;  %v2422_v49 = vor.u32 1.1754944e-38, %v2421_v32  ;;  %v2813_v59 = vld [vmem:[#allocation10 + $0x68] sm:$0xff] }
 0x3f1   :  { %v2368_v41 = vmul.f32 %v8918_v52, %v2367_v3  ;;  %v2397_v6 = vsub.f32 1.0, %v2396_v58  ;;  %v2426_v0 = vmul.f32 %v8971_v63, %v8887_v27  ;;  %v2436_v60 = vand.u32 2147483648, %v8887_v27  ;;  %2880 = vmatpush.msrb.mxu2 %v2824_v34  ;;  %3503 = vmatpush.msra.mxu1 %v2824_v34 }
 0x3f2   :  { %v2383_v3 = vmul.f32 %v8925_v31, %v2382_v47  ;;  %v2825_v47 = vld [vmem:[#allocation10 + $0xc8] sm:$0xff]  ;;  %vm2401_vm7 = vweird.f32 %v8941_v12  ;;  %v2412_v23 = vsub.f32 1.0, %v2411_v5  ;;  %v8987_v33 = vpop.eup %5766  ;;  %vm8997_vm0 = vcmp.eq.f32.partialorder %v2434_v17, 8.507059e+37  ;;  %v2815_v17 = vld [vmem:[#allocation10 + $0x78] sm:$0xff] }
 0x3f3   :  { %v2369_v20 = vadd.f32 %v8918_v52, %v2368_v41  ;;  %v2398_v62 = vmul.f32 %v8941_v12, %v2397_v6  ;;  %2900 = vmatpush.msra.mxu3 %v2825_v47  ;;  %v2427_v7 = vsub.f32 1.0, %v2426_v0  ;;  %vm2445_vm12 = vweird.f32 %v8915_v37  ;;  %v2821_v6 = vld [vmem:[#allocation10 + $0xa8] sm:$0xff]  ;;  %v2819_v47 = vld [vmem:[#allocation10 + $0x98] sm:$0xff] }
 0x3f4   :  { %v2384_v58 = vadd.f32 %v8925_v31, %v2383_v3  ;;  %5768 = vrcp.f32 %v8933_v56  ;;  %v2822_v3 = vld [vmem:[#allocation10 + $0xb0] sm:$0xff]  ;;  %v2413_v0 = vmul.f32 %v8957_v38, %v2412_v23  ;;  %vm2416_vm1 = vweird.f32 %v8957_v38  ;;  %2881 = vmatpush.msrb.mxu2 %v2821_v6  ;;  %3504 = vmatpush.msra.mxu1 %v2821_v6 }
 0x3f5   :  { %v2373_v9 = vsel %vm8993_vm15, %v8918_v52, %v2369_v20  ;;  %v2399_v5 = vadd.f32 %v8941_v12, %v2398_v62  ;;  %vm9024_vm15 = vmor %vm2400_vm14, %vm2401_vm7  ;;  %v2428_v8 = vmul.f32 %v8971_v63, %v2427_v7  ;;  %vm2431_vm11 = vweird.f32 %v8971_v63  ;;  %2901 = vmatpush.msra.mxu3 %v2822_v3  ;;  %v2818_v52 = vld [vmem:[#allocation10 + $0x90] sm:$0xff] }
 0x3f6   :  { %v2388_v34 = vsel %vm9010_vm10, %v8925_v31, %v2384_v58  ;;  %v2441_v23 = vmul.f32 %v8987_v33, %v8915_v37  ;;  %v2414_v15 = vadd.f32 %v8957_v38, %v2413_v0  ;;  %v2449_v58 = vand.u32 2147483647, %v8915_v37  ;;  %2882 = vmatpush.msrb.mxu2 %v2818_v52  ;;  %vm9045_vm14 = vmor %vm2415_vm6, %vm2416_vm1  ;;  %3505 = vmatpush.msra.mxu1 %v2818_v52  ;;  %v2809_v52 = vld [vmem:[#allocation10 + $0x48] sm:$0xff] }
 0x3f7   :  { %v2403_v31 = vsel %vm9024_vm15, %v8941_v12, %v2399_v5  ;;  %v2451_v62 = vand.u32 2147483648, %v8915_v37  ;;  %v2378_v32 = vsel %vm8948_vm8, %v8929_v51, %v2373_v9  ;;  %v2429_v12 = vadd.f32 %v8971_v63, %v2428_v8  ;;  %2902 = vmatpush.msra.mxu3 %v2819_v47  ;;  %v2816_v5 = vld [vmem:[#allocation10 + $0x80] sm:$0xff]  ;;  %vm2432_vm8 = vmor %vm2430_vm5, %vm2431_vm11  ;;  %v2810_v47 = vld [vmem:[#allocation10 + $0x50] sm:$0xff] }
 0x3f8   :  { %v2437_v6 = vor.u32 1.1754944e-38, %v2436_v60  ;;  %v2442_v3 = vsub.f32 1.0, %v2441_v23  ;;  %v2393_v51 = vsel %vm8961_vm3, %v8937_v26, %v2388_v34  ;;  %v2408_v42 = vsel %vm8965_vm9, %v8954_v13, %v2403_v31  ;;  %2883 = vmatpush.msrb.mxu2 %v2815_v17  ;;  %3506 = vmatpush.msra.mxu1 %v2815_v17 }
 0x3f9   :  { %v2418_v21 = vsel %vm9045_vm14, %v8957_v38, %v2414_v15  ;;  %5770 = vrcp.f32 %v8943_v29  ;;  %v2433_v54 = vsel %vm2432_vm8, %v8971_v63, %v2429_v12  ;;  %vm2446_vm6 = vweird.f32 %v8987_v33  ;;  %2903 = vmatpush.msra.mxu3 %v2816_v5  ;;  %v2812_v38 = vld [vmem:[#allocation10 + $0x60] sm:$0xff]  ;;  %v2806_v5 = vld [vmem:[#allocation10 + $0x30] sm:$0xff] }
 0x3fa   :  { %v9064_v60 = vpop.eup %5768  ;;  %v2423_v26 = vsel %vm8976_vm4, %v2422_v49, %v2418_v21  ;;  %v2443_v13 = vmul.f32 %v8987_v33, %v2442_v3  ;;  %vm2660_vm2 = vweird.f32 %v8768_v36  ;;  %v2438_v27 = vsel %vm8997_vm0, %v2437_v6, %v2433_v54  ;;  %2884 = vmatpush.msrb.mxu2 %v2812_v38  ;;  %3507 = vmatpush.msra.mxu1 %v2812_v38  ;;  %vm9096_vm4 = vmor %vm2445_vm12, %vm2446_vm6 }
 0x3fb   :  { %vm9074_vm3 = vcmp.eq.f32.partialorder %v2449_v58, 8.507059e+37  ;;  %v2452_v49 = vor.u32 1.1754944e-38, %v2451_v62  ;;  %v2456_v63 = vmul.f32 %v9064_v60, %v8933_v56  ;;  %v12465_v24 = vand.u32 2147483647, %v8661_v11  ;;  %2904 = vmatpush.msra.mxu3 %v2813_v59 }
 0x3fc   :  { %v2444_v34 = vadd.f32 %v8987_v33, %v2443_v13  ;;  %v2464_v41 = vand.u32 2147483647, %v8933_v56  ;;  %v2704_v20 = vmul.f32 %v8634_v1, %v2378_v32  ;;  %v12468_v8 = vrot.slane %v8634_v1, 1  ;;  %2885 = vmatpush.msrb.mxu2 %v2809_v52  ;;  %3508 = vmatpush.msra.mxu1 %v2809_v52 }
 0x3fd   :  { %vm9082_vm9 = vcmp.eq.f32.partialorder %v12465_v24, 8.507059e+37  ;;  %vm2659_vm5 = vweird.f32 %v8698_v25  ;;  %v2457_v31 = vsub.f32 1.0, %v2456_v63  ;;  %v2466_v15 = vand.u32 2147483648, %v8933_v56  ;;  %2905 = vmatpush.msra.mxu3 %v2810_v47  ;;  %v2803_v63 = vld [vmem:[#allocation10 + $0x18] sm:$0xff]  ;;  %v2804_v24 = vld [vmem:[#allocation10 + $0x20] sm:$0xff] }
 0x3fe   :  { %v2705_v23 = vmul.f32 %v12468_v8, %v2393_v51  ;;  %v12471_v58 = vrot.slane %v8634_v1, 2  ;;  %v12472_v32 = vrot.slane %v8634_v1, 3  ;;  %v2448_v12 = vsel %vm9096_vm4, %v8987_v33, %v2444_v34  ;;  %v2807_v51 = vld [vmem:[#allocation10 + $0x38] sm:$0xff]  ;;  %2886 = vmatpush.msrb.mxu2 %v2806_v5  ;;  %3509 = vmatpush.msra.mxu1 %v2806_v5  ;;  %vm9171_vm14 = vmor %vm2659_vm5, %vm2660_vm2 }
 0x3ff   :  { %vm2461_vm7 = vweird.f32 %v9064_v60  ;;  %v12473_v37 = vrot.slane %v8634_v1, 4  ;;  %v12474_v3 = vrot.slane %v8595_v53, 2  ;;  %v2453_v21 = vsel %vm9074_vm3, %v2452_v49, %v2448_v12  ;;  %2906 = vmatpush.msra.mxu3 %v2807_v51 }
 0x400   :  { %v2706_v62 = vmul.f32 %v12471_v58, %v2408_v42  ;;  %v2707_v7 = vmul.f32 %v12472_v32, %v2423_v26  ;;  %v9113_v42 = vpop.eup %5770  ;;  %v2458_v26 = vmul.f32 %v9064_v60, %v2457_v31  ;;  %v12475_v33 = vrot.slane %v8597_v22, 2  ;;  %2887 = vmatpush.msrb.mxu2 %v2803_v63  ;;  %3510 = vmatpush.msra.mxu1 %v2803_v63  ;;  %v6122_v58 = vld [vmem:[#allocation10 + $0x8] sm:$0xff]  ;;  %v12501_v63 = vld [vmem:[#allocation20_spill] sm:$0xff] }
 0x401   :  { %v2708_v6 = vmul.f32 %v12473_v37, %v2438_v27  ;;  %v2728_v17 = vadd.f32 %v12474_v3, %v2704_v20  ;;  %v12476_v13 = vrot.slane %v8599_v2, 2  ;;  %vm2460_vm0 = vweird.f32 %v8933_v56  ;;  %2907 = vmatpush.msra.mxu3 %v2804_v24  ;;  %v12502_v24 = vld [vmem:[#allocation32_spill] sm:$0xff] }
 0x402   :  { %v2729_v54 = vadd.f32 %v12475_v33, %v2705_v23  ;;  %v2471_v53 = vmul.f32 %v9113_v42, %v8943_v29  ;;  %v12477_v59 = vrot.slane %v8634_v1, 5  ;;  %v12478_v9 = vrot.slane %v8601_v4, 2  ;;  %vm2462_vm1 = vmor %vm2460_vm0, %vm2461_vm7  ;;  %v12505_v4 = vld [vmem:[#allocation30_spill] sm:$0xff] }
 0x403   :  { %v2730_v38 = vadd.f32 %v12476_v13, %v2706_v62  ;;  %v2459_v22 = vadd.f32 %v9064_v60, %v2458_v26  ;;  %vm9130_vm12 = vcmp.eq.f32.partialorder %v2464_v41, 8.507059e+37  ;;  %v12481_v56 = vrot.slane %v8603_v46, 2  ;;  %v2800_v46 = vld [vmem:[#allocation10] sm:$0xff]  ;;  %2908 = vmatpush.msra.mxu3 %v6122_v58  ;;  %v12508_v58 = vld [vmem:[#allocation48_spill] sm:$0xff] }
 0x404   :  { %v2709_v27 = vmul.f32 %v12477_v59, %v2453_v21  ;;  %v2731_v49 = vadd.f32 %v12478_v9, %v2707_v7  ;;  %5772 = vtanh.f32 %v2728_v17  ;;  %v12482_v20 = vand.u32 2147483647, %v8698_v25  ;;  %2888 = vmatpush.msrb.mxu2 %v2800_v46  ;;  %3511 = vmatpush.msra.mxu1 %v2800_v46  ;;  %v12496_v59 = vld [vmem:[#allocation49_spill] sm:$0xff] }
 0x405   :  { %v2732_v34 = vadd.f32 %v12481_v56, %v2708_v6  ;;  %v2467_v8 = vor.u32 1.1754944e-38, %v2466_v15  ;;  %v2472_v23 = vsub.f32 1.0, %v2471_v53  ;;  %v12485_v41 = vrot.slane %v8610_v48, 2 }
 0x406   :  { %vm9138_vm10 = vcmp.eq.f32.partialorder %v12482_v20, 8.507059e+37  ;;  %5774 = vtanh.f32 %v2729_v54  ;;  %vm2674_vm15 = vweird.f32 %v8716_v14  ;;  %v2463_v47 = vsel %vm2462_vm1, %v9064_v60, %v2459_v22 }
 0x407   :  { %v2733_v52 = vadd.f32 %v12485_v41, %v2709_v27  ;;  %v2479_v11 = vand.u32 2147483647, %v8943_v29  ;;  %v2481_v31 = vand.u32 2147483648, %v8943_v29  ;;  %5776 = vtanh.f32 %v2730_v38 }
 0x408   :  { %v2468_v15 = vsel %vm9130_vm12, %v2467_v8, %v2463_v47  ;;  %v2473_v48 = vmul.f32 %v9113_v42, %v2472_v23  ;;  %vm2476_vm11 = vweird.f32 %v9113_v42  ;;  %5778 = vtanh.f32 %v2731_v49 }
 0x409   :  { %v12486_v60 = vsel %vm8893_vm13, %v8721_v43, %v8870_v28  ;;  %v12487_v32 = vsub.f32 1.0, %v8879_v45  ;;  %v12488_v12 = vrot.slane %v8634_v1, 6  ;;  %5780 = vtanh.f32 %v2732_v34 }
 0x40a   :  { %v2652_v62 = vsel %vm9082_vm9, %v8847_v10, %v12486_v60  ;;  %v2761_v43 = vmul.f32 %v8840_v50, %v8546_v55  ;;  %v2474_v10 = vadd.f32 %v9113_v42, %v2473_v48  ;;  %vm2475_vm13 = vweird.f32 %v8943_v29  ;;  %v5773_v28 = vpop.eup %5772 }
 0x40b   :  { %v2672_v7 = vmul.f32 %v8835_v61, %v12487_v32  ;;  %v2710_v37 = vmul.f32 %v12488_v12, %v2468_v15  ;;  %5782 = vtanh.f32 %v2733_v52  ;;  %vm2675_vm8 = vweird.f32 %v8835_v61  ;;  %vm2477_vm6 = vmor %vm2475_vm13, %vm2476_vm11  ;;  %v12509_v12 = vld [vmem:[#allocation31_spill] sm:$0xff] }
 0x40c   :  { %v2762_v45 = vmul.f32 %v8853_v18, %v8549_v57  ;;  %v2482_v25 = vor.u32 1.1754944e-38, %v2481_v31  ;;  %v12491_v0 = vrot.slane %v8612_v30, 2  ;;  %v5775_v3 = vpop.eup %5774  ;;  %v2662_v55 = vsel %vm9171_vm14, %v8768_v36, %v8912_v44  ;;  %vm9216_vm3 = vmor %vm2674_vm15, %vm2675_vm8 }
 0x40d   :  { %v2478_v29 = vsel %vm2477_vm6, %v9113_v42, %v2474_v10  ;;  %vm2480_vm2 = vcmp.eq.f32.partialorder %v2479_v11, 8.507059e+37  ;;  %v12492_v17 = vsub.f32 1.0, %v8807_v16  ;;  %v5777_v57 = vpop.eup %5776  ;;  %v2673_v51 = vadd.f32 %v8835_v61, %v2672_v7 }
 0x40e   :  { %v2734_v6 = vadd.f32 %v12491_v0, %v2710_v37  ;;  %v2483_v21 = vsel %vm2480_vm2, %v2482_v25, %v2478_v29  ;;  %v12493_v30 = vsub.f32 1.0, %v8840_v50  ;;  %v5779_v33 = vpop.eup %5778  ;;  %v2749_v54 = vsub.f32 1.0, %v2652_v62  ;;  %v9268_v25 = vld [vmem:[#allocation3 + $0x34] ss:$8 sm:$0x7] }
 0x40f   :  { %v2752_v5 = vmul.f32 %v5773_v28, %v12492_v17  ;;  %v12494_v13 = vrot.slane %v8634_v1, 7  ;;  %v12495_v36 = vsub.f32 1.0, %v8853_v18  ;;  %v5781_v16 = vpop.eup %5780  ;;  %v2667_v53 = vsel %vm9138_vm10, %v8865_v39, %v2662_v55  ;;  %v9264_v28 = vld [vmem:[#allocation3 + $0x4] ss:$8 sm:$0x7] }
 0x410   :  { %5784 = vtanh.f32 %v2734_v6  ;;  %v2753_v26 = vmul.f32 %v5775_v3, %v12493_v30  ;;  %v2763_v50 = vmul.f32 %v12496_v59, %v8554_v19  ;;  %v12497_v27 = vsub.f32 1.0, %v12496_v59  ;;  %v9270_v0 = vld [vmem:[#allocation3 + $0x4c] ss:$8 sm:$0x7] }
 0x411   :  { %v2711_v38 = vmul.f32 %v12494_v13, %v2483_v21  ;;  %v2754_v44 = vmul.f32 %v5777_v57, %v12495_v36  ;;  %v9201_v42 = vadd.f32 %v8908_v40, %v2752_v5  ;;  %v5783_v1 = vpop.eup %5782  ;;  %v12500_v40 = vld [vmem:[#allocation47_spill] sm:$0xff]  ;;  %v12503_v22 = vrot.slane %v12502_v24, 2  ;;  %v9272_v6 = vld [vmem:[#allocation3 + $0x64] ss:$8 sm:$0x7] }
 0x412   :  { %v2755_v9 = vmul.f32 %v5779_v33, %v12497_v27  ;;  %v9210_v49 = vadd.f32 %v2761_v43, %v2753_v26  ;;  %v2764_v39 = vmul.f32 %v12501_v63, %v12500_v40  ;;  %v12504_v2 = vsub.f32 1.0, %v12501_v63  ;;  %v9274_v57 = vld [vmem:[#allocation3 + $0x7c] ss:$8 sm:$0x7] }
 0x413   :  { %v2735_v19 = vadd.f32 %v12503_v22, %v2711_v38  ;;  %v9226_v34 = vadd.f32 %v2762_v45, %v2754_v44  ;;  %2776 = vst [vmem:[#allocation12 + $0x3] sm:$0x1] %v9201_v42  ;;  %v2677_v20 = vsel %vm9216_vm3, %v8835_v61, %v2673_v51  ;;  %v2765_v8 = vmul.f32 %v2652_v62, %v12505_v4  ;;  %v9266_v45 = vld [vmem:[#allocation3 + $0x1c] ss:$8 sm:$0x7] }
 0x414   :  { %v2756_v56 = vmul.f32 %v5781_v16, %v12504_v2  ;;  %v2757_v23 = vmul.f32 %v5783_v1, %v2749_v54  ;;  %v9233_v41 = vadd.f32 %v2763_v50, %v2755_v9  ;;  %2777 = vst [vmem:[#allocation12 + $0xb] sm:$0x1] %v9210_v49  ;;  %v12506_v52 = vand.u32 2147483648, %v8716_v14  ;;  %v9277_v33 = vld [vmem:[#allocation3 + $0x94] ss:$8 sm:$0x7] }
 0x415   :  { %v2750_v47 = vsub.f32 1.0, %v2667_v53  ;;  %5786 = vtanh.f32 %v2735_v19  ;;  %2778 = vst [vmem:[#allocation12 + $0x13] sm:$0x1] %v9226_v34  ;;  %v12507_v15 = vand.u32 2147483647, %v8716_v14  ;;  %v2766_v60 = vmul.f32 %v2667_v53, %v12508_v58 }
 0x416   :  { %v2681_v46 = vor.u32 1.1754944e-38, %v12506_v52  ;;  %v9238_v11 = vadd.f32 %v2764_v39, %v2756_v56  ;;  %v5785_v31 = vpop.eup %5784  ;;  %v9243_v61 = vadd.f32 %v2765_v8, %v2757_v23  ;;  %2779 = vst [vmem:[#allocation12 + $0x1b] sm:$0x1] %v9233_v41  ;;  %v9279_v54 = vld [vmem:[#allocation3 + $0xac] ss:$8 sm:$0x7] }
 0x417   :  { %vm2679_vm9 = vcmp.eq.f32.partialorder %v12507_v15, 8.507059e+37  ;;  %v2758_v62 = vmul.f32 %v5785_v31, %v2750_v47  ;;  %2856 = vst [vmem:[#allocation1] ss:$9 sm:$0xff] %v9201_v42  ;;  %v5464_v16 = vld [vmem:[%s11920_s5] ss:$0 sm:$0xff]  ;;  %v3116_v27 = vrot.slane %v9264_v28, 1 }
 0x418   :  { %v2682_v48 = vsel %vm2679_vm9, %v2681_v46, %v2677_v20  ;;  %2780 = vst [vmem:[#allocation12 + $0x23] sm:$0x1] %v9238_v11  ;;  %v3117_v56 = vrot.slane %v9266_v45, 1  ;;  %v3118_v23 = vrot.slane %v9268_v25, 1  ;;  %v3119_v47 = vrot.slane %v9270_v0, 1 }
 0x419   :  { %2781 = vst [vmem:[#allocation12 + $0x2b] sm:$0x1] %v9243_v61  ;;  %v9249_v32 = vadd.f32 %v2766_v60, %v2758_v62  ;;  %v2751_v7 = vsub.f32 1.0, %v2682_v48  ;;  %v2767_v37 = vmul.f32 %v2682_v48, %v12509_v12  ;;  %v3120_v48 = vrot.slane %v9272_v6, 1 }
 0x41a   :  { %2858 = vst [vmem:[#allocation1 + $0x1] ss:$9 sm:$0xff] %v9210_v49  ;;  %v3121_v60 = vrot.slane %v9274_v57, 1 }
 0x41b   :  { %v5787_v14 = vpop.eup %5786  ;;  %2782 = vst [vmem:[#allocation12 + $0x33] sm:$0x1] %v9249_v32 }
 0x41c   :  { %v2759_v35 = vmul.f32 %v5787_v14, %v2751_v7  ;;  %2860 = vst [vmem:[#allocation1 + $0x2] ss:$9 sm:$0xff] %v9226_v34 }
 0x41d   :  { %2862 = vst [vmem:[#allocation1 + $0x3] ss:$9 sm:$0xff] %v9233_v41 }
 0x41e   :  { %v9257_v43 = vadd.f32 %v2767_v37, %v2759_v35  ;;  %2864 = vst [vmem:[#allocation1 + $0x4] ss:$9 sm:$0xff] %v9238_v11 }
 0x41f   :  { %2866 = vst [vmem:[#allocation1 + $0x5] ss:$9 sm:$0xff] %v9243_v61 }
 0x420   :  { %2783 = vst [vmem:[#allocation12 + $0x3b] sm:$0x1] %v9257_v43 }
 0x421   :  { %2868 = vst [vmem:[#allocation1 + $0x6] ss:$9 sm:$0xff] %v9249_v32 }
 0x422   :  { %2870 = vst [vmem:[#allocation1 + $0x7] ss:$9 sm:$0xff] %v9257_v43 }
 0x429   :  { %v2871_v10 = vld [vmem:[#allocation1] sm:$0xff] }
 0x42a   :  { %2889 = vmatmul.f32.vlgmr.msrb.gmra.mxu2 %v2871_v10  ;;  %2909 = vmatmul.f32.vlgmr.msra.gmra.mxu3 %v2871_v10 }
 0x42b   :  { %2929 = vmatmul.f32.vlgmr.msra.gmra.mxu0 %v2871_v10 }
 0x4a8   :  { %v2930_v9 = vpop.f32.mrf.mxu0 }
 0x4a9   :  { %v9296_v20 = vadd.f32 %v5464_v16, %v2930_v9 }
 0x4ab   :  { %v3313_v14 = vrot.slane %v9296_v20, 1  ;;  %v3314_v12 = vrot.slane %v9296_v20, 2 }
 0x4ad   :  { %v2890_v3 = vpop.f32.mrf.mxu2  ;;  %v9299_v8 = vpop.f32.mrf.mxu3 }
 0x4ae   :  { %v2934_v55 = vrot.slane %v2890_v3, 1  ;;  %v2935_v29 = vrot.slane %v2890_v3, 2  ;;  %v2936_v17 = vrot.slane %v2890_v3, 3  ;;  %v2937_v5 = vrot.slane %v2890_v3, 4 }
 0x4af   :  { %v2938_v51 = vrot.slane %v2890_v3, 5  ;;  %v2939_v21 = vrot.slane %v2890_v3, 6  ;;  %v2940_v30 = vrot.slane %v2890_v3, 7  ;;  %v2948_v26 = vadd.f32 %v2890_v3, %v9264_v28 }
 0x4b0   :  { %v2949_v13 = vadd.f32 %v2934_v55, %v9266_v45  ;;  %v2950_v38 = vadd.f32 %v2935_v29, %v9268_v25  ;;  %v2951_v36 = vadd.f32 %v2936_v17, %v9270_v0  ;;  %v2952_v44 = vadd.f32 %v2937_v5, %v9272_v6 }
 0x4b1   :  { %v2953_v53 = vadd.f32 %v2938_v51, %v9274_v57  ;;  %v5387_v59 = vmul.f32 -1.442695, %v2948_v26  ;;  %v2954_v1 = vadd.f32 %v2939_v21, %v9277_v33  ;;  %v2955_v39 = vadd.f32 %v2940_v30, %v9279_v54 }
 0x4b2   :  { %v5388_v18 = vmul.f32 -1.442695, %v2949_v13  ;;  %v5389_v40 = vmul.f32 -1.442695, %v2950_v38  ;;  %v5390_v63 = vmul.f32 -1.442695, %v2951_v36  ;;  %v3147_v62 = vadd.f32 %v3116_v27, %v9299_v8 }
 0x4b3   :  { %5788 = vpow2.f32 %v5387_v59  ;;  %v5391_v24 = vmul.f32 -1.442695, %v2952_v44  ;;  %v5392_v19 = vmul.f32 -1.442695, %v2953_v53  ;;  %v5393_v52 = vmul.f32 -1.442695, %v2954_v1 }
 0x4b4   :  { %5790 = vpow2.f32 %v5388_v18  ;;  %v5394_v31 = vmul.f32 -1.442695, %v2955_v39  ;;  %v3315_v55 = vrot.slane %v9296_v20, 3  ;;  %v3133_v29 = vrot.slane %v9299_v8, 1 }
 0x4b5   :  { %5792 = vpow2.f32 %v5389_v40  ;;  %v3316_v51 = vrot.slane %v9296_v20, 4  ;;  %v3134_v21 = vrot.slane %v9299_v8, 2  ;;  %v3135_v13 = vrot.slane %v9299_v8, 3 }
 0x4b6   :  { %5794 = vpow2.f32 %v5390_v63  ;;  %v5395_v38 = vmul.f32 -1.442695, %v3147_v62  ;;  %v3136_v16 = vrot.slane %v9299_v8, 4  ;;  %v3137_v53 = vrot.slane %v9299_v8, 5 }
 0x4b7   :  { %5796 = vpow2.f32 %v5391_v24  ;;  %v3148_v18 = vadd.f32 %v3133_v29, %v3117_v56 }
 0x4b8   :  { %5798 = vpow2.f32 %v5392_v19  ;;  %v9346_v56 = vadd.f32 %v3136_v16, %v3120_v48 }
 0x4b9   :  { %v5789_v7 = vpop.eup %5788  ;;  %5800 = vpow2.f32 %v5393_v52  ;;  %v9339_v52 = vadd.f32 %v3134_v21, %v3118_v23  ;;  %v9355_v23 = vmul.f32 -1.442695, %v3148_v18 }
 0x4ba   :  { %v5791_v10 = vpop.eup %5790  ;;  %v9313_v3 = vadd.f32 1.0, %v5789_v7  ;;  %5802 = vpow2.f32 %v5394_v31  ;;  %v9341_v31 = vadd.f32 %v3135_v13, %v3119_v47 }
 0x4bb   :  { %v5793_v17 = vpop.eup %5792  ;;  %v9317_v5 = vadd.f32 1.0, %v5791_v10  ;;  %v9348_v10 = vadd.f32 %v3137_v53, %v3121_v60 }
 0x4bc   :  { %v5795_v30 = vpop.eup %5794  ;;  %v9321_v26 = vadd.f32 1.0, %v5793_v17  ;;  %5804 = vrcp.f32 %v9313_v3  ;;  %v2999_v40 = vand.u32 2147483648, %v9313_v3  ;;  %vm2993_vm5 = vweird.f32 %v9313_v3 }
 0x4bd   :  { %v5797_v36 = vpop.eup %5796  ;;  %v9325_v44 = vadd.f32 1.0, %v5795_v30  ;;  %5806 = vrcp.f32 %v9317_v5  ;;  %v3014_v19 = vand.u32 2147483648, %v9317_v5  ;;  %v2997_v17 = vand.u32 2147483647, %v9313_v3 }
 0x4be   :  { %v5799_v59 = vpop.eup %5798  ;;  %v9330_v27 = vadd.f32 1.0, %v5797_v36  ;;  %5808 = vrcp.f32 %v9321_v26  ;;  %v3000_v30 = vor.u32 1.1754944e-38, %v2999_v40  ;;  %vm3008_vm4 = vweird.f32 %v9317_v5 }
 0x4bf   :  { %v5801_v24 = vpop.eup %5800  ;;  %5810 = vpow2.f32 %v5395_v38  ;;  %v9343_v7 = vadd.f32 1.0, %v5799_v59  ;;  %v3012_v48 = vand.u32 2147483647, %v9317_v5  ;;  %v3029_v60 = vand.u32 2147483648, %v9321_v26 }
 0x4c0   :  { %v5803_v62 = vpop.eup %5802  ;;  %5812 = vrcp.f32 %v9325_v44  ;;  %v9364_v13 = vadd.f32 1.0, %v5801_v24  ;;  %v3015_v36 = vor.u32 1.1754944e-38, %v3014_v19  ;;  %vm3023_vm7 = vweird.f32 %v9321_v26 }
 0x4c1   :  { %5814 = vrcp.f32 %v9330_v27  ;;  %v3027_v16 = vand.u32 2147483647, %v9321_v26  ;;  %v9372_v59 = vadd.f32 1.0, %v5803_v62  ;;  %v3042_v40 = vand.u32 2147483647, %v9325_v44 }
 0x4c2   :  { %v9350_v29 = vpop.eup %5804  ;;  %5816 = vrcp.f32 %v9343_v7  ;;  %vm9379_vm12 = vcmp.eq.f32.partialorder %v2997_v17, 8.507059e+37  ;;  %vm3038_vm10 = vweird.f32 %v9325_v44  ;;  %v3044_v62 = vand.u32 2147483648, %v9325_v44 }
 0x4c3   :  { %v9357_v47 = vpop.eup %5806  ;;  %v2989_v21 = vmul.f32 %v9350_v29, %v9313_v3  ;;  %vm2994_vm0 = vweird.f32 %v9350_v29  ;;  %vm9388_vm1 = vcmp.eq.f32.partialorder %v3012_v48, 8.507059e+37  ;;  %v3030_v37 = vor.u32 1.1754944e-38, %v3029_v60 }
 0x4c4   :  { %v3004_v38 = vmul.f32 %v9357_v47, %v9317_v5  ;;  %v9370_v53 = vpop.eup %5808  ;;  %vm3053_vm15 = vweird.f32 %v9330_v27  ;;  %v3057_v17 = vand.u32 2147483647, %v9330_v27  ;;  %vm3009_vm11 = vweird.f32 %v9357_v47  ;;  %vm9415_vm6 = vmor %vm2993_vm5, %vm2994_vm0 }
 0x4c5   :  { %v2990_v18 = vsub.f32 1.0, %v2989_v21  ;;  %v9376_v58 = vpop.eup %5810  ;;  %v3019_v39 = vmul.f32 %v9370_v53, %v9321_v26  ;;  %vm9396_vm14 = vcmp.eq.f32.partialorder %v3027_v16, 8.507059e+37  ;;  %vm9402_vm13 = vcmp.eq.f32.partialorder %v3042_v40, 8.507059e+37  ;;  %vm9431_vm3 = vmor %vm3008_vm4, %vm3009_vm11 }
 0x4c6   :  { %v3005_v19 = vsub.f32 1.0, %v3004_v38  ;;  %v5813_v21 = vpop.eup %5812  ;;  %v3059_v9 = vand.u32 2147483648, %v9330_v27  ;;  %vm3024_vm8 = vweird.f32 %v9370_v53  ;;  %v3045_v40 = vor.u32 1.1754944e-38, %v3044_v62 }
 0x4c7   :  { %v2991_v35 = vmul.f32 %v9350_v29, %v2990_v18  ;;  %v5815_v38 = vpop.eup %5814  ;;  %v3020_v1 = vsub.f32 1.0, %v3019_v39  ;;  %v3034_v48 = vmul.f32 %v5813_v21, %v9325_v44  ;;  %vm9419_vm2 = vcmp.eq.f32.partialorder %v3057_v17, 8.507059e+37  ;;  %vm9441_vm5 = vmor %vm3023_vm7, %vm3024_vm8 }
 0x4c8   :  { %v3006_v15 = vmul.f32 %v9357_v47, %v3005_v19  ;;  %v3049_v4 = vmul.f32 %v5815_v38, %v9330_v27  ;;  %v5817_v2 = vpop.eup %5816  ;;  %5818 = vrcp.f32 %v9364_v13  ;;  %vm3039_vm9 = vweird.f32 %v5813_v21 }
 0x4c9   :  { %v2992_v18 = vadd.f32 %v9350_v29, %v2991_v35  ;;  %v3021_v39 = vmul.f32 %v9370_v53, %v3020_v1  ;;  %v3035_v16 = vsub.f32 1.0, %v3034_v48  ;;  %vm3054_vm0 = vweird.f32 %v5815_v38  ;;  %vm3040_vm4 = vmor %vm3038_vm10, %vm3039_vm9 }
 0x4ca   :  { %v3007_v19 = vadd.f32 %v9357_v47, %v3006_v15  ;;  %v3050_v22 = vsub.f32 1.0, %v3049_v4  ;;  %v3064_v5 = vmul.f32 %v5817_v2, %v9343_v7  ;;  %vm3055_vm7 = vmor %vm3053_vm15, %vm3054_vm0  ;;  %vm3069_vm11 = vweird.f32 %v5817_v2 }
 0x4cb   :  { %v2996_v15 = vsel %vm9415_vm6, %v9350_v29, %v2992_v18  ;;  %v3022_v4 = vadd.f32 %v9370_v53, %v3021_v39  ;;  %v3036_v1 = vmul.f32 %v5813_v21, %v3035_v16  ;;  %v3060_v39 = vor.u32 1.1754944e-38, %v3059_v9 }
 0x4cc   :  { %v3011_v62 = vsel %vm9431_vm3, %v9357_v47, %v3007_v19  ;;  %v3051_v17 = vmul.f32 %v5815_v38, %v3050_v22  ;;  %v3074_v16 = vand.u32 2147483648, %v9343_v7  ;;  %v3001_v47 = vsel %vm9379_vm12, %v3000_v30, %v2996_v15 }
 0x4cd   :  { %v3026_v48 = vsel %vm9441_vm5, %v9370_v53, %v3022_v4  ;;  %v3037_v18 = vadd.f32 %v5813_v21, %v3036_v1  ;;  %v3065_v19 = vsub.f32 1.0, %v3064_v5  ;;  %v3072_v22 = vand.u32 2147483647, %v9343_v7 }
 0x4ce   :  { %v3052_v26 = vadd.f32 %v5815_v38, %v3051_v17  ;;  %v3016_v35 = vsel %vm9388_vm1, %v3015_v36, %v3011_v62  ;;  %5820 = vrcp.f32 %v9372_v59  ;;  %v5819_v9 = vpop.eup %5818  ;;  %v3031_v30 = vsel %vm9396_vm14, %v3030_v37, %v3026_v48 }
 0x4cf   :  { %v3041_v3 = vsel %vm3040_vm4, %v5813_v21, %v3037_v18  ;;  %v3066_v24 = vmul.f32 %v5817_v2, %v3065_v19  ;;  %vm3068_vm12 = vweird.f32 %v9343_v7  ;;  %v3075_v36 = vor.u32 1.1754944e-38, %v3074_v16 }
 0x4d0   :  { %v3046_v44 = vsel %vm9402_vm13, %v3045_v40, %v3041_v3  ;;  %v3056_v53 = vsel %vm3055_vm7, %v5815_v38, %v3052_v26  ;;  %v3079_v27 = vmul.f32 %v5819_v9, %v9364_v13  ;;  %v3087_v15 = vand.u32 2147483647, %v9364_v13  ;;  %vm3070_vm10 = vmor %vm3068_vm12, %vm3069_vm11 }
 0x4d1   :  { %v3061_v63 = vsel %vm9419_vm2, %v3060_v39, %v3056_v53  ;;  %v3067_v21 = vadd.f32 %v5817_v2, %v3066_v24  ;;  %v3327_v4 = vmul.f32 %v9296_v20, %v3001_v47  ;;  %v3328_v46 = vmul.f32 %v3313_v14, %v3016_v35 }
 0x4d2   :  { %v3080_v37 = vsub.f32 1.0, %v3079_v27  ;;  %v3089_v38 = vand.u32 2147483648, %v9364_v13  ;;  %v3329_v50 = vmul.f32 %v3314_v12, %v3031_v30  ;;  %v3330_v7 = vmul.f32 %v3315_v55, %v3046_v44 }
 0x4d3   :  { %v3071_v60 = vsel %vm3070_vm10, %v5817_v2, %v3067_v21  ;;  %vm3073_vm1 = vcmp.eq.f32.partialorder %v3072_v22, 8.507059e+37  ;;  %v3331_v40 = vmul.f32 %v3316_v51, %v3061_v63  ;;  %v12526_v1 = vrot.slane %v9264_v28, 2 }
 0x4d4   :  { %v5821_v14 = vpop.eup %5820  ;;  %v3076_v29 = vsel %vm3073_vm1, %v3075_v36, %v3071_v60  ;;  %v3081_v17 = vmul.f32 %v5819_v9, %v3080_v37  ;;  %vm3084_vm15 = vweird.f32 %v5819_v9  ;;  %v12527_v5 = vrot.slane %v9266_v45, 2 }
 0x4d5   :  { %v3351_v62 = vadd.f32 %v12526_v1, %v3327_v4  ;;  %vm3083_vm14 = vweird.f32 %v9364_v13  ;;  %vm9485_vm13 = vcmp.eq.f32.partialorder %v3087_v15, 8.507059e+37  ;;  %v3094_v2 = vmul.f32 %v5821_v14, %v9372_v59 }
 0x4d6   :  { %v3352_v48 = vadd.f32 %v12527_v5, %v3328_v46  ;;  %v12530_v55 = vrot.slane %v9268_v25, 2  ;;  %v3082_v28 = vadd.f32 %v5819_v9, %v3081_v17  ;;  %v3090_v18 = vor.u32 1.1754944e-38, %v3089_v38  ;;  %vm3085_vm8 = vmor %vm3083_vm14, %vm3084_vm15  ;;  %v3469_v5 = vld [vmem:[#allocation10 + $0x170] sm:$0xff] }
 0x4d7   :  { %v12531_v39 = vrot.slane %v9296_v20, 5  ;;  %v12532_v47 = vrot.slane %v9270_v0, 2  ;;  %v3095_v26 = vsub.f32 1.0, %v3094_v2  ;;  %v3102_v13 = vand.u32 2147483647, %v9372_v59  ;;  %3516 = vmatpush.msra.mxu2 %v3469_v5  ;;  %4139 = vmatpush.msrb.mxu1 %v3469_v5 }
 0x4d8   :  { %v3353_v51 = vadd.f32 %v12530_v55, %v3329_v50  ;;  %v12533_v19 = vrot.slane %v9272_v6, 2  ;;  %5822 = vtanh.f32 %v3351_v62  ;;  %v3086_v35 = vsel %vm3085_vm8, %v5819_v9, %v3082_v28 }
 0x4d9   :  { %v3332_v16 = vmul.f32 %v12531_v39, %v3076_v29  ;;  %v3354_v45 = vadd.f32 %v12532_v47, %v3330_v7  ;;  %vm3099_vm6 = vweird.f32 %v5821_v14  ;;  %v3104_v25 = vand.u32 2147483648, %v9372_v59  ;;  %v6123_v39 = vld [vmem:[#allocation10 + $0x158] sm:$0xff] }
 0x4da   :  { %v3355_v22 = vadd.f32 %v12533_v19, %v3331_v40  ;;  %5824 = vtanh.f32 %v3352_v48  ;;  %v3091_v3 = vsel %vm9485_vm13, %v3090_v18, %v3086_v35  ;;  %v3096_v30 = vmul.f32 %v5821_v14, %v3095_v26  ;;  %v9540_v48 = vld [vmem:[#allocation10 + $0x178] sm:$0xff]  ;;  %3517 = vmatpush.msra.mxu2 %v6123_v39  ;;  %v9559_v26 = vld [vmem:[#allocation10 + $0x148] sm:$0xff] }
 0x4db   :  { %5826 = vtanh.f32 %v3353_v51  ;;  %v5397_v0 = vmul.f32 -1.442695, %v9339_v52  ;;  %v12534_v44 = vrot.slane %v9296_v20, 6  ;;  %v12535_v24 = vrot.slane %v9274_v57, 2  ;;  %3536 = vmatpush.msrb.mxu3 %v9540_v48  ;;  %v9548_v51 = vld [vmem:[#allocation10 + $0x160] sm:$0xff] }
 0x4dc   :  { %5828 = vtanh.f32 %v3354_v45  ;;  %v12536_v9 = vrot.slane %v9277_v33, 1  ;;  %v12537_v63 = vrot.slane %v9299_v8, 6  ;;  %v3097_v27 = vadd.f32 %v5821_v14, %v3096_v30 }
 0x4dd   :  { %v3333_v53 = vmul.f32 %v12534_v44, %v3091_v3  ;;  %v3356_v6 = vadd.f32 %v12535_v24, %v3332_v16  ;;  %vm3098_vm2 = vweird.f32 %v9372_v59  ;;  %5830 = vtanh.f32 %v3355_v22  ;;  %3537 = vmatpush.msrb.mxu3 %v9548_v51  ;;  %v6124_v22 = vld [vmem:[#allocation10 + $0x140] sm:$0xff]  ;;  %v9568_v3 = vld [vmem:[#allocation10 + $0x130] sm:$0xff]  ;;  %v6125_v24 = vld [vmem:[#allocation10 + $0x128] sm:$0xff] }
 0x4de   :  { %v3153_v36 = vadd.f32 %v12537_v63, %v12536_v9  ;;  %v5398_v21 = vmul.f32 -1.442695, %v9341_v31  ;;  %vm3100_vm3 = vmor %vm3098_vm2, %vm3099_vm6  ;;  %v3105_v52 = vor.u32 1.1754944e-38, %v3104_v25  ;;  %v12538_v15 = vrot.slane %v9279_v54, 1  ;;  %v9520_v37 = vpop.eup %5822  ;;  %3518 = vmatpush.msra.mxu2 %v6124_v22 }
 0x4df   :  { %v12539_v57 = vrot.slane %v9299_v8, 7  ;;  %5832 = vpow2.f32 %v9355_v23  ;;  %v5399_v46 = vmul.f32 -1.442695, %v9346_v56  ;;  %v3101_v38 = vsel %vm3100_vm3, %v5821_v14, %v3097_v27  ;;  %3538 = vmatpush.msrb.mxu3 %v9559_v26  ;;  %v9584_v27 = vld [vmem:[#allocation10 + $0x118] sm:$0xff] }
 0x4e0   :  { %vm3103_vm9 = vcmp.eq.f32.partialorder %v3102_v13, 8.507059e+37  ;;  %5834 = vpow2.f32 %v5397_v0  ;;  %v5400_v59 = vmul.f32 -1.442695, %v9348_v10  ;;  %v9523_v31 = vpop.eup %5824  ;;  %v12540_v7 = vrot.slane %v9277_v33, 2  ;;  %3519 = vmatpush.msra.mxu2 %v6125_v24 }
 0x4e1   :  { %v3154_v4 = vadd.f32 %v12539_v57, %v12538_v15  ;;  %v3106_v50 = vsel %vm3103_vm9, %v3105_v52, %v3101_v38  ;;  %5836 = vtanh.f32 %v3356_v6  ;;  %v9527_v8 = vpop.eup %5826  ;;  %v3319_v23 = vrot.slane %v9296_v20, 7  ;;  %3539 = vmatpush.msrb.mxu3 %v9568_v3 }
 0x4e2   :  { %v3357_v60 = vadd.f32 %v12540_v7, %v3333_v53  ;;  %5838 = vpow2.f32 %v5398_v21  ;;  %v5401_v56 = vmul.f32 -1.442695, %v3153_v36  ;;  %v9530_v40 = vpop.eup %5828  ;;  %v9535_v14 = vadd.f32 1.0, %v9376_v58 }
 0x4e3   :  { %5840 = vpow2.f32 %v5399_v46  ;;  %v5402_v1 = vmul.f32 -1.442695, %v3154_v4  ;;  %v9532_v62 = vpop.eup %5830  ;;  %v3334_v10 = vmul.f32 %v3319_v23, %v3106_v50  ;;  %v3342_v17 = vrot.slane %v9279_v54, 2  ;;  %v6126_v4 = vld [vmem:[#allocation10 + $0x110] sm:$0xff]  ;;  %3540 = vmatpush.msrb.mxu3 %v9584_v27 }
 0x4e4   :  { %5842 = vpow2.f32 %v5400_v59  ;;  %v3198_v18 = vand.u32 2147483648, %v9535_v14  ;;  %vm3192_vm5 = vweird.f32 %v9535_v14  ;;  %v3196_v0 = vand.u32 2147483647, %v9535_v14  ;;  %3520 = vmatpush.msra.mxu2 %v6126_v4 }
 0x4e5   :  { %v5833_v33 = vpop.eup %5832  ;;  %5844 = vtanh.f32 %v3357_v60  ;;  %v3358_v55 = vadd.f32 %v3342_v17, %v3334_v10  ;;  %v9606_v60 = vld [vmem:[#allocation10 + $0x100] sm:$0xff] }
 0x4e6   :  { %v5835_v29 = vpop.eup %5834  ;;  %5846 = vpow2.f32 %v5401_v56  ;;  %v9538_v20 = vadd.f32 1.0, %v5833_v33  ;;  %v9572_v44 = vor.u32 1.1754944e-38, %v3198_v18  ;;  %3541 = vmatpush.msrb.mxu3 %v9606_v60  ;;  %vm9619_vm12 = vcmp.eq.f32.partialorder %v3196_v0, 8.507059e+37 }
 0x4e7   :  { %v9542_v12 = vpop.eup %5836  ;;  %5848 = vpow2.f32 %v5402_v1  ;;  %v9544_v2 = vadd.f32 1.0, %v5835_v29  ;;  %v6127_v29 = vld [vmem:[#allocation10 + $0xf8] sm:$0xff] }
 0x4e8   :  { %v5839_v58 = vpop.eup %5838  ;;  %5850 = vrcp.f32 %v9535_v14  ;;  %v3213_v45 = vand.u32 2147483648, %v9538_v20  ;;  %vm3207_vm0 = vweird.f32 %v9538_v20  ;;  %v3211_v9 = vand.u32 2147483647, %v9538_v20  ;;  %3521 = vmatpush.msra.mxu2 %v6127_v29 }
 0x4e9   :  { %v5841_v54 = vpop.eup %5840  ;;  %v9550_v28 = vadd.f32 1.0, %v5839_v58  ;;  %5852 = vrcp.f32 %v9538_v20  ;;  %v3228_v25 = vand.u32 2147483648, %v9544_v2  ;;  %v3226_v36 = vand.u32 2147483647, %v9544_v2 }
 0x4ea   :  { %v5843_v16 = vpop.eup %5842  ;;  %v9555_v47 = vadd.f32 1.0, %v5841_v54  ;;  %5854 = vrcp.f32 %v9544_v2  ;;  %v9581_v63 = vor.u32 1.1754944e-38, %v3213_v45  ;;  %vm3222_vm4 = vweird.f32 %v9544_v2  ;;  %v9627_v54 = vld [vmem:[#allocation10 + $0xe8] sm:$0xff] }
 0x4eb   :  { %v9561_v13 = vpop.eup %5844  ;;  %v9563_v19 = vadd.f32 1.0, %v5843_v16  ;;  %5856 = vrcp.f32 %v9550_v28  ;;  %v3243_v53 = vand.u32 2147483648, %v9550_v28  ;;  %v3241_v57 = vand.u32 2147483647, %v9550_v28  ;;  %3542 = vmatpush.msrb.mxu3 %v9627_v54 }
 0x4ec   :  { %v5847_v35 = vpop.eup %5846  ;;  %5858 = vtanh.f32 %v3358_v55  ;;  %v9602_v50 = vor.u32 1.1754944e-38, %v3228_v25  ;;  %vm3237_vm7 = vweird.f32 %v9550_v28  ;;  %v3256_v7 = vand.u32 2147483647, %v9555_v47 }
 0x4ed   :  { %v5849_v30 = vpop.eup %5848  ;;  %5860 = vrcp.f32 %v9555_v47  ;;  %v9588_v52 = vadd.f32 1.0, %v5847_v35  ;;  %v9612_v10 = vor.u32 1.1754944e-38, %v3243_v53  ;;  %v3258_v33 = vand.u32 2147483648, %v9555_v47  ;;  %v6128_v35 = vld [vmem:[#allocation10 + $0xe0] sm:$0xff] }
 0x4ee   :  { %v9577_v6 = vpop.eup %5850  ;;  %5862 = vrcp.f32 %v9563_v19  ;;  %v9598_v38 = vadd.f32 1.0, %v5849_v30  ;;  %vm3252_vm1 = vweird.f32 %v9555_v47  ;;  %vm9632_vm15 = vcmp.eq.f32.partialorder %v3211_v9, 8.507059e+37  ;;  %3522 = vmatpush.msra.mxu2 %v6128_v35  ;;  %v9651_v9 = vld [vmem:[#allocation10 + $0xd0] sm:$0xff]  ;;  %v9780_v30 = vld [vmem:[#allocation10 + $0x58] sm:$0xff]  ;;  %v9782_v53 = vld [vmem:[#allocation10 + $0x40] sm:$0xff] }
 0x4ef   :  { %v9586_v21 = vpop.eup %5852  ;;  %v3188_v15 = vmul.f32 %v9577_v6, %v9535_v14  ;;  %vm3193_vm11 = vweird.f32 %v9577_v6  ;;  %v3271_v22 = vand.u32 2147483647, %v9563_v19  ;;  %5864 = vrcp.f32 %v9588_v52  ;;  %3543 = vmatpush.msrb.mxu3 %v9651_v9 }
 0x4f0   :  { %v9596_v46 = vpop.eup %5854  ;;  %v3203_v59 = vmul.f32 %v9586_v21, %v9538_v20  ;;  %vm3208_vm10 = vweird.f32 %v9586_v21  ;;  %vm9641_vm13 = vcmp.eq.f32.partialorder %v3226_v36, 8.507059e+37  ;;  %vm9645_vm8 = vcmp.eq.f32.partialorder %v3241_v57, 8.507059e+37  ;;  %vm9668_vm3 = vmor %vm3192_vm5, %vm3193_vm11 }
 0x4f1   :  { %v9608_v23 = vpop.eup %5856  ;;  %v3189_v56 = vsub.f32 1.0, %v3188_v15  ;;  %v3218_v1 = vmul.f32 %v9596_v46, %v9544_v2  ;;  %vm3223_vm14 = vweird.f32 %v9596_v46  ;;  %vm9658_vm2 = vcmp.eq.f32.partialorder %v3256_v7, 8.507059e+37  ;;  %vm9682_vm9 = vmor %vm3207_vm0, %vm3208_vm10  ;;  %v6134_v2 = vld [vmem:[#allocation10 + $0x50] sm:$0xff] }
 0x4f2   :  { %v9616_v17 = vpop.eup %5858  ;;  %v3204_v58 = vsub.f32 1.0, %v3203_v59  ;;  %v3233_v55 = vmul.f32 %v9608_v23, %v9550_v28  ;;  %vm3238_vm6 = vweird.f32 %v9608_v23  ;;  %v3273_v57 = vand.u32 2147483648, %v9563_v19  ;;  %vm9700_vm0 = vmor %vm3222_vm4, %vm3223_vm14 }
 0x4f3   :  { %v9629_v18 = vpop.eup %5860  ;;  %v3190_v39 = vmul.f32 %v9577_v6, %v3189_v56  ;;  %v3219_v45 = vsub.f32 1.0, %v3218_v1  ;;  %v6129_v56 = vld [vmem:[#allocation10 + $0xc8] sm:$0xff]  ;;  %v3259_v35 = vor.u32 1.1754944e-38, %v3258_v33  ;;  %vm3267_vm5 = vweird.f32 %v9563_v19  ;;  %vm9718_vm4 = vmor %vm3237_vm7, %vm3238_vm6 }
 0x4f4   :  { %v3205_v25 = vmul.f32 %v9586_v21, %v3204_v58  ;;  %v3234_v0 = vsub.f32 1.0, %v3233_v55  ;;  %v3248_v24 = vmul.f32 %v9629_v18, %v9555_v47  ;;  %v9653_v15 = vpop.eup %5862  ;;  %3523 = vmatpush.msra.mxu2 %v6129_v56  ;;  %vm9688_vm11 = vcmp.eq.f32.partialorder %v3271_v22, 8.507059e+37 }
 0x4f5   :  { %v3191_v4 = vadd.f32 %v9577_v6, %v3190_v39  ;;  %v3220_v59 = vmul.f32 %v9596_v46, %v3219_v45  ;;  %v3263_v55 = vmul.f32 %v9653_v15, %v9563_v19  ;;  %v9676_v39 = vld [vmem:[#allocation10 + $0xb8] sm:$0xff]  ;;  %vm3253_vm10 = vweird.f32 %v9629_v18  ;;  %v9709_v56 = vpop.eup %5864 }
 0x4f6   :  { %v3206_v29 = vadd.f32 %v9586_v21, %v3205_v25  ;;  %v3235_v7 = vmul.f32 %v9608_v23, %v3234_v0  ;;  %v3249_v58 = vsub.f32 1.0, %v3248_v24  ;;  %v6130_v0 = vld [vmem:[#allocation10 + $0xb0] sm:$0xff]  ;;  %3544 = vmatpush.msrb.mxu3 %v9676_v39  ;;  %v3274_v1 = vor.u32 1.1754944e-38, %v3273_v57  ;;  %v9733_v57 = vld [vmem:[#allocation10 + $0x88] sm:$0xff]  ;;  %vm9742_vm7 = vmor %vm3252_vm1, %vm3253_vm10 }
 0x4f7   :  { %v3221_v45 = vadd.f32 %v9596_v46, %v3220_v59  ;;  %3524 = vmatpush.msra.mxu2 %v6130_v0  ;;  %v3195_v20 = vsel %vm9668_vm3, %v9577_v6, %v3191_v4  ;;  %v9707_v59 = vld [vmem:[#allocation10 + $0xa0] sm:$0xff]  ;;  %v3264_v4 = vsub.f32 1.0, %v3263_v55  ;;  %v3278_v55 = vmul.f32 %v9709_v56, %v9588_v52 }
 0x4f8   :  { %v3236_v22 = vadd.f32 %v9608_v23, %v3235_v7  ;;  %v3250_v24 = vmul.f32 %v9629_v18, %v3249_v58  ;;  %v3210_v6 = vsel %vm9682_vm9, %v9586_v21, %v3206_v29  ;;  %v3286_v7 = vand.u32 2147483647, %v9588_v52  ;;  %v6131_v58 = vld [vmem:[#allocation10 + $0x98] sm:$0xff]  ;;  %3545 = vmatpush.msrb.mxu3 %v9707_v59  ;;  %v6132_v0 = vld [vmem:[#allocation10 + $0x80] sm:$0xff] }
 0x4f9   :  { %3525 = vmatpush.msra.mxu2 %v6131_v58  ;;  %v3225_v21 = vsel %vm9700_vm0, %v9596_v46, %v3221_v45  ;;  %v3200_v14 = vsel %vm9619_vm12, %v9572_v44, %v3195_v20  ;;  %vm3268_vm14 = vweird.f32 %v9653_v15  ;;  %v3288_v45 = vand.u32 2147483648, %v9588_v52  ;;  %v9757_v20 = vld [vmem:[#allocation10 + $0x70] sm:$0xff] }
 0x4fa   :  { %v3240_v28 = vsel %vm9718_vm4, %v9608_v23, %v3236_v22  ;;  %v3251_v29 = vadd.f32 %v9629_v18, %v3250_v24  ;;  %v3265_v23 = vmul.f32 %v9653_v15, %v3264_v4  ;;  %3546 = vmatpush.msrb.mxu3 %v9733_v57  ;;  %v3215_v44 = vsel %vm9632_vm15, %v9581_v63, %v3210_v6  ;;  %v6133_v63 = vld [vmem:[#allocation10 + $0x68] sm:$0xff]  ;;  %vm3269_vm1 = vmor %vm3267_vm5, %vm3268_vm14 }
 0x4fb   :  { %3526 = vmatpush.msra.mxu2 %v6132_v0  ;;  %v3279_v5 = vsub.f32 1.0, %v3278_v55  ;;  %5866 = vrcp.f32 %v9598_v38  ;;  %v3230_v33 = vsel %vm9641_vm13, %v9602_v50, %v3225_v21  ;;  %v3245_v22 = vsel %vm9645_vm8, %v9612_v10, %v3240_v28  ;;  %v9789_v21 = vld [vmem:[#allocation10 + $0x28] sm:$0xff]  ;;  %v6135_v55 = vld [vmem:[#allocation10 + $0x38] sm:$0xff] }
 0x4fc   :  { %v3255_v47 = vsel %vm9742_vm7, %v9629_v18, %v3251_v29  ;;  %v3266_v16 = vadd.f32 %v9653_v15, %v3265_v23  ;;  %vm3282_vm12 = vweird.f32 %v9588_v52  ;;  %3547 = vmatpush.msrb.mxu3 %v9757_v20  ;;  %vm3283_vm15 = vweird.f32 %v9709_v56 }
 0x4fd   :  { %3527 = vmatpush.msra.mxu2 %v6133_v63  ;;  %v3260_v18 = vsel %vm9658_vm2, %v3259_v35, %v3255_v47  ;;  %v3280_v50 = vmul.f32 %v9709_v56, %v3279_v5  ;;  %vm9776_vm13 = vcmp.eq.f32.partialorder %v3286_v7, 8.507059e+37  ;;  %v3289_v35 = vor.u32 1.1754944e-38, %v3288_v45  ;;  %vm9795_vm8 = vmor %vm3282_vm12, %vm3283_vm15  ;;  %v3424_v47 = vld [vmem:[#allocation10 + $0x8] sm:$0xff]  ;;  %v9809_v5 = vld [vmem:[#allocation10 + $0x10] sm:$0xff] }
 0x4fe   :  { %v3270_v36 = vsel %vm3269_vm1, %v9653_v15, %v3266_v16  ;;  %v3367_v24 = vsub.f32 1.0, %v3200_v14  ;;  %v3368_v6 = vsub.f32 1.0, %v3215_v44  ;;  %3548 = vmatpush.msrb.mxu3 %v9780_v30  ;;  %v3369_v7 = vsub.f32 1.0, %v3230_v33 }
 0x4ff   :  { %3528 = vmatpush.msra.mxu2 %v6134_v2  ;;  %v3275_v19 = vsel %vm9688_vm11, %v3274_v1, %v3270_v36  ;;  %v3281_v4 = vadd.f32 %v9709_v56, %v3280_v50  ;;  %v3370_v58 = vsub.f32 1.0, %v3245_v22  ;;  %v3301_v28 = vand.u32 2147483647, %v9598_v38  ;;  %v6136_v36 = vld [vmem:[#allocation10 + $0x20] sm:$0xff] }
 0x500   :  { %v3303_v29 = vand.u32 2147483648, %v9598_v38  ;;  %v3371_v25 = vsub.f32 1.0, %v3260_v18  ;;  %v3375_v1 = vmul.f32 %v9520_v37, %v3367_v24  ;;  %3549 = vmatpush.msrb.mxu3 %v9782_v53  ;;  %v3376_v23 = vmul.f32 %v9523_v31, %v3368_v6 }
 0x501   :  { %3529 = vmatpush.msra.mxu2 %v6135_v55  ;;  %v5867_v46 = vpop.eup %5866  ;;  %v3285_v52 = vsel %vm9795_vm8, %v9709_v56, %v3281_v4  ;;  %v3377_v45 = vmul.f32 %v9527_v8, %v3369_v7  ;;  %v3378_v0 = vmul.f32 %v9530_v40, %v3370_v58  ;;  %v3372_v63 = vsub.f32 1.0, %v3275_v19 }
 0x502   :  { %v3290_v37 = vsel %vm9776_vm13, %v3289_v35, %v3285_v52  ;;  %v3293_v16 = vmul.f32 %v5867_v46, %v9598_v38  ;;  %v3379_v50 = vmul.f32 %v9532_v62, %v3371_v25  ;;  %3550 = vmatpush.msrb.mxu3 %v9789_v21  ;;  %v3383_v8 = vmul.f32 %v3200_v14, %v9201_v42 }
 0x503   :  { %3530 = vmatpush.msra.mxu2 %v6136_v36  ;;  %v3373_v31 = vsub.f32 1.0, %v3290_v37  ;;  %v3384_v40 = vmul.f32 %v3215_v44, %v9210_v49  ;;  %v3385_v56 = vmul.f32 %v3230_v33, %v9226_v34  ;;  %v3380_v10 = vmul.f32 %v9542_v12, %v3372_v63 }
 0x504   :  { %v3294_v24 = vsub.f32 1.0, %v3293_v16  ;;  %v3386_v35 = vmul.f32 %v3245_v22, %v9233_v41  ;;  %v3387_v6 = vmul.f32 %v3260_v18, %v9238_v11  ;;  %3551 = vmatpush.msrb.mxu3 %v9809_v5  ;;  %v9824_v2 = vadd.f32 %v3383_v8, %v3375_v1  ;;  %v9885_v18 = vld [vmem:[#allocation3 + $0x4d] ss:$8 sm:$0x7] }
 0x505   :  { %3531 = vmatpush.msra.mxu2 %v3424_v47  ;;  %v3381_v62 = vmul.f32 %v9561_v13, %v3373_v31  ;;  %v9826_v4 = vadd.f32 %v3384_v40, %v3376_v23  ;;  %v9828_v42 = vadd.f32 %v3385_v56, %v3377_v45  ;;  %vm3298_vm6 = vweird.f32 %v5867_v46  ;;  %12578 = vst [vmem:[#allocation27_spill] sm:$0xff] %v9885_v18  ;;  %v9898_v47 = vld [vmem:[#allocation3 + $0xad] ss:$8 sm:$0x7] }
 0x506   :  { %12567 = vst [vmem:[#allocation22_spill] sm:$0xff] %v9824_v2  ;;  %v3295_v49 = vmul.f32 %v5867_v46, %v3294_v24  ;;  %v3388_v34 = vmul.f32 %v3275_v19, %v9243_v61  ;;  %v9832_v41 = vadd.f32 %v3386_v35, %v3378_v0  ;;  %v3389_v11 = vmul.f32 %v3290_v37, %v9249_v32  ;;  %v9888_v19 = vld [vmem:[#allocation3 + $0x65] ss:$8 sm:$0x7] }
 0x507   :  { %12568 = vst [vmem:[#allocation18_spill] sm:$0xff] %v9826_v4  ;;  %4159 = vmatpush.msrb.mxu2 %v9540_v48  ;;  %v9835_v12 = vadd.f32 %v3387_v6, %v3379_v50  ;;  %vm3297_vm2 = vweird.f32 %v9598_v38  ;;  %v3304_v48 = vor.u32 1.1754944e-38, %v3303_v29  ;;  %vm3302_vm9 = vcmp.eq.f32.partialorder %v3301_v28, 8.507059e+37  ;;  %v9892_v28 = vld [vmem:[#allocation3 + $0x7d] ss:$8 sm:$0x7] }
 0x508   :  { %12569 = vst [vmem:[#allocation17_spill] sm:$0xff] %v9828_v42  ;;  %v3296_v13 = vadd.f32 %v5867_v46, %v3295_v49  ;;  %v9840_v14 = vadd.f32 %v3388_v34, %v3380_v10  ;;  %vm3299_vm3 = vmor %vm3297_vm2, %vm3298_vm6  ;;  %v9843_v61 = vadd.f32 %v3389_v11, %v3381_v62  ;;  %v9894_v29 = vld [vmem:[#allocation3 + $0x95] ss:$8 sm:$0x7] }
 0x509   :  { %12570 = vst [vmem:[#allocation19_spill] sm:$0xff] %v9832_v41  ;;  %4160 = vmatpush.msrb.mxu2 %v9548_v51 }
 0x50a   :  { %12571 = vst [vmem:[#allocation39_spill] sm:$0xff] %v9835_v12  ;;  %v3300_v32 = vsel %vm3299_vm3, %v5867_v46, %v3296_v13 }
 0x50b   :  { %3399 = vst [vmem:[#allocation12 + $0x4] sm:$0x1] %v9824_v2  ;;  %4161 = vmatpush.msrb.mxu2 %v9559_v26  ;;  %v3305_v51 = vsel %vm3302_vm9, %v3304_v48, %v3300_v32 }
 0x50c   :  { %12572 = vst [vmem:[#allocation41_spill] sm:$0xff] %v9840_v14  ;;  %v3374_v38 = vsub.f32 1.0, %v3305_v51  ;;  %v3390_v26 = vmul.f32 %v3305_v51, %v9257_v43 }
 0x50d   :  { %3400 = vst [vmem:[#allocation12 + $0xc] sm:$0x1] %v9826_v4  ;;  %4162 = vmatpush.msrb.mxu2 %v9568_v3 }
 0x50e   :  { %12573 = vst [vmem:[#allocation40_spill] sm:$0xff] %v9843_v61  ;;  %v3382_v44 = vmul.f32 %v9616_v17, %v3374_v38 }
 0x50f   :  { %3401 = vst [vmem:[#allocation12 + $0x14] sm:$0x1] %v9828_v42  ;;  %4163 = vmatpush.msrb.mxu2 %v9584_v27  ;;  %v9877_v27 = vld [vmem:[#allocation3 + $0x5] ss:$8 sm:$0x7] }
 0x510   :  { %3402 = vst [vmem:[#allocation12 + $0x1c] sm:$0x1] %v9832_v41  ;;  %v9858_v33 = vadd.f32 %v3390_v26, %v3382_v44  ;;  %v3739_v63 = vrot.slane %v9877_v27, 1 }
 0x511   :  { %3403 = vst [vmem:[#allocation12 + $0x24] sm:$0x1] %v9835_v12  ;;  %4164 = vmatpush.msrb.mxu2 %v9606_v60 }
 0x512   :  { %3404 = vst [vmem:[#allocation12 + $0x2c] sm:$0x1] %v9840_v14 }
 0x513   :  { %3405 = vst [vmem:[#allocation12 + $0x34] sm:$0x1] %v9843_v61  ;;  %4165 = vmatpush.msrb.mxu2 %v9627_v54 }
 0x514   :  { %3479 = vst [vmem:[#allocation1] ss:$9 sm:$0xff] %v9824_v2 }
 0x515   :  { %3481 = vst [vmem:[#allocation1 + $0x1] ss:$9 sm:$0xff] %v9826_v4  ;;  %4166 = vmatpush.msrb.mxu2 %v9651_v9  ;;  %v9880_v9 = vld [vmem:[#allocation3 + $0x1d] ss:$8 sm:$0x7] }
 0x516   :  { %12574 = vst [vmem:[#allocation45_spill] sm:$0xff] %v9858_v33  ;;  %v3740_v62 = vrot.slane %v9880_v9, 1 }
 0x517   :  { %3483 = vst [vmem:[#allocation1 + $0x2] ss:$9 sm:$0xff] %v9828_v42  ;;  %4167 = vmatpush.msrb.mxu2 %v9676_v39 }
 0x518   :  { %3485 = vst [vmem:[#allocation1 + $0x3] ss:$9 sm:$0xff] %v9832_v41 }
 0x519   :  { %3406 = vst [vmem:[#allocation12 + $0x3c] sm:$0x1] %v9858_v33  ;;  %4168 = vmatpush.msrb.mxu2 %v9707_v59 }
 0x51a   :  { %3487 = vst [vmem:[#allocation1 + $0x4] ss:$9 sm:$0xff] %v9835_v12 }
 0x51b   :  { %3489 = vst [vmem:[#allocation1 + $0x5] ss:$9 sm:$0xff] %v9840_v14  ;;  %4169 = vmatpush.msrb.mxu2 %v9733_v57 }
 0x51c   :  { %3491 = vst [vmem:[#allocation1 + $0x6] ss:$9 sm:$0xff] %v9843_v61 }
 0x51d   :  { %3493 = vst [vmem:[#allocation1 + $0x7] ss:$9 sm:$0xff] %v9858_v33  ;;  %4170 = vmatpush.msrb.mxu2 %v9757_v20  ;;  %v9883_v20 = vld [vmem:[#allocation3 + $0x35] ss:$8 sm:$0x7] }
 0x51e   :  { %12575 = vst [vmem:[#allocation25_spill] sm:$0xff] %v9877_v27  ;;  %v3741_v11 = vrot.slane %v9883_v20, 1 }
 0x51f   :  { %4171 = vmatpush.msrb.mxu2 %v9780_v30  ;;  %12576 = vst [vmem:[#allocation26_spill] sm:$0xff] %v9880_v9 }
 0x520   :  { %12577 = vst [vmem:[#allocation42_spill] sm:$0xff] %v9883_v20 }
 0x521   :  { %4172 = vmatpush.msrb.mxu2 %v9782_v53  ;;  %12579 = vst [vmem:[#allocation28_spill] sm:$0xff] %v9888_v19 }
 0x522   :  { %12580 = vst [vmem:[#allocation29_spill] sm:$0xff] %v9892_v28 }
 0x523   :  { %4173 = vmatpush.msrb.mxu2 %v9789_v21  ;;  %12581 = vst [vmem:[#allocation43_spill] sm:$0xff] %v9894_v29 }
 0x524   :  { %v3494_v43 = vld [vmem:[#allocation1] sm:$0xff]  ;;  %12582 = vst [vmem:[#allocation33_spill] sm:$0xff] %v9898_v47 }
 0x525   :  { %3512 = vmatmul.f32.vlgmr.msra.gmra.mxu1 %v3494_v43  ;;  %3532 = vmatmul.f32.vlgmr.msra.gmra.mxu2 %v3494_v43 }
 0x526   :  { %3552 = vmatmul.f32.vlgmr.msrb.gmra.mxu3 %v3494_v43  ;;  %4174 = vmatpush.msrb.mxu2 %v9809_v5 }
 0x5a2   :  { %v3513_v3 = vpop.f32.mrf.mxu1 }
 0x5a3   :  { %v3557_v60 = vrot.slane %v3513_v3, 1  ;;  %v3571_v17 = vadd.f32 %v3513_v3, %v9877_v27  ;;  %v3558_v54 = vrot.slane %v3513_v3, 2  ;;  %v3559_v39 = vrot.slane %v3513_v3, 3 }
 0x5a4   :  { %v3560_v59 = vrot.slane %v3513_v3, 4  ;;  %v3561_v30 = vrot.slane %v3513_v3, 5  ;;  %v3562_v7 = vrot.slane %v3513_v3, 6  ;;  %v3563_v52 = vrot.slane %v3513_v3, 7 }
 0x5a5   :  { %v3572_v57 = vadd.f32 %v3557_v60, %v9880_v9  ;;  %v5403_v22 = vmul.f32 -1.442695, %v3571_v17  ;;  %v3573_v53 = vadd.f32 %v3558_v54, %v9883_v20  ;;  %v3574_v58 = vadd.f32 %v3559_v39, %v9885_v18  ;;  %v4086_v20 = vld [vmem:[#allocation10 + $0x140] sm:$0xff] }
 0x5a6   :  { %v3575_v21 = vadd.f32 %v3560_v59, %v9888_v19  ;;  %v3576_v25 = vadd.f32 %v3561_v30, %v9892_v28  ;;  %v3577_v55 = vadd.f32 %v3562_v7, %v9894_v29  ;;  %v3578_v16 = vadd.f32 %v3563_v52, %v9898_v47 }
 0x5a7   :  { %v5404_v15 = vmul.f32 -1.442695, %v3572_v57  ;;  %5868 = vpow2.f32 %v5403_v22  ;;  %v5405_v1 = vmul.f32 -1.442695, %v3573_v53  ;;  %v5406_v46 = vmul.f32 -1.442695, %v3574_v58 }
 0x5a8   :  { %v5407_v23 = vmul.f32 -1.442695, %v3575_v21  ;;  %v5408_v45 = vmul.f32 -1.442695, %v3576_v25  ;;  %v5409_v5 = vmul.f32 -1.442695, %v3577_v55  ;;  %v9900_v37 = vpop.f32.mrf.mxu2 }
 0x5a9   :  { %5870 = vpow2.f32 %v5404_v15  ;;  %v3770_v31 = vadd.f32 %v3739_v63, %v9900_v37  ;;  %v5410_v40 = vmul.f32 -1.442695, %v3578_v16  ;;  %v3756_v49 = vrot.slane %v9900_v37, 1 }
 0x5aa   :  { %5872 = vpow2.f32 %v5405_v1  ;;  %v3757_v13 = vrot.slane %v9900_v37, 2  ;;  %v3758_v44 = vrot.slane %v9900_v37, 3  ;;  %v3742_v3 = vrot.slane %v9885_v18, 1  ;;  %v4085_v18 = vld [vmem:[#allocation10 + $0x138] sm:$0xff] }
 0x5ab   :  { %5874 = vpow2.f32 %v5406_v46  ;;  %v5411_v48 = vmul.f32 -1.442695, %v3770_v31  ;;  %v3759_v60 = vrot.slane %v9900_v37, 4  ;;  %v3760_v39 = vrot.slane %v9900_v37, 5 }
 0x5ac   :  { %5876 = vpow2.f32 %v5407_v23  ;;  %v3771_v59 = vadd.f32 %v3756_v49, %v3740_v62  ;;  %v3743_v57 = vrot.slane %v9888_v19, 1  ;;  %v3744_v22 = vrot.slane %v9892_v28, 1 }
 0x5ad   :  { %v5869_v0 = vpop.eup %5868  ;;  %5878 = vpow2.f32 %v5408_v45  ;;  %v3772_v30 = vadd.f32 %v3757_v13, %v3741_v11  ;;  %v3761_v7 = vrot.slane %v9900_v37, 6  ;;  %v3773_v58 = vadd.f32 %v3758_v44, %v3742_v3 }
 0x5ae   :  { %v9904_v36 = vadd.f32 1.0, %v5869_v0  ;;  %5880 = vpow2.f32 %v5409_v5  ;;  %v3762_v25 = vrot.slane %v9900_v37, 7  ;;  %v3774_v1 = vadd.f32 %v3759_v60, %v3743_v57 }
 0x5af   :  { %v5871_v50 = vpop.eup %5870  ;;  %v3775_v46 = vadd.f32 %v3760_v39, %v3744_v22  ;;  %v5412_v52 = vmul.f32 -1.442695, %v3771_v59  ;;  %v3745_v0 = vrot.slane %v9894_v29, 1  ;;  %v3746_v5 = vrot.slane %v9898_v47, 1 }
 0x5b0   :  { %v5873_v8 = vpop.eup %5872  ;;  %v9909_v35 = vadd.f32 1.0, %v5871_v50  ;;  %5882 = vrcp.f32 %v9904_v36  ;;  %v5413_v16 = vmul.f32 -1.442695, %v3772_v30  ;;  %v5414_v31 = vmul.f32 -1.442695, %v3773_v58 }
 0x5b1   :  { %v5875_v10 = vpop.eup %5874  ;;  %v9917_v32 = vadd.f32 1.0, %v5873_v8  ;;  %5884 = vpow2.f32 %v5410_v40  ;;  %v3776_v40 = vadd.f32 %v3761_v7, %v3745_v0  ;;  %v5415_v62 = vmul.f32 -1.442695, %v3774_v1 }
 0x5b2   :  { %v5877_v34 = vpop.eup %5876  ;;  %v9922_v43 = vadd.f32 1.0, %v5875_v10  ;;  %5886 = vrcp.f32 %v9909_v35  ;;  %v3777_v10 = vadd.f32 %v3762_v25, %v3746_v5  ;;  %v3637_v11 = vand.u32 2147483648, %v9909_v35 }
 0x5b3   :  { %v5879_v26 = vpop.eup %5878  ;;  %v9926_v54 = vadd.f32 1.0, %v5877_v34  ;;  %5888 = vpow2.f32 %v5411_v48  ;;  %v3622_v34 = vand.u32 2147483648, %v9904_v36  ;;  %v5416_v13 = vmul.f32 -1.442695, %v3775_v46 }
 0x5b4   :  { %v5881_v17 = vpop.eup %5880  ;;  %v9932_v53 = vadd.f32 1.0, %v5879_v26  ;;  %5890 = vrcp.f32 %v9917_v32  ;;  %v3620_v26 = vand.u32 2147483647, %v9904_v36  ;;  %v3652_v39 = vand.u32 2147483648, %v9917_v32 }
 0x5b5   :  { %v9938_v15 = vadd.f32 1.0, %v5881_v17  ;;  %5892 = vrcp.f32 %v9922_v43  ;;  %v3667_v59 = vand.u32 2147483648, %v9922_v43  ;;  %v3635_v57 = vand.u32 2147483647, %v9909_v35 }
 0x5b6   :  { %v9936_v21 = vpop.eup %5882  ;;  %5894 = vrcp.f32 %v9926_v54  ;;  %v9976_v58 = vor.u32 1.1754944e-38, %v3622_v34  ;;  %v9978_v25 = vor.u32 1.1754944e-38, %v3637_v11  ;;  %vm3616_vm11 = vweird.f32 %v9904_v36 }
 0x5b7   :  { %v5885_v23 = vpop.eup %5884  ;;  %v3612_v37 = vmul.f32 %v9936_v21, %v9904_v36  ;;  %5896 = vrcp.f32 %v9932_v53  ;;  %vm3617_vm5 = vweird.f32 %v9936_v21  ;;  %vm3631_vm10 = vweird.f32 %v9909_v35 }
 0x5b8   :  { %v9947_v63 = vpop.eup %5886  ;;  %5898 = vrcp.f32 %v9938_v15  ;;  %v9960_v44 = vadd.f32 1.0, %v5885_v23  ;;  %vm10028_vm7 = vcmp.eq.f32.partialorder %v3620_v26, 8.507059e+37  ;;  %vm3646_vm14 = vweird.f32 %v9917_v32  ;;  %vm10080_vm1 = vmor %vm3616_vm11, %vm3617_vm5 }
 0x5b9   :  { %v5889_v8 = vpop.eup %5888  ;;  %5900 = vpow2.f32 %v5412_v52  ;;  %v3627_v3 = vmul.f32 %v9947_v63, %v9909_v35  ;;  %v3613_v17 = vsub.f32 1.0, %v3612_v37  ;;  %vm3632_vm0 = vweird.f32 %v9947_v63 }
 0x5ba   :  { %v9954_v49 = vpop.eup %5890  ;;  %5902 = vpow2.f32 %v5413_v16  ;;  %v9972_v30 = vadd.f32 1.0, %v5889_v8  ;;  %v9992_v8 = vor.u32 1.1754944e-38, %v3667_v59  ;;  %vm10046_vm12 = vcmp.eq.f32.partialorder %v3635_v57, 8.507059e+37  ;;  %vm10103_vm15 = vmor %vm3631_vm10, %vm3632_vm0 }
 0x5bb   :  { %v9958_v48 = vpop.eup %5892  ;;  %5904 = vpow2.f32 %v5414_v31  ;;  %v3642_v22 = vmul.f32 %v9954_v49, %v9917_v32  ;;  %v3628_v23 = vsub.f32 1.0, %v3627_v3  ;;  %v3614_v37 = vmul.f32 %v9936_v21, %v3613_v17 }
 0x5bc   :  { %v9965_v60 = vpop.eup %5894  ;;  %5906 = vpow2.f32 %v5415_v62  ;;  %v3657_v46 = vmul.f32 %v9958_v48, %v9922_v43  ;;  %v9990_v31 = vor.u32 1.1754944e-38, %v3652_v39  ;;  %v3682_v62 = vand.u32 2147483648, %v9926_v54 }
 0x5bd   :  { %v9974_v7 = vpop.eup %5896  ;;  %v3672_v5 = vmul.f32 %v9965_v60, %v9926_v54  ;;  %5908 = vrcp.f32 %v9960_v44  ;;  %v3643_v11 = vsub.f32 1.0, %v3642_v22  ;;  %v5417_v17 = vmul.f32 -1.442695, %v3776_v40 }
 0x5be   :  { %v9983_v52 = vpop.eup %5898  ;;  %v3687_v3 = vmul.f32 %v9974_v7, %v9932_v53  ;;  %5910 = vrcp.f32 %v9972_v30  ;;  %v3658_v55 = vsub.f32 1.0, %v3657_v46  ;;  %v3629_v38 = vmul.f32 %v9947_v63, %v3628_v23 }
 0x5bf   :  { %v5901_v16 = vpop.eup %5900  ;;  %5912 = vpow2.f32 %v5416_v13  ;;  %v3673_v22 = vsub.f32 1.0, %v3672_v5  ;;  %v10010_v6 = vor.u32 1.1754944e-38, %v3682_v62  ;;  %v5418_v13 = vmul.f32 -1.442695, %v3777_v10 }
 0x5c0   :  { %v5903_v34 = vpop.eup %5902  ;;  %v9998_v50 = vadd.f32 1.0, %v5901_v16  ;;  %v3644_v46 = vmul.f32 %v9954_v49, %v3643_v11  ;;  %v3688_v23 = vsub.f32 1.0, %v3687_v3  ;;  %vm3647_vm4 = vweird.f32 %v9954_v49 }
 0x5c1   :  { %v5905_v45 = vpop.eup %5904  ;;  %v10001_v39 = vadd.f32 1.0, %v5903_v34  ;;  %v3659_v34 = vmul.f32 %v9958_v48, %v3658_v55  ;;  %v3702_v10 = vmul.f32 %v9983_v52, %v9938_v15  ;;  %v3615_v56 = vadd.f32 %v9936_v21, %v3614_v37  ;;  %vm10136_vm6 = vmor %vm3646_vm14, %vm3647_vm4 }
 0x5c2   :  { %v5907_v59 = vpop.eup %5906  ;;  %v10006_v51 = vadd.f32 1.0, %v5905_v45  ;;  %5914 = vrcp.f32 %v9998_v50  ;;  %v3697_v45 = vand.u32 2147483648, %v9932_v53  ;;  %v10033_v3 = vadd.f32 %v9947_v63, %v3629_v38  ;;  %v4091_v38 = vld [vmem:[#allocation10 + $0x168] sm:$0xff] }
 0x5c3   :  { %5916 = vrcp.f32 %v10001_v39  ;;  %v10013_v40 = vpop.eup %5908  ;;  %v10023_v62 = vadd.f32 1.0, %v5907_v59  ;;  %v3674_v5 = vmul.f32 %v9965_v60, %v3673_v22  ;;  %v3712_v59 = vand.u32 2147483648, %v9938_v15  ;;  %4119 = vmatpush.msrb.mxu0 %v4091_v38  ;;  %4742 = vmatpush.msra.mxu3 %v4091_v38 }
 0x5c4   :  { %5918 = vpow2.f32 %v5417_v17  ;;  %v10025_v24 = vpop.eup %5910  ;;  %v3717_v26 = vmul.f32 %v10013_v40, %v9960_v44  ;;  %v10051_v22 = vadd.f32 %v9954_v49, %v3644_v46  ;;  %v3689_v16 = vmul.f32 %v9974_v7, %v3688_v23  ;;  %v5465_v46 = vld [vmem:[%s11920_s5] ss:$0 sm:$0xff] }
 0x5c5   :  { %5920 = vrcp.f32 %v10006_v51  ;;  %v5913_v55 = vpop.eup %5912  ;;  %v3727_v17 = vand.u32 2147483648, %v9960_v44  ;;  %v3811_v0 = vmul.f32 %v10025_v24, %v9972_v30  ;;  %v10062_v33 = vor.u32 1.1754944e-38, %v3697_v45  ;;  %v3553_v45 = vpop.f32.mrf.mxu3 }
 0x5c6   :  { %5922 = vpow2.f32 %v5418_v13  ;;  %v10060_v13 = vadd.f32 %v9958_v48, %v3659_v34  ;;  %v3703_v57 = vsub.f32 1.0, %v3702_v10  ;;  %v10069_v23 = vadd.f32 %v9965_v60, %v3674_v5 }
 0x5c7   :  { %5924 = vrcp.f32 %v10023_v62  ;;  %v3821_v61 = vand.u32 2147483648, %v9972_v30  ;;  %v10084_v5 = vor.u32 1.1754944e-38, %v3712_v59  ;;  %v3718_v41 = vsub.f32 1.0, %v3717_v26 }
 0x5c8   :  { %v10042_v37 = vpop.eup %5914  ;;  %v10087_v4 = vadd.f32 1.0, %v5913_v55  ;;  %v10092_v47 = vadd.f32 %v9974_v7, %v3689_v16  ;;  %v10094_v29 = vor.u32 1.1754944e-38, %v3727_v17  ;;  %v3812_v28 = vsub.f32 1.0, %v3811_v0 }
 0x5c9   :  { %v10057_v1 = vpop.eup %5916  ;;  %v3826_v14 = vmul.f32 %v10042_v37, %v9998_v50  ;;  %12589 = vst [vmem:[#allocation44_spill] sm:$0xff] %v10084_v5  ;;  %v3619_v36 = vsel %vm10080_vm1, %v9936_v21, %v3615_v56  ;;  %v3704_v59 = vmul.f32 %v9983_v52, %v3703_v57  ;;  %v3819_v16 = vand.u32 2147483647, %v9972_v30  ;;  %v4079_v5 = vld [vmem:[#allocation10 + $0x108] sm:$0xff] }
 0x5ca   :  { %v3841_v34 = vmul.f32 %v10057_v1, %v10001_v39  ;;  %v5919_v12 = vpop.eup %5918  ;;  %12590 = vst [vmem:[#allocation21_spill] sm:$0xff] %v10094_v29  ;;  %v10111_v17 = vadd.f32 %v5465_v46, %v3553_v45  ;;  %vm3815_vm13 = vweird.f32 %v9972_v30  ;;  %v10114_v56 = vor.u32 1.1754944e-38, %v3821_v61 }
 0x5cb   :  { %v10089_v2 = vpop.eup %5920  ;;  %v3827_v21 = vsub.f32 1.0, %v3826_v14  ;;  %v3634_v35 = vsel %vm10103_vm15, %v9947_v63, %v10033_v3  ;;  %vm3662_vm8 = vweird.f32 %v9958_v48  ;;  %v3719_v57 = vmul.f32 %v10013_v40, %v3718_v41 }
 0x5cc   :  { %v5923_v19 = vpop.eup %5922  ;;  %v3856_v0 = vmul.f32 %v10089_v2, %v10006_v51  ;;  %12593 = vst [vmem:[#allocation34_spill] sm:$0xff] %v10111_v17  ;;  %v3842_v26 = vsub.f32 1.0, %v3841_v34  ;;  %v10124_v42 = vadd.f32 1.0, %v5919_v12  ;;  %5926 = vrcp.f32 %v10087_v4 }
 0x5cd   :  { %v10120_v10 = vpop.eup %5924  ;;  %v10130_v14 = vsel %vm10028_vm7, %v9976_v58, %v3619_v36  ;;  %v10140_v63 = vadd.f32 1.0, %v5923_v19  ;;  %v3813_v41 = vmul.f32 %v10025_v24, %v3812_v28  ;;  %v3834_v12 = vand.u32 2147483647, %v9998_v50 }
 0x5ce   :  { %12594 = vst [vmem:[#allocation35_spill] sm:$0xff] %v10130_v14  ;;  %v3857_v3 = vsub.f32 1.0, %v3856_v0  ;;  %v10147_v58 = vadd.f32 %v9983_v52, %v3704_v59  ;;  %vm3830_vm9 = vweird.f32 %v9998_v50  ;;  %v10153_v11 = vsel %vm10046_vm12, %v9978_v25, %v3634_v35  ;;  %v4083_v14 = vld [vmem:[#allocation10 + $0x128] sm:$0xff] }
 0x5cf   :  { %12597 = vst [vmem:[#allocation23_spill] sm:$0xff] %v10153_v11  ;;  %vm10160_vm11 = vcmp.eq.f32.partialorder %v3819_v16, 8.507059e+37  ;;  %v3828_v46 = vmul.f32 %v10042_v37, %v3827_v21  ;;  %v3836_v34 = vand.u32 2147483648, %v9998_v50  ;;  %v3843_v45 = vmul.f32 %v10057_v1, %v3842_v26  ;;  %v4088_v21 = vld [vmem:[#allocation10 + $0x150] sm:$0xff]  ;;  %v4089_v26 = vld [vmem:[#allocation10 + $0x158] sm:$0xff] }
 0x5d0   :  { %v10169_v25 = vmul.f32 %v10120_v10, %v10023_v62  ;;  %v10174_v36 = vadd.f32 %v10013_v40, %v3719_v57  ;;  %vm3845_vm4 = vweird.f32 %v10001_v39  ;;  %v3849_v55 = vand.u32 2147483647, %v10001_v39  ;;  %4120 = vmatpush.msrb.mxu0 %v4088_v21  ;;  %4140 = vmatpush.msrb.mxu1 %v4089_v26  ;;  %v4068_v11 = vld [vmem:[#allocation10 + $0xb0] sm:$0xff] }
 0x5d1   :  { %5928 = vrcp.f32 %v10124_v42  ;;  %v10182_v59 = vadd.f32 %v10025_v24, %v3813_v41  ;;  %vm3816_vm12 = vweird.f32 %v10025_v24  ;;  %vm10185_vm1 = vcmp.eq.f32.partialorder %v3834_v12, 8.507059e+37  ;;  %4743 = vmatpush.msra.mxu3 %v4088_v21 }
 0x5d2   :  { %v3858_v0 = vmul.f32 %v10089_v2, %v3857_v3  ;;  %5930 = vrcp.f32 %v10140_v63  ;;  %v10191_v35 = vpop.eup %5926  ;;  %vm3831_vm14 = vweird.f32 %v10042_v37  ;;  %v3851_v57 = vand.u32 2147483648, %v10001_v39  ;;  %vm10211_vm7 = vmor %vm3815_vm13, %vm3816_vm12  ;;  %4121 = vmatpush.msrb.mxu0 %v4085_v18  ;;  %4141 = vmatpush.msrb.mxu1 %v4086_v20 }
 0x5d3   :  { %v3864_v41 = vand.u32 2147483647, %v10006_v51  ;;  %v3866_v12 = vand.u32 2147483648, %v10006_v51  ;;  %v10200_v3 = vadd.f32 %v10042_v37, %v3828_v46  ;;  %v10203_v38 = vadd.f32 %v10057_v1, %v3843_v45  ;;  %vm10247_vm0 = vmor %vm3830_vm9, %vm3831_vm14  ;;  %4744 = vmatpush.msra.mxu3 %v4085_v18 }
 0x5d4   :  { %vm3846_vm15 = vweird.f32 %v10057_v1  ;;  %v3872_v19 = vsub.f32 1.0, %v10169_v25  ;;  %v3837_v46 = vor.u32 1.1754944e-38, %v3836_v34  ;;  %vm10215_vm10 = vcmp.eq.f32.partialorder %v3849_v55, 8.507059e+37  ;;  %4142 = vmatpush.msrb.mxu1 %v4083_v14  ;;  %v4067_v34 = vld [vmem:[#allocation10 + $0xa8] sm:$0xff] }
 0x5d5   :  { %v3881_v45 = vand.u32 2147483648, %v10023_v62  ;;  %v3896_v25 = vand.u32 2147483648, %v10087_v4  ;;  %v12606_v21 = vand.u32 2147483647, %v9917_v32  ;;  %v12609_v30 = vand.u32 2147483647, %v9922_v43  ;;  %vm10273_vm14 = vmor %vm3845_vm4, %vm3846_vm15 }
 0x5d6   :  { %v12612_v55 = vand.u32 2147483647, %v9926_v54  ;;  %v3818_v20 = vsel %vm10211_vm7, %v10025_v24, %v10182_v59  ;;  %v12617_v24 = vand.u32 2147483647, %v9932_v53  ;;  %v12618_v50 = vmov 0  ;;  %v4074_v32 = vld [vmem:[#allocation10 + $0xe0] sm:$0xff] }
 0x5d7   :  { %vm10223_vm5 = vcmp.eq.f32.partialorder %v12606_v21, 8.507059e+37  ;;  %vm10229_vm13 = vcmp.eq.f32.partialorder %v12609_v30, 8.507059e+37  ;;  %v3859_v21 = vadd.f32 %v10089_v2, %v3858_v0  ;;  %v3886_v30 = vmul.f32 %v10191_v35, %v10087_v4  ;;  %v10255_v26 = vpop.eup %5928 }
 0x5d8   :  { %vm10235_vm12 = vcmp.eq.f32.partialorder %v12612_v55, 8.507059e+37  ;;  %v4082_v55 = vld [vmem:[#allocation10 + $0x120] sm:$0xff]  ;;  %vm10259_vm7 = vcmp.eq.f32.partialorder %v12617_v24, 8.507059e+37  ;;  %v12621_v59 = vand.u32 2147483647, %v9938_v15  ;;  %v12622_v0 = vmov 0  ;;  %v10283_v17 = vpop.eup %5930 }
 0x5d9   :  { %v12619_v50 = vsel %vm10259_vm7, 4294967295, %v12618_v50  ;;  %v3852_v29 = vor.u32 1.1754944e-38, %v3851_v57  ;;  %vm10278_vm2 = vcmp.eq.f32.partialorder %v3864_v41, 8.507059e+37  ;;  %4122 = vmatpush.msrb.mxu0 %v4082_v55  ;;  %vm12629_vm4 = vweird.f32 %v9922_v43  ;;  %4745 = vmatpush.msra.mxu3 %v4082_v55 }
 0x5da   :  { %12620 = vst [vmem:[#allocation36_spill] sm:$0xff] %v12619_v50  ;;  %vm10265_vm9 = vcmp.eq.f32.partialorder %v12621_v59, 8.507059e+37  ;;  %vm10289_vm15 = vmor %vm12629_vm4, %vm3662_vm8  ;;  %v12632_v57 = vand.u32 2147483647, %v9960_v44  ;;  %v12633_v41 = vmov 0  ;;  %v3833_v14 = vsel %vm10247_vm0, %v10042_v37, %v10200_v3  ;;  %v4080_v50 = vld [vmem:[#allocation10 + $0x110] sm:$0xff] }
 0x5db   :  { %v12623_v0 = vsel %vm10265_vm9, 4294967295, %v12622_v0  ;;  %v3848_v43 = vsel %vm10273_vm14, %v10057_v1, %v10203_v38  ;;  %v3867_v59 = vor.u32 1.1754944e-38, %v3866_v12  ;;  %vm12635_vm8 = vweird.f32 %v10089_v2  ;;  %4123 = vmatpush.msrb.mxu0 %v4079_v5  ;;  %4143 = vmatpush.msrb.mxu1 %v4080_v50  ;;  %v4076_v38 = vld [vmem:[#allocation10 + $0xf0] sm:$0xff]  ;;  %v4071_v50 = vld [vmem:[#allocation10 + $0xc8] sm:$0xff] }
 0x5dc   :  { %12624 = vst [vmem:[#allocation37_spill] sm:$0xff] %v12623_v0  ;;  %vm10295_vm3 = vcmp.eq.f32.partialorder %v12632_v57, 8.507059e+37  ;;  %v3873_v0 = vmul.f32 %v10120_v10, %v3872_v19  ;;  %v10311_v57 = vsel %vm10160_vm11, %v10114_v56, %v3818_v20  ;;  %vm12636_vm0 = vweird.f32 %v10006_v51  ;;  %4746 = vmatpush.msra.mxu3 %v4079_v5  ;;  %v4064_v56 = vld [vmem:[#allocation10 + $0x90] sm:$0xff] }
 0x5dd   :  { %v12634_v41 = vsel %vm10295_vm3, 4294967295, %v12633_v41  ;;  %vm10317_vm4 = vmor %vm12636_vm0, %vm12635_vm8  ;;  %v10321_v1 = vor.u32 1.1754944e-38, %v3881_v45  ;;  %v3894_v19 = vand.u32 2147483647, %v10087_v4  ;;  %v10324_v12 = vor.u32 1.1754944e-38, %v3896_v25  ;;  %v4077_v45 = vld [vmem:[#allocation10 + $0xf8] sm:$0xff]  ;;  %4124 = vmatpush.msrb.mxu0 %v4076_v38 }
 0x5de   :  { %vm12639_vm14 = vweird.f32 %v9965_v60  ;;  %vm12640_vm11 = vweird.f32 %v9926_v54  ;;  %v3863_v51 = vsel %vm10317_vm4, %v10089_v2, %v3859_v21  ;;  %vm3876_vm8 = vweird.f32 %v10120_v10  ;;  %4144 = vmatpush.msrb.mxu1 %v4077_v45  ;;  %4747 = vmatpush.msra.mxu3 %v4076_v38  ;;  %v12666_v45 = vld [vmem:[#allocation23_spill] sm:$0xff]  ;;  %v12699_v21 = vld [vmem:[#allocation17_spill] sm:$0xff] }
 0x5df   :  { %vm10330_vm3 = vmor %vm12640_vm11, %vm12639_vm14  ;;  %v3887_v28 = vsub.f32 1.0, %v3886_v30  ;;  %v10340_v3 = vmul.f32 %v10255_v26, %v10124_v42  ;;  %vm12643_vm0 = vweird.f32 %v9974_v7  ;;  %vm12644_vm14 = vweird.f32 %v9932_v53 }
 0x5e0   :  { %vm10346_vm11 = vmor %vm12644_vm14, %vm12643_vm0  ;;  %v10352_v2 = vsel %vm10185_vm1, %v3837_v46, %v3833_v14  ;;  %v10356_v25 = vsel %vm10215_vm10, %v3852_v29, %v3848_v43  ;;  %v3909_v20 = vand.u32 2147483647, %v10124_v42  ;;  %v10361_v5 = vmul.f32 %v10283_v17, %v10140_v63  ;;  %v4073_v46 = vld [vmem:[#allocation10 + $0xd8] sm:$0xff]  ;;  %4145 = vmatpush.msrb.mxu1 %v4074_v32  ;;  %v4062_v32 = vld [vmem:[#allocation10 + $0x80] sm:$0xff] }
 0x5e1   :  { %vm12647_vm4 = vweird.f32 %v9983_v52  ;;  %vm12648_vm0 = vweird.f32 %v9938_v15  ;;  %v10372_v9 = vadd.f32 %v10120_v10, %v3873_v0  ;;  %vm3875_vm10 = vweird.f32 %v10023_v62  ;;  %4125 = vmatpush.msrb.mxu0 %v4073_v46  ;;  %4748 = vmatpush.msra.mxu3 %v4073_v46 }
 0x5e2   :  { %vm10367_vm14 = vmor %vm12648_vm0, %vm12647_vm4  ;;  %v3911_v29 = vand.u32 2147483648, %v10124_v42  ;;  %v3664_v16 = vsel %vm10289_vm15, %v9958_v48, %v10060_v13  ;;  %v3679_v15 = vsel %vm10330_vm3, %v9965_v60, %v10069_v23  ;;  %vm12651_vm1 = vweird.f32 %v10013_v40  ;;  %4146 = vmatpush.msrb.mxu1 %v4071_v50 }
 0x5e3   :  { %vm12652_vm4 = vweird.f32 %v9960_v44  ;;  %v10394_v30 = vsel %vm10278_vm2, %v3867_v59, %v3863_v51  ;;  %v3924_v48 = vand.u32 2147483647, %v10140_v63  ;;  %v3694_v60 = vsel %vm10346_vm11, %v9974_v7, %v10092_v47  ;;  %v4070_v7 = vld [vmem:[#allocation10 + $0xc0] sm:$0xff]  ;;  %v4065_v51 = vld [vmem:[#allocation10 + $0x98] sm:$0xff] }
 0x5e4   :  { %vm10388_vm0 = vmor %vm12652_vm4, %vm12651_vm1  ;;  %v3709_v44 = vsel %vm10367_vm14, %v9983_v52, %v10147_v58  ;;  %v10406_v13 = vmul.f32 %v10191_v35, %v3887_v28  ;;  %vm3891_vm3 = vweird.f32 %v10191_v35  ;;  %v3902_v23 = vsub.f32 1.0, %v10340_v3  ;;  %4126 = vmatpush.msrb.mxu0 %v4070_v7  ;;  %4749 = vmatpush.msra.mxu3 %v4070_v7  ;;  %v12665_v3 = vld [vmem:[#allocation35_spill] sm:$0xff]  ;;  %v12669_v7 = vld [vmem:[#allocation25_spill] sm:$0xff] }
 0x5e5   :  { %v3926_v55 = vand.u32 2147483648, %v10140_v63  ;;  %v3724_v47 = vsel %vm10388_vm0, %v10013_v40, %v10174_v36  ;;  %v3917_v52 = vsub.f32 1.0, %v10361_v5  ;;  %v12655_v58 = vsel %vm10136_vm6, %v9954_v49, %v10051_v22  ;;  %v12657_v22 = vld [vmem:[#allocation44_spill] sm:$0xff]  ;;  %4147 = vmatpush.msrb.mxu1 %v4068_v11  ;;  %v4050_v59 = vld [vmem:[#allocation10 + $0x20] sm:$0xff] }
 0x5e6   :  { %v3654_v0 = vsel %vm10223_vm5, %v9990_v31, %v12655_v58  ;;  %v3669_v18 = vsel %vm10229_vm13, %v9992_v8, %v3664_v16  ;;  %v3684_v40 = vsel %vm10235_vm12, %v10010_v6, %v3679_v15  ;;  %vm3890_vm2 = vweird.f32 %v10087_v4  ;;  %v12659_v31 = vld [vmem:[#allocation34_spill] sm:$0xff]  ;;  %4127 = vmatpush.msrb.mxu0 %v4067_v34  ;;  %v4061_v5 = vld [vmem:[#allocation10 + $0x78] sm:$0xff]  ;;  %4750 = vmatpush.msra.mxu3 %v4067_v34  ;;  %v4058_v58 = vld [vmem:[#allocation10 + $0x60] sm:$0xff] }
 0x5e7   :  { %v3699_v49 = vsel %vm10259_vm7, %v10062_v33, %v3694_v60  ;;  %v3714_v27 = vsel %vm10265_vm9, %v12657_v22, %v3709_v44  ;;  %v3936_v24 = vrot.slane %v12659_v31, 1  ;;  %v3937_v8 = vrot.slane %v12659_v31, 2  ;;  %v12663_v33 = vld [vmem:[#allocation21_spill] sm:$0xff]  ;;  %4148 = vmatpush.msrb.mxu1 %v4065_v51  ;;  %vm10472_vm9 = vmor %vm3875_vm10, %vm3876_vm8  ;;  %v12681_v34 = vld [vmem:[#allocation28_spill] sm:$0xff] }
 0x5e8   :  { %v12660_v6 = vand.u32 2147483647, %v10023_v62  ;;  %vm3905_vm5 = vweird.f32 %v10124_v42  ;;  %vm12664_vm13 = vnez %v12634_v41  ;;  %v3938_v14 = vrot.slane %v12659_v31, 3  ;;  %4128 = vmatpush.msrb.mxu0 %v4064_v56  ;;  %4751 = vmatpush.msra.mxu3 %v4064_v56  ;;  %v4052_v56 = vld [vmem:[#allocation10 + $0x30] sm:$0xff]  ;;  %vm10508_vm14 = vmor %vm3890_vm2, %vm3891_vm3 }
 0x5e9   :  { %v3729_v39 = vsel %vm12664_vm13, %v12663_v33, %v3724_v47  ;;  %v3939_v43 = vrot.slane %v12659_v31, 4  ;;  %v3940_v37 = vrot.slane %v12659_v31, 5  ;;  %vm3920_vm12 = vweird.f32 %v10140_v63  ;;  %4149 = vmatpush.msrb.mxu1 %v4062_v32  ;;  %v4055_v33 = vld [vmem:[#allocation10 + $0x48] sm:$0xff] }
 0x5ea   :  { %vm10441_vm6 = vcmp.eq.f32.partialorder %v12660_v6, 8.507059e+37  ;;  %v3941_v28 = vrot.slane %v12659_v31, 6  ;;  %v3950_v38 = vmul.f32 %v12659_v31, %v12665_v3  ;;  %v3951_v41 = vmul.f32 %v3936_v24, %v12666_v45  ;;  %4129 = vmatpush.msrb.mxu0 %v4061_v5  ;;  %v4059_v24 = vld [vmem:[#allocation10 + $0x68] sm:$0xff]  ;;  %4752 = vmatpush.msra.mxu3 %v4061_v5 }
 0x5eb   :  { %v3952_v54 = vmul.f32 %v3937_v8, %v3654_v0  ;;  %v3903_v53 = vmul.f32 %v10255_v26, %v3902_v23  ;;  %v3942_v16 = vrot.slane %v12659_v31, 7  ;;  %v3953_v15 = vmul.f32 %v3938_v14, %v3669_v18  ;;  %v12675_v18 = vld [vmem:[#allocation26_spill] sm:$0xff]  ;;  %v12683_v14 = vld [vmem:[#allocation29_spill] sm:$0xff]  ;;  %4150 = vmatpush.msrb.mxu1 %v4059_v24 }
 0x5ec   :  { %v3954_v46 = vmul.f32 %v3939_v43, %v3684_v40  ;;  %vm10461_vm7 = vcmp.eq.f32.partialorder %v3894_v19, 8.507059e+37  ;;  %v3918_v60 = vmul.f32 %v10283_v17, %v3917_v52  ;;  %v3955_v44 = vmul.f32 %v3940_v37, %v3699_v49  ;;  %v12677_v49 = vld [vmem:[#allocation42_spill] sm:$0xff]  ;;  %4130 = vmatpush.msrb.mxu0 %v4058_v58  ;;  %4753 = vmatpush.msra.mxu3 %v4058_v58 }
 0x5ed   :  { %v3956_v47 = vmul.f32 %v3941_v28, %v3714_v27  ;;  %v12670_v50 = vrot.slane %v12669_v7, 2  ;;  %vm10478_vm15 = vcmp.eq.f32.partialorder %v3909_v20, 8.507059e+37  ;;  %v3957_v52 = vmul.f32 %v3942_v16, %v3729_v39  ;;  %v12679_v27 = vld [vmem:[#allocation27_spill] sm:$0xff]  ;;  %v12697_v7 = vld [vmem:[#allocation22_spill] sm:$0xff] }
 0x5ee   :  { %v12676_v40 = vrot.slane %v12675_v18, 2  ;;  %v12678_v22 = vrot.slane %v12677_v49, 2  ;;  %v12680_v31 = vrot.slane %v12679_v27, 2  ;;  %v3878_v20 = vsel %vm10472_vm9, %v10120_v10, %v10372_v9  ;;  %v4056_v10 = vld [vmem:[#allocation10 + $0x50] sm:$0xff]  ;;  %4131 = vmatpush.msrb.mxu0 %v4055_v33  ;;  %4754 = vmatpush.msra.mxu3 %v4055_v33  ;;  %v6137_v24 = vld [vmem:[#allocation10 + $0x8] sm:$0xff] }
 0x5ef   :  { %v3974_v23 = vadd.f32 %v12670_v50, %v3950_v38  ;;  %v3889_v8 = vadd.f32 %v10191_v35, %v10406_v13  ;;  %v12682_v11 = vrot.slane %v12681_v34, 2  ;;  %v3904_v39 = vadd.f32 %v10255_v26, %v3903_v53  ;;  %v12685_v13 = vld [vmem:[#allocation43_spill] sm:$0xff]  ;;  %v4053_v53 = vld [vmem:[#allocation10 + $0x38] sm:$0xff]  ;;  %4151 = vmatpush.msrb.mxu1 %v4056_v10 }
 0x5f0   :  { %v3975_v61 = vadd.f32 %v12676_v40, %v3951_v41  ;;  %v3976_v36 = vadd.f32 %v12678_v22, %v3952_v54  ;;  %v3977_v62 = vadd.f32 %v12680_v31, %v3953_v15  ;;  %vm3906_vm8 = vweird.f32 %v10255_v26  ;;  %v12691_v41 = vld [vmem:[#allocation33_spill] sm:$0xff]  ;;  %v4049_v15 = vld [vmem:[#allocation10 + $0x18] sm:$0xff]  ;;  %4132 = vmatpush.msrb.mxu0 %v4052_v56  ;;  %4755 = vmatpush.msra.mxu3 %v4052_v56  ;;  %v12701_v27 = vld [vmem:[#allocation19_spill] sm:$0xff] }
 0x5f1   :  { %v3978_v6 = vadd.f32 %v12682_v11, %v3954_v46  ;;  %5932 = vtanh.f32 %v3974_v23  ;;  %v12684_v43 = vrot.slane %v12683_v14, 2  ;;  %v3919_v9 = vadd.f32 %v10283_v17, %v3918_v60  ;;  %vm10532_vm1 = vmor %vm3905_vm5, %vm3906_vm8  ;;  %4152 = vmatpush.msrb.mxu1 %v4053_v53  ;;  %v4046_v60 = vld [vmem:[#allocation10] sm:$0xff]  ;;  %v12703_v34 = vld [vmem:[#allocation39_spill] sm:$0xff] }
 0x5f2   :  { %5934 = vtanh.f32 %v3975_v61  ;;  %vm3921_vm11 = vweird.f32 %v10283_v17  ;;  %v12686_v51 = vrot.slane %v12685_v13, 2  ;;  %v3912_v38 = vor.u32 1.1754944e-38, %v3911_v29  ;;  %4133 = vmatpush.msrb.mxu0 %v4049_v15  ;;  %4756 = vmatpush.msra.mxu3 %v4049_v15  ;;  %v12705_v14 = vld [vmem:[#allocation41_spill] sm:$0xff] }
 0x5f3   :  { %v3979_v37 = vadd.f32 %v12684_v43, %v3955_v44  ;;  %5936 = vtanh.f32 %v3976_v36  ;;  %vm10516_vm10 = vcmp.eq.f32.partialorder %v3924_v48, 8.507059e+37  ;;  %v12692_v54 = vrot.slane %v12691_v41, 2  ;;  %vm10545_vm4 = vmor %vm3920_vm12, %vm3921_vm11  ;;  %4153 = vmatpush.msrb.mxu1 %v4050_v59  ;;  %v12709_v56 = vld [vmem:[#allocation45_spill] sm:$0xff] }
 0x5f4   :  { %v3980_v28 = vadd.f32 %v12686_v51, %v3956_v47  ;;  %5938 = vtanh.f32 %v3977_v62  ;;  %v3883_v4 = vsel %vm10441_vm6, %v10321_v1, %v3878_v20  ;;  %v3893_v29 = vsel %vm10508_vm14, %v10191_v35, %v3889_v8  ;;  %4134 = vmatpush.msrb.mxu0 %v4046_v60  ;;  %4757 = vmatpush.msra.mxu3 %v4046_v60  ;;  %v10609_v48 = vld [vmem:[#allocation3 + $0x1e] ss:$8 sm:$0x7] }
 0x5f5   :  { %v3981_v5 = vadd.f32 %v12692_v54, %v3957_v52  ;;  %v3927_v16 = vor.u32 1.1754944e-38, %v3926_v55  ;;  %5940 = vtanh.f32 %v3978_v6  ;;  %v3908_v1 = vsel %vm10532_vm1, %v10255_v26, %v3904_v39  ;;  %v12698_v52 = vld [vmem:[#allocation18_spill] sm:$0xff]  ;;  %4154 = vmatpush.msrb.mxu1 %v6137_v24  ;;  %12714 = vst [vmem:[#allocation31_spill] sm:$0xff] %v10609_v48 }
 0x5f6   :  { %v3990_v35 = vsub.f32 1.0, %v10311_v57  ;;  %v3991_v55 = vsub.f32 1.0, %v10352_v2  ;;  %5942 = vtanh.f32 %v3979_v37  ;;  %v3923_v26 = vsel %vm10545_vm4, %v10283_v17, %v3919_v9  ;;  %v12707_v9 = vld [vmem:[#allocation40_spill] sm:$0xff] }
 0x5f7   :  { %v5933_v46 = vpop.eup %5932  ;;  %v3992_v32 = vsub.f32 1.0, %v10356_v25  ;;  %v3993_v63 = vsub.f32 1.0, %v10394_v30  ;;  %5944 = vtanh.f32 %v3980_v28  ;;  %v3898_v47 = vsel %vm10461_vm7, %v10324_v12, %v3893_v29  ;;  %v10607_v29 = vld [vmem:[#allocation3 + $0x6] ss:$8 sm:$0x7] }
 0x5f8   :  { %v5935_v44 = vpop.eup %5934  ;;  %v4006_v50 = vmul.f32 %v10311_v57, %v12697_v7  ;;  %5946 = vtanh.f32 %v3981_v5  ;;  %v3998_v23 = vmul.f32 %v5933_v46, %v3990_v35  ;;  %v3913_v58 = vsel %vm10478_vm15, %v3912_v38, %v3908_v1  ;;  %12713 = vst [vmem:[#allocation48_spill] sm:$0xff] %v10607_v29  ;;  %v10613_v35 = vld [vmem:[#allocation3 + $0x36] ss:$8 sm:$0x7] }
 0x5f9   :  { %v5937_v17 = vpop.eup %5936  ;;  %v3994_v0 = vsub.f32 1.0, %v3883_v4  ;;  %v4007_v18 = vmul.f32 %v10352_v2, %v12698_v52  ;;  %v3999_v40 = vmul.f32 %v5935_v44, %v3991_v55  ;;  %v3928_v12 = vsel %vm10516_vm10, %v3927_v16, %v3923_v26  ;;  %12715 = vst [vmem:[#allocation36_spill] sm:$0xff] %v10613_v35  ;;  %v10618_v44 = vld [vmem:[#allocation3 + $0x66] ss:$8 sm:$0x7] }
 0x5fa   :  { %v5939_v61 = vpop.eup %5938  ;;  %v4008_v57 = vmul.f32 %v10356_v25, %v12699_v21  ;;  %v4000_v49 = vmul.f32 %v5937_v17, %v3992_v32  ;;  %v10569_v22 = vadd.f32 %v4006_v50, %v3998_v23  ;;  %v3995_v36 = vsub.f32 1.0, %v3898_v47  ;;  %v10616_v32 = vld [vmem:[#allocation3 + $0x4e] ss:$8 sm:$0x7]  ;;  %12717 = vst [vmem:[#allocation37_spill] sm:$0xff] %v10618_v44 }
 0x5fb   :  { %v5941_v19 = vpop.eup %5940  ;;  %v4009_v31 = vmul.f32 %v10394_v30, %v12701_v27  ;;  %v4001_v2 = vmul.f32 %v5939_v61, %v3993_v63  ;;  %v10573_v62 = vadd.f32 %v4007_v18, %v3999_v40  ;;  %v3996_v8 = vsub.f32 1.0, %v3913_v58  ;;  %12716 = vst [vmem:[#allocation44_spill] sm:$0xff] %v10616_v32  ;;  %v10621_v7 = vld [vmem:[#allocation3 + $0x7e] ss:$8 sm:$0x7] }
 0x5fc   :  { %12700 = vst [vmem:[#allocation24_spill] sm:$0xff] %v10569_v22  ;;  %v5943_v20 = vpop.eup %5942  ;;  %v4010_v11 = vmul.f32 %v3883_v4, %v12703_v34  ;;  %v4002_v25 = vmul.f32 %v5941_v19, %v3994_v0  ;;  %v10576_v6 = vadd.f32 %v4008_v57, %v4000_v49  ;;  %v3997_v39 = vsub.f32 1.0, %v3928_v12  ;;  %v10624_v23 = vld [vmem:[#allocation3 + $0x96] ss:$8 sm:$0x7] }
 0x5fd   :  { %12702 = vst [vmem:[#allocation38_spill] sm:$0xff] %v10573_v62  ;;  %v5945_v33 = vpop.eup %5944  ;;  %v4011_v43 = vmul.f32 %v3898_v47, %v12705_v14  ;;  %v4003_v30 = vmul.f32 %v5943_v20, %v3995_v36  ;;  %v10580_v37 = vadd.f32 %v4009_v31, %v4001_v2  ;;  %v4012_v13 = vmul.f32 %v3913_v58, %v12707_v9  ;;  %v10628_v40 = vld [vmem:[#allocation3 + $0xae] ss:$8 sm:$0x7] }
 0x5fe   :  { %12704 = vst [vmem:[#allocation46_spill] sm:$0xff] %v10576_v6  ;;  %v5947_v10 = vpop.eup %5946  ;;  %v4004_v51 = vmul.f32 %v5945_v33, %v3996_v8  ;;  %v10584_v28 = vadd.f32 %v4010_v11, %v4002_v25  ;;  %v4013_v3 = vmul.f32 %v3928_v12, %v12709_v56  ;;  %v4362_v36 = vrot.slane %v10607_v29, 1 }
 0x5ff   :  { %4022 = vst [vmem:[#allocation12 + $0x5] sm:$0x1] %v10569_v22  ;;  %v4005_v38 = vmul.f32 %v5947_v10, %v3997_v39  ;;  %v10588_v45 = vadd.f32 %v4011_v43, %v4003_v30 }
 0x600   :  { %12706 = vst [vmem:[#allocation49_spill] sm:$0xff] %v10580_v37  ;;  %v10591_v41 = vadd.f32 %v4012_v13, %v4004_v51  ;;  %v4363_v51 = vrot.slane %v10609_v48, 1 }
 0x601   :  { %4023 = vst [vmem:[#allocation12 + $0xd] sm:$0x1] %v10573_v62  ;;  %v10594_v54 = vadd.f32 %v4013_v3, %v4005_v38  ;;  %v4364_v38 = vrot.slane %v10613_v35, 1 }
 0x602   :  { %12708 = vst [vmem:[#allocation47_spill] sm:$0xff] %v10584_v28 }
 0x603   :  { %4024 = vst [vmem:[#allocation12 + $0x15] sm:$0x1] %v10576_v6 }
 0x604   :  { %12710 = vst [vmem:[#allocation20_spill] sm:$0xff] %v10588_v45 }
 0x605   :  { %4025 = vst [vmem:[#allocation12 + $0x1d] sm:$0x1] %v10580_v37 }
 0x606   :  { %12711 = vst [vmem:[#allocation32_spill] sm:$0xff] %v10591_v41 }
 0x607   :  { %4026 = vst [vmem:[#allocation12 + $0x25] sm:$0x1] %v10584_v28 }
 0x608   :  { %12712 = vst [vmem:[#allocation30_spill] sm:$0xff] %v10594_v54 }
 0x609   :  { %4027 = vst [vmem:[#allocation12 + $0x2d] sm:$0x1] %v10588_v45 }
 0x60a   :  { %4028 = vst [vmem:[#allocation12 + $0x35] sm:$0x1] %v10591_v41 }
 0x60b   :  { %4029 = vst [vmem:[#allocation12 + $0x3d] sm:$0x1] %v10594_v54 }
 0x60c   :  { %4102 = vst [vmem:[#allocation1] ss:$9 sm:$0xff] %v10569_v22 }
 0x60d   :  { %4104 = vst [vmem:[#allocation1 + $0x1] ss:$9 sm:$0xff] %v10573_v62 }
 0x60e   :  { %4106 = vst [vmem:[#allocation1 + $0x2] ss:$9 sm:$0xff] %v10576_v6 }
 0x60f   :  { %4108 = vst [vmem:[#allocation1 + $0x3] ss:$9 sm:$0xff] %v10580_v37 }
 0x610   :  { %4110 = vst [vmem:[#allocation1 + $0x4] ss:$9 sm:$0xff] %v10584_v28 }
 0x611   :  { %4112 = vst [vmem:[#allocation1 + $0x5] ss:$9 sm:$0xff] %v10588_v45 }
 0x612   :  { %4114 = vst [vmem:[#allocation1 + $0x6] ss:$9 sm:$0xff] %v10591_v41 }
 0x613   :  { %4116 = vst [vmem:[#allocation1 + $0x7] ss:$9 sm:$0xff] %v10594_v54 }
 0x614   :  { %12718 = vst [vmem:[#allocation34_spill] sm:$0xff] %v10621_v7 }
 0x615   :  { %12719 = vst [vmem:[#allocation21_spill] sm:$0xff] %v10624_v23 }
 0x616   :  { %12720 = vst [vmem:[#allocation35_spill] sm:$0xff] %v10628_v40 }
 0x61a   :  { %v4117_v5 = vld [vmem:[#allocation1] sm:$0xff] }
 0x61b   :  { %4135 = vmatmul.f32.vlgmr.msrb.gmra.mxu0 %v4117_v5  ;;  %4155 = vmatmul.f32.vlgmr.msrb.gmra.mxu1 %v4117_v5 }
 0x61c   :  { %4175 = vmatmul.f32.vlgmr.msrb.gmra.mxu2 %v4117_v5  ;;  %v4365_v5 = vrot.slane %v10616_v32, 1 }
 0x698   :  { %v4136_v53 = vpop.f32.mrf.mxu0  ;;  %v10631_v49 = vpop.f32.mrf.mxu1 }
 0x699   :  { %v4180_v4 = vrot.slane %v4136_v53, 1  ;;  %v4181_v16 = vrot.slane %v4136_v53, 2  ;;  %v4194_v15 = vadd.f32 %v4136_v53, %v10607_v29  ;;  %v4182_v42 = vrot.slane %v4136_v53, 3  ;;  %v6139_v29 = vld [vmem:[#allocation10 + $0x140] sm:$0xff] }
 0x69a   :  { %v4183_v55 = vrot.slane %v4136_v53, 4  ;;  %v4184_v59 = vrot.slane %v4136_v53, 5  ;;  %v4185_v63 = vrot.slane %v4136_v53, 6  ;;  %v4186_v17 = vrot.slane %v4136_v53, 7 }
 0x69b   :  { %v4195_v1 = vadd.f32 %v4180_v4, %v10609_v48  ;;  %v4196_v46 = vadd.f32 %v4181_v16, %v10613_v35  ;;  %v5419_v26 = vmul.f32 -1.442695, %v4194_v15  ;;  %v4197_v47 = vadd.f32 %v4182_v42, %v10616_v32  ;;  %v4713_v32 = vld [vmem:[#allocation10 + $0x160] sm:$0xff]  ;;  %v4710_v48 = vld [vmem:[#allocation10 + $0x148] sm:$0xff] }
 0x69c   :  { %v4198_v50 = vadd.f32 %v4183_v55, %v10618_v44  ;;  %v4199_v58 = vadd.f32 %v4184_v59, %v10621_v7  ;;  %v4200_v52 = vadd.f32 %v4185_v63, %v10624_v23  ;;  %v4201_v12 = vadd.f32 %v4186_v17, %v10628_v40 }
 0x69d   :  { %v5420_v60 = vmul.f32 -1.442695, %v4195_v1  ;;  %5948 = vpow2.f32 %v5419_v26  ;;  %v5421_v0 = vmul.f32 -1.442695, %v4196_v46  ;;  %v5422_v18 = vmul.f32 -1.442695, %v4197_v47 }
 0x69e   :  { %v5423_v61 = vmul.f32 -1.442695, %v4198_v50  ;;  %v5424_v21 = vmul.f32 -1.442695, %v4199_v58  ;;  %v5425_v57 = vmul.f32 -1.442695, %v4200_v52  ;;  %v4393_v2 = vadd.f32 %v4362_v36, %v10631_v49 }
 0x69f   :  { %5950 = vpow2.f32 %v5420_v60  ;;  %v5426_v31 = vmul.f32 -1.442695, %v4201_v12  ;;  %v4379_v39 = vrot.slane %v10631_v49, 1  ;;  %v4380_v30 = vrot.slane %v10631_v49, 2 }
 0x6a0   :  { %5952 = vpow2.f32 %v5421_v0  ;;  %v5427_v10 = vmul.f32 -1.442695, %v4393_v2  ;;  %v4381_v56 = vrot.slane %v10631_v49, 3  ;;  %v4382_v53 = vrot.slane %v10631_v49, 4 }
 0x6a1   :  { %5954 = vpow2.f32 %v5422_v18  ;;  %v4366_v15 = vrot.slane %v10618_v44, 1  ;;  %v4383_v1 = vrot.slane %v10631_v49, 5  ;;  %v4394_v42 = vadd.f32 %v4379_v39, %v4363_v51 }
 0x6a2   :  { %5956 = vpow2.f32 %v5423_v61  ;;  %v4384_v59 = vrot.slane %v10631_v49, 6  ;;  %v4395_v46 = vadd.f32 %v4380_v30, %v4364_v38  ;;  %v4367_v63 = vrot.slane %v10621_v7, 1 }
 0x6a3   :  { %v5949_v19 = vpop.eup %5948  ;;  %5958 = vpow2.f32 %v5424_v21  ;;  %v4396_v60 = vadd.f32 %v4381_v56, %v4365_v5  ;;  %v4368_v17 = vrot.slane %v10624_v23, 1  ;;  %v4385_v58 = vrot.slane %v10631_v49, 7 }
 0x6a4   :  { %5960 = vpow2.f32 %v5425_v57  ;;  %v10635_v24 = vadd.f32 1.0, %v5949_v19  ;;  %v4397_v0 = vadd.f32 %v4382_v53, %v4366_v15  ;;  %v4369_v61 = vrot.slane %v10628_v40, 1 }
 0x6a5   :  { %v5951_v27 = vpop.eup %5950  ;;  %5962 = vpow2.f32 %v5426_v31  ;;  %v5428_v12 = vmul.f32 -1.442695, %v4394_v42  ;;  %v4398_v57 = vadd.f32 %v4383_v1, %v4367_v63  ;;  %v4399_v19 = vadd.f32 %v4384_v59, %v4368_v17 }
 0x6a6   :  { %v5953_v20 = vpop.eup %5952  ;;  %v10637_v8 = vadd.f32 1.0, %v5951_v27  ;;  %5964 = vrcp.f32 %v10635_v24  ;;  %v5429_v36 = vmul.f32 -1.442695, %v4395_v46  ;;  %v5430_v31 = vmul.f32 -1.442695, %v4396_v60 }
 0x6a7   :  { %v5955_v14 = vpop.eup %5954  ;;  %v10646_v13 = vadd.f32 1.0, %v5953_v20  ;;  %v4400_v39 = vadd.f32 %v4385_v58, %v4369_v61  ;;  %v5433_v38 = vmul.f32 -1.442695, %v4399_v19  ;;  %vm4239_vm3 = vweird.f32 %v10635_v24 }
 0x6a8   :  { %v5957_v9 = vpop.eup %5956  ;;  %5966 = vrcp.f32 %v10637_v8  ;;  %v10655_v16 = vadd.f32 1.0, %v5955_v14  ;;  %v5431_v14 = vmul.f32 -1.442695, %v4397_v0  ;;  %v4260_v56 = vand.u32 2147483648, %v10637_v8 }
 0x6a9   :  { %v5959_v3 = vpop.eup %5958  ;;  %v10659_v55 = vadd.f32 1.0, %v5957_v9  ;;  %5968 = vpow2.f32 %v5427_v10  ;;  %v4245_v9 = vand.u32 2147483648, %v10635_v24  ;;  %vm12765_vm6 = vweird.f32 %v10637_v8 }
 0x6aa   :  { %v5961_v4 = vpop.eup %5960  ;;  %v10662_v26 = vadd.f32 1.0, %v5959_v3  ;;  %5970 = vrcp.f32 %v10646_v13  ;;  %v5432_v3 = vmul.f32 -1.442695, %v4398_v57  ;;  %v4290_v15 = vand.u32 2147483648, %v10655_v16 }
 0x6ab   :  { %v5963_v47 = vpop.eup %5962  ;;  %v10666_v50 = vadd.f32 1.0, %v5961_v4  ;;  %5972 = vrcp.f32 %v10655_v16  ;;  %v4275_v4 = vand.u32 2147483648, %v10646_v13  ;;  %v10711_v0 = vor.u32 1.1754944e-38, %v4260_v56 }
 0x6ac   :  { %v10670_v52 = vpop.eup %5964  ;;  %5974 = vrcp.f32 %v10659_v55  ;;  %v10681_v20 = vadd.f32 1.0, %v5963_v47  ;;  %v10707_v47 = vor.u32 1.1754944e-38, %v4245_v9  ;;  %v4305_v57 = vand.u32 2147483648, %v10659_v55 }
 0x6ad   :  { %5976 = vrcp.f32 %v10662_v26  ;;  %v4235_v10 = vmul.f32 %v10670_v52, %v10635_v24  ;;  %vm4240_vm0 = vweird.f32 %v10670_v52 }
 0x6ae   :  { %v10675_v21 = vpop.eup %5966  ;;  %5978 = vrcp.f32 %v10666_v50  ;;  %v10736_v33 = vor.u32 1.1754944e-38, %v4305_v57  ;;  %vm10877_vm10 = vmor %vm4239_vm3, %vm4240_vm0 }
 0x6af   :  { %v5969_v2 = vpop.eup %5968  ;;  %v4250_v51 = vmul.f32 %v10675_v21, %v10637_v8  ;;  %5980 = vpow2.f32 %v5428_v12  ;;  %v4236_v60 = vsub.f32 1.0, %v4235_v10 }
 0x6b0   :  { %v10684_v30 = vpop.eup %5970  ;;  %5982 = vpow2.f32 %v5429_v36  ;;  %v10703_v46 = vadd.f32 1.0, %v5969_v2  ;;  %v10716_v36 = vor.u32 1.1754944e-38, %v4275_v4  ;;  %v10720_v2 = vor.u32 1.1754944e-38, %v4290_v15  ;;  %12722 = vst [vmem:[#allocation25_spill] sm:$0xff] %v10736_v33 }
 0x6b1   :  { %v10692_v5 = vpop.eup %5972  ;;  %5984 = vpow2.f32 %v5430_v31  ;;  %v4265_v59 = vmul.f32 %v10684_v30, %v10646_v13  ;;  %v4251_v17 = vsub.f32 1.0, %v4250_v51  ;;  %v4237_v4 = vmul.f32 %v10670_v52, %v4236_v60 }
 0x6b2   :  { %v10697_v1 = vpop.eup %5974  ;;  %5986 = vrcp.f32 %v10681_v20  ;;  %v4280_v31 = vmul.f32 %v10692_v5, %v10655_v16  ;;  %12721 = vst [vmem:[#allocation23_spill] sm:$0xff] %v10720_v2  ;;  %v5434_v60 = vmul.f32 -1.442695, %v4400_v39  ;;  %v5466_v39 = vld [vmem:[%s11920_s5] ss:$0 sm:$0xff]  ;;  %v4444_v45 = vand.u32 2147483648, %v10703_v46 }
 0x6b3   :  { %v10705_v63 = vpop.eup %5976  ;;  %5988 = vpow2.f32 %v5431_v14  ;;  %v4295_v14 = vmul.f32 %v10697_v1, %v10659_v55  ;;  %v4266_v9 = vsub.f32 1.0, %v4265_v59  ;;  %v4252_v49 = vmul.f32 %v10675_v21, %v4251_v17 }
 0x6b4   :  { %v10709_v58 = vpop.eup %5978  ;;  %v4310_v51 = vmul.f32 %v10705_v63, %v10662_v26  ;;  %5990 = vrcp.f32 %v10703_v46  ;;  %v4281_v11 = vsub.f32 1.0, %v4280_v31  ;;  %v10747_v57 = vadd.f32 %v10670_v52, %v4237_v4 }
 0x6b5   :  { %v5981_v19 = vpop.eup %5980  ;;  %v4296_v34 = vsub.f32 1.0, %v4295_v14  ;;  %v4267_v17 = vmul.f32 %v10684_v30, %v4266_v9  ;;  %v4325_v15 = vmul.f32 %v10709_v58, %v10666_v50  ;;  %v4320_v59 = vand.u32 2147483648, %v10662_v26 }
 0x6b6   :  { %v5983_v10 = vpop.eup %5982  ;;  %v10726_v56 = vadd.f32 1.0, %v5981_v19  ;;  %v4335_v4 = vand.u32 2147483648, %v10666_v50  ;;  %v4442_v22 = vand.u32 2147483647, %v10703_v46  ;;  %vm4438_vm2 = vweird.f32 %v10703_v46 }
 0x6b7   :  { %v5985_v27 = vpop.eup %5984  ;;  %v10732_v18 = vadd.f32 1.0, %v5983_v10  ;;  %v4311_v10 = vsub.f32 1.0, %v4310_v51  ;;  %v4282_v51 = vmul.f32 %v10692_v5, %v4281_v11  ;;  %v10770_v61 = vadd.f32 %v10684_v30, %v4267_v17 }
 0x6b8   :  { %v10734_v43 = vpop.eup %5986  ;;  %v10739_v25 = vadd.f32 1.0, %v5985_v27  ;;  %5992 = vrcp.f32 %v10726_v56  ;;  %v10750_v27 = vadd.f32 %v10675_v21, %v4252_v49  ;;  %v4176_v49 = vpop.f32.mrf.mxu2  ;;  %v4326_v42 = vsub.f32 1.0, %v4325_v15 }
 0x6b9   :  { %v5989_v19 = vpop.eup %5988  ;;  %5994 = vrcp.f32 %v10732_v18  ;;  %v4312_v14 = vmul.f32 %v10705_v63, %v4311_v10  ;;  %v10776_v54 = vor.u32 1.1754944e-38, %v4320_v59  ;;  %v10790_v59 = vadd.f32 %v10692_v5, %v4282_v51 }
 0x6ba   :  { %5996 = vpow2.f32 %v5432_v3  ;;  %v10756_v31 = vpop.eup %5990  ;;  %v4340_v3 = vmul.f32 %v10734_v43, %v10681_v20  ;;  %v10761_v9 = vadd.f32 1.0, %v5989_v19  ;;  %v4350_v19 = vand.u32 2147483648, %v10681_v20 }
 0x6bb   :  { %5998 = vpow2.f32 %v5433_v38  ;;  %v4297_v38 = vmul.f32 %v10697_v1, %v4296_v34  ;;  %12723 = vst [vmem:[#allocation26_spill] sm:$0xff] %v10776_v54  ;;  %v4434_v34 = vmul.f32 %v10756_v31, %v10703_v46  ;;  %v10801_v37 = vadd.f32 %v10705_v63, %v4312_v14 }
 0x6bc   :  { %6000 = vrcp.f32 %v10739_v25  ;;  %v4341_v17 = vsub.f32 1.0, %v4340_v3  ;;  %v4327_v6 = vmul.f32 %v10709_v58, %v4326_v42  ;;  %v10804_v62 = vor.u32 1.1754944e-38, %v4350_v19  ;;  %v4716_v19 = vld [vmem:[#allocation10 + $0x178] sm:$0xff] }
 0x6bd   :  { %6002 = vpow2.f32 %v5434_v60  ;;  %v10782_v60 = vadd.f32 %v5466_v39, %v4176_v49  ;;  %v10793_v28 = vadd.f32 %v10697_v1, %v4297_v38  ;;  %v10795_v39 = vor.u32 1.1754944e-38, %v4335_v4  ;;  %4782 = vmatpush.msra.mxu1 %v4716_v19  ;;  %v6138_v19 = vld [vmem:[#allocation10 + $0x158] sm:$0xff] }
 0x6be   :  { %v10767_v12 = vpop.eup %5992  ;;  %6004 = vrcp.f32 %v10761_v9  ;;  %12726 = vst [vmem:[#allocation28_spill] sm:$0xff] %v10804_v62  ;;  %v4435_v4 = vsub.f32 1.0, %v4434_v34  ;;  %v4342_v23 = vmul.f32 %v10734_v43, %v4341_v17  ;;  %v10813_v14 = vor.u32 1.1754944e-38, %v4444_v45 }
 0x6bf   :  { %v10774_v53 = vpop.eup %5994  ;;  %v4449_v11 = vmul.f32 %v10767_v12, %v10726_v56  ;;  %12724 = vst [vmem:[#allocation42_spill] sm:$0xff] %v10782_v60  ;;  %v10827_v45 = vadd.f32 %v10709_v58, %v4327_v6  ;;  %vm4453_vm7 = vweird.f32 %v10726_v56  ;;  %v4715_v6 = vld [vmem:[#allocation10 + $0x170] sm:$0xff]  ;;  %vm10848_vm11 = vcmp.eq.f32.partialorder %v4442_v22, 8.507059e+37  ;;  %4783 = vmatpush.msra.mxu1 %v4713_v32 }
 0x6c0   :  { %v5997_v41 = vpop.eup %5996  ;;  %v4464_v15 = vmul.f32 %v10774_v53, %v10732_v18  ;;  %12725 = vst [vmem:[#allocation27_spill] sm:$0xff] %v10795_v39  ;;  %v4436_v34 = vmul.f32 %v10756_v31, %v4435_v4  ;;  %4762 = vmatpush.msra.mxu0 %v4715_v6  ;;  %vm4468_vm14 = vweird.f32 %v10732_v18  ;;  %vm4439_vm4 = vweird.f32 %v10756_v31 }
 0x6c1   :  { %v5999_v10 = vpop.eup %5998  ;;  %v10808_v38 = vadd.f32 1.0, %v5997_v41  ;;  %v4450_v40 = vsub.f32 1.0, %v4449_v11  ;;  %12727 = vst [vmem:[#allocation29_spill] sm:$0xff] %v10827_v45  ;;  %v4472_v22 = vand.u32 2147483647, %v10732_v18  ;;  %vm4454_vm1 = vweird.f32 %v10767_v12  ;;  %4784 = vmatpush.msra.mxu1 %v4710_v48  ;;  %vm10905_vm8 = vmor %vm4438_vm2, %vm4439_vm4 }
 0x6c2   :  { %v10798_v49 = vpop.eup %6000  ;;  %v4465_v42 = vsub.f32 1.0, %v4464_v15  ;;  %v10817_v7 = vadd.f32 1.0, %v5999_v10  ;;  %v4457_v10 = vand.u32 2147483647, %v10726_v56  ;;  %v4459_v15 = vand.u32 2147483648, %v10726_v56  ;;  %4763 = vmatpush.msra.mxu0 %v6138_v19  ;;  %vm10936_vm5 = vmor %vm4453_vm7, %vm4454_vm1 }
 0x6c3   :  { %v6003_v51 = vpop.eup %6002  ;;  %v4479_v41 = vmul.f32 %v10798_v49, %v10739_v25  ;;  %v4451_v11 = vmul.f32 %v10767_v12, %v4450_v40  ;;  %6006 = vrcp.f32 %v10808_v38  ;;  %v4489_v35 = vand.u32 2147483648, %v10739_v25 }
 0x6c4   :  { %v10823_v3 = vpop.eup %6004  ;;  %v10829_v17 = vadd.f32 1.0, %v6003_v51  ;;  %v10842_v51 = vadd.f32 %v10734_v43, %v4342_v23  ;;  %v4466_v4 = vmul.f32 %v10774_v53, %v4465_v42  ;;  %6008 = vrcp.f32 %v10817_v7  ;;  %4764 = vmatpush.msra.mxu0 %v6139_v29 }
 0x6c5   :  { %v4480_v44 = vsub.f32 1.0, %v4479_v41  ;;  %v10855_v23 = vmul.f32 %v10823_v3, %v10761_v9  ;;  %v4474_v42 = vand.u32 2147483648, %v10732_v18  ;;  %v10866_v41 = vadd.f32 %v10756_v31, %v4436_v34 }
 0x6c6   :  { %12728 = vst [vmem:[#allocation43_spill] sm:$0xff] %v10842_v51  ;;  %6010 = vrcp.f32 %v10829_v17  ;;  %v10869_v6 = vadd.f32 %v10767_v12, %v4451_v11  ;;  %vm10883_vm12 = vcmp.eq.f32.partialorder %v4457_v10, 8.507059e+37  ;;  %v10888_v34 = vadd.f32 %v10774_v53, %v4466_v4  ;;  %v4707_v4 = vld [vmem:[#allocation10 + $0x130] sm:$0xff] }
 0x6c7   :  { %vm4469_vm9 = vweird.f32 %v10774_v53  ;;  %v4487_v11 = vand.u32 2147483647, %v10739_v25  ;;  %v12735_v60 = vand.u32 2147483647, %v10635_v24  ;;  %v4481_v29 = vmul.f32 %v10798_v49, %v4480_v44  ;;  %4785 = vmatpush.msra.mxu1 %v4707_v4 }
 0x6c8   :  { %v4495_v48 = vsub.f32 1.0, %v10855_v23  ;;  %v4504_v24 = vand.u32 2147483648, %v10761_v9  ;;  %v12740_v51 = vand.u32 2147483647, %v10637_v8  ;;  %v12743_v46 = vand.u32 2147483647, %v10646_v13  ;;  %vm10971_vm1 = vmor %vm4468_vm14, %vm4469_vm9 }
 0x6c9   :  { %v10892_v62 = vpop.eup %6006  ;;  %vm10896_vm0 = vcmp.eq.f32.partialorder %v12735_v60, 8.507059e+37  ;;  %v4519_v60 = vand.u32 2147483648, %v10808_v38  ;;  %v12744_v54 = vmov 0  ;;  %v12747_v44 = vand.u32 2147483647, %v10655_v16  ;;  %v12811_v45 = vld [vmem:[#allocation29_spill] sm:$0xff] }
 0x6ca   :  { %vm10915_vm3 = vcmp.eq.f32.partialorder %v12740_v51, 8.507059e+37  ;;  %vm10921_vm2 = vcmp.eq.f32.partialorder %v12743_v46, 8.507059e+37  ;;  %v12748_v23 = vmov 0  ;;  %v4460_v46 = vor.u32 1.1754944e-38, %v4459_v15  ;;  %v6141_v51 = vld [vmem:[#allocation10 + $0x110] sm:$0xff] }
 0x6cb   :  { %v12745_v54 = vsel %vm10921_vm2, 4294967295, %v12744_v54  ;;  %vm10927_vm4 = vcmp.eq.f32.partialorder %v12747_v44, 8.507059e+37  ;;  %vm10940_vm13 = vcmp.eq.f32.partialorder %v4472_v22, 8.507059e+37  ;;  %v4475_v2 = vor.u32 1.1754944e-38, %v4474_v42  ;;  %v6140_v44 = vld [vmem:[#allocation10 + $0x128] sm:$0xff] }
 0x6cc   :  { %12746 = vst [vmem:[#allocation33_spill] sm:$0xff] %v12745_v54  ;;  %v12749_v23 = vsel %vm10927_vm4, 4294967295, %v12748_v23  ;;  %4765 = vmatpush.msra.mxu0 %v6140_v44  ;;  %v12755_v54 = vand.u32 2147483647, %v10659_v55  ;;  %v12758_v15 = vand.u32 2147483647, %v10662_v26  ;;  %v4441_v42 = vsel %vm10905_vm8, %v10756_v31, %v10866_v41 }
 0x6cd   :  { %12750 = vst [vmem:[#allocation22_spill] sm:$0xff] %v12749_v23  ;;  %v10945_v23 = vpop.eup %6008  ;;  %v12759_v22 = vmov 0  ;;  %v4456_v4 = vsel %vm10936_vm5, %v10767_v12, %v10869_v6  ;;  %v10975_v44 = vor.u32 1.1754944e-38, %v4489_v35  ;;  %vm12764_vm8 = vweird.f32 %v10675_v21  ;;  %v4701_v6 = vld [vmem:[#allocation10 + $0x100] sm:$0xff] }
 0x6ce   :  { %vm10949_vm15 = vcmp.eq.f32.partialorder %v12755_v54, 8.507059e+37  ;;  %vm10955_vm7 = vcmp.eq.f32.partialorder %v12758_v15, 8.507059e+37  ;;  %v4502_v15 = vand.u32 2147483647, %v10761_v9  ;;  %v10978_v10 = vpop.eup %6010  ;;  %vm10984_vm5 = vmor %vm12765_vm6, %vm12764_vm8  ;;  %v12768_v18 = vand.u32 2147483647, %v10666_v50  ;;  %4766 = vmatpush.msra.mxu0 %v6141_v51 }
 0x6cf   :  { %v12760_v22 = vsel %vm10955_vm7, 4294967295, %v12759_v22  ;;  %v12769_v31 = vmov 0  ;;  %v4471_v35 = vsel %vm10971_vm1, %v10774_v53, %v10888_v34  ;;  %vm10999_vm7 = vcmp.eq.f32.partialorder %v4487_v11, 8.507059e+37  ;;  %v12808_v53 = vld [vmem:[#allocation26_spill] sm:$0xff] }
 0x6d0   :  { %12761 = vst [vmem:[#allocation18_spill] sm:$0xff] %v12760_v22  ;;  %v4704_v22 = vld [vmem:[#allocation10 + $0x118] sm:$0xff]  ;;  %vm10990_vm9 = vcmp.eq.f32.partialorder %v12768_v18, 8.507059e+37  ;;  %v12771_v41 = vmov 0  ;;  %v11005_v8 = vmul.f32 %v10892_v62, %v10808_v38  ;;  %vm12773_vm6 = vweird.f32 %v10684_v30 }
 0x6d1   :  { %v12770_v31 = vsel %vm10990_vm9, 4294967295, %v12769_v31  ;;  %v12772_v41 = vsel %vm10999_vm7, 4294967295, %v12771_v41  ;;  %4786 = vmatpush.msra.mxu1 %v4704_v22  ;;  %vm12774_vm8 = vweird.f32 %v10646_v13  ;;  %v12777_v34 = vand.u32 2147483647, %v10681_v20 }
 0x6d2   :  { %vm11012_vm1 = vmor %vm12774_vm8, %vm12773_vm6  ;;  %v12778_v11 = vmov 0  ;;  %v4482_v54 = vadd.f32 %v10798_v49, %v4481_v29  ;;  %v4496_v18 = vmul.f32 %v10823_v3, %v4495_v48  ;;  %v11024_v51 = vor.u32 1.1754944e-38, %v4504_v24 }
 0x6d3   :  { %vm11018_vm14 = vcmp.eq.f32.partialorder %v12777_v34, 8.507059e+37  ;;  %v11026_v22 = vor.u32 1.1754944e-38, %v4519_v60  ;;  %vm12780_vm6 = vweird.f32 %v10692_v5  ;;  %vm12781_vm8 = vweird.f32 %v10655_v16  ;;  %v6142_v16 = vld [vmem:[#allocation10 + $0xf8] sm:$0xff]  ;;  %4787 = vmatpush.msra.mxu1 %v4701_v6 }
 0x6d4   :  { %v12779_v11 = vsel %vm11018_vm14, 4294967295, %v12778_v11  ;;  %vm11032_vm9 = vmor %vm12781_vm8, %vm12780_vm6  ;;  %v11039_v34 = vsel %vm10848_vm11, %v10813_v14, %v4441_v42  ;;  %v11043_v29 = vsel %vm10883_vm12, %v4460_v46, %v4456_v4  ;;  %vm4499_vm14 = vweird.f32 %v10823_v3  ;;  %4767 = vmatpush.msra.mxu0 %v6142_v16  ;;  %v6144_v4 = vld [vmem:[#allocation10 + $0xc8] sm:$0xff]  ;;  %v4689_v16 = vld [vmem:[#allocation10 + $0xa0] sm:$0xff] }
 0x6d5   :  { %v11048_v48 = vmul.f32 %v10945_v23, %v10817_v7  ;;  %vm12784_vm6 = vweird.f32 %v10697_v1  ;;  %vm12785_vm8 = vweird.f32 %v10659_v55  ;;  %v11060_v40 = vsel %vm10940_vm13, %v4475_v2, %v4471_v35  ;;  %v4698_v55 = vld [vmem:[#allocation10 + $0xe8] sm:$0xff] }
 0x6d6   :  { %vm11054_vm7 = vmor %vm12785_vm8, %vm12784_vm6  ;;  %v4532_v32 = vand.u32 2147483647, %v10817_v7  ;;  %v11065_v24 = vmul.f32 %v10978_v10, %v10829_v17  ;;  %v4242_v60 = vsel %vm10877_vm10, %v10670_v52, %v10747_v57  ;;  %vm12788_vm12 = vweird.f32 %v10798_v49  ;;  %v6143_v57 = vld [vmem:[#allocation10 + $0xe0] sm:$0xff]  ;;  %4788 = vmatpush.msra.mxu1 %v4698_v55 }
 0x6d7   :  { %vm12789_vm11 = vweird.f32 %v10739_v25  ;;  %vm4498_vm13 = vweird.f32 %v10761_v9  ;;  %v4510_v2 = vsub.f32 1.0, %v11005_v8  ;;  %v4257_v46 = vsel %vm10984_vm5, %v10675_v21, %v10750_v27  ;;  %4768 = vmatpush.msra.mxu0 %v6143_v57  ;;  %v4695_v27 = vld [vmem:[#allocation10 + $0xd0] sm:$0xff]  ;;  %v12807_v8 = vld [vmem:[#allocation25_spill] sm:$0xff]  ;;  %v4686_v57 = vld [vmem:[#allocation10 + $0x88] sm:$0xff] }
 0x6d8   :  { %vm11075_vm6 = vmor %vm12789_vm11, %vm12788_vm12  ;;  %v4272_v52 = vsel %vm11012_vm1, %v10684_v30, %v10770_v61  ;;  %v4287_v25 = vsel %vm11032_vm9, %v10692_v5, %v10790_v59  ;;  %vm12792_vm10 = vweird.f32 %v10705_v63  ;;  %vm12793_vm8 = vweird.f32 %v10662_v26  ;;  %4789 = vmatpush.msra.mxu1 %v4695_v27 }
 0x6d9   :  { %vm11097_vm12 = vmor %vm12793_vm8, %vm12792_vm10  ;;  %v4486_v21 = vsel %vm11075_vm6, %v10798_v49, %v4482_v54  ;;  %v11105_v30 = vadd.f32 %v10823_v3, %v4496_v18  ;;  %v4534_v61 = vand.u32 2147483648, %v10817_v7  ;;  %v4547_v5 = vand.u32 2147483647, %v10829_v17  ;;  %4769 = vmatpush.msra.mxu0 %v6144_v4  ;;  %v12809_v54 = vld [vmem:[#allocation18_spill] sm:$0xff]  ;;  %v12812_v18 = vld [vmem:[#allocation43_spill] sm:$0xff] }
 0x6da   :  { %vm12796_vm5 = vweird.f32 %v10709_v58  ;;  %vm12797_vm9 = vweird.f32 %v10666_v50  ;;  %vm4514_vm11 = vweird.f32 %v10892_v62  ;;  %v4525_v59 = vsub.f32 1.0, %v11048_v48  ;;  %v6145_v48 = vld [vmem:[#allocation10 + $0xb0] sm:$0xff] }
 0x6db   :  { %vm11113_vm1 = vmor %vm12797_vm9, %vm12796_vm5  ;;  %v4247_v49 = vsel %vm10896_vm0, %v10707_v47, %v4242_v60  ;;  %v4302_v42 = vsel %vm11054_vm7, %v10697_v1, %v10793_v28  ;;  %v4317_v50 = vsel %vm11097_vm12, %v10705_v63, %v10801_v37  ;;  %vm12800_vm6 = vweird.f32 %v10734_v43  ;;  %v12805_v63 = vld [vmem:[#allocation23_spill] sm:$0xff]  ;;  %4770 = vmatpush.msra.mxu0 %v6145_v48  ;;  %v12818_v60 = vld [vmem:[#allocation42_spill] sm:$0xff] }
 0x6dc   :  { %vm12801_vm10 = vweird.f32 %v10681_v20  ;;  %v4540_v47 = vsub.f32 1.0, %v11065_v24  ;;  %v4262_v28 = vsel %vm10915_vm3, %v10711_v0, %v4257_v46  ;;  %v4277_v37 = vsel %vm10921_vm2, %v10716_v36, %v4272_v52  ;;  %v4692_v20 = vld [vmem:[#allocation10 + $0xb8] sm:$0xff]  ;;  %v12816_v24 = vld [vmem:[#allocation27_spill] sm:$0xff] }
 0x6dd   :  { %vm11134_vm8 = vmor %vm12801_vm10, %vm12800_vm6  ;;  %v4292_v35 = vsel %vm10927_vm4, %v12805_v63, %v4287_v25  ;;  %vm4513_vm0 = vweird.f32 %v10808_v38  ;;  %v4307_v6 = vsel %vm10949_vm15, %v12807_v8, %v4302_v42  ;;  %vm12810_vm7 = vnez %v12809_v54  ;;  %4790 = vmatpush.msra.mxu1 %v4692_v20  ;;  %v12832_v63 = vld [vmem:[#allocation31_spill] sm:$0xff]  ;;  %v6147_v20 = vld [vmem:[#allocation10 + $0x80] sm:$0xff] }
 0x6de   :  { %v4322_v0 = vsel %vm12810_vm7, %v12808_v53, %v4317_v50  ;;  %v4332_v36 = vsel %vm11113_vm1, %v10709_v58, %v12811_v45  ;;  %v4347_v13 = vsel %vm11134_vm8, %v10734_v43, %v12812_v18  ;;  %vm12813_vm15 = vnez %v12772_v41  ;;  %v4683_v8 = vld [vmem:[#allocation10 + $0x70] sm:$0xff]  ;;  %vm11213_vm1 = vmor %vm4498_vm13, %vm4499_vm14  ;;  %v12840_v18 = vld [vmem:[#allocation44_spill] sm:$0xff] }
 0x6df   :  { %v11166_v56 = vsel %vm12813_vm15, %v10975_v44, %v4486_v21  ;;  %vm11170_vm3 = vcmp.eq.f32.partialorder %v4502_v15, 8.507059e+37  ;;  %v4511_v58 = vmul.f32 %v10892_v62, %v4510_v2  ;;  %vm4528_vm2 = vweird.f32 %v10817_v7  ;;  %v12819_v44 = vld [vmem:[#allocation28_spill] sm:$0xff]  ;;  %4791 = vmatpush.msra.mxu1 %v4689_v16  ;;  %v12842_v16 = vld [vmem:[#allocation37_spill] sm:$0xff]  ;;  %vm11247_vm10 = vmor %vm4513_vm0, %vm4514_vm11 }
 0x6e0   :  { %vm12817_vm4 = vnez %v12770_v31  ;;  %v4573_v55 = vmul.f32 %v12818_v60, %v4247_v49  ;;  %vm4543_vm12 = vweird.f32 %v10829_v17  ;;  %vm12820_vm5 = vnez %v12779_v11  ;;  %v6146_v31 = vld [vmem:[#allocation10 + $0x98] sm:$0xff]  ;;  %v12860_v50 = vld [vmem:[#allocation46_spill] sm:$0xff] }
 0x6e1   :  { %v4337_v43 = vsel %vm12817_vm4, %v12816_v24, %v4332_v36  ;;  %v4352_v15 = vsel %vm12820_vm5, %v12819_v44, %v4347_v13  ;;  %v12821_v41 = vrot.slane %v12818_v60, 1  ;;  %v12822_v2 = vrot.slane %v12818_v60, 2  ;;  %4771 = vmatpush.msra.mxu0 %v6146_v31  ;;  %4792 = vmatpush.msra.mxu1 %v4686_v57 }
 0x6e2   :  { %v12823_v52 = vrot.slane %v12818_v60, 3  ;;  %v4526_v19 = vmul.f32 %v10945_v23, %v4525_v59  ;;  %v4565_v21 = vrot.slane %v12818_v60, 7  ;;  %v12824_v27 = vrot.slane %v12818_v60, 4 }
 0x6e3   :  { %v4574_v33 = vmul.f32 %v12821_v41, %v4262_v28  ;;  %v4575_v46 = vmul.f32 %v12822_v2, %v4277_v37  ;;  %v12825_v26 = vrot.slane %v12818_v60, 5  ;;  %v12826_v42 = vand.u32 2147483647, %v10808_v38  ;;  %v12830_v28 = vld [vmem:[#allocation48_spill] sm:$0xff]  ;;  %4772 = vmatpush.msra.mxu0 %v6147_v20  ;;  %4793 = vmatpush.msra.mxu1 %v4683_v8 }
 0x6e4   :  { %v4576_v25 = vmul.f32 %v12823_v52, %v4292_v35  ;;  %v4577_v11 = vmul.f32 %v12824_v27, %v4307_v6  ;;  %v4541_v4 = vmul.f32 %v10978_v10, %v4540_v47  ;;  %v12829_v12 = vrot.slane %v12818_v60, 6  ;;  %v6148_v60 = vld [vmem:[#allocation10 + $0x68] sm:$0xff]  ;;  %v4677_v52 = vld [vmem:[#allocation10 + $0x40] sm:$0xff] }
 0x6e5   :  { %v4578_v49 = vmul.f32 %v12825_v26, %v4322_v0  ;;  %vm11198_vm9 = vcmp.eq.f32.partialorder %v12826_v42, 8.507059e+37  ;;  %v12831_v1 = vrot.slane %v12830_v28, 2  ;;  %v12833_v39 = vrot.slane %v12832_v63, 2  ;;  %v12838_v0 = vld [vmem:[#allocation36_spill] sm:$0xff]  ;;  %4773 = vmatpush.msra.mxu0 %v6148_v60  ;;  %v4670_v42 = vld [vmem:[#allocation10 + $0x8] sm:$0xff]  ;;  %v4671_v28 = vld [vmem:[#allocation10 + $0x10] sm:$0xff] }
 0x6e6   :  { %v4579_v59 = vmul.f32 %v12829_v12, %v4337_v43  ;;  %vm11219_vm6 = vcmp.eq.f32.partialorder %v4532_v32, 8.507059e+37  ;;  %v4549_v53 = vand.u32 2147483648, %v10829_v17  ;;  %v4580_v54 = vmul.f32 %v4565_v21, %v4352_v15  ;;  %v12844_v15 = vld [vmem:[#allocation34_spill] sm:$0xff]  ;;  %v6150_v26 = vld [vmem:[#allocation10 + $0x38] sm:$0xff] }
 0x6e7   :  { %v4597_v37 = vadd.f32 %v12831_v1, %v4573_v55  ;;  %v4598_v35 = vadd.f32 %v12833_v39, %v4574_v33  ;;  %v12839_v45 = vrot.slane %v12838_v0, 2  ;;  %v12841_v13 = vrot.slane %v12840_v18, 2  ;;  %v4680_v55 = vld [vmem:[#allocation10 + $0x58] sm:$0xff]  ;;  %v12859_v6 = vld [vmem:[#allocation38_spill] sm:$0xff] }
 0x6e8   :  { %v4501_v9 = vsel %vm11213_vm1, %v10823_v3, %v11105_v30  ;;  %v4512_v32 = vadd.f32 %v10892_v62, %v4511_v58  ;;  %v12843_v24 = vrot.slane %v12842_v16, 2  ;;  %v4527_v44 = vadd.f32 %v10945_v23, %v4526_v19  ;;  %v12846_v30 = vld [vmem:[#allocation21_spill] sm:$0xff]  ;;  %v12852_v19 = vld [vmem:[#allocation35_spill] sm:$0xff]  ;;  %4794 = vmatpush.msra.mxu1 %v4680_v55  ;;  %v12858_v63 = vld [vmem:[#allocation24_spill] sm:$0xff] }
 0x6e9   :  { %v4599_v36 = vadd.f32 %v12839_v45, %v4575_v46  ;;  %v4600_v48 = vadd.f32 %v12841_v13, %v4576_v25  ;;  %6012 = vtanh.f32 %v4597_v37  ;;  %vm4529_vm14 = vweird.f32 %v10945_v23  ;;  %v6149_v46 = vld [vmem:[#allocation10 + $0x50] sm:$0xff]  ;;  %v12861_v13 = vld [vmem:[#allocation49_spill] sm:$0xff] }
 0x6ea   :  { %v4601_v43 = vadd.f32 %v12843_v24, %v4577_v11  ;;  %v12845_v41 = vrot.slane %v12844_v15, 2  ;;  %6014 = vtanh.f32 %v4598_v35  ;;  %v4542_v3 = vadd.f32 %v10978_v10, %v4541_v4  ;;  %4774 = vmatpush.msra.mxu0 %v6149_v46  ;;  %vm11271_vm11 = vmor %vm4528_vm2, %vm4529_vm14  ;;  %4795 = vmatpush.msra.mxu1 %v4677_v52  ;;  %v12862_v24 = vld [vmem:[#allocation47_spill] sm:$0xff]  ;;  %v12863_v15 = vld [vmem:[#allocation20_spill] sm:$0xff] }
 0x6eb   :  { %vm4544_vm13 = vweird.f32 %v10978_v10  ;;  %v12847_v58 = vrot.slane %v12846_v30, 2  ;;  %6016 = vtanh.f32 %v4599_v36  ;;  %v4535_v31 = vor.u32 1.1754944e-38, %v4534_v61  ;;  %v12864_v30 = vld [vmem:[#allocation32_spill] sm:$0xff]  ;;  %v12866_v52 = vld [vmem:[#allocation30_spill] sm:$0xff] }
 0x6ec   :  { %v4602_v33 = vadd.f32 %v12845_v41, %v4578_v49  ;;  %vm11255_vm8 = vcmp.eq.f32.partialorder %v4547_v5, 8.507059e+37  ;;  %v12853_v21 = vrot.slane %v12852_v19, 2  ;;  %6018 = vtanh.f32 %v4600_v48  ;;  %4775 = vmatpush.msra.mxu0 %v6150_v26  ;;  %v4674_v49 = vld [vmem:[#allocation10 + $0x28] sm:$0xff]  ;;  %vm11282_vm0 = vmor %vm4543_vm12, %vm4544_vm13 }
 0x6ed   :  { %v4603_v2 = vadd.f32 %v12847_v58, %v4579_v59  ;;  %v4506_v38 = vsel %vm11170_vm3, %v11024_v51, %v4501_v9  ;;  %v4516_v11 = vsel %vm11247_vm10, %v10892_v62, %v4512_v32  ;;  %v4550_v5 = vor.u32 1.1754944e-38, %v4549_v53  ;;  %v6151_v59 = vld [vmem:[#allocation10 + $0x20] sm:$0xff]  ;;  %4796 = vmatpush.msra.mxu1 %v4674_v49  ;;  %v11348_v61 = vld [vmem:[#allocation3 + $0x37] ss:$8 sm:$0x7] }
 0x6ee   :  { %v4604_v27 = vadd.f32 %v12853_v21, %v4580_v54  ;;  %6020 = vtanh.f32 %v4601_v43  ;;  %v4531_v51 = vsel %vm11271_vm11, %v10945_v23, %v4527_v44  ;;  %v4613_v7 = vsub.f32 1.0, %v11039_v34  ;;  %4776 = vmatpush.msra.mxu0 %v6151_v59  ;;  %v11352_v26 = vld [vmem:[#allocation3 + $0x67] ss:$8 sm:$0x7] }
 0x6ef   :  { %v4614_v14 = vsub.f32 1.0, %v11043_v29  ;;  %6022 = vtanh.f32 %v4602_v33  ;;  %v6013_v4 = vpop.eup %6012  ;;  %v4546_v23 = vsel %vm11282_vm0, %v10978_v10, %v4542_v3  ;;  %v4615_v12 = vsub.f32 1.0, %v11060_v40  ;;  %4797 = vmatpush.msra.mxu1 %v4671_v28 }
 0x6f0   :  { %v4616_v17 = vsub.f32 1.0, %v11166_v56  ;;  %6024 = vtanh.f32 %v4603_v2  ;;  %v6015_v1 = vpop.eup %6014  ;;  %v4521_v37 = vsel %vm11198_vm9, %v11026_v22, %v4516_v11  ;;  %v4629_v39 = vmul.f32 %v11039_v34, %v12858_v63  ;;  %4777 = vmatpush.msra.mxu0 %v4670_v42  ;;  %v11346_v11 = vld [vmem:[#allocation3 + $0x1f] ss:$8 sm:$0x7] }
 0x6f1   :  { %6026 = vtanh.f32 %v4604_v27  ;;  %v4621_v35 = vmul.f32 %v6013_v4, %v4613_v7  ;;  %v6017_v10 = vpop.eup %6016  ;;  %v4536_v20 = vsel %vm11219_vm6, %v4535_v31, %v4531_v51  ;;  %v4617_v8 = vsub.f32 1.0, %v4506_v38 }
 0x6f2   :  { %v4630_v53 = vmul.f32 %v11043_v29, %v12859_v6  ;;  %v4622_v54 = vmul.f32 %v6015_v1, %v4614_v14  ;;  %v6019_v0 = vpop.eup %6018  ;;  %v4551_v22 = vsel %vm11255_vm8, %v4550_v5, %v4546_v23  ;;  %v4631_v34 = vmul.f32 %v11060_v40, %v12860_v50  ;;  %v11350_v5 = vld [vmem:[#allocation3 + $0x4f] ss:$8 sm:$0x7] }
 0x6f3   :  { %v4623_v45 = vmul.f32 %v6017_v10, %v4615_v12  ;;  %v11306_v36 = vadd.f32 %v4629_v39, %v4621_v35  ;;  %v4618_v47 = vsub.f32 1.0, %v4521_v37  ;;  %v4632_v48 = vmul.f32 %v11166_v56, %v12861_v13  ;;  %v11361_v6 = vld [vmem:[#allocation3 + $0x97] ss:$8 sm:$0x7] }
 0x6f4   :  { %v6021_v18 = vpop.eup %6020  ;;  %v4624_v9 = vmul.f32 %v6019_v0, %v4616_v17  ;;  %v11310_v29 = vadd.f32 %v4630_v53, %v4622_v54  ;;  %v4619_v16 = vsub.f32 1.0, %v4536_v20  ;;  %v4633_v43 = vmul.f32 %v4506_v38, %v12862_v24  ;;  %v11344_v38 = vld [vmem:[#allocation3 + $0x7] ss:$8 sm:$0x7] }
 0x6f5   :  { %v6023_v32 = vpop.eup %6022  ;;  %v4625_v60 = vmul.f32 %v6021_v18, %v4617_v8  ;;  %v11313_v55 = vadd.f32 %v4631_v34, %v4623_v45  ;;  %4645 = vst [vmem:[#allocation12 + $0x6] sm:$0x1] %v11306_v36  ;;  %v4620_v44 = vsub.f32 1.0, %v4551_v22  ;;  %v4634_v41 = vmul.f32 %v4521_v37, %v12863_v15 }
 0x6f6   :  { %v6025_v40 = vpop.eup %6024  ;;  %v4626_v33 = vmul.f32 %v6023_v32, %v4618_v47  ;;  %v11317_v3 = vadd.f32 %v4632_v48, %v4624_v9  ;;  %4646 = vst [vmem:[#allocation12 + $0xe] sm:$0x1] %v11310_v29  ;;  %v4635_v58 = vmul.f32 %v4536_v20, %v12864_v30  ;;  %v4636_v25 = vmul.f32 %v4551_v22, %v12866_v52  ;;  %v11359_v20 = vld [vmem:[#allocation3 + $0x7f] ss:$8 sm:$0x7] }
 0x6f7   :  { %v6027_v56 = vpop.eup %6026  ;;  %v4627_v2 = vmul.f32 %v6025_v40, %v4619_v16  ;;  %v11321_v46 = vadd.f32 %v4633_v43, %v4625_v60  ;;  %4647 = vst [vmem:[#allocation12 + $0x16] sm:$0x1] %v11313_v55  ;;  %v4985_v51 = vrot.slane %v11344_v38, 1  ;;  %v4986_v62 = vrot.slane %v11346_v11, 1 }
 0x6f8   :  { %v4628_v31 = vmul.f32 %v6027_v56, %v4620_v44  ;;  %v11325_v57 = vadd.f32 %v4634_v41, %v4626_v33  ;;  %4648 = vst [vmem:[#allocation12 + $0x1e] sm:$0x1] %v11317_v3  ;;  %v4987_v7 = vrot.slane %v11348_v61, 1  ;;  %v4988_v14 = vrot.slane %v11350_v5, 1  ;;  %v5467_v44 = vld [vmem:[%s11920_s5] ss:$0 sm:$0xff] }
 0x6f9   :  { %12865 = vst [vmem:[#allocation17_spill] sm:$0xff] %v11321_v46  ;;  %v11328_v19 = vadd.f32 %v4635_v58, %v4627_v2  ;;  %v4989_v17 = vrot.slane %v11352_v26, 1  ;;  %v4990_v22 = vrot.slane %v11359_v20, 1  ;;  %v4991_v50 = vrot.slane %v11361_v6, 1  ;;  %s6288_s5 = smov [#allocation12]  }
 0x6fa   :  { %12867 = vst [vmem:[#allocation19_spill] sm:$0xff] %v11325_v57  ;;  %v11331_v21 = vadd.f32 %v4636_v25, %v4628_v31  ;;  %v11367_v9 = vld [vmem:[#allocation3 + $0xaf] ss:$8 sm:$0x7]  ;;  %s5306_s11 = sshll.u32 %s6288_s5, 4  ;;  %s5307_s11 = int_to_ptr.vmem [resolvable:$true] %s5306_s11 }
 0x6fb   :  { %12868 = vst [vmem:[#allocation39_spill] sm:$0xff] %v11328_v19  ;;  %v4992_v15 = vrot.slane %v11367_v9, 1 }
 0x6fc   :  { %4649 = vst [vmem:[#allocation12 + $0x26] sm:$0x1] %v11321_v46 }
 0x6fd   :  { %12869 = vst [vmem:[#allocation41_spill] sm:$0xff] %v11331_v21 }
 0x6fe   :  { %4650 = vst [vmem:[#allocation12 + $0x2e] sm:$0x1] %v11325_v57 }
 0x6ff   :  { %4651 = vst [vmem:[#allocation12 + $0x36] sm:$0x1] %v11328_v19 }
 0x700   :  { %4652 = vst [vmem:[#allocation12 + $0x3e] sm:$0x1] %v11331_v21 }
 0x701   :  { %4725 = vst [vmem:[#allocation1] ss:$9 sm:$0xff] %v11306_v36 }
 0x702   :  { %4727 = vst [vmem:[#allocation1 + $0x1] ss:$9 sm:$0xff] %v11310_v29 }
 0x703   :  { %4729 = vst [vmem:[#allocation1 + $0x2] ss:$9 sm:$0xff] %v11313_v55 }
 0x704   :  { %4731 = vst [vmem:[#allocation1 + $0x3] ss:$9 sm:$0xff] %v11317_v3 }
 0x705   :  { %4733 = vst [vmem:[#allocation1 + $0x4] ss:$9 sm:$0xff] %v11321_v46 }
 0x706   :  { %4735 = vst [vmem:[#allocation1 + $0x5] ss:$9 sm:$0xff] %v11325_v57 }
 0x707   :  { %4737 = vst [vmem:[#allocation1 + $0x6] ss:$9 sm:$0xff] %v11328_v19 }
 0x708   :  { %4739 = vst [vmem:[#allocation1 + $0x7] ss:$9 sm:$0xff] %v11331_v21 }
 0x709   :  { %12870 = vst [vmem:[#allocation40_spill] sm:$0xff] %v11367_v9 }
 0x70f   :  { %v4740_v27 = vld [vmem:[#allocation1] sm:$0xff] }
 0x710   :  { %4758 = vmatmul.f32.vlgmr.msra.gmra.mxu3 %v4740_v27  ;;  %4778 = vmatmul.f32.vlgmr.msra.gmra.mxu0 %v4740_v27 }
 0x711   :  { %4798 = vmatmul.f32.vlgmr.msra.gmra.mxu1 %v4740_v27 }
 0x78d   :  { %v4779_v49 = vpop.f32.mrf.mxu0 }
 0x78e   :  { %v5002_v42 = vrot.slane %v4779_v49, 1  ;;  %v5003_v4 = vrot.slane %v4779_v49, 2  ;;  %v5004_v23 = vrot.slane %v4779_v49, 3  ;;  %v5005_v12 = vrot.slane %v4779_v49, 4  ;;  %v4799_v33 = vpop.f32.mrf.mxu1 }
 0x78f   :  { %v5016_v59 = vadd.f32 %v4985_v51, %v4779_v49  ;;  %v5006_v53 = vrot.slane %v4779_v49, 5  ;;  %v5007_v0 = vrot.slane %v4779_v49, 6  ;;  %v5008_v24 = vrot.slane %v4779_v49, 7 }
 0x790   :  { %v5017_v28 = vadd.f32 %v5002_v42, %v4986_v62  ;;  %v5018_v1 = vadd.f32 %v5003_v4, %v4987_v7  ;;  %v5019_v37 = vadd.f32 %v5004_v23, %v4988_v14  ;;  %v5020_v63 = vadd.f32 %v5005_v12, %v4989_v17 }
 0x791   :  { %v5443_v39 = vmul.f32 -1.442695, %v5016_v59  ;;  %v5021_v45 = vadd.f32 %v5006_v53, %v4990_v22  ;;  %v5022_v18 = vadd.f32 %v5007_v0, %v4991_v50  ;;  %v5023_v30 = vadd.f32 %v5008_v24, %v4992_v15 }
 0x792   :  { %v5444_v35 = vmul.f32 -1.442695, %v5017_v28  ;;  %v5445_v10 = vmul.f32 -1.442695, %v5018_v1  ;;  %v5446_v8 = vmul.f32 -1.442695, %v5019_v37  ;;  %v11383_v2 = vadd.f32 %v5467_v44, %v4799_v33 }
 0x793   :  { %6028 = vpow2.f32 %v5443_v39  ;;  %v5447_v54 = vmul.f32 -1.442695, %v5020_v63  ;;  %v5448_v32 = vmul.f32 -1.442695, %v5021_v45  ;;  %v5449_v43 = vmul.f32 -1.442695, %v5022_v18  ;;  %v4759_v31 = vpop.f32.mrf.mxu3 }
 0x794   :  { %6030 = vpow2.f32 %v5444_v35  ;;  %v5450_v7 = vmul.f32 -1.442695, %v5023_v30  ;;  %v4803_v59 = vrot.slane %v4759_v31, 1  ;;  %v4804_v63 = vrot.slane %v4759_v31, 2 }
 0x795   :  { %6032 = vpow2.f32 %v5445_v10  ;;  %v4805_v39 = vrot.slane %v4759_v31, 3  ;;  %v4807_v50 = vrot.slane %v4759_v31, 5 }
 0x796   :  { %6034 = vpow2.f32 %v5446_v8 }
 0x797   :  { %6036 = vpow2.f32 %v5447_v54  ;;  %v4806_v54 = vrot.slane %v4759_v31, 4  ;;  %v11429_v44 = vadd.f32 %v4805_v39, %v11350_v5 }
 0x799   :  { %v6029_v34 = vpop.eup %6028 }
 0x79a   :  { %v11365_v47 = vadd.f32 1.0, %v6029_v34  ;;  %v6031_v13 = vpop.eup %6030  ;;  %v4808_v34 = vrot.slane %v4759_v31, 6 }
 0x79b   :  { %v6033_v48 = vpop.eup %6032  ;;  %v11369_v40 = vadd.f32 1.0, %v6031_v13  ;;  %v4809_v13 = vrot.slane %v4759_v31, 7 }
 0x79c   :  { %v6035_v16 = vpop.eup %6034  ;;  %6038 = vrcp.f32 %v11365_v47  ;;  %v11376_v41 = vadd.f32 1.0, %v6033_v48  ;;  %v11416_v48 = vadd.f32 %v4759_v31, %v11344_v38  ;;  %v5067_v15 = vand.u32 2147483648, %v11365_v47 }
 0x79d   :  { %v6037_v60 = vpop.eup %6036  ;;  %6040 = vpow2.f32 %v5448_v32  ;;  %v11378_v56 = vadd.f32 1.0, %v6035_v16  ;;  %v11419_v32 = vadd.f32 %v4803_v59, %v11346_v11  ;;  %v5082_v33 = vand.u32 2147483648, %v11369_v40 }
 0x79e   :  { %6042 = vpow2.f32 %v5449_v43  ;;  %v11380_v58 = vadd.f32 1.0, %v6037_v60  ;;  %v11426_v60 = vadd.f32 %v4804_v63, %v11348_v61  ;;  %v11436_v31 = vadd.f32 %v4806_v54, %v11352_v26 }
 0x79f   :  { %6044 = vrcp.f32 %v11369_v40  ;;  %v11445_v59 = vadd.f32 %v4808_v34, %v11361_v6  ;;  %vm5061_vm7 = vweird.f32 %v11365_v47  ;;  %v11453_v39 = vadd.f32 %v4809_v13, %v11367_v9 }
 0x7a0   :  { %6046 = vrcp.f32 %v11376_v41  ;;  %v5065_v18 = vand.u32 2147483647, %v11365_v47  ;;  %v5097_v42 = vand.u32 2147483648, %v11376_v41  ;;  %v5068_v34 = vor.u32 1.1754944e-38, %v5067_v15 }
 0x7a1   :  { %6048 = vrcp.f32 %v11378_v56  ;;  %v11459_v53 = vor.u32 1.1754944e-38, %v5082_v33  ;;  %vm5076_vm15 = vweird.f32 %v11369_v40  ;;  %v5095_v62 = vand.u32 2147483647, %v11376_v41 }
 0x7a2   :  { %v11388_v27 = vpop.eup %6038  ;;  %6050 = vrcp.f32 %v11380_v58  ;;  %v5112_v51 = vand.u32 2147483648, %v11378_v56  ;;  %vm5091_vm3 = vweird.f32 %v11376_v41  ;;  %vm11474_vm4 = vcmp.eq.f32.partialorder %v5065_v18, 8.507059e+37 }
 0x7a3   :  { %v6041_v4 = vpop.eup %6040  ;;  %v5057_v1 = vmul.f32 %v11388_v27, %v11365_v47  ;;  %6052 = vpow2.f32 %v5450_v7  ;;  %vm5062_vm2 = vweird.f32 %v11388_v27  ;;  %v11479_v49 = vor.u32 1.1754944e-38, %v5097_v42 }
 0x7a4   :  { %v6043_v28 = vpop.eup %6042  ;;  %v11410_v22 = vadd.f32 1.0, %v6041_v4  ;;  %v11442_v4 = vadd.f32 %v4807_v50, %v11359_v20  ;;  %vm5106_vm12 = vweird.f32 %v11378_v56  ;;  %vm5121_vm9 = vweird.f32 %v11380_v58  ;;  %vm11494_vm14 = vmor %vm5061_vm7, %vm5062_vm2 }
 0x7a5   :  { %v11403_v35 = vpop.eup %6044  ;;  %v5058_v24 = vsub.f32 1.0, %v5057_v1  ;;  %v11447_v1 = vadd.f32 1.0, %v6043_v28  ;;  %v5080_v28 = vand.u32 2147483647, %v11369_v40  ;;  %v5113_v42 = vor.u32 1.1754944e-38, %v5112_v51 }
 0x7a6   :  { %v11408_v0 = vpop.eup %6046  ;;  %v5072_v43 = vmul.f32 %v11403_v35, %v11369_v40  ;;  %6054 = vrcp.f32 %v11410_v22  ;;  %vm5077_vm5 = vweird.f32 %v11403_v35  ;;  %vm11507_vm10 = vcmp.eq.f32.partialorder %v5095_v62, 8.507059e+37 }
 0x7a7   :  { %v11412_v45 = vpop.eup %6048  ;;  %v5087_v30 = vmul.f32 %v11408_v0, %v11376_v41  ;;  %v5059_v23 = vmul.f32 %v11388_v27, %v5058_v24  ;;  %v5127_v24 = vand.u32 2147483648, %v11380_v58  ;;  %6056 = vrcp.f32 %v11447_v1  ;;  %vm11534_vm7 = vmor %vm5076_vm15, %vm5077_vm5 }
 0x7a8   :  { %v11421_v16 = vpop.eup %6050  ;;  %v5102_v7 = vmul.f32 %v11412_v45, %v11378_v56  ;;  %v5073_v50 = vsub.f32 1.0, %v5072_v43  ;;  %v5110_v43 = vand.u32 2147483647, %v11378_v56  ;;  %vm11486_vm1 = vcmp.eq.f32.partialorder %v5080_v28, 8.507059e+37 }
 0x7a9   :  { %v5117_v63 = vmul.f32 %v11421_v16, %v11380_v58  ;;  %v6053_v54 = vpop.eup %6052  ;;  %v5088_v14 = vsub.f32 1.0, %v5087_v30  ;;  %v5060_v30 = vadd.f32 %v11388_v27, %v5059_v23  ;;  %v5125_v23 = vand.u32 2147483647, %v11380_v58 }
 0x7aa   :  { %v5103_v13 = vsub.f32 1.0, %v5102_v7  ;;  %v11465_v8 = vadd.f32 1.0, %v6053_v54  ;;  %v5074_v54 = vmul.f32 %v11403_v35, %v5073_v50  ;;  %vm5092_vm6 = vweird.f32 %v11408_v0 }
 0x7ab   :  { %v5118_v15 = vsub.f32 1.0, %v5117_v63  ;;  %v5089_v63 = vmul.f32 %v11408_v0, %v5088_v14  ;;  %v5128_v50 = vor.u32 1.1754944e-38, %v5127_v24  ;;  %vm5107_vm13 = vweird.f32 %v11412_v45  ;;  %vm11547_vm2 = vmor %vm5091_vm3, %vm5092_vm6 }
 0x7ac   :  { %v11470_v33 = vpop.eup %6054  ;;  %v5104_v18 = vmul.f32 %v11412_v45, %v5103_v13  ;;  %v5064_v51 = vsel %vm11494_vm14, %v11388_v27, %v5060_v30  ;;  %v5075_v13 = vadd.f32 %v11403_v35, %v5074_v54  ;;  %vm11511_vm8 = vcmp.eq.f32.partialorder %v5110_v43, 8.507059e+37  ;;  %vm11565_vm15 = vmor %vm5106_vm12, %vm5107_vm13 }
 0x7ad   :  { %v5119_v14 = vmul.f32 %v11421_v16, %v5118_v15  ;;  %v5132_v28 = vmul.f32 %v11470_v33, %v11410_v22  ;;  %vm5122_vm11 = vweird.f32 %v11421_v16  ;;  %v5435_v15 = vmul.f32 -1.442695, %v11416_v48  ;;  %v11517_v37 = vpop.eup %6056 }
 0x7ae   :  { %v5090_v17 = vadd.f32 %v11408_v0, %v5089_v63  ;;  %vm11520_vm0 = vcmp.eq.f32.partialorder %v5125_v23, 8.507059e+37  ;;  %6058 = vrcp.f32 %v11465_v8  ;;  %v5436_v27 = vmul.f32 -1.442695, %v11419_v32 }
 0x7af   :  { %v5437_v62 = vmul.f32 -1.442695, %v11426_v60  ;;  %v5105_v43 = vadd.f32 %v11412_v45, %v5104_v18  ;;  %6060 = vpow2.f32 %v5435_v15  ;;  %v5438_v30 = vmul.f32 -1.442695, %v11429_v44 }
 0x7b0   :  { %v5439_v48 = vmul.f32 -1.442695, %v11436_v31  ;;  %v5120_v63 = vadd.f32 %v11421_v16, %v5119_v14  ;;  %v5133_v32 = vsub.f32 1.0, %v5132_v28  ;;  %6062 = vpow2.f32 %v5436_v27 }
 0x7b1   :  { %v5440_v60 = vmul.f32 -1.442695, %v11442_v4  ;;  %v5079_v44 = vsel %vm11534_vm7, %v11403_v35, %v5075_v13  ;;  %v5142_v31 = vand.u32 2147483648, %v11410_v22  ;;  %v5147_v23 = vmul.f32 %v11517_v37, %v11447_v1 }
 0x7b2   :  { %6064 = vpow2.f32 %v5437_v62  ;;  %v11556_v4 = vsel %vm11474_vm4, %v5068_v34, %v5064_v51  ;;  %v5094_v35 = vsel %vm11547_vm2, %v11408_v0, %v5090_v17  ;;  %vm5136_vm3 = vweird.f32 %v11410_v22  ;;  %vm11578_vm4 = vmor %vm5121_vm9, %vm5122_vm11 }
 0x7b3   :  { %6066 = vpow2.f32 %v5438_v30  ;;  %v5441_v18 = vmul.f32 -1.442695, %v11445_v59  ;;  %v5109_v34 = vsel %vm11565_vm15, %v11412_v45, %v5105_v43  ;;  %v5157_v56 = vand.u32 2147483648, %v11447_v1 }
 0x7b4   :  { %6068 = vpow2.f32 %v5439_v48  ;;  %v5442_v0 = vmul.f32 -1.442695, %v11453_v39  ;;  %v11584_v7 = vpop.eup %6058  ;;  %v11589_v59 = vsel %vm11486_vm1, %v11459_v53, %v5079_v44  ;;  %v5124_v58 = vsel %vm11578_vm4, %v11421_v16, %v5120_v63 }
 0x7b5   :  { %v5134_v45 = vmul.f32 %v11470_v33, %v5133_v32  ;;  %6070 = vpow2.f32 %v5440_v60  ;;  %v6061_v14 = vpop.eup %6060  ;;  %vm5137_vm12 = vweird.f32 %v11470_v33  ;;  %v11596_v28 = vor.u32 1.1754944e-38, %v5142_v31 }
 0x7b6   :  { %v5148_v39 = vsub.f32 1.0, %v5147_v23  ;;  %v6063_v13 = vpop.eup %6062  ;;  %v11602_v25 = vsel %vm11507_vm10, %v11479_v49, %v5094_v35  ;;  %v11606_v53 = vsel %vm11511_vm8, %v5113_v42, %v5109_v34  ;;  %6072 = vpow2.f32 %v5441_v18  ;;  %vm11642_vm5 = vmor %vm5136_vm3, %vm5137_vm12 }
 0x7b7   :  { %v11608_v16 = vadd.f32 1.0, %v6061_v14  ;;  %v11612_v27 = vsel %vm11520_vm0, %v5128_v50, %v5124_v58  ;;  %v11614_v62 = vor.u32 1.1754944e-38, %v5157_v56  ;;  %6074 = vpow2.f32 %v5442_v0 }
 0x7b8   :  { %v6065_v15 = vpop.eup %6064  ;;  %12891 = vst [vmem:[#allocation45_spill] sm:$0xff] %v11612_v27  ;;  %v11616_v43 = vadd.f32 1.0, %v6063_v13  ;;  %v11619_v49 = vadd.f32 %v11470_v33, %v5134_v45  ;;  %v5149_v52 = vmul.f32 %v11517_v37, %v5148_v39  ;;  %v11628_v50 = vmul.f32 %v11584_v7, %v11465_v8 }
 0x7b9   :  { %v6067_v47 = vpop.eup %6066  ;;  %v11622_v24 = vadd.f32 1.0, %v6065_v15  ;;  %6076 = vrcp.f32 %v11608_v16  ;;  %v4868_v35 = vand.u32 2147483648, %v11608_v16  ;;  %v11657_v17 = vmul.f32 %v11556_v4, %v11306_v36 }
 0x7ba   :  { %v6069_v30 = vpop.eup %6068  ;;  %v11630_v48 = vadd.f32 1.0, %v6067_v47  ;;  %6078 = vrcp.f32 %v11616_v43  ;;  %v4883_v56 = vand.u32 2147483648, %v11616_v43  ;;  %v11661_v58 = vadd.f32 %v11517_v37, %v5149_v52 }
 0x7bb   :  { %v6071_v54 = vpop.eup %6070  ;;  %v11636_v44 = vadd.f32 1.0, %v6069_v30  ;;  %6080 = vrcp.f32 %v11622_v24  ;;  %vm4862_vm9 = vweird.f32 %v11608_v16  ;;  %v4866_v13 = vand.u32 2147483647, %v11608_v16 }
 0x7bc   :  { %v6073_v41 = vpop.eup %6072  ;;  %v11664_v14 = vadd.f32 1.0, %v6071_v54  ;;  %6082 = vrcp.f32 %v11630_v48  ;;  %v4898_v36 = vand.u32 2147483648, %v11622_v24  ;;  %v4869_v52 = vor.u32 1.1754944e-38, %v4868_v35 }
 0x7bd   :  { %v6075_v0 = vpop.eup %6074  ;;  %6084 = vrcp.f32 %v11636_v44  ;;  %v11675_v47 = vadd.f32 1.0, %v6073_v41  ;;  %vm4877_vm1 = vweird.f32 %v11616_v43  ;;  %v4881_v54 = vand.u32 2147483647, %v11616_v43 }
 0x7be   :  { %v4884_v63 = vor.u32 1.1754944e-38, %v4883_v56  ;;  %vm4892_vm6 = vweird.f32 %v11622_v24  ;;  %v4896_v34 = vand.u32 2147483647, %v11622_v24  ;;  %v4911_v23 = vand.u32 2147483647, %v11630_v48 }
 0x7bf   :  { %v11667_v39 = vpop.eup %6076  ;;  %v11688_v31 = vadd.f32 1.0, %v6075_v0  ;;  %v4913_v35 = vand.u32 2147483648, %v11630_v48  ;;  %6086 = vrcp.f32 %v11664_v14  ;;  %vm11693_vm13 = vcmp.eq.f32.partialorder %v4866_v13, 8.507059e+37 }
 0x7c0   :  { %v11673_v15 = vpop.eup %6078  ;;  %v4858_v30 = vmul.f32 %v11667_v39, %v11608_v16  ;;  %vm4863_vm14 = vweird.f32 %v11667_v39  ;;  %v4899_v18 = vor.u32 1.1754944e-38, %v4898_v36  ;;  %vm4907_vm10 = vweird.f32 %v11630_v48 }
 0x7c1   :  { %v4873_v42 = vmul.f32 %v11673_v15, %v11616_v43  ;;  %v11686_v41 = vpop.eup %6080  ;;  %vm4878_vm8 = vweird.f32 %v11673_v15  ;;  %vm11702_vm11 = vcmp.eq.f32.partialorder %v4881_v54, 8.507059e+37  ;;  %vm4922_vm0 = vweird.f32 %v11636_v44  ;;  %vm11728_vm3 = vmor %vm4862_vm9, %vm4863_vm14 }
 0x7c2   :  { %v4859_v60 = vsub.f32 1.0, %v4858_v30  ;;  %v4888_v45 = vmul.f32 %v11686_v41, %v11622_v24  ;;  %v6083_v0 = vpop.eup %6082  ;;  %v4926_v13 = vand.u32 2147483647, %v11636_v44  ;;  %vm11709_vm7 = vcmp.eq.f32.partialorder %v4896_v34, 8.507059e+37  ;;  %vm11745_vm9 = vmor %vm4877_vm1, %vm4878_vm8 }
 0x7c3   :  { %v4874_v56 = vsub.f32 1.0, %v4873_v42  ;;  %v6085_v42 = vpop.eup %6084  ;;  %vm11714_vm2 = vcmp.eq.f32.partialorder %v4911_v23, 8.507059e+37  ;;  %v4914_v19 = vor.u32 1.1754944e-38, %v4913_v35  ;;  %v4928_v9 = vand.u32 2147483648, %v11636_v44 }
 0x7c4   :  { %v4860_v30 = vmul.f32 %v11667_v39, %v4859_v60  ;;  %v4889_v10 = vsub.f32 1.0, %v4888_v45  ;;  %v4903_v60 = vmul.f32 %v6083_v0, %v11630_v48  ;;  %v4918_v57 = vmul.f32 %v6085_v42, %v11636_v44 }
 0x7c5   :  { %v4875_v12 = vmul.f32 %v11673_v15, %v4874_v56  ;;  %vm4893_vm15 = vweird.f32 %v11686_v41  ;;  %v6087_v27 = vpop.eup %6086  ;;  %vm11732_vm4 = vcmp.eq.f32.partialorder %v4926_v13, 8.507059e+37  ;;  %6088 = vrcp.f32 %v11675_v47 }
 0x7c6   :  { %v4861_v54 = vadd.f32 %v11667_v39, %v4860_v30  ;;  %v4890_v34 = vmul.f32 %v11686_v41, %v4889_v10  ;;  %v4904_v45 = vsub.f32 1.0, %v4903_v60  ;;  %v4919_v35 = vsub.f32 1.0, %v4918_v57  ;;  %vm11755_vm12 = vmor %vm4892_vm6, %vm4893_vm15 }
 0x7c7   :  { %v4876_v56 = vadd.f32 %v11673_v15, %v4875_v12  ;;  %vm4908_vm14 = vweird.f32 %v6083_v0  ;;  %v4933_v43 = vmul.f32 %v6087_v27, %v11664_v14  ;;  %v4943_v23 = vand.u32 2147483648, %v11664_v14 }
 0x7c8   :  { %v4865_v12 = vsel %vm11728_vm3, %v11667_v39, %v4861_v54  ;;  %v4891_v57 = vadd.f32 %v11686_v41, %v4890_v34  ;;  %v4905_v16 = vmul.f32 %v6083_v0, %v4904_v45  ;;  %v4920_v60 = vmul.f32 %v6085_v42, %v4919_v35  ;;  %vm4909_vm1 = vmor %vm4907_vm10, %vm4908_vm14 }
 0x7c9   :  { %v4880_v13 = vsel %vm11745_vm9, %v11673_v15, %v4876_v56  ;;  %vm4923_vm3 = vweird.f32 %v6085_v42  ;;  %v4941_v45 = vand.u32 2147483647, %v11664_v14  ;;  %v4870_v24 = vsel %vm11693_vm13, %v4869_v52, %v4865_v12 }
 0x7ca   :  { %v4895_v54 = vsel %vm11755_vm12, %v11686_v41, %v4891_v57  ;;  %v4906_v34 = vadd.f32 %v6083_v0, %v4905_v16  ;;  %v4921_v15 = vadd.f32 %v6085_v42, %v4920_v60  ;;  %v4929_v56 = vor.u32 1.1754944e-38, %v4928_v9  ;;  %vm4924_vm6 = vmor %vm4922_vm0, %vm4923_vm3 }
 0x7cb   :  { %v4934_v35 = vsub.f32 1.0, %v4933_v43  ;;  %v4885_v10 = vsel %vm11702_vm11, %v4884_v63, %v4880_v13  ;;  %vm4938_vm8 = vweird.f32 %v6087_v27  ;;  %6090 = vrcp.f32 %v11688_v31  ;;  %v6089_v41 = vpop.eup %6088 }
 0x7cc   :  { %v4910_v46 = vsel %vm4909_vm1, %v6083_v0, %v4906_v34  ;;  %v4900_v32 = vsel %vm11709_vm7, %v4899_v18, %v4895_v54  ;;  %v4925_v52 = vsel %vm4924_vm6, %v6085_v42, %v4921_v15  ;;  %vm5152_vm13 = vweird.f32 %v11517_v37 }
 0x7cd   :  { %v4915_v48 = vsel %vm11714_vm2, %v4914_v19, %v4910_v46  ;;  %v4935_v9 = vmul.f32 %v6087_v27, %v4934_v35  ;;  %v4930_v51 = vsel %vm11732_vm4, %v4929_v56, %v4925_v52  ;;  %vm11781_vm10 = vcmp.eq.f32.partialorder %v4941_v45, 8.507059e+37 }
 0x7ce   :  { %v4944_v44 = vor.u32 1.1754944e-38, %v4943_v23  ;;  %v4948_v0 = vmul.f32 %v6089_v41, %v11675_v47  ;;  %v12912_v36 = vand.u32 2147483647, %v11410_v22  ;;  %v4956_v19 = vand.u32 2147483647, %v11675_v47 }
 0x7cf   :  { %v4936_v46 = vadd.f32 %v6087_v27, %v4935_v9  ;;  %v5196_v21 = vmul.f32 %v11383_v2, %v4870_v24  ;;  %v12915_v42 = vrot.slane %v11383_v2, 1  ;;  %vm5151_vm0 = vweird.f32 %v11447_v1 }
 0x7d0   :  { %vm11788_vm11 = vcmp.eq.f32.partialorder %v12912_v36, 8.507059e+37  ;;  %vm12916_vm7 = vweird.f32 %v11664_v14  ;;  %v4949_v12 = vsub.f32 1.0, %v4948_v0  ;;  %v4958_v22 = vand.u32 2147483648, %v11675_v47  ;;  %vm11852_vm6 = vmor %vm5151_vm0, %vm5152_vm13 }
 0x7d1   :  { %v5197_v30 = vmul.f32 %v12915_v42, %v4885_v10  ;;  %vm4939_vm2 = vmor %vm12916_vm7, %vm4938_vm8  ;;  %v12917_v57 = vrot.slane %v11383_v2, 2  ;;  %v12918_v13 = vrot.slane %v11383_v2, 3  ;;  %vm4953_vm15 = vweird.f32 %v6089_v41  ;;  %v6091_v23 = vpop.eup %6090 }
 0x7d2   :  { %v4940_v60 = vsel %vm4939_vm2, %v6087_v27, %v4936_v46  ;;  %v12919_v43 = vrot.slane %v11383_v2, 4  ;;  %v12920_v34 = vrot.slane %v11344_v38, 2  ;;  %v4950_v24 = vmul.f32 %v6089_v41, %v4949_v12 }
 0x7d3   :  { %v5198_v16 = vmul.f32 %v12917_v57, %v4900_v32  ;;  %v5199_v39 = vmul.f32 %v12918_v13, %v4915_v48  ;;  %v4945_v14 = vsel %vm11781_vm10, %v4944_v44, %v4940_v60  ;;  %v12921_v15 = vrot.slane %v11346_v11, 2 }
 0x7d4   :  { %v5200_v54 = vmul.f32 %v12919_v43, %v4930_v51  ;;  %v5220_v45 = vadd.f32 %v12920_v34, %v5196_v21  ;;  %v12922_v35 = vrot.slane %v11348_v61, 2  ;;  %vm4952_vm4 = vweird.f32 %v11675_v47 }
 0x7d5   :  { %v5221_v56 = vadd.f32 %v12921_v15, %v5197_v30  ;;  %v4963_v27 = vmul.f32 %v6091_v23, %v11688_v31  ;;  %v12923_v32 = vrot.slane %v11383_v2, 5  ;;  %v12924_v38 = vrot.slane %v11350_v5, 2  ;;  %vm4954_vm14 = vmor %vm4952_vm4, %vm4953_vm15 }
 0x7d6   :  { %v5222_v10 = vadd.f32 %v12922_v35, %v5198_v16  ;;  %v4951_v9 = vadd.f32 %v6089_v41, %v4950_v24  ;;  %vm4957_vm12 = vcmp.eq.f32.partialorder %v4956_v19, 8.507059e+37  ;;  %v12925_v51 = vrot.slane %v11352_v26, 2 }
 0x7d7   :  { %v5201_v48 = vmul.f32 %v12923_v32, %v4945_v14  ;;  %v5223_v52 = vadd.f32 %v12924_v38, %v5199_v39  ;;  %6092 = vtanh.f32 %v5220_v45  ;;  %v12926_v11 = vand.u32 2147483647, %v11447_v1 }
 0x7d8   :  { %v5224_v63 = vadd.f32 %v12925_v51, %v5200_v54  ;;  %v4959_v47 = vor.u32 1.1754944e-38, %v4958_v22  ;;  %v4964_v44 = vsub.f32 1.0, %v4963_v27  ;;  %v12929_v0 = vrot.slane %v11359_v20, 2  ;;  %v12948_v51 = vld [vmem:[#allocation19_spill] sm:$0xff] }
 0x7d9   :  { %vm11825_vm9 = vcmp.eq.f32.partialorder %v12926_v11, 8.507059e+37  ;;  %6094 = vtanh.f32 %v5221_v56  ;;  %vm5166_vm3 = vweird.f32 %v11465_v8  ;;  %v4955_v36 = vsel %vm4954_vm14, %v6089_v41, %v4951_v9 }
 0x7da   :  { %v5225_v5 = vadd.f32 %v12929_v0, %v5201_v48  ;;  %v4971_v26 = vand.u32 2147483647, %v11688_v31  ;;  %v4973_v46 = vand.u32 2147483648, %v11688_v31  ;;  %6096 = vtanh.f32 %v5222_v10 }
 0x7db   :  { %v4960_v19 = vsel %vm4957_vm12, %v4959_v47, %v4955_v36  ;;  %v4965_v21 = vmul.f32 %v6091_v23, %v4964_v44  ;;  %vm4968_vm1 = vweird.f32 %v6091_v23  ;;  %6098 = vtanh.f32 %v5223_v52 }
 0x7dc   :  { %v12930_v42 = vsel %vm11642_vm5, %v11470_v33, %v11619_v49  ;;  %v12931_v41 = vsub.f32 1.0, %v11628_v50  ;;  %v12932_v12 = vrot.slane %v11383_v2, 6  ;;  %6100 = vtanh.f32 %v5224_v63 }
 0x7dd   :  { %v5144_v20 = vsel %vm11788_vm11, %v11596_v28, %v12930_v42  ;;  %v5253_v33 = vmul.f32 %v11589_v59, %v11310_v29  ;;  %v4966_v28 = vadd.f32 %v6091_v23, %v4965_v21  ;;  %vm4967_vm5 = vweird.f32 %v11688_v31  ;;  %v6093_v49 = vpop.eup %6092 }
 0x7de   :  { %v5164_v30 = vmul.f32 %v11584_v7, %v12931_v41  ;;  %v5202_v22 = vmul.f32 %v12932_v12, %v4960_v19  ;;  %6102 = vtanh.f32 %v5225_v5  ;;  %vm5167_vm8 = vweird.f32 %v11584_v7  ;;  %vm4969_vm10 = vmor %vm4967_vm5, %vm4968_vm1 }
 0x7df   :  { %v5254_v50 = vmul.f32 %v11602_v25, %v11313_v55  ;;  %v4974_v18 = vor.u32 1.1754944e-38, %v4973_v46  ;;  %v12935_v1 = vrot.slane %v11361_v6, 2  ;;  %v6095_v16 = vpop.eup %6094  ;;  %v5154_v29 = vsel %vm11852_vm6, %v11517_v37, %v11661_v58  ;;  %vm11889_vm11 = vmor %vm5166_vm3, %vm5167_vm8 }
 0x7e0   :  { %v4970_v13 = vsel %vm4969_vm10, %v6091_v23, %v4966_v28  ;;  %vm4972_vm13 = vcmp.eq.f32.partialorder %v4971_v26, 8.507059e+37  ;;  %v12936_v31 = vsub.f32 1.0, %v11556_v4  ;;  %v6097_v60 = vpop.eup %6096  ;;  %v5165_v43 = vadd.f32 %v11584_v7, %v5164_v30 }
 0x7e1   :  { %v5226_v57 = vadd.f32 %v12935_v1, %v5202_v22  ;;  %v4975_v55 = vsel %vm4972_vm13, %v4974_v18, %v4970_v13  ;;  %v12937_v54 = vsub.f32 1.0, %v11589_v59  ;;  %v6099_v34 = vpop.eup %6098  ;;  %v5241_v45 = vsub.f32 1.0, %v5144_v20 }
 0x7e2   :  { %v5244_v39 = vmul.f32 %v6093_v49, %v12936_v31  ;;  %v12938_v14 = vrot.slane %v11383_v2, 7  ;;  %v12939_v37 = vsub.f32 1.0, %v11602_v25  ;;  %v6101_v4 = vpop.eup %6100  ;;  %v5159_v15 = vsel %vm11825_vm9, %v11614_v62, %v5154_v29  ;;  %v12943_v25 = vld [vmem:[#allocation17_spill] sm:$0xff]  ;;  %v12945_v62 = vld [vmem:[#allocation40_spill] sm:$0xff] }
 0x7e3   :  { %6104 = vtanh.f32 %v5226_v57  ;;  %v5245_v6 = vmul.f32 %v6095_v16, %v12937_v54  ;;  %v5255_v56 = vmul.f32 %v11606_v53, %v11317_v3  ;;  %v12940_v59 = vsub.f32 1.0, %v11606_v53 }
 0x7e4   :  { %v5203_v24 = vmul.f32 %v12938_v14, %v4975_v55  ;;  %v5246_v58 = vmul.f32 %v6097_v60, %v12939_v37  ;;  %v5260_v23 = vadd.f32 %v11657_v17, %v5244_v39  ;;  %v6103_v27 = vpop.eup %6102  ;;  %v12944_v17 = vld [vmem:[#allocation45_spill] sm:$0xff]  ;;  %v12946_v48 = vrot.slane %v12945_v62, 2 }
 0x7e5   :  { %v5247_v35 = vmul.f32 %v6099_v34, %v12940_v59  ;;  %v5261_v10 = vadd.f32 %v5253_v33, %v5245_v6  ;;  %v5256_v32 = vmul.f32 %v12944_v17, %v12943_v25  ;;  %v12947_v3 = vsub.f32 1.0, %v12944_v17 }
 0x7e6   :  { %v5227_v38 = vadd.f32 %v12946_v48, %v5203_v24  ;;  %v5262_v52 = vadd.f32 %v5254_v50, %v5246_v58  ;;  %5268 = vst [vmem:[#allocation12 + $0x7] sm:$0x1] %v5260_v23  ;;  %v5169_v9 = vsel %vm11889_vm11, %v11584_v7, %v5165_v43  ;;  %v5257_v63 = vmul.f32 %v5144_v20, %v12948_v51  ;;  %v12951_v7 = vld [vmem:[#allocation39_spill] sm:$0xff] }
 0x7e7   :  { %v5248_v53 = vmul.f32 %v6101_v4, %v12947_v3  ;;  %v5249_v11 = vmul.f32 %v6103_v27, %v5241_v45  ;;  %v5263_v61 = vadd.f32 %v5255_v56, %v5247_v35  ;;  %5269 = vst [vmem:[#allocation12 + $0xf] sm:$0x1] %v5261_v10  ;;  %v12949_v47 = vand.u32 2147483648, %v11465_v8 }
 0x7e8   :  { %v5242_v0 = vsub.f32 1.0, %v5159_v15  ;;  %6106 = vtanh.f32 %v5227_v38  ;;  %5270 = vst [vmem:[#allocation12 + $0x17] sm:$0x1] %v5262_v52  ;;  %v12950_v26 = vand.u32 2147483647, %v11465_v8  ;;  %v5258_v21 = vmul.f32 %v5159_v15, %v12951_v7  ;;  %v12952_v8 = vld [vmem:[#allocation41_spill] sm:$0xff] }
 0x7e9   :  { %v5173_v44 = vor.u32 1.1754944e-38, %v12949_v47  ;;  %v5264_v5 = vadd.f32 %v5256_v32, %v5248_v53  ;;  %v6105_v36 = vpop.eup %6104  ;;  %v5265_v46 = vadd.f32 %v5257_v63, %v5249_v11  ;;  %5271 = vst [vmem:[#allocation12 + $0x1f] sm:$0x1] %v5263_v61 }
 0x7ea   :  { %vm5171_vm0 = vcmp.eq.f32.partialorder %v12950_v26, 8.507059e+37  ;;  %v5250_v42 = vmul.f32 %v6105_v36, %v5242_v0  ;;  %5284 = vst [vmem:[#allocation1] ss:$9 sm:$0xff] %v5260_v23 }
 0x7eb   :  { %v5174_v19 = vsel %vm5171_vm0, %v5173_v44, %v5169_v9  ;;  %5272 = vst [vmem:[#allocation12 + $0x27] sm:$0x1] %v5264_v5 }
 0x7ec   :  { %5273 = vst [vmem:[#allocation12 + $0x2f] sm:$0x1] %v5265_v46  ;;  %v5266_v20 = vadd.f32 %v5258_v21, %v5250_v42  ;;  %v5243_v41 = vsub.f32 1.0, %v5174_v19  ;;  %v5259_v12 = vmul.f32 %v5174_v19, %v12952_v8 }
 0x7ed   :  { %5286 = vst [vmem:[#allocation1 + $0x1] ss:$9 sm:$0xff] %v5261_v10 }
 0x7ee   :  { %v6107_v30 = vpop.eup %6106  ;;  %5274 = vst [vmem:[#allocation12 + $0x37] sm:$0x1] %v5266_v20 }
 0x7ef   :  { %v5251_v22 = vmul.f32 %v6107_v30, %v5243_v41  ;;  %5288 = vst [vmem:[#allocation1 + $0x2] ss:$9 sm:$0xff] %v5262_v52 }
 0x7f0   :  { %5290 = vst [vmem:[#allocation1 + $0x3] ss:$9 sm:$0xff] %v5263_v61 }
 0x7f1   :  { %v5267_v40 = vadd.f32 %v5259_v12, %v5251_v22  ;;  %5292 = vst [vmem:[#allocation1 + $0x4] ss:$9 sm:$0xff] %v5264_v5 }
 0x7f2   :  { %5294 = vst [vmem:[#allocation1 + $0x5] ss:$9 sm:$0xff] %v5265_v46 }
 0x7f3   :  { %5275 = vst [vmem:[#allocation12 + $0x3f] sm:$0x1] %v5267_v40 }
 0x7f4   :  { %5296 = vst [vmem:[#allocation1 + $0x6] ss:$9 sm:$0xff] %v5266_v20  ;;  %5314 = dma.vmem_to_hbm [thread:$0]  %s5307_s11, 1024, %s5309_s13, [#allocation6], %s6282_s7, %s6282_s7, %s6283_s8  }
 0x7f5   :  { %5298 = vst [vmem:[#allocation1 + $0x7] ss:$9 sm:$0xff] %v5267_v40 }
 0x7f6   :  { %6278 = dma.done.wait [#allocation6], 1024  }
 0x7f7   :  { %6279 = vsyncadd [#allocation6], 4294966272 }
 0x7f8   :  { %5319 = vsyncpa [#allocation5], 1 }
 0x7f9   :  { %5320 = vsyncpa [#allocation8], 1 }
 0x7fa   :  { %5321 = vsyncpa [#allocation11], 1 }
 0x7fb   :  { %5322 = vsyncpa [#allocation6], 1 }

</bundles_post_ra>
